<compile_context>
chip_gen: v7x
topology: tpu7x:2x2x1
jax: 0.10.0
libtpu: 0.0.40
codegen_flags: <defaults>
</compile_context>

<pallas_src>
import functools

import numpy as np
import jax
import jax.numpy as jnp
from jax.experimental import pallas as pl
from jax.experimental.pallas import tpu as pltpu

_BN_EPS = 1e-5
_BF16 = jnp.bfloat16
_F32 = jnp.float32


# ------------------------- constant matrix builders ------------------------ #
def _conv_tap_selection(batch, hi, wi, k, stride, pad):
    """0/1 row-selection matrices for a kxk conv, stacked tap-major and
    block-diagonal over batch: rows (t, b, ho, wo), cols (b, h, w)."""
    ho = (hi + 2 * pad - k) // stride + 1
    wo = (wi + 2 * pad - k) // stride + 1
    m_out, m_in = batch * ho * wo, batch * hi * wi
    sel = np.zeros((k * k * m_out, m_in), np.float32)
    for i in range(k):
        for j in range(k):
            t = i * k + j
            for b in range(batch):
                for oh in range(ho):
                    h = oh * stride + i - pad
                    if h < 0 or h >= hi:
                        continue
                    for ow in range(wo):
                        w = ow * stride + j - pad
                        if w < 0 or w >= wi:
                            continue
                        sel[t * m_out + b * ho * wo + oh * wo + ow,
                            b * hi * wi + h * wi + w] = 1.0
    return sel, ho, wo


def _fc_row_selection(batch):
    """Reorders the (B*16, 128) final feature rows to (spatial r, batch)."""
    sel = np.zeros((16 * batch, batch * 16), np.float32)
    for r in range(16):
        for b in range(batch):
            sel[r * batch + b, b * 16 + r] = 1.0
    return sel


def _fold_pool_into_fc(fc_w):
    """AdaptiveAvgPool2d((2,2)) on a 4x4 map folded into Linear(512,2):
    W_eff[r*128 + c, :] = 0.25 * fc_w[c*4 + pooled(r), :] with r = h*4 + w."""
    idx = np.zeros((16 * 128,), np.int32)
    for r in range(16):
        h, w = r // 4, r % 4
        p = (h // 2) * 2 + (w // 2)
        for c in range(128):
            idx[r * 128 + c] = c * 4 + p
    return 0.25 * fc_w[idx, :]


def _im2col(x_nhwc, k):
    """stride-1, no-pad im2col; patch column order (kh, kw, cin)."""
    b, h, w, c = x_nhwc.shape
    ho, wo = h - k + 1, w - k + 1
    cols = [x_nhwc[:, i:i + ho, j:j + wo, :] for i in range(k) for j in range(k)]
    return jnp.concatenate(cols, axis=-1).reshape(b * ho * wo, k * k * c)


# ------------------------------ Pallas kernel ------------------------------ #
def _mycnn_kernel(p1_ref, w_b1_ref, aux_b1_ref,
                  t1_b2_ref, s2_b2_ref, w1_b2_ref, w2_b2_ref, w3_b2_ref, aux_b2_ref,
                  t1_b3_ref, s2_b3_ref, w1_b3_ref, w2_b3_ref, w3_b3_ref, aux_b3_ref,
                  gsel_ref, w_eff_ref, fc_b_ref,
                  out_ref, *, batch):
    def mm(a, b):  # bf16 MXU matmul with f32 accumulation
        return jnp.dot(a.astype(_BF16), b.astype(_BF16),
                       preferred_element_type=_F32)

    def bn(z, gamma, beta, residual=None, relu=True):
        # Train-mode BatchNorm2d over (N, H, W): rows of z are exactly those
        # positions.  Centred values are reused for var and the normalise
        # (conv bias before BN was dropped -- it cancels here exactly).
        inv_m = 1.0 / z.shape[0]
        mean = jnp.sum(z, axis=0, keepdims=True) * inv_m
        zc = z - mean
        var = jnp.sum(zc * zc, axis=0, keepdims=True) * inv_m
        y = zc * (gamma * jax.lax.rsqrt(var + _BN_EPS)) + beta
        if residual is not None:
            y = y + residual
        if relu:
            y = jnp.maximum(y, 0.0)
        return y

    def tap_conv(x_bf, sel_ref, w_ref, cin, cout, m_out, want_center=False):
        # 3x3 conv = 9 x (0/1 row-selection matmul + per-tap channel matmul).
        acc = jnp.zeros((m_out, cout), _F32)
        center = None
        for t in range(9):
            sel = mm(sel_ref[t * m_out:(t + 1) * m_out, :], x_bf)  # (m_out, cin)
            if want_center and t == 4:
                center = sel                                       # = stride-2 subsample
            acc = acc + mm(sel, w_ref[t * cin:(t + 1) * cin, :])
        return acc, center

    # ---- b1: Conv2d(3, 32, k=7) + BN + ReLU (im2col patches from wrapper) --
    z = mm(p1_ref[...], w_b1_ref[...])                              # (B*225, 32)
    x1 = bn(z, aux_b1_ref[0:1, :], aux_b1_ref[1:2, :])

    # ---- Residual blocks (everything stays on-chip) -------------------------
    def residual(x, t1_ref, s2_ref, w1_ref, w2_ref, w3_ref, aux_ref,
                 cin, cout, m_out):
        x_bf = x.astype(_BF16)
        # conv1: 3x3 stride-2 pad-1 ; skip conv3 (1x1 stride-2) reuses the
        # centre tap's row selection.
        z1, center = tap_conv(x_bf, t1_ref, w1_ref, cin, cout, m_out,
                              want_center=True)
        y1 = bn(z1, aux_ref[0:1, :], aux_ref[1:2, :])
        skip = mm(center, w3_ref[...]) + aux_ref[4:5, :]            # conv3 bias kept
        # conv2: 3x3 stride-1 pad-1, then BN + residual add + ReLU.
        z2, _ = tap_conv(y1.astype(_BF16), s2_ref, w2_ref, cout, cout, m_out)
        return bn(z2, aux_ref[2:3, :], aux_ref[3:4, :], residual=skip)

    x2 = residual(x1, t1_b2_ref, s2_b2_ref, w1_b2_ref, w2_b2_ref, w3_b2_ref,
                  aux_b2_ref, 32, 64, batch * 64)                   # (B*64, 64)
    x3 = residual(x2, t1_b3_ref, s2_b3_ref, w1_b3_ref, w2_b3_ref, w3_b3_ref,
                  aux_b3_ref, 64, 128, batch * 16)                  # (B*16, 128)

    # ---- AdaptiveAvgPool2d((2,2)) folded into Linear(512, 2) ----------------
    yP = mm(gsel_ref[...], x3.astype(_BF16)).astype(_BF16)          # rows (r, b)
    logits = fc_b_ref[...] + jnp.zeros((batch, 2), _F32)
    for r in range(16):
        logits = logits + mm(yP[r * batch:(r + 1) * batch, :],
                             w_eff_ref[r * 128:(r + 1) * 128, :])
    out_ref[...] = logits


# ------------------------------ params + packing --------------------------- #
def init_params(key):
    ks = jax.random.split(key, 16)

    def conv_w(k_, kk, cin, cout):
        return jax.random.normal(k_, (kk, kk, cin, cout), _F32) / np.sqrt(kk * kk * cin)

    def bn_p(kg, c):
        g_, b_ = jax.random.split(kg)
        return (1.0 + 0.1 * jax.random.normal(g_, (c,), _F32),
                0.1 * jax.random.normal(b_, (c,), _F32))

    p = {}
    # b1: Conv2d(3,32,k=7)+BN+ReLU   (conv bias omitted: cancelled by BN)
    p['b1_w'] = conv_w(ks[0], 7, 3, 32)
    p['b1_g'], p['b1_be'] = bn_p(ks[1], 32)
    # b2: Residual(32, 64, stride 2)
    p['b2_w1'] = conv_w(ks[2], 3, 32, 64)
    p['b2_g1'], p['b2_be1'] = bn_p(ks[3], 64)
    p['b2_w2'] = conv_w(ks[4], 3, 64, 64)
    p['b2_g2'], p['b2_be2'] = bn_p(ks[5], 64)
    p['b2_w3'] = conv_w(ks[6], 1, 32, 64)
    p['b2_b3'] = 0.01 * jax.random.normal(ks[7], (64,), _F32)       # skip conv bias (no BN)
    # b3: Residual(64, 128, stride 2)
    p['b3_w1'] = conv_w(ks[8], 3, 64, 128)
    p['b3_g1'], p['b3_be1'] = bn_p(ks[9], 128)
    p['b3_w2'] = conv_w(ks[10], 3, 128, 128)
    p['b3_g2'], p['b3_be2'] = bn_p(ks[11], 128)
    p['b3_w3'] = conv_w(ks[12], 1, 64, 128)
    p['b3_b3'] = 0.01 * jax.random.normal(ks[13], (128,), _F32)
    # classifier Linear(512, 2)
    p['fc_w'] = jax.random.normal(ks[14], (512, 2), _F32) / np.sqrt(512.0)
    p['fc_b'] = 0.01 * jax.random.normal(ks[15], (2,), _F32)
    return p


def pack_params(params, batch):
    """Pack weights into the kernel's tap-stacked bf16 layout and build the
    constant selection matrices (done once, outside jit)."""
    def taps(w):                       # (k,k,cin,cout) -> (k*k*cin, cout)
        kk, _, cin, cout = w.shape
        return w.reshape(kk * kk * cin, cout).astype(_BF16)

    pk = {'b1_w': taps(params['b1_w']),
          'b1_aux': jnp.stack([params['b1_g'], params['b1_be']]).astype(_F32)}

    for blk, hi, cin, cout in (('b2', 15, 32, 64), ('b3', 8, 64, 128)):
        t1, ho, _ = _conv_tap_selection(batch, hi, hi, 3, 2, 1)     # conv1 (stride 2)
        s2, _, _ = _conv_tap_selection(batch, ho, ho, 3, 1, 1)      # conv2 (stride 1)
        pk[blk + '_t1'] = jnp.asarray(t1, _BF16)
        pk[blk + '_s2'] = jnp.asarray(s2, _BF16)
        pk[blk + '_w1'] = taps(params[blk + '_w1'])
        pk[blk + '_w2'] = taps(params[blk + '_w2'])
        pk[blk + '_w3'] = params[blk + '_w3'].reshape(cin, cout).astype(_BF16)
        pk[blk + '_aux'] = jnp.stack(
            [params[blk + '_g1'], params[blk + '_be1'],
             params[blk + '_g2'], params[blk + '_be2'],
             params[blk + '_b3']]).astype(_F32)                     # (5, C)

    pk['gsel'] = jnp.asarray(_fc_row_selection(batch), _BF16)       # (16B, 16B)
    pk['w_eff'] = jnp.asarray(_fold_pool_into_fc(np.asarray(params['fc_w'])), _BF16)
    pk['fc_b'] = params['fc_b'].reshape(1, 2).astype(_F32)
    return pk


# --------------------------------- forward --------------------------------- #
def my_cnn_forward(x_nchw, packed):
    batch = x_nchw.shape[0]
    # Crop + NCHW->NHWC + b1 7x7 im2col (layout plumbing kept in XLA; all the
    # compute is one Pallas kernel).
    x = jnp.transpose(x_nchw[:, :, 10:31, 10:31], (0, 2, 3, 1))     # (B,21,21,3)
    p1 = _im2col(x, 7).astype(_BF16)                                # (B*225, 147)

    inputs = [p1,
              packed['b1_w'], packed['b1_aux'],
              packed['b2_t1'], packed['b2_s2'], packed['b2_w1'],
              packed['b2_w2'], packed['b2_w3'], packed['b2_aux'],
              packed['b3_t1'], packed['b3_s2'], packed['b3_w1'],
              packed['b3_w2'], packed['b3_w3'], packed['b3_aux'],
              packed['gsel'], packed['w_eff'], packed['fc_b']]

    kernel = functools.partial(_mycnn_kernel, batch=batch)
    return pl.pallas_call(
        kernel,
        out_shape=jax.ShapeDtypeStruct((batch, 2), _F32),
        in_specs=[pl.BlockSpec(memory_space=pltpu.MemorySpace.VMEM)] * len(inputs),
        out_specs=pl.BlockSpec(memory_space=pltpu.MemorySpace.VMEM),
    )(*inputs)


if __name__ == "__main__":
    key = jax.random.PRNGKey(0)
    kx, kp = jax.random.split(key)
    B = 2
    # Any spatial size >= 31 works for the [10:31, 10:31] crop; use 32x32.
    x = jax.random.normal(kx, (B, 3, 32, 32), _F32)
    params = init_params(kp)
    packed = pack_params(params, B)

    fwd = jax.jit(my_cnn_forward)
    logits = jax.block_until_ready(fwd(x, packed))
    assert logits.shape == (B, 2) and logits.dtype == _F32
    print("KERNEL_OK")
</pallas_src>

<mosaic_0001>
module attributes {stable_mosaic.version = 11 : i64} {
  func.func @_mycnn_kernel(%arg0: memref<450x147xbf16, #tpu.memory_space<vmem>>, %arg1: memref<147x32xbf16, #tpu.memory_space<vmem>>, %arg2: memref<2x32xf32, #tpu.memory_space<vmem>>, %arg3: memref<1152x450xbf16, #tpu.memory_space<vmem>>, %arg4: memref<1152x128xbf16, #tpu.memory_space<vmem>>, %arg5: memref<288x64xbf16, #tpu.memory_space<vmem>>, %arg6: memref<576x64xbf16, #tpu.memory_space<vmem>>, %arg7: memref<32x64xbf16, #tpu.memory_space<vmem>>, %arg8: memref<5x64xf32, #tpu.memory_space<vmem>>, %arg9: memref<288x128xbf16, #tpu.memory_space<vmem>>, %arg10: memref<288x32xbf16, #tpu.memory_space<vmem>>, %arg11: memref<576x128xbf16, #tpu.memory_space<vmem>>, %arg12: memref<1152x128xbf16, #tpu.memory_space<vmem>>, %arg13: memref<64x128xbf16, #tpu.memory_space<vmem>>, %arg14: memref<5x128xf32, #tpu.memory_space<vmem>>, %arg15: memref<32x32xbf16, #tpu.memory_space<vmem>>, %arg16: memref<2048x2xbf16, #tpu.memory_space<vmem>>, %arg17: memref<1x2xf32, #tpu.memory_space<vmem>>, %arg18: memref<2x2xf32, #tpu.memory_space<vmem>>) attributes {dimension_semantics = [], scalar_prefetch = 0 : i64, scratch_operands = 0 : i64, tpu.core_type = #tpu.core_type<tc>} {
    %c0 = arith.constant 0 : index
    %c0_0 = arith.constant 0 : index
    %0 = vector.load %arg0[%c0, %c0_0] : memref<450x147xbf16, #tpu.memory_space<vmem>>, vector<450x147xbf16>
    %c0_1 = arith.constant 0 : index
    %c0_2 = arith.constant 0 : index
    %1 = vector.load %arg1[%c0_1, %c0_2] : memref<147x32xbf16, #tpu.memory_space<vmem>>, vector<147x32xbf16>
    %cst = arith.constant dense<0.000000e+00> : vector<450x32xf32>
    %2 = tpu.matmul %0, %1, %cst {dimension_numbers = #tpu.dot_dimension_numbers<[1], [0], [0], [1], [0, 0, 1, 1], [], []>} : vector<450x147xbf16>, vector<147x32xbf16>, vector<450x32xf32> -> vector<450x32xf32>
    %c0_3 = arith.constant 0 : index
    %c0_4 = arith.constant 0 : index
    %3 = vector.load %arg2[%c0_3, %c0_4] : memref<2x32xf32, #tpu.memory_space<vmem>>, vector<1x32xf32>
    %c1 = arith.constant 1 : index
    %c0_5 = arith.constant 0 : index
    %4 = vector.load %arg2[%c1, %c0_5] : memref<2x32xf32, #tpu.memory_space<vmem>>, vector<1x32xf32>
    %cst_6 = arith.constant dense<0.000000e+00> : vector<32xf32>
    %5 = vector.multi_reduction <add>, %2, %cst_6 [0] : vector<450x32xf32> to vector<32xf32>
    %6 = vector.shape_cast %5 : vector<32xf32> to vector<1x32xf32>
    %cst_7 = arith.constant 0.00222222228 : f32
    %7 = vector.broadcast %cst_7 : f32 to vector<1x32xf32>
    %8 = arith.mulf %6, %7 : vector<1x32xf32>
    %9 = vector.broadcast %8 : vector<1x32xf32> to vector<450x32xf32>
    %10 = arith.subf %2, %9 : vector<450x32xf32>
    %11 = arith.mulf %10, %10 : vector<450x32xf32>
    %cst_8 = arith.constant dense<0.000000e+00> : vector<32xf32>
    %12 = vector.multi_reduction <add>, %11, %cst_8 [0] : vector<450x32xf32> to vector<32xf32>
    %13 = vector.shape_cast %12 : vector<32xf32> to vector<1x32xf32>
    %cst_9 = arith.constant 0.00222222228 : f32
    %14 = vector.broadcast %cst_9 : f32 to vector<1x32xf32>
    %15 = arith.mulf %13, %14 : vector<1x32xf32>
    %cst_10 = arith.constant 9.99999974E-6 : f32
    %16 = vector.broadcast %cst_10 : f32 to vector<1x32xf32>
    %17 = arith.addf %15, %16 : vector<1x32xf32>
    %18 = math.rsqrt %17 : vector<1x32xf32>
    %19 = arith.mulf %3, %18 : vector<1x32xf32>
    %20 = vector.broadcast %19 : vector<1x32xf32> to vector<450x32xf32>
    %21 = arith.mulf %10, %20 : vector<450x32xf32>
    %22 = vector.broadcast %4 : vector<1x32xf32> to vector<450x32xf32>
    %23 = arith.addf %21, %22 : vector<450x32xf32>
    %cst_11 = arith.constant 0.000000e+00 : f32
    %24 = vector.broadcast %cst_11 : f32 to vector<450x32xf32>
    %25 = arith.maximumf %23, %24 : vector<450x32xf32>
    %26 = arith.truncf %25 : vector<450x32xf32> to vector<450x32xbf16>
    %cst_12 = arith.constant 0.000000e+00 : f32
    %27 = vector.broadcast %cst_12 : f32 to vector<128x64xf32>
    %c0_13 = arith.constant 0 : index
    %c0_14 = arith.constant 0 : index
    %28 = vector.load %arg3[%c0_13, %c0_14] : memref<1152x450xbf16, #tpu.memory_space<vmem>>, vector<128x450xbf16>
    %cst_15 = arith.constant dense<0.000000e+00> : vector<128x32xf32>
    %29 = tpu.matmul %28, %26, %cst_15 {dimension_numbers = #tpu.dot_dimension_numbers<[1], [0], [0], [1], [0, 0, 1, 1], [], []>} : vector<128x450xbf16>, vector<450x32xbf16>, vector<128x32xf32> -> vector<128x32xf32>
    %c0_16 = arith.constant 0 : index
    %c0_17 = arith.constant 0 : index
    %30 = vector.load %arg5[%c0_16, %c0_17] : memref<288x64xbf16, #tpu.memory_space<vmem>>, vector<32x64xbf16>
    %31 = arith.truncf %29 : vector<128x32xf32> to vector<128x32xbf16>
    %cst_18 = arith.constant dense<0.000000e+00> : vector<128x64xf32>
    %32 = tpu.matmul %31, %30, %cst_18 {dimension_numbers = #tpu.dot_dimension_numbers<[1], [0], [0], [1], [0, 0, 1, 1], [], []>} : vector<128x32xbf16>, vector<32x64xbf16>, vector<128x64xf32> -> vector<128x64xf32>
    %33 = arith.addf %27, %32 : vector<128x64xf32>
    %c128 = arith.constant 128 : index
    %c0_19 = arith.constant 0 : index
    %34 = vector.load %arg3[%c128, %c0_19] : memref<1152x450xbf16, #tpu.memory_space<vmem>>, vector<128x450xbf16>
    %cst_20 = arith.constant dense<0.000000e+00> : vector<128x32xf32>
    %35 = tpu.matmul %34, %26, %cst_20 {dimension_numbers = #tpu.dot_dimension_numbers<[1], [0], [0], [1], [0, 0, 1, 1], [], []>} : vector<128x450xbf16>, vector<450x32xbf16>, vector<128x32xf32> -> vector<128x32xf32>
    %c32 = arith.constant 32 : index
    %c0_21 = arith.constant 0 : index
    %36 = vector.load %arg5[%c32, %c0_21] : memref<288x64xbf16, #tpu.memory_space<vmem>>, vector<32x64xbf16>
    %37 = arith.truncf %35 : vector<128x32xf32> to vector<128x32xbf16>
    %cst_22 = arith.constant dense<0.000000e+00> : vector<128x64xf32>
    %38 = tpu.matmul %37, %36, %cst_22 {dimension_numbers = #tpu.dot_dimension_numbers<[1], [0], [0], [1], [0, 0, 1, 1], [], []>} : vector<128x32xbf16>, vector<32x64xbf16>, vector<128x64xf32> -> vector<128x64xf32>
    %39 = arith.addf %33, %38 : vector<128x64xf32>
    %c256 = arith.constant 256 : index
    %c0_23 = arith.constant 0 : index
    %40 = vector.load %arg3[%c256, %c0_23] : memref<1152x450xbf16, #tpu.memory_space<vmem>>, vector<128x450xbf16>
    %cst_24 = arith.constant dense<0.000000e+00> : vector<128x32xf32>
    %41 = tpu.matmul %40, %26, %cst_24 {dimension_numbers = #tpu.dot_dimension_numbers<[1], [0], [0], [1], [0, 0, 1, 1], [], []>} : vector<128x450xbf16>, vector<450x32xbf16>, vector<128x32xf32> -> vector<128x32xf32>
    %c64 = arith.constant 64 : index
    %c0_25 = arith.constant 0 : index
    %42 = vector.load %arg5[%c64, %c0_25] : memref<288x64xbf16, #tpu.memory_space<vmem>>, vector<32x64xbf16>
    %43 = arith.truncf %41 : vector<128x32xf32> to vector<128x32xbf16>
    %cst_26 = arith.constant dense<0.000000e+00> : vector<128x64xf32>
    %44 = tpu.matmul %43, %42, %cst_26 {dimension_numbers = #tpu.dot_dimension_numbers<[1], [0], [0], [1], [0, 0, 1, 1], [], []>} : vector<128x32xbf16>, vector<32x64xbf16>, vector<128x64xf32> -> vector<128x64xf32>
    %45 = arith.addf %39, %44 : vector<128x64xf32>
    %c384 = arith.constant 384 : index
    %c0_27 = arith.constant 0 : index
    %46 = vector.load %arg3[%c384, %c0_27] : memref<1152x450xbf16, #tpu.memory_space<vmem>>, vector<128x450xbf16>
    %cst_28 = arith.constant dense<0.000000e+00> : vector<128x32xf32>
    %47 = tpu.matmul %46, %26, %cst_28 {dimension_numbers = #tpu.dot_dimension_numbers<[1], [0], [0], [1], [0, 0, 1, 1], [], []>} : vector<128x450xbf16>, vector<450x32xbf16>, vector<128x32xf32> -> vector<128x32xf32>
    %c96 = arith.constant 96 : index
    %c0_29 = arith.constant 0 : index
    %48 = vector.load %arg5[%c96, %c0_29] : memref<288x64xbf16, #tpu.memory_space<vmem>>, vector<32x64xbf16>
    %49 = arith.truncf %47 : vector<128x32xf32> to vector<128x32xbf16>
    %cst_30 = arith.constant dense<0.000000e+00> : vector<128x64xf32>
    %50 = tpu.matmul %49, %48, %cst_30 {dimension_numbers = #tpu.dot_dimension_numbers<[1], [0], [0], [1], [0, 0, 1, 1], [], []>} : vector<128x32xbf16>, vector<32x64xbf16>, vector<128x64xf32> -> vector<128x64xf32>
    %51 = arith.addf %45, %50 : vector<128x64xf32>
    %c512 = arith.constant 512 : index
    %c0_31 = arith.constant 0 : index
    %52 = vector.load %arg3[%c512, %c0_31] : memref<1152x450xbf16, #tpu.memory_space<vmem>>, vector<128x450xbf16>
    %cst_32 = arith.constant dense<0.000000e+00> : vector<128x32xf32>
    %53 = tpu.matmul %52, %26, %cst_32 {dimension_numbers = #tpu.dot_dimension_numbers<[1], [0], [0], [1], [0, 0, 1, 1], [], []>} : vector<128x450xbf16>, vector<450x32xbf16>, vector<128x32xf32> -> vector<128x32xf32>
    %c128_33 = arith.constant 128 : index
    %c0_34 = arith.constant 0 : index
    %54 = vector.load %arg5[%c128_33, %c0_34] : memref<288x64xbf16, #tpu.memory_space<vmem>>, vector<32x64xbf16>
    %55 = arith.truncf %53 : vector<128x32xf32> to vector<128x32xbf16>
    %cst_35 = arith.constant dense<0.000000e+00> : vector<128x64xf32>
    %56 = tpu.matmul %55, %54, %cst_35 {dimension_numbers = #tpu.dot_dimension_numbers<[1], [0], [0], [1], [0, 0, 1, 1], [], []>} : vector<128x32xbf16>, vector<32x64xbf16>, vector<128x64xf32> -> vector<128x64xf32>
    %57 = arith.addf %51, %56 : vector<128x64xf32>
    %c640 = arith.constant 640 : index
    %c0_36 = arith.constant 0 : index
    %58 = vector.load %arg3[%c640, %c0_36] : memref<1152x450xbf16, #tpu.memory_space<vmem>>, vector<128x450xbf16>
    %cst_37 = arith.constant dense<0.000000e+00> : vector<128x32xf32>
    %59 = tpu.matmul %58, %26, %cst_37 {dimension_numbers = #tpu.dot_dimension_numbers<[1], [0], [0], [1], [0, 0, 1, 1], [], []>} : vector<128x450xbf16>, vector<450x32xbf16>, vector<128x32xf32> -> vector<128x32xf32>
    %c160 = arith.constant 160 : index
    %c0_38 = arith.constant 0 : index
    %60 = vector.load %arg5[%c160, %c0_38] : memref<288x64xbf16, #tpu.memory_space<vmem>>, vector<32x64xbf16>
    %61 = arith.truncf %59 : vector<128x32xf32> to vector<128x32xbf16>
    %cst_39 = arith.constant dense<0.000000e+00> : vector<128x64xf32>
    %62 = tpu.matmul %61, %60, %cst_39 {dimension_numbers = #tpu.dot_dimension_numbers<[1], [0], [0], [1], [0, 0, 1, 1], [], []>} : vector<128x32xbf16>, vector<32x64xbf16>, vector<128x64xf32> -> vector<128x64xf32>
    %63 = arith.addf %57, %62 : vector<128x64xf32>
    %c768 = arith.constant 768 : index
    %c0_40 = arith.constant 0 : index
    %64 = vector.load %arg3[%c768, %c0_40] : memref<1152x450xbf16, #tpu.memory_space<vmem>>, vector<128x450xbf16>
    %cst_41 = arith.constant dense<0.000000e+00> : vector<128x32xf32>
    %65 = tpu.matmul %64, %26, %cst_41 {dimension_numbers = #tpu.dot_dimension_numbers<[1], [0], [0], [1], [0, 0, 1, 1], [], []>} : vector<128x450xbf16>, vector<450x32xbf16>, vector<128x32xf32> -> vector<128x32xf32>
    %c192 = arith.constant 192 : index
    %c0_42 = arith.constant 0 : index
    %66 = vector.load %arg5[%c192, %c0_42] : memref<288x64xbf16, #tpu.memory_space<vmem>>, vector<32x64xbf16>
    %67 = arith.truncf %65 : vector<128x32xf32> to vector<128x32xbf16>
    %cst_43 = arith.constant dense<0.000000e+00> : vector<128x64xf32>
    %68 = tpu.matmul %67, %66, %cst_43 {dimension_numbers = #tpu.dot_dimension_numbers<[1], [0], [0], [1], [0, 0, 1, 1], [], []>} : vector<128x32xbf16>, vector<32x64xbf16>, vector<128x64xf32> -> vector<128x64xf32>
    %69 = arith.addf %63, %68 : vector<128x64xf32>
    %c896 = arith.constant 896 : index
    %c0_44 = arith.constant 0 : index
    %70 = vector.load %arg3[%c896, %c0_44] : memref<1152x450xbf16, #tpu.memory_space<vmem>>, vector<128x450xbf16>
    %cst_45 = arith.constant dense<0.000000e+00> : vector<128x32xf32>
    %71 = tpu.matmul %70, %26, %cst_45 {dimension_numbers = #tpu.dot_dimension_numbers<[1], [0], [0], [1], [0, 0, 1, 1], [], []>} : vector<128x450xbf16>, vector<450x32xbf16>, vector<128x32xf32> -> vector<128x32xf32>
    %c224 = arith.constant 224 : index
    %c0_46 = arith.constant 0 : index
    %72 = vector.load %arg5[%c224, %c0_46] : memref<288x64xbf16, #tpu.memory_space<vmem>>, vector<32x64xbf16>
    %73 = arith.truncf %71 : vector<128x32xf32> to vector<128x32xbf16>
    %cst_47 = arith.constant dense<0.000000e+00> : vector<128x64xf32>
    %74 = tpu.matmul %73, %72, %cst_47 {dimension_numbers = #tpu.dot_dimension_numbers<[1], [0], [0], [1], [0, 0, 1, 1], [], []>} : vector<128x32xbf16>, vector<32x64xbf16>, vector<128x64xf32> -> vector<128x64xf32>
    %75 = arith.addf %69, %74 : vector<128x64xf32>
    %c1024 = arith.constant 1024 : index
    %c0_48 = arith.constant 0 : index
    %76 = vector.load %arg3[%c1024, %c0_48] : memref<1152x450xbf16, #tpu.memory_space<vmem>>, vector<128x450xbf16>
    %cst_49 = arith.constant dense<0.000000e+00> : vector<128x32xf32>
    %77 = tpu.matmul %76, %26, %cst_49 {dimension_numbers = #tpu.dot_dimension_numbers<[1], [0], [0], [1], [0, 0, 1, 1], [], []>} : vector<128x450xbf16>, vector<450x32xbf16>, vector<128x32xf32> -> vector<128x32xf32>
    %c256_50 = arith.constant 256 : index
    %c0_51 = arith.constant 0 : index
    %78 = vector.load %arg5[%c256_50, %c0_51] : memref<288x64xbf16, #tpu.memory_space<vmem>>, vector<32x64xbf16>
    %79 = arith.truncf %77 : vector<128x32xf32> to vector<128x32xbf16>
    %cst_52 = arith.constant dense<0.000000e+00> : vector<128x64xf32>
    %80 = tpu.matmul %79, %78, %cst_52 {dimension_numbers = #tpu.dot_dimension_numbers<[1], [0], [0], [1], [0, 0, 1, 1], [], []>} : vector<128x32xbf16>, vector<32x64xbf16>, vector<128x64xf32> -> vector<128x64xf32>
    %81 = arith.addf %75, %80 : vector<128x64xf32>
    %c0_53 = arith.constant 0 : index
    %c0_54 = arith.constant 0 : index
    %82 = vector.load %arg8[%c0_53, %c0_54] : memref<5x64xf32, #tpu.memory_space<vmem>>, vector<1x64xf32>
    %c1_55 = arith.constant 1 : index
    %c0_56 = arith.constant 0 : index
    %83 = vector.load %arg8[%c1_55, %c0_56] : memref<5x64xf32, #tpu.memory_space<vmem>>, vector<1x64xf32>
    %cst_57 = arith.constant dense<0.000000e+00> : vector<64xf32>
    %84 = vector.multi_reduction <add>, %81, %cst_57 [0] : vector<128x64xf32> to vector<64xf32>
    %85 = vector.shape_cast %84 : vector<64xf32> to vector<1x64xf32>
    %cst_58 = arith.constant 7.812500e-03 : f32
    %86 = vector.broadcast %cst_58 : f32 to vector<1x64xf32>
    %87 = arith.mulf %85, %86 : vector<1x64xf32>
    %88 = vector.broadcast %87 : vector<1x64xf32> to vector<128x64xf32>
    %89 = arith.subf %81, %88 : vector<128x64xf32>
    %90 = arith.mulf %89, %89 : vector<128x64xf32>
    %cst_59 = arith.constant dense<0.000000e+00> : vector<64xf32>
    %91 = vector.multi_reduction <add>, %90, %cst_59 [0] : vector<128x64xf32> to vector<64xf32>
    %92 = vector.shape_cast %91 : vector<64xf32> to vector<1x64xf32>
    %cst_60 = arith.constant 7.812500e-03 : f32
    %93 = vector.broadcast %cst_60 : f32 to vector<1x64xf32>
    %94 = arith.mulf %92, %93 : vector<1x64xf32>
    %cst_61 = arith.constant 9.99999974E-6 : f32
    %95 = vector.broadcast %cst_61 : f32 to vector<1x64xf32>
    %96 = arith.addf %94, %95 : vector<1x64xf32>
    %97 = math.rsqrt %96 : vector<1x64xf32>
    %98 = arith.mulf %82, %97 : vector<1x64xf32>
    %99 = vector.broadcast %98 : vector<1x64xf32> to vector<128x64xf32>
    %100 = arith.mulf %89, %99 : vector<128x64xf32>
    %101 = vector.broadcast %83 : vector<1x64xf32> to vector<128x64xf32>
    %102 = arith.addf %100, %101 : vector<128x64xf32>
    %cst_62 = arith.constant 0.000000e+00 : f32
    %103 = vector.broadcast %cst_62 : f32 to vector<128x64xf32>
    %104 = arith.maximumf %102, %103 : vector<128x64xf32>
    %c0_63 = arith.constant 0 : index
    %c0_64 = arith.constant 0 : index
    %105 = vector.load %arg7[%c0_63, %c0_64] : memref<32x64xbf16, #tpu.memory_space<vmem>>, vector<32x64xbf16>
    %106 = arith.truncf %53 : vector<128x32xf32> to vector<128x32xbf16>
    %cst_65 = arith.constant dense<0.000000e+00> : vector<128x64xf32>
    %107 = tpu.matmul %106, %105, %cst_65 {dimension_numbers = #tpu.dot_dimension_numbers<[1], [0], [0], [1], [0, 0, 1, 1], [], []>} : vector<128x32xbf16>, vector<32x64xbf16>, vector<128x64xf32> -> vector<128x64xf32>
    %c4 = arith.constant 4 : index
    %c0_66 = arith.constant 0 : index
    %108 = vector.load %arg8[%c4, %c0_66] : memref<5x64xf32, #tpu.memory_space<vmem>>, vector<1x64xf32>
    %109 = vector.broadcast %108 : vector<1x64xf32> to vector<128x64xf32>
    %110 = arith.addf %107, %109 : vector<128x64xf32>
    %111 = arith.truncf %104 : vector<128x64xf32> to vector<128x64xbf16>
    %cst_67 = arith.constant 0.000000e+00 : f32
    %112 = vector.broadcast %cst_67 : f32 to vector<128x64xf32>
    %c0_68 = arith.constant 0 : index
    %c0_69 = arith.constant 0 : index
    %113 = vector.load %arg4[%c0_68, %c0_69] : memref<1152x128xbf16, #tpu.memory_space<vmem>>, vector<128x128xbf16>
    %cst_70 = arith.constant dense<0.000000e+00> : vector<128x64xf32>
    %114 = tpu.matmul %113, %111, %cst_70 {dimension_numbers = #tpu.dot_dimension_numbers<[1], [0], [0], [1], [0, 0, 1, 1], [], []>} : vector<128x128xbf16>, vector<128x64xbf16>, vector<128x64xf32> -> vector<128x64xf32>
    %c0_71 = arith.constant 0 : index
    %c0_72 = arith.constant 0 : index
    %115 = vector.load %arg6[%c0_71, %c0_72] : memref<576x64xbf16, #tpu.memory_space<vmem>>, vector<64x64xbf16>
    %116 = arith.truncf %114 : vector<128x64xf32> to vector<128x64xbf16>
    %cst_73 = arith.constant dense<0.000000e+00> : vector<128x64xf32>
    %117 = tpu.matmul %116, %115, %cst_73 {dimension_numbers = #tpu.dot_dimension_numbers<[1], [0], [0], [1], [0, 0, 1, 1], [], []>} : vector<128x64xbf16>, vector<64x64xbf16>, vector<128x64xf32> -> vector<128x64xf32>
    %118 = arith.addf %112, %117 : vector<128x64xf32>
    %c128_74 = arith.constant 128 : index
    %c0_75 = arith.constant 0 : index
    %119 = vector.load %arg4[%c128_74, %c0_75] : memref<1152x128xbf16, #tpu.memory_space<vmem>>, vector<128x128xbf16>
    %cst_76 = arith.constant dense<0.000000e+00> : vector<128x64xf32>
    %120 = tpu.matmul %119, %111, %cst_76 {dimension_numbers = #tpu.dot_dimension_numbers<[1], [0], [0], [1], [0, 0, 1, 1], [], []>} : vector<128x128xbf16>, vector<128x64xbf16>, vector<128x64xf32> -> vector<128x64xf32>
    %c64_77 = arith.constant 64 : index
    %c0_78 = arith.constant 0 : index
    %121 = vector.load %arg6[%c64_77, %c0_78] : memref<576x64xbf16, #tpu.memory_space<vmem>>, vector<64x64xbf16>
    %122 = arith.truncf %120 : vector<128x64xf32> to vector<128x64xbf16>
    %cst_79 = arith.constant dense<0.000000e+00> : vector<128x64xf32>
    %123 = tpu.matmul %122, %121, %cst_79 {dimension_numbers = #tpu.dot_dimension_numbers<[1], [0], [0], [1], [0, 0, 1, 1], [], []>} : vector<128x64xbf16>, vector<64x64xbf16>, vector<128x64xf32> -> vector<128x64xf32>
    %124 = arith.addf %118, %123 : vector<128x64xf32>
    %c256_80 = arith.constant 256 : index
    %c0_81 = arith.constant 0 : index
    %125 = vector.load %arg4[%c256_80, %c0_81] : memref<1152x128xbf16, #tpu.memory_space<vmem>>, vector<128x128xbf16>
    %cst_82 = arith.constant dense<0.000000e+00> : vector<128x64xf32>
    %126 = tpu.matmul %125, %111, %cst_82 {dimension_numbers = #tpu.dot_dimension_numbers<[1], [0], [0], [1], [0, 0, 1, 1], [], []>} : vector<128x128xbf16>, vector<128x64xbf16>, vector<128x64xf32> -> vector<128x64xf32>
    %c128_83 = arith.constant 128 : index
    %c0_84 = arith.constant 0 : index
    %127 = vector.load %arg6[%c128_83, %c0_84] : memref<576x64xbf16, #tpu.memory_space<vmem>>, vector<64x64xbf16>
    %128 = arith.truncf %126 : vector<128x64xf32> to vector<128x64xbf16>
    %cst_85 = arith.constant dense<0.000000e+00> : vector<128x64xf32>
    %129 = tpu.matmul %128, %127, %cst_85 {dimension_numbers = #tpu.dot_dimension_numbers<[1], [0], [0], [1], [0, 0, 1, 1], [], []>} : vector<128x64xbf16>, vector<64x64xbf16>, vector<128x64xf32> -> vector<128x64xf32>
    %130 = arith.addf %124, %129 : vector<128x64xf32>
    %c384_86 = arith.constant 384 : index
    %c0_87 = arith.constant 0 : index
    %131 = vector.load %arg4[%c384_86, %c0_87] : memref<1152x128xbf16, #tpu.memory_space<vmem>>, vector<128x128xbf16>
    %cst_88 = arith.constant dense<0.000000e+00> : vector<128x64xf32>
    %132 = tpu.matmul %131, %111, %cst_88 {dimension_numbers = #tpu.dot_dimension_numbers<[1], [0], [0], [1], [0, 0, 1, 1], [], []>} : vector<128x128xbf16>, vector<128x64xbf16>, vector<128x64xf32> -> vector<128x64xf32>
    %c192_89 = arith.constant 192 : index
    %c0_90 = arith.constant 0 : index
    %133 = vector.load %arg6[%c192_89, %c0_90] : memref<576x64xbf16, #tpu.memory_space<vmem>>, vector<64x64xbf16>
    %134 = arith.truncf %132 : vector<128x64xf32> to vector<128x64xbf16>
    %cst_91 = arith.constant dense<0.000000e+00> : vector<128x64xf32>
    %135 = tpu.matmul %134, %133, %cst_91 {dimension_numbers = #tpu.dot_dimension_numbers<[1], [0], [0], [1], [0, 0, 1, 1], [], []>} : vector<128x64xbf16>, vector<64x64xbf16>, vector<128x64xf32> -> vector<128x64xf32>
    %136 = arith.addf %130, %135 : vector<128x64xf32>
    %c512_92 = arith.constant 512 : index
    %c0_93 = arith.constant 0 : index
    %137 = vector.load %arg4[%c512_92, %c0_93] : memref<1152x128xbf16, #tpu.memory_space<vmem>>, vector<128x128xbf16>
    %cst_94 = arith.constant dense<0.000000e+00> : vector<128x64xf32>
    %138 = tpu.matmul %137, %111, %cst_94 {dimension_numbers = #tpu.dot_dimension_numbers<[1], [0], [0], [1], [0, 0, 1, 1], [], []>} : vector<128x128xbf16>, vector<128x64xbf16>, vector<128x64xf32> -> vector<128x64xf32>
    %c256_95 = arith.constant 256 : index
    %c0_96 = arith.constant 0 : index
    %139 = vector.load %arg6[%c256_95, %c0_96] : memref<576x64xbf16, #tpu.memory_space<vmem>>, vector<64x64xbf16>
    %140 = arith.truncf %138 : vector<128x64xf32> to vector<128x64xbf16>
    %cst_97 = arith.constant dense<0.000000e+00> : vector<128x64xf32>
    %141 = tpu.matmul %140, %139, %cst_97 {dimension_numbers = #tpu.dot_dimension_numbers<[1], [0], [0], [1], [0, 0, 1, 1], [], []>} : vector<128x64xbf16>, vector<64x64xbf16>, vector<128x64xf32> -> vector<128x64xf32>
    %142 = arith.addf %136, %141 : vector<128x64xf32>
    %c640_98 = arith.constant 640 : index
    %c0_99 = arith.constant 0 : index
    %143 = vector.load %arg4[%c640_98, %c0_99] : memref<1152x128xbf16, #tpu.memory_space<vmem>>, vector<128x128xbf16>
    %cst_100 = arith.constant dense<0.000000e+00> : vector<128x64xf32>
    %144 = tpu.matmul %143, %111, %cst_100 {dimension_numbers = #tpu.dot_dimension_numbers<[1], [0], [0], [1], [0, 0, 1, 1], [], []>} : vector<128x128xbf16>, vector<128x64xbf16>, vector<128x64xf32> -> vector<128x64xf32>
    %c320 = arith.constant 320 : index
    %c0_101 = arith.constant 0 : index
    %145 = vector.load %arg6[%c320, %c0_101] : memref<576x64xbf16, #tpu.memory_space<vmem>>, vector<64x64xbf16>
    %146 = arith.truncf %144 : vector<128x64xf32> to vector<128x64xbf16>
    %cst_102 = arith.constant dense<0.000000e+00> : vector<128x64xf32>
    %147 = tpu.matmul %146, %145, %cst_102 {dimension_numbers = #tpu.dot_dimension_numbers<[1], [0], [0], [1], [0, 0, 1, 1], [], []>} : vector<128x64xbf16>, vector<64x64xbf16>, vector<128x64xf32> -> vector<128x64xf32>
    %148 = arith.addf %142, %147 : vector<128x64xf32>
    %c768_103 = arith.constant 768 : index
    %c0_104 = arith.constant 0 : index
    %149 = vector.load %arg4[%c768_103, %c0_104] : memref<1152x128xbf16, #tpu.memory_space<vmem>>, vector<128x128xbf16>
    %cst_105 = arith.constant dense<0.000000e+00> : vector<128x64xf32>
    %150 = tpu.matmul %149, %111, %cst_105 {dimension_numbers = #tpu.dot_dimension_numbers<[1], [0], [0], [1], [0, 0, 1, 1], [], []>} : vector<128x128xbf16>, vector<128x64xbf16>, vector<128x64xf32> -> vector<128x64xf32>
    %c384_106 = arith.constant 384 : index
    %c0_107 = arith.constant 0 : index
    %151 = vector.load %arg6[%c384_106, %c0_107] : memref<576x64xbf16, #tpu.memory_space<vmem>>, vector<64x64xbf16>
    %152 = arith.truncf %150 : vector<128x64xf32> to vector<128x64xbf16>
    %cst_108 = arith.constant dense<0.000000e+00> : vector<128x64xf32>
    %153 = tpu.matmul %152, %151, %cst_108 {dimension_numbers = #tpu.dot_dimension_numbers<[1], [0], [0], [1], [0, 0, 1, 1], [], []>} : vector<128x64xbf16>, vector<64x64xbf16>, vector<128x64xf32> -> vector<128x64xf32>
    %154 = arith.addf %148, %153 : vector<128x64xf32>
    %c896_109 = arith.constant 896 : index
    %c0_110 = arith.constant 0 : index
    %155 = vector.load %arg4[%c896_109, %c0_110] : memref<1152x128xbf16, #tpu.memory_space<vmem>>, vector<128x128xbf16>
    %cst_111 = arith.constant dense<0.000000e+00> : vector<128x64xf32>
    %156 = tpu.matmul %155, %111, %cst_111 {dimension_numbers = #tpu.dot_dimension_numbers<[1], [0], [0], [1], [0, 0, 1, 1], [], []>} : vector<128x128xbf16>, vector<128x64xbf16>, vector<128x64xf32> -> vector<128x64xf32>
    %c448 = arith.constant 448 : index
    %c0_112 = arith.constant 0 : index
    %157 = vector.load %arg6[%c448, %c0_112] : memref<576x64xbf16, #tpu.memory_space<vmem>>, vector<64x64xbf16>
    %158 = arith.truncf %156 : vector<128x64xf32> to vector<128x64xbf16>
    %cst_113 = arith.constant dense<0.000000e+00> : vector<128x64xf32>
    %159 = tpu.matmul %158, %157, %cst_113 {dimension_numbers = #tpu.dot_dimension_numbers<[1], [0], [0], [1], [0, 0, 1, 1], [], []>} : vector<128x64xbf16>, vector<64x64xbf16>, vector<128x64xf32> -> vector<128x64xf32>
    %160 = arith.addf %154, %159 : vector<128x64xf32>
    %c1024_114 = arith.constant 1024 : index
    %c0_115 = arith.constant 0 : index
    %161 = vector.load %arg4[%c1024_114, %c0_115] : memref<1152x128xbf16, #tpu.memory_space<vmem>>, vector<128x128xbf16>
    %cst_116 = arith.constant dense<0.000000e+00> : vector<128x64xf32>
    %162 = tpu.matmul %161, %111, %cst_116 {dimension_numbers = #tpu.dot_dimension_numbers<[1], [0], [0], [1], [0, 0, 1, 1], [], []>} : vector<128x128xbf16>, vector<128x64xbf16>, vector<128x64xf32> -> vector<128x64xf32>
    %c512_117 = arith.constant 512 : index
    %c0_118 = arith.constant 0 : index
    %163 = vector.load %arg6[%c512_117, %c0_118] : memref<576x64xbf16, #tpu.memory_space<vmem>>, vector<64x64xbf16>
    %164 = arith.truncf %162 : vector<128x64xf32> to vector<128x64xbf16>
    %cst_119 = arith.constant dense<0.000000e+00> : vector<128x64xf32>
    %165 = tpu.matmul %164, %163, %cst_119 {dimension_numbers = #tpu.dot_dimension_numbers<[1], [0], [0], [1], [0, 0, 1, 1], [], []>} : vector<128x64xbf16>, vector<64x64xbf16>, vector<128x64xf32> -> vector<128x64xf32>
    %166 = arith.addf %160, %165 : vector<128x64xf32>
    %c2 = arith.constant 2 : index
    %c0_120 = arith.constant 0 : index
    %167 = vector.load %arg8[%c2, %c0_120] : memref<5x64xf32, #tpu.memory_space<vmem>>, vector<1x64xf32>
    %c3 = arith.constant 3 : index
    %c0_121 = arith.constant 0 : index
    %168 = vector.load %arg8[%c3, %c0_121] : memref<5x64xf32, #tpu.memory_space<vmem>>, vector<1x64xf32>
    %cst_122 = arith.constant dense<0.000000e+00> : vector<64xf32>
    %169 = vector.multi_reduction <add>, %166, %cst_122 [0] : vector<128x64xf32> to vector<64xf32>
    %170 = vector.shape_cast %169 : vector<64xf32> to vector<1x64xf32>
    %cst_123 = arith.constant 7.812500e-03 : f32
    %171 = vector.broadcast %cst_123 : f32 to vector<1x64xf32>
    %172 = arith.mulf %170, %171 : vector<1x64xf32>
    %173 = vector.broadcast %172 : vector<1x64xf32> to vector<128x64xf32>
    %174 = arith.subf %166, %173 : vector<128x64xf32>
    %175 = arith.mulf %174, %174 : vector<128x64xf32>
    %cst_124 = arith.constant dense<0.000000e+00> : vector<64xf32>
    %176 = vector.multi_reduction <add>, %175, %cst_124 [0] : vector<128x64xf32> to vector<64xf32>
    %177 = vector.shape_cast %176 : vector<64xf32> to vector<1x64xf32>
    %cst_125 = arith.constant 7.812500e-03 : f32
    %178 = vector.broadcast %cst_125 : f32 to vector<1x64xf32>
    %179 = arith.mulf %177, %178 : vector<1x64xf32>
    %cst_126 = arith.constant 9.99999974E-6 : f32
    %180 = vector.broadcast %cst_126 : f32 to vector<1x64xf32>
    %181 = arith.addf %179, %180 : vector<1x64xf32>
    %182 = math.rsqrt %181 : vector<1x64xf32>
    %183 = arith.mulf %167, %182 : vector<1x64xf32>
    %184 = vector.broadcast %183 : vector<1x64xf32> to vector<128x64xf32>
    %185 = arith.mulf %174, %184 : vector<128x64xf32>
    %186 = vector.broadcast %168 : vector<1x64xf32> to vector<128x64xf32>
    %187 = arith.addf %185, %186 : vector<128x64xf32>
    %188 = arith.addf %187, %110 : vector<128x64xf32>
    %cst_127 = arith.constant 0.000000e+00 : f32
    %189 = vector.broadcast %cst_127 : f32 to vector<128x64xf32>
    %190 = arith.maximumf %188, %189 : vector<128x64xf32>
    %191 = arith.truncf %190 : vector<128x64xf32> to vector<128x64xbf16>
    %cst_128 = arith.constant 0.000000e+00 : f32
    %192 = vector.broadcast %cst_128 : f32 to vector<32x128xf32>
    %c0_129 = arith.constant 0 : index
    %c0_130 = arith.constant 0 : index
    %193 = vector.load %arg9[%c0_129, %c0_130] : memref<288x128xbf16, #tpu.memory_space<vmem>>, vector<32x128xbf16>
    %cst_131 = arith.constant dense<0.000000e+00> : vector<32x64xf32>
    %194 = tpu.matmul %193, %191, %cst_131 {dimension_numbers = #tpu.dot_dimension_numbers<[1], [0], [0], [1], [0, 0, 1, 1], [], []>} : vector<32x128xbf16>, vector<128x64xbf16>, vector<32x64xf32> -> vector<32x64xf32>
    %c0_132 = arith.constant 0 : index
    %c0_133 = arith.constant 0 : index
    %195 = vector.load %arg11[%c0_132, %c0_133] : memref<576x128xbf16, #tpu.memory_space<vmem>>, vector<64x128xbf16>
    %196 = arith.truncf %194 : vector<32x64xf32> to vector<32x64xbf16>
    %cst_134 = arith.constant dense<0.000000e+00> : vector<32x128xf32>
    %197 = tpu.matmul %196, %195, %cst_134 {dimension_numbers = #tpu.dot_dimension_numbers<[1], [0], [0], [1], [0, 0, 1, 1], [], []>} : vector<32x64xbf16>, vector<64x128xbf16>, vector<32x128xf32> -> vector<32x128xf32>
    %198 = arith.addf %192, %197 : vector<32x128xf32>
    %c32_135 = arith.constant 32 : index
    %c0_136 = arith.constant 0 : index
    %199 = vector.load %arg9[%c32_135, %c0_136] : memref<288x128xbf16, #tpu.memory_space<vmem>>, vector<32x128xbf16>
    %cst_137 = arith.constant dense<0.000000e+00> : vector<32x64xf32>
    %200 = tpu.matmul %199, %191, %cst_137 {dimension_numbers = #tpu.dot_dimension_numbers<[1], [0], [0], [1], [0, 0, 1, 1], [], []>} : vector<32x128xbf16>, vector<128x64xbf16>, vector<32x64xf32> -> vector<32x64xf32>
    %c64_138 = arith.constant 64 : index
    %c0_139 = arith.constant 0 : index
    %201 = vector.load %arg11[%c64_138, %c0_139] : memref<576x128xbf16, #tpu.memory_space<vmem>>, vector<64x128xbf16>
    %202 = arith.truncf %200 : vector<32x64xf32> to vector<32x64xbf16>
    %cst_140 = arith.constant dense<0.000000e+00> : vector<32x128xf32>
    %203 = tpu.matmul %202, %201, %cst_140 {dimension_numbers = #tpu.dot_dimension_numbers<[1], [0], [0], [1], [0, 0, 1, 1], [], []>} : vector<32x64xbf16>, vector<64x128xbf16>, vector<32x128xf32> -> vector<32x128xf32>
    %204 = arith.addf %198, %203 : vector<32x128xf32>
    %c64_141 = arith.constant 64 : index
    %c0_142 = arith.constant 0 : index
    %205 = vector.load %arg9[%c64_141, %c0_142] : memref<288x128xbf16, #tpu.memory_space<vmem>>, vector<32x128xbf16>
    %cst_143 = arith.constant dense<0.000000e+00> : vector<32x64xf32>
    %206 = tpu.matmul %205, %191, %cst_143 {dimension_numbers = #tpu.dot_dimension_numbers<[1], [0], [0], [1], [0, 0, 1, 1], [], []>} : vector<32x128xbf16>, vector<128x64xbf16>, vector<32x64xf32> -> vector<32x64xf32>
    %c128_144 = arith.constant 128 : index
    %c0_145 = arith.constant 0 : index
    %207 = vector.load %arg11[%c128_144, %c0_145] : memref<576x128xbf16, #tpu.memory_space<vmem>>, vector<64x128xbf16>
    %208 = arith.truncf %206 : vector<32x64xf32> to vector<32x64xbf16>
    %cst_146 = arith.constant dense<0.000000e+00> : vector<32x128xf32>
    %209 = tpu.matmul %208, %207, %cst_146 {dimension_numbers = #tpu.dot_dimension_numbers<[1], [0], [0], [1], [0, 0, 1, 1], [], []>} : vector<32x64xbf16>, vector<64x128xbf16>, vector<32x128xf32> -> vector<32x128xf32>
    %210 = arith.addf %204, %209 : vector<32x128xf32>
    %c96_147 = arith.constant 96 : index
    %c0_148 = arith.constant 0 : index
    %211 = vector.load %arg9[%c96_147, %c0_148] : memref<288x128xbf16, #tpu.memory_space<vmem>>, vector<32x128xbf16>
    %cst_149 = arith.constant dense<0.000000e+00> : vector<32x64xf32>
    %212 = tpu.matmul %211, %191, %cst_149 {dimension_numbers = #tpu.dot_dimension_numbers<[1], [0], [0], [1], [0, 0, 1, 1], [], []>} : vector<32x128xbf16>, vector<128x64xbf16>, vector<32x64xf32> -> vector<32x64xf32>
    %c192_150 = arith.constant 192 : index
    %c0_151 = arith.constant 0 : index
    %213 = vector.load %arg11[%c192_150, %c0_151] : memref<576x128xbf16, #tpu.memory_space<vmem>>, vector<64x128xbf16>
    %214 = arith.truncf %212 : vector<32x64xf32> to vector<32x64xbf16>
    %cst_152 = arith.constant dense<0.000000e+00> : vector<32x128xf32>
    %215 = tpu.matmul %214, %213, %cst_152 {dimension_numbers = #tpu.dot_dimension_numbers<[1], [0], [0], [1], [0, 0, 1, 1], [], []>} : vector<32x64xbf16>, vector<64x128xbf16>, vector<32x128xf32> -> vector<32x128xf32>
    %216 = arith.addf %210, %215 : vector<32x128xf32>
    %c128_153 = arith.constant 128 : index
    %c0_154 = arith.constant 0 : index
    %217 = vector.load %arg9[%c128_153, %c0_154] : memref<288x128xbf16, #tpu.memory_space<vmem>>, vector<32x128xbf16>
    %cst_155 = arith.constant dense<0.000000e+00> : vector<32x64xf32>
    %218 = tpu.matmul %217, %191, %cst_155 {dimension_numbers = #tpu.dot_dimension_numbers<[1], [0], [0], [1], [0, 0, 1, 1], [], []>} : vector<32x128xbf16>, vector<128x64xbf16>, vector<32x64xf32> -> vector<32x64xf32>
    %c256_156 = arith.constant 256 : index
    %c0_157 = arith.constant 0 : index
    %219 = vector.load %arg11[%c256_156, %c0_157] : memref<576x128xbf16, #tpu.memory_space<vmem>>, vector<64x128xbf16>
    %220 = arith.truncf %218 : vector<32x64xf32> to vector<32x64xbf16>
    %cst_158 = arith.constant dense<0.000000e+00> : vector<32x128xf32>
    %221 = tpu.matmul %220, %219, %cst_158 {dimension_numbers = #tpu.dot_dimension_numbers<[1], [0], [0], [1], [0, 0, 1, 1], [], []>} : vector<32x64xbf16>, vector<64x128xbf16>, vector<32x128xf32> -> vector<32x128xf32>
    %222 = arith.addf %216, %221 : vector<32x128xf32>
    %c160_159 = arith.constant 160 : index
    %c0_160 = arith.constant 0 : index
    %223 = vector.load %arg9[%c160_159, %c0_160] : memref<288x128xbf16, #tpu.memory_space<vmem>>, vector<32x128xbf16>
    %cst_161 = arith.constant dense<0.000000e+00> : vector<32x64xf32>
    %224 = tpu.matmul %223, %191, %cst_161 {dimension_numbers = #tpu.dot_dimension_numbers<[1], [0], [0], [1], [0, 0, 1, 1], [], []>} : vector<32x128xbf16>, vector<128x64xbf16>, vector<32x64xf32> -> vector<32x64xf32>
    %c320_162 = arith.constant 320 : index
    %c0_163 = arith.constant 0 : index
    %225 = vector.load %arg11[%c320_162, %c0_163] : memref<576x128xbf16, #tpu.memory_space<vmem>>, vector<64x128xbf16>
    %226 = arith.truncf %224 : vector<32x64xf32> to vector<32x64xbf16>
    %cst_164 = arith.constant dense<0.000000e+00> : vector<32x128xf32>
    %227 = tpu.matmul %226, %225, %cst_164 {dimension_numbers = #tpu.dot_dimension_numbers<[1], [0], [0], [1], [0, 0, 1, 1], [], []>} : vector<32x64xbf16>, vector<64x128xbf16>, vector<32x128xf32> -> vector<32x128xf32>
    %228 = arith.addf %222, %227 : vector<32x128xf32>
    %c192_165 = arith.constant 192 : index
    %c0_166 = arith.constant 0 : index
    %229 = vector.load %arg9[%c192_165, %c0_166] : memref<288x128xbf16, #tpu.memory_space<vmem>>, vector<32x128xbf16>
    %cst_167 = arith.constant dense<0.000000e+00> : vector<32x64xf32>
    %230 = tpu.matmul %229, %191, %cst_167 {dimension_numbers = #tpu.dot_dimension_numbers<[1], [0], [0], [1], [0, 0, 1, 1], [], []>} : vector<32x128xbf16>, vector<128x64xbf16>, vector<32x64xf32> -> vector<32x64xf32>
    %c384_168 = arith.constant 384 : index
    %c0_169 = arith.constant 0 : index
    %231 = vector.load %arg11[%c384_168, %c0_169] : memref<576x128xbf16, #tpu.memory_space<vmem>>, vector<64x128xbf16>
    %232 = arith.truncf %230 : vector<32x64xf32> to vector<32x64xbf16>
    %cst_170 = arith.constant dense<0.000000e+00> : vector<32x128xf32>
    %233 = tpu.matmul %232, %231, %cst_170 {dimension_numbers = #tpu.dot_dimension_numbers<[1], [0], [0], [1], [0, 0, 1, 1], [], []>} : vector<32x64xbf16>, vector<64x128xbf16>, vector<32x128xf32> -> vector<32x128xf32>
    %234 = arith.addf %228, %233 : vector<32x128xf32>
    %c224_171 = arith.constant 224 : index
    %c0_172 = arith.constant 0 : index
    %235 = vector.load %arg9[%c224_171, %c0_172] : memref<288x128xbf16, #tpu.memory_space<vmem>>, vector<32x128xbf16>
    %cst_173 = arith.constant dense<0.000000e+00> : vector<32x64xf32>
    %236 = tpu.matmul %235, %191, %cst_173 {dimension_numbers = #tpu.dot_dimension_numbers<[1], [0], [0], [1], [0, 0, 1, 1], [], []>} : vector<32x128xbf16>, vector<128x64xbf16>, vector<32x64xf32> -> vector<32x64xf32>
    %c448_174 = arith.constant 448 : index
    %c0_175 = arith.constant 0 : index
    %237 = vector.load %arg11[%c448_174, %c0_175] : memref<576x128xbf16, #tpu.memory_space<vmem>>, vector<64x128xbf16>
    %238 = arith.truncf %236 : vector<32x64xf32> to vector<32x64xbf16>
    %cst_176 = arith.constant dense<0.000000e+00> : vector<32x128xf32>
    %239 = tpu.matmul %238, %237, %cst_176 {dimension_numbers = #tpu.dot_dimension_numbers<[1], [0], [0], [1], [0, 0, 1, 1], [], []>} : vector<32x64xbf16>, vector<64x128xbf16>, vector<32x128xf32> -> vector<32x128xf32>
    %240 = arith.addf %234, %239 : vector<32x128xf32>
    %c256_177 = arith.constant 256 : index
    %c0_178 = arith.constant 0 : index
    %241 = vector.load %arg9[%c256_177, %c0_178] : memref<288x128xbf16, #tpu.memory_space<vmem>>, vector<32x128xbf16>
    %cst_179 = arith.constant dense<0.000000e+00> : vector<32x64xf32>
    %242 = tpu.matmul %241, %191, %cst_179 {dimension_numbers = #tpu.dot_dimension_numbers<[1], [0], [0], [1], [0, 0, 1, 1], [], []>} : vector<32x128xbf16>, vector<128x64xbf16>, vector<32x64xf32> -> vector<32x64xf32>
    %c512_180 = arith.constant 512 : index
    %c0_181 = arith.constant 0 : index
    %243 = vector.load %arg11[%c512_180, %c0_181] : memref<576x128xbf16, #tpu.memory_space<vmem>>, vector<64x128xbf16>
    %244 = arith.truncf %242 : vector<32x64xf32> to vector<32x64xbf16>
    %cst_182 = arith.constant dense<0.000000e+00> : vector<32x128xf32>
    %245 = tpu.matmul %244, %243, %cst_182 {dimension_numbers = #tpu.dot_dimension_numbers<[1], [0], [0], [1], [0, 0, 1, 1], [], []>} : vector<32x64xbf16>, vector<64x128xbf16>, vector<32x128xf32> -> vector<32x128xf32>
    %246 = arith.addf %240, %245 : vector<32x128xf32>
    %c0_183 = arith.constant 0 : index
    %c0_184 = arith.constant 0 : index
    %247 = vector.load %arg14[%c0_183, %c0_184] : memref<5x128xf32, #tpu.memory_space<vmem>>, vector<1x128xf32>
    %c1_185 = arith.constant 1 : index
    %c0_186 = arith.constant 0 : index
    %248 = vector.load %arg14[%c1_185, %c0_186] : memref<5x128xf32, #tpu.memory_space<vmem>>, vector<1x128xf32>
    %cst_187 = arith.constant dense<0.000000e+00> : vector<128xf32>
    %249 = vector.multi_reduction <add>, %246, %cst_187 [0] : vector<32x128xf32> to vector<128xf32>
    %250 = vector.shape_cast %249 : vector<128xf32> to vector<1x128xf32>
    %cst_188 = arith.constant 3.125000e-02 : f32
    %251 = vector.broadcast %cst_188 : f32 to vector<1x128xf32>
    %252 = arith.mulf %250, %251 : vector<1x128xf32>
    %253 = vector.broadcast %252 : vector<1x128xf32> to vector<32x128xf32>
    %254 = arith.subf %246, %253 : vector<32x128xf32>
    %255 = arith.mulf %254, %254 : vector<32x128xf32>
    %cst_189 = arith.constant dense<0.000000e+00> : vector<128xf32>
    %256 = vector.multi_reduction <add>, %255, %cst_189 [0] : vector<32x128xf32> to vector<128xf32>
    %257 = vector.shape_cast %256 : vector<128xf32> to vector<1x128xf32>
    %cst_190 = arith.constant 3.125000e-02 : f32
    %258 = vector.broadcast %cst_190 : f32 to vector<1x128xf32>
    %259 = arith.mulf %257, %258 : vector<1x128xf32>
    %cst_191 = arith.constant 9.99999974E-6 : f32
    %260 = vector.broadcast %cst_191 : f32 to vector<1x128xf32>
    %261 = arith.addf %259, %260 : vector<1x128xf32>
    %262 = math.rsqrt %261 : vector<1x128xf32>
    %263 = arith.mulf %247, %262 : vector<1x128xf32>
    %264 = vector.broadcast %263 : vector<1x128xf32> to vector<32x128xf32>
    %265 = arith.mulf %254, %264 : vector<32x128xf32>
    %266 = vector.broadcast %248 : vector<1x128xf32> to vector<32x128xf32>
    %267 = arith.addf %265, %266 : vector<32x128xf32>
    %cst_192 = arith.constant 0.000000e+00 : f32
    %268 = vector.broadcast %cst_192 : f32 to vector<32x128xf32>
    %269 = arith.maximumf %267, %268 : vector<32x128xf32>
    %c0_193 = arith.constant 0 : index
    %c0_194 = arith.constant 0 : index
    %270 = vector.load %arg13[%c0_193, %c0_194] : memref<64x128xbf16, #tpu.memory_space<vmem>>, vector<64x128xbf16>
    %271 = arith.truncf %218 : vector<32x64xf32> to vector<32x64xbf16>
    %cst_195 = arith.constant dense<0.000000e+00> : vector<32x128xf32>
    %272 = tpu.matmul %271, %270, %cst_195 {dimension_numbers = #tpu.dot_dimension_numbers<[1], [0], [0], [1], [0, 0, 1, 1], [], []>} : vector<32x64xbf16>, vector<64x128xbf16>, vector<32x128xf32> -> vector<32x128xf32>
    %c4_196 = arith.constant 4 : index
    %c0_197 = arith.constant 0 : index
    %273 = vector.load %arg14[%c4_196, %c0_197] : memref<5x128xf32, #tpu.memory_space<vmem>>, vector<1x128xf32>
    %274 = vector.broadcast %273 : vector<1x128xf32> to vector<32x128xf32>
    %275 = arith.addf %272, %274 : vector<32x128xf32>
    %276 = arith.truncf %269 : vector<32x128xf32> to vector<32x128xbf16>
    %cst_198 = arith.constant 0.000000e+00 : f32
    %277 = vector.broadcast %cst_198 : f32 to vector<32x128xf32>
    %c0_199 = arith.constant 0 : index
    %c0_200 = arith.constant 0 : index
    %278 = vector.load %arg10[%c0_199, %c0_200] : memref<288x32xbf16, #tpu.memory_space<vmem>>, vector<32x32xbf16>
    %cst_201 = arith.constant dense<0.000000e+00> : vector<32x128xf32>
    %279 = tpu.matmul %278, %276, %cst_201 {dimension_numbers = #tpu.dot_dimension_numbers<[1], [0], [0], [1], [0, 0, 1, 1], [], []>} : vector<32x32xbf16>, vector<32x128xbf16>, vector<32x128xf32> -> vector<32x128xf32>
    %c0_202 = arith.constant 0 : index
    %c0_203 = arith.constant 0 : index
    %280 = vector.load %arg12[%c0_202, %c0_203] : memref<1152x128xbf16, #tpu.memory_space<vmem>>, vector<128x128xbf16>
    %281 = arith.truncf %279 : vector<32x128xf32> to vector<32x128xbf16>
    %cst_204 = arith.constant dense<0.000000e+00> : vector<32x128xf32>
    %282 = tpu.matmul %281, %280, %cst_204 {dimension_numbers = #tpu.dot_dimension_numbers<[1], [0], [0], [1], [0, 0, 1, 1], [], []>} : vector<32x128xbf16>, vector<128x128xbf16>, vector<32x128xf32> -> vector<32x128xf32>
    %283 = arith.addf %277, %282 : vector<32x128xf32>
    %c32_205 = arith.constant 32 : index
    %c0_206 = arith.constant 0 : index
    %284 = vector.load %arg10[%c32_205, %c0_206] : memref<288x32xbf16, #tpu.memory_space<vmem>>, vector<32x32xbf16>
    %cst_207 = arith.constant dense<0.000000e+00> : vector<32x128xf32>
    %285 = tpu.matmul %284, %276, %cst_207 {dimension_numbers = #tpu.dot_dimension_numbers<[1], [0], [0], [1], [0, 0, 1, 1], [], []>} : vector<32x32xbf16>, vector<32x128xbf16>, vector<32x128xf32> -> vector<32x128xf32>
    %c128_208 = arith.constant 128 : index
    %c0_209 = arith.constant 0 : index
    %286 = vector.load %arg12[%c128_208, %c0_209] : memref<1152x128xbf16, #tpu.memory_space<vmem>>, vector<128x128xbf16>
    %287 = arith.truncf %285 : vector<32x128xf32> to vector<32x128xbf16>
    %cst_210 = arith.constant dense<0.000000e+00> : vector<32x128xf32>
    %288 = tpu.matmul %287, %286, %cst_210 {dimension_numbers = #tpu.dot_dimension_numbers<[1], [0], [0], [1], [0, 0, 1, 1], [], []>} : vector<32x128xbf16>, vector<128x128xbf16>, vector<32x128xf32> -> vector<32x128xf32>
    %289 = arith.addf %283, %288 : vector<32x128xf32>
    %c64_211 = arith.constant 64 : index
    %c0_212 = arith.constant 0 : index
    %290 = vector.load %arg10[%c64_211, %c0_212] : memref<288x32xbf16, #tpu.memory_space<vmem>>, vector<32x32xbf16>
    %cst_213 = arith.constant dense<0.000000e+00> : vector<32x128xf32>
    %291 = tpu.matmul %290, %276, %cst_213 {dimension_numbers = #tpu.dot_dimension_numbers<[1], [0], [0], [1], [0, 0, 1, 1], [], []>} : vector<32x32xbf16>, vector<32x128xbf16>, vector<32x128xf32> -> vector<32x128xf32>
    %c256_214 = arith.constant 256 : index
    %c0_215 = arith.constant 0 : index
    %292 = vector.load %arg12[%c256_214, %c0_215] : memref<1152x128xbf16, #tpu.memory_space<vmem>>, vector<128x128xbf16>
    %293 = arith.truncf %291 : vector<32x128xf32> to vector<32x128xbf16>
    %cst_216 = arith.constant dense<0.000000e+00> : vector<32x128xf32>
    %294 = tpu.matmul %293, %292, %cst_216 {dimension_numbers = #tpu.dot_dimension_numbers<[1], [0], [0], [1], [0, 0, 1, 1], [], []>} : vector<32x128xbf16>, vector<128x128xbf16>, vector<32x128xf32> -> vector<32x128xf32>
    %295 = arith.addf %289, %294 : vector<32x128xf32>
    %c96_217 = arith.constant 96 : index
    %c0_218 = arith.constant 0 : index
    %296 = vector.load %arg10[%c96_217, %c0_218] : memref<288x32xbf16, #tpu.memory_space<vmem>>, vector<32x32xbf16>
    %cst_219 = arith.constant dense<0.000000e+00> : vector<32x128xf32>
    %297 = tpu.matmul %296, %276, %cst_219 {dimension_numbers = #tpu.dot_dimension_numbers<[1], [0], [0], [1], [0, 0, 1, 1], [], []>} : vector<32x32xbf16>, vector<32x128xbf16>, vector<32x128xf32> -> vector<32x128xf32>
    %c384_220 = arith.constant 384 : index
    %c0_221 = arith.constant 0 : index
    %298 = vector.load %arg12[%c384_220, %c0_221] : memref<1152x128xbf16, #tpu.memory_space<vmem>>, vector<128x128xbf16>
    %299 = arith.truncf %297 : vector<32x128xf32> to vector<32x128xbf16>
    %cst_222 = arith.constant dense<0.000000e+00> : vector<32x128xf32>
    %300 = tpu.matmul %299, %298, %cst_222 {dimension_numbers = #tpu.dot_dimension_numbers<[1], [0], [0], [1], [0, 0, 1, 1], [], []>} : vector<32x128xbf16>, vector<128x128xbf16>, vector<32x128xf32> -> vector<32x128xf32>
    %301 = arith.addf %295, %300 : vector<32x128xf32>
    %c128_223 = arith.constant 128 : index
    %c0_224 = arith.constant 0 : index
    %302 = vector.load %arg10[%c128_223, %c0_224] : memref<288x32xbf16, #tpu.memory_space<vmem>>, vector<32x32xbf16>
    %cst_225 = arith.constant dense<0.000000e+00> : vector<32x128xf32>
    %303 = tpu.matmul %302, %276, %cst_225 {dimension_numbers = #tpu.dot_dimension_numbers<[1], [0], [0], [1], [0, 0, 1, 1], [], []>} : vector<32x32xbf16>, vector<32x128xbf16>, vector<32x128xf32> -> vector<32x128xf32>
    %c512_226 = arith.constant 512 : index
    %c0_227 = arith.constant 0 : index
    %304 = vector.load %arg12[%c512_226, %c0_227] : memref<1152x128xbf16, #tpu.memory_space<vmem>>, vector<128x128xbf16>
    %305 = arith.truncf %303 : vector<32x128xf32> to vector<32x128xbf16>
    %cst_228 = arith.constant dense<0.000000e+00> : vector<32x128xf32>
    %306 = tpu.matmul %305, %304, %cst_228 {dimension_numbers = #tpu.dot_dimension_numbers<[1], [0], [0], [1], [0, 0, 1, 1], [], []>} : vector<32x128xbf16>, vector<128x128xbf16>, vector<32x128xf32> -> vector<32x128xf32>
    %307 = arith.addf %301, %306 : vector<32x128xf32>
    %c160_229 = arith.constant 160 : index
    %c0_230 = arith.constant 0 : index
    %308 = vector.load %arg10[%c160_229, %c0_230] : memref<288x32xbf16, #tpu.memory_space<vmem>>, vector<32x32xbf16>
    %cst_231 = arith.constant dense<0.000000e+00> : vector<32x128xf32>
    %309 = tpu.matmul %308, %276, %cst_231 {dimension_numbers = #tpu.dot_dimension_numbers<[1], [0], [0], [1], [0, 0, 1, 1], [], []>} : vector<32x32xbf16>, vector<32x128xbf16>, vector<32x128xf32> -> vector<32x128xf32>
    %c640_232 = arith.constant 640 : index
    %c0_233 = arith.constant 0 : index
    %310 = vector.load %arg12[%c640_232, %c0_233] : memref<1152x128xbf16, #tpu.memory_space<vmem>>, vector<128x128xbf16>
    %311 = arith.truncf %309 : vector<32x128xf32> to vector<32x128xbf16>
    %cst_234 = arith.constant dense<0.000000e+00> : vector<32x128xf32>
    %312 = tpu.matmul %311, %310, %cst_234 {dimension_numbers = #tpu.dot_dimension_numbers<[1], [0], [0], [1], [0, 0, 1, 1], [], []>} : vector<32x128xbf16>, vector<128x128xbf16>, vector<32x128xf32> -> vector<32x128xf32>
    %313 = arith.addf %307, %312 : vector<32x128xf32>
    %c192_235 = arith.constant 192 : index
    %c0_236 = arith.constant 0 : index
    %314 = vector.load %arg10[%c192_235, %c0_236] : memref<288x32xbf16, #tpu.memory_space<vmem>>, vector<32x32xbf16>
    %cst_237 = arith.constant dense<0.000000e+00> : vector<32x128xf32>
    %315 = tpu.matmul %314, %276, %cst_237 {dimension_numbers = #tpu.dot_dimension_numbers<[1], [0], [0], [1], [0, 0, 1, 1], [], []>} : vector<32x32xbf16>, vector<32x128xbf16>, vector<32x128xf32> -> vector<32x128xf32>
    %c768_238 = arith.constant 768 : index
    %c0_239 = arith.constant 0 : index
    %316 = vector.load %arg12[%c768_238, %c0_239] : memref<1152x128xbf16, #tpu.memory_space<vmem>>, vector<128x128xbf16>
    %317 = arith.truncf %315 : vector<32x128xf32> to vector<32x128xbf16>
    %cst_240 = arith.constant dense<0.000000e+00> : vector<32x128xf32>
    %318 = tpu.matmul %317, %316, %cst_240 {dimension_numbers = #tpu.dot_dimension_numbers<[1], [0], [0], [1], [0, 0, 1, 1], [], []>} : vector<32x128xbf16>, vector<128x128xbf16>, vector<32x128xf32> -> vector<32x128xf32>
    %319 = arith.addf %313, %318 : vector<32x128xf32>
    %c224_241 = arith.constant 224 : index
    %c0_242 = arith.constant 0 : index
    %320 = vector.load %arg10[%c224_241, %c0_242] : memref<288x32xbf16, #tpu.memory_space<vmem>>, vector<32x32xbf16>
    %cst_243 = arith.constant dense<0.000000e+00> : vector<32x128xf32>
    %321 = tpu.matmul %320, %276, %cst_243 {dimension_numbers = #tpu.dot_dimension_numbers<[1], [0], [0], [1], [0, 0, 1, 1], [], []>} : vector<32x32xbf16>, vector<32x128xbf16>, vector<32x128xf32> -> vector<32x128xf32>
    %c896_244 = arith.constant 896 : index
    %c0_245 = arith.constant 0 : index
    %322 = vector.load %arg12[%c896_244, %c0_245] : memref<1152x128xbf16, #tpu.memory_space<vmem>>, vector<128x128xbf16>
    %323 = arith.truncf %321 : vector<32x128xf32> to vector<32x128xbf16>
    %cst_246 = arith.constant dense<0.000000e+00> : vector<32x128xf32>
    %324 = tpu.matmul %323, %322, %cst_246 {dimension_numbers = #tpu.dot_dimension_numbers<[1], [0], [0], [1], [0, 0, 1, 1], [], []>} : vector<32x128xbf16>, vector<128x128xbf16>, vector<32x128xf32> -> vector<32x128xf32>
    %325 = arith.addf %319, %324 : vector<32x128xf32>
    %c256_247 = arith.constant 256 : index
    %c0_248 = arith.constant 0 : index
    %326 = vector.load %arg10[%c256_247, %c0_248] : memref<288x32xbf16, #tpu.memory_space<vmem>>, vector<32x32xbf16>
    %cst_249 = arith.constant dense<0.000000e+00> : vector<32x128xf32>
    %327 = tpu.matmul %326, %276, %cst_249 {dimension_numbers = #tpu.dot_dimension_numbers<[1], [0], [0], [1], [0, 0, 1, 1], [], []>} : vector<32x32xbf16>, vector<32x128xbf16>, vector<32x128xf32> -> vector<32x128xf32>
    %c1024_250 = arith.constant 1024 : index
    %c0_251 = arith.constant 0 : index
    %328 = vector.load %arg12[%c1024_250, %c0_251] : memref<1152x128xbf16, #tpu.memory_space<vmem>>, vector<128x128xbf16>
    %329 = arith.truncf %327 : vector<32x128xf32> to vector<32x128xbf16>
    %cst_252 = arith.constant dense<0.000000e+00> : vector<32x128xf32>
    %330 = tpu.matmul %329, %328, %cst_252 {dimension_numbers = #tpu.dot_dimension_numbers<[1], [0], [0], [1], [0, 0, 1, 1], [], []>} : vector<32x128xbf16>, vector<128x128xbf16>, vector<32x128xf32> -> vector<32x128xf32>
    %331 = arith.addf %325, %330 : vector<32x128xf32>
    %c2_253 = arith.constant 2 : index
    %c0_254 = arith.constant 0 : index
    %332 = vector.load %arg14[%c2_253, %c0_254] : memref<5x128xf32, #tpu.memory_space<vmem>>, vector<1x128xf32>
    %c3_255 = arith.constant 3 : index
    %c0_256 = arith.constant 0 : index
    %333 = vector.load %arg14[%c3_255, %c0_256] : memref<5x128xf32, #tpu.memory_space<vmem>>, vector<1x128xf32>
    %cst_257 = arith.constant dense<0.000000e+00> : vector<128xf32>
    %334 = vector.multi_reduction <add>, %331, %cst_257 [0] : vector<32x128xf32> to vector<128xf32>
    %335 = vector.shape_cast %334 : vector<128xf32> to vector<1x128xf32>
    %cst_258 = arith.constant 3.125000e-02 : f32
    %336 = vector.broadcast %cst_258 : f32 to vector<1x128xf32>
    %337 = arith.mulf %335, %336 : vector<1x128xf32>
    %338 = vector.broadcast %337 : vector<1x128xf32> to vector<32x128xf32>
    %339 = arith.subf %331, %338 : vector<32x128xf32>
    %340 = arith.mulf %339, %339 : vector<32x128xf32>
    %cst_259 = arith.constant dense<0.000000e+00> : vector<128xf32>
    %341 = vector.multi_reduction <add>, %340, %cst_259 [0] : vector<32x128xf32> to vector<128xf32>
    %342 = vector.shape_cast %341 : vector<128xf32> to vector<1x128xf32>
    %cst_260 = arith.constant 3.125000e-02 : f32
    %343 = vector.broadcast %cst_260 : f32 to vector<1x128xf32>
    %344 = arith.mulf %342, %343 : vector<1x128xf32>
    %cst_261 = arith.constant 9.99999974E-6 : f32
    %345 = vector.broadcast %cst_261 : f32 to vector<1x128xf32>
    %346 = arith.addf %344, %345 : vector<1x128xf32>
    %347 = math.rsqrt %346 : vector<1x128xf32>
    %348 = arith.mulf %332, %347 : vector<1x128xf32>
    %349 = vector.broadcast %348 : vector<1x128xf32> to vector<32x128xf32>
    %350 = arith.mulf %339, %349 : vector<32x128xf32>
    %351 = vector.broadcast %333 : vector<1x128xf32> to vector<32x128xf32>
    %352 = arith.addf %350, %351 : vector<32x128xf32>
    %353 = arith.addf %352, %275 : vector<32x128xf32>
    %cst_262 = arith.constant 0.000000e+00 : f32
    %354 = vector.broadcast %cst_262 : f32 to vector<32x128xf32>
    %355 = arith.maximumf %353, %354 : vector<32x128xf32>
    %c0_263 = arith.constant 0 : index
    %c0_264 = arith.constant 0 : index
    %356 = vector.load %arg15[%c0_263, %c0_264] : memref<32x32xbf16, #tpu.memory_space<vmem>>, vector<32x32xbf16>
    %357 = arith.truncf %355 : vector<32x128xf32> to vector<32x128xbf16>
    %cst_265 = arith.constant dense<0.000000e+00> : vector<32x128xf32>
    %358 = tpu.matmul %356, %357, %cst_265 {dimension_numbers = #tpu.dot_dimension_numbers<[1], [0], [0], [1], [0, 0, 1, 1], [], []>} : vector<32x32xbf16>, vector<32x128xbf16>, vector<32x128xf32> -> vector<32x128xf32>
    %359 = arith.truncf %358 : vector<32x128xf32> to vector<32x128xbf16>
    %c0_266 = arith.constant 0 : index
    %c0_267 = arith.constant 0 : index
    %360 = vector.load %arg17[%c0_266, %c0_267] : memref<1x2xf32, #tpu.memory_space<vmem>>, vector<1x2xf32>
    %cst_268 = arith.constant 0.000000e+00 : f32
    %361 = vector.broadcast %cst_268 : f32 to vector<2x2xf32>
    %362 = vector.broadcast %360 : vector<1x2xf32> to vector<2x2xf32>
    %363 = arith.addf %362, %361 : vector<2x2xf32>
    %364 = vector.extract_strided_slice %359 {offsets = [0, 0], sizes = [2, 128], strides = [1, 1]} : vector<32x128xbf16> to vector<2x128xbf16>
    %c0_269 = arith.constant 0 : index
    %c0_270 = arith.constant 0 : index
    %365 = vector.load %arg16[%c0_269, %c0_270] : memref<2048x2xbf16, #tpu.memory_space<vmem>>, vector<128x2xbf16>
    %cst_271 = arith.constant dense<0.000000e+00> : vector<2x2xf32>
    %366 = tpu.matmul %364, %365, %cst_271 {dimension_numbers = #tpu.dot_dimension_numbers<[1], [0], [0], [1], [0, 0, 1, 1], [], []>} : vector<2x128xbf16>, vector<128x2xbf16>, vector<2x2xf32> -> vector<2x2xf32>
    %367 = arith.addf %363, %366 : vector<2x2xf32>
    %368 = vector.extract_strided_slice %359 {offsets = [2, 0], sizes = [2, 128], strides = [1, 1]} : vector<32x128xbf16> to vector<2x128xbf16>
    %c128_272 = arith.constant 128 : index
    %c0_273 = arith.constant 0 : index
    %369 = vector.load %arg16[%c128_272, %c0_273] : memref<2048x2xbf16, #tpu.memory_space<vmem>>, vector<128x2xbf16>
    %cst_274 = arith.constant dense<0.000000e+00> : vector<2x2xf32>
    %370 = tpu.matmul %368, %369, %cst_274 {dimension_numbers = #tpu.dot_dimension_numbers<[1], [0], [0], [1], [0, 0, 1, 1], [], []>} : vector<2x128xbf16>, vector<128x2xbf16>, vector<2x2xf32> -> vector<2x2xf32>
    %371 = arith.addf %367, %370 : vector<2x2xf32>
    %372 = vector.extract_strided_slice %359 {offsets = [4, 0], sizes = [2, 128], strides = [1, 1]} : vector<32x128xbf16> to vector<2x128xbf16>
    %c256_275 = arith.constant 256 : index
    %c0_276 = arith.constant 0 : index
    %373 = vector.load %arg16[%c256_275, %c0_276] : memref<2048x2xbf16, #tpu.memory_space<vmem>>, vector<128x2xbf16>
    %cst_277 = arith.constant dense<0.000000e+00> : vector<2x2xf32>
    %374 = tpu.matmul %372, %373, %cst_277 {dimension_numbers = #tpu.dot_dimension_numbers<[1], [0], [0], [1], [0, 0, 1, 1], [], []>} : vector<2x128xbf16>, vector<128x2xbf16>, vector<2x2xf32> -> vector<2x2xf32>
    %375 = arith.addf %371, %374 : vector<2x2xf32>
    %376 = vector.extract_strided_slice %359 {offsets = [6, 0], sizes = [2, 128], strides = [1, 1]} : vector<32x128xbf16> to vector<2x128xbf16>
    %c384_278 = arith.constant 384 : index
    %c0_279 = arith.constant 0 : index
    %377 = vector.load %arg16[%c384_278, %c0_279] : memref<2048x2xbf16, #tpu.memory_space<vmem>>, vector<128x2xbf16>
    %cst_280 = arith.constant dense<0.000000e+00> : vector<2x2xf32>
    %378 = tpu.matmul %376, %377, %cst_280 {dimension_numbers = #tpu.dot_dimension_numbers<[1], [0], [0], [1], [0, 0, 1, 1], [], []>} : vector<2x128xbf16>, vector<128x2xbf16>, vector<2x2xf32> -> vector<2x2xf32>
    %379 = arith.addf %375, %378 : vector<2x2xf32>
    %380 = vector.extract_strided_slice %359 {offsets = [8, 0], sizes = [2, 128], strides = [1, 1]} : vector<32x128xbf16> to vector<2x128xbf16>
    %c512_281 = arith.constant 512 : index
    %c0_282 = arith.constant 0 : index
    %381 = vector.load %arg16[%c512_281, %c0_282] : memref<2048x2xbf16, #tpu.memory_space<vmem>>, vector<128x2xbf16>
    %cst_283 = arith.constant dense<0.000000e+00> : vector<2x2xf32>
    %382 = tpu.matmul %380, %381, %cst_283 {dimension_numbers = #tpu.dot_dimension_numbers<[1], [0], [0], [1], [0, 0, 1, 1], [], []>} : vector<2x128xbf16>, vector<128x2xbf16>, vector<2x2xf32> -> vector<2x2xf32>
    %383 = arith.addf %379, %382 : vector<2x2xf32>
    %384 = vector.extract_strided_slice %359 {offsets = [10, 0], sizes = [2, 128], strides = [1, 1]} : vector<32x128xbf16> to vector<2x128xbf16>
    %c640_284 = arith.constant 640 : index
    %c0_285 = arith.constant 0 : index
    %385 = vector.load %arg16[%c640_284, %c0_285] : memref<2048x2xbf16, #tpu.memory_space<vmem>>, vector<128x2xbf16>
    %cst_286 = arith.constant dense<0.000000e+00> : vector<2x2xf32>
    %386 = tpu.matmul %384, %385, %cst_286 {dimension_numbers = #tpu.dot_dimension_numbers<[1], [0], [0], [1], [0, 0, 1, 1], [], []>} : vector<2x128xbf16>, vector<128x2xbf16>, vector<2x2xf32> -> vector<2x2xf32>
    %387 = arith.addf %383, %386 : vector<2x2xf32>
    %388 = vector.extract_strided_slice %359 {offsets = [12, 0], sizes = [2, 128], strides = [1, 1]} : vector<32x128xbf16> to vector<2x128xbf16>
    %c768_287 = arith.constant 768 : index
    %c0_288 = arith.constant 0 : index
    %389 = vector.load %arg16[%c768_287, %c0_288] : memref<2048x2xbf16, #tpu.memory_space<vmem>>, vector<128x2xbf16>
    %cst_289 = arith.constant dense<0.000000e+00> : vector<2x2xf32>
    %390 = tpu.matmul %388, %389, %cst_289 {dimension_numbers = #tpu.dot_dimension_numbers<[1], [0], [0], [1], [0, 0, 1, 1], [], []>} : vector<2x128xbf16>, vector<128x2xbf16>, vector<2x2xf32> -> vector<2x2xf32>
    %391 = arith.addf %387, %390 : vector<2x2xf32>
    %392 = vector.extract_strided_slice %359 {offsets = [14, 0], sizes = [2, 128], strides = [1, 1]} : vector<32x128xbf16> to vector<2x128xbf16>
    %c896_290 = arith.constant 896 : index
    %c0_291 = arith.constant 0 : index
    %393 = vector.load %arg16[%c896_290, %c0_291] : memref<2048x2xbf16, #tpu.memory_space<vmem>>, vector<128x2xbf16>
    %cst_292 = arith.constant dense<0.000000e+00> : vector<2x2xf32>
    %394 = tpu.matmul %392, %393, %cst_292 {dimension_numbers = #tpu.dot_dimension_numbers<[1], [0], [0], [1], [0, 0, 1, 1], [], []>} : vector<2x128xbf16>, vector<128x2xbf16>, vector<2x2xf32> -> vector<2x2xf32>
    %395 = arith.addf %391, %394 : vector<2x2xf32>
    %396 = vector.extract_strided_slice %359 {offsets = [16, 0], sizes = [2, 128], strides = [1, 1]} : vector<32x128xbf16> to vector<2x128xbf16>
    %c1024_293 = arith.constant 1024 : index
    %c0_294 = arith.constant 0 : index
    %397 = vector.load %arg16[%c1024_293, %c0_294] : memref<2048x2xbf16, #tpu.memory_space<vmem>>, vector<128x2xbf16>
    %cst_295 = arith.constant dense<0.000000e+00> : vector<2x2xf32>
    %398 = tpu.matmul %396, %397, %cst_295 {dimension_numbers = #tpu.dot_dimension_numbers<[1], [0], [0], [1], [0, 0, 1, 1], [], []>} : vector<2x128xbf16>, vector<128x2xbf16>, vector<2x2xf32> -> vector<2x2xf32>
    %399 = arith.addf %395, %398 : vector<2x2xf32>
    %400 = vector.extract_strided_slice %359 {offsets = [18, 0], sizes = [2, 128], strides = [1, 1]} : vector<32x128xbf16> to vector<2x128xbf16>
    %c1152 = arith.constant 1152 : index
    %c0_296 = arith.constant 0 : index
    %401 = vector.load %arg16[%c1152, %c0_296] : memref<2048x2xbf16, #tpu.memory_space<vmem>>, vector<128x2xbf16>
    %cst_297 = arith.constant dense<0.000000e+00> : vector<2x2xf32>
    %402 = tpu.matmul %400, %401, %cst_297 {dimension_numbers = #tpu.dot_dimension_numbers<[1], [0], [0], [1], [0, 0, 1, 1], [], []>} : vector<2x128xbf16>, vector<128x2xbf16>, vector<2x2xf32> -> vector<2x2xf32>
    %403 = arith.addf %399, %402 : vector<2x2xf32>
    %404 = vector.extract_strided_slice %359 {offsets = [20, 0], sizes = [2, 128], strides = [1, 1]} : vector<32x128xbf16> to vector<2x128xbf16>
    %c1280 = arith.constant 1280 : index
    %c0_298 = arith.constant 0 : index
    %405 = vector.load %arg16[%c1280, %c0_298] : memref<2048x2xbf16, #tpu.memory_space<vmem>>, vector<128x2xbf16>
    %cst_299 = arith.constant dense<0.000000e+00> : vector<2x2xf32>
    %406 = tpu.matmul %404, %405, %cst_299 {dimension_numbers = #tpu.dot_dimension_numbers<[1], [0], [0], [1], [0, 0, 1, 1], [], []>} : vector<2x128xbf16>, vector<128x2xbf16>, vector<2x2xf32> -> vector<2x2xf32>
    %407 = arith.addf %403, %406 : vector<2x2xf32>
    %408 = vector.extract_strided_slice %359 {offsets = [22, 0], sizes = [2, 128], strides = [1, 1]} : vector<32x128xbf16> to vector<2x128xbf16>
    %c1408 = arith.constant 1408 : index
    %c0_300 = arith.constant 0 : index
    %409 = vector.load %arg16[%c1408, %c0_300] : memref<2048x2xbf16, #tpu.memory_space<vmem>>, vector<128x2xbf16>
    %cst_301 = arith.constant dense<0.000000e+00> : vector<2x2xf32>
    %410 = tpu.matmul %408, %409, %cst_301 {dimension_numbers = #tpu.dot_dimension_numbers<[1], [0], [0], [1], [0, 0, 1, 1], [], []>} : vector<2x128xbf16>, vector<128x2xbf16>, vector<2x2xf32> -> vector<2x2xf32>
    %411 = arith.addf %407, %410 : vector<2x2xf32>
    %412 = vector.extract_strided_slice %359 {offsets = [24, 0], sizes = [2, 128], strides = [1, 1]} : vector<32x128xbf16> to vector<2x128xbf16>
    %c1536 = arith.constant 1536 : index
    %c0_302 = arith.constant 0 : index
    %413 = vector.load %arg16[%c1536, %c0_302] : memref<2048x2xbf16, #tpu.memory_space<vmem>>, vector<128x2xbf16>
    %cst_303 = arith.constant dense<0.000000e+00> : vector<2x2xf32>
    %414 = tpu.matmul %412, %413, %cst_303 {dimension_numbers = #tpu.dot_dimension_numbers<[1], [0], [0], [1], [0, 0, 1, 1], [], []>} : vector<2x128xbf16>, vector<128x2xbf16>, vector<2x2xf32> -> vector<2x2xf32>
    %415 = arith.addf %411, %414 : vector<2x2xf32>
    %416 = vector.extract_strided_slice %359 {offsets = [26, 0], sizes = [2, 128], strides = [1, 1]} : vector<32x128xbf16> to vector<2x128xbf16>
    %c1664 = arith.constant 1664 : index
    %c0_304 = arith.constant 0 : index
    %417 = vector.load %arg16[%c1664, %c0_304] : memref<2048x2xbf16, #tpu.memory_space<vmem>>, vector<128x2xbf16>
    %cst_305 = arith.constant dense<0.000000e+00> : vector<2x2xf32>
    %418 = tpu.matmul %416, %417, %cst_305 {dimension_numbers = #tpu.dot_dimension_numbers<[1], [0], [0], [1], [0, 0, 1, 1], [], []>} : vector<2x128xbf16>, vector<128x2xbf16>, vector<2x2xf32> -> vector<2x2xf32>
    %419 = arith.addf %415, %418 : vector<2x2xf32>
    %420 = vector.extract_strided_slice %359 {offsets = [28, 0], sizes = [2, 128], strides = [1, 1]} : vector<32x128xbf16> to vector<2x128xbf16>
    %c1792 = arith.constant 1792 : index
    %c0_306 = arith.constant 0 : index
    %421 = vector.load %arg16[%c1792, %c0_306] : memref<2048x2xbf16, #tpu.memory_space<vmem>>, vector<128x2xbf16>
    %cst_307 = arith.constant dense<0.000000e+00> : vector<2x2xf32>
    %422 = tpu.matmul %420, %421, %cst_307 {dimension_numbers = #tpu.dot_dimension_numbers<[1], [0], [0], [1], [0, 0, 1, 1], [], []>} : vector<2x128xbf16>, vector<128x2xbf16>, vector<2x2xf32> -> vector<2x2xf32>
    %423 = arith.addf %419, %422 : vector<2x2xf32>
    %424 = vector.extract_strided_slice %359 {offsets = [30, 0], sizes = [2, 128], strides = [1, 1]} : vector<32x128xbf16> to vector<2x128xbf16>
    %c1920 = arith.constant 1920 : index
    %c0_308 = arith.constant 0 : index
    %425 = vector.load %arg16[%c1920, %c0_308] : memref<2048x2xbf16, #tpu.memory_space<vmem>>, vector<128x2xbf16>
    %cst_309 = arith.constant dense<0.000000e+00> : vector<2x2xf32>
    %426 = tpu.matmul %424, %425, %cst_309 {dimension_numbers = #tpu.dot_dimension_numbers<[1], [0], [0], [1], [0, 0, 1, 1], [], []>} : vector<2x128xbf16>, vector<128x2xbf16>, vector<2x2xf32> -> vector<2x2xf32>
    %427 = arith.addf %423, %426 : vector<2x2xf32>
    %c0_310 = arith.constant 0 : index
    %c0_311 = arith.constant 0 : index
    %428 = vector.load %arg18[%c0_310, %c0_311] : memref<2x2xf32, #tpu.memory_space<vmem>>, vector<2x2xf32>
    tpu.vector_store %arg18[%c0_310, %c0_311], %427 {strides = array<i32>} : memref<2x2xf32, #tpu.memory_space<vmem>>, vector<2x2xf32>,
    return
  }
}

</mosaic_0001>

<bundles_post_ra>
// kernel: my_cnn_forward.1
= control target key start
LH: loop header
LB: loop body
LE: loop exit
PB: predicated region body
PF: predicated region fallthrough
CT: control target
= control target key end

     0   :  { %s26191_s0 = inlined_call_operand.vmem [shape: bf16[450,147], index: 0, kind: input, shape index: {}]   ;;  %s26192_s1 = inlined_call_operand.vmem [shape: bf16[147,32], index: 1, kind: input, shape index: {}]   ;;  %s26193_s2 = inlined_call_operand.vmem [shape: f32[2,32], index: 2, kind: input, shape index: {}]   ;;  %s26194_s3 = inlined_call_operand.vmem [shape: bf16[1152,450], index: 3, kind: input, shape index: {}]   ;;  %s26195_s4 = inlined_call_operand.vmem [shape: bf16[1152,128], index: 4, kind: input, shape index: {}]   ;;  %s26196_s5 = inlined_call_operand.vmem [shape: bf16[288,64], index: 5, kind: input, shape index: {}]   ;;  %s26197_s6 = inlined_call_operand.vmem [shape: bf16[576,64], index: 6, kind: input, shape index: {}]   ;;  %s26198_s7 = inlined_call_operand.vmem [shape: bf16[32,64], index: 7, kind: input, shape index: {}]   ;;  %s26199_s8 = inlined_call_operand.vmem [shape: f32[5,64], index: 8, kind: input, shape index: {}]   ;;  %s26200_s9 = inlined_call_operand.vmem [shape: bf16[288,128], index: 9, kind: input, shape index: {}]   ;;  %s26201_s10 = inlined_call_operand.vmem [shape: bf16[288,32], index: 10, kind: input, shape index: {}]   ;;  %s26202_s11 = inlined_call_operand.vmem [shape: bf16[576,128], index: 11, kind: input, shape index: {}]   ;;  %s26203_s12 = inlined_call_operand.vmem [shape: bf16[1152,128], index: 12, kind: input, shape index: {}]   ;;  %s26204_s13 = inlined_call_operand.vmem [shape: bf16[64,128], index: 13, kind: input, shape index: {}]   ;;  %s26205_s14 = inlined_call_operand.vmem [shape: f32[5,128], index: 14, kind: input, shape index: {}]   ;;  %s26206_s15 = inlined_call_operand.vmem [shape: bf16[32,32], index: 15, kind: input, shape index: {}]   ;;  %s26207_s16 = inlined_call_operand.vmem [shape: bf16[2048,2], index: 16, kind: input, shape index: {}]   ;;  %s26208_s17 = inlined_call_operand.vmem [shape: f32[1,2], index: 17, kind: input, shape index: {}]   ;;  %s26209_s18 = inlined_call_operand.hbm [shape: f32[2,2], index: 18, kind: output, shape index: {}]  }
   0x1   :  { %26302 = sst [smem:[#allocation96_spill]] %s26191_s0 }
   0x2   :  { %26303 = sst [smem:[#allocation97_spill]] %s26192_s1 }
   0x3   :  { %26304 = sst [smem:[#allocation98_spill]] %s26193_s2 }
   0x4   :  { %s26305_s29 = sld [smem:[#allocation97_spill]]  ;;  %v26213_v1 = vmov 0   ;;  %vm452_vm0 = vcmask 154624   ;;  %s26306_s23 = sld [smem:[#allocation96_spill]]  ;;  %vm540_vm1 = vcmask 1040384   ;;  %vm541_vm2 = vcmask 1041408  }
   0x5   :  { %547 = vmatprep.subr.bf16.mxu0 %v26213_v1  ;;  %v20401_v10 = vmov 65535   ;;  %vm813_vm3 = vcmask 261120  }
   0x6   :  { %v542_v11 = vsel %vm540_vm1, 4294967295, %v20401_v10 }
   0x7   :  { %v543_v14 = vsel %vm541_vm2, %v542_v11, 0 }
   0xa   :  { %v19432_v0 = vld [vmem:[%s26305_s29] sm:$0xff]   ;;  %v19433_v2 = vld [vmem:[%s26305_s29 + $0x8] sm:$0xff]   ;;  %v19434_v3 = vld [vmem:[%s26305_s29 + $0x10] sm:$0xff]  }
   0xb   :  { %548 = vmatpush1.bf16.msra.mxu0 %v19432_v0  ;;  %v19435_v4 = vld [vmem:[%s26305_s29 + $0x18] sm:$0xff]   ;;  %v19444_v5 = vld [vmem:[%s26306_s23 + $0x4] ss:$8 sps:$4 sm:$0xff]   ;;  %v19438_v8 = vld [vmem:[%s26305_s29 + $0x30] sm:$0xff]  }
   0xc   :  { %549 = vmatprep.subr.bf16.mxu0 %v26213_v1  ;;  %15089 = vmatprep.mubr.msk.bf16.mxu0 %vm452_vm0, %v19444_v5  ;;  %v19436_v6 = vld [vmem:[%s26305_s29 + $0x20] sm:$0xff]   ;;  %v19437_v7 = vld [vmem:[%s26305_s29 + $0x28] sm:$0xff]   ;;  %v19439_v9 = vld [vmem:[%s26305_s29 + $0x38] sm:$0xff]  }
   0xd   :  { %v19440_v12 = vld [vmem:[%s26305_s29 + $0x40] sm:$0xff]   ;;  %v19441_v13 = vld [vmem:[%s26305_s29 + $0x48] ss:$0 sps:$4 sm:$0x33]   ;;  %v19445_v17 = vld [vmem:[%s26306_s23 + $0x14] ss:$8 sps:$4 sm:$0xff]  }
   0xe   :  { %v545_v15 = vand.u32 %v19441_v13, %v543_v14  ;;  %v19442_v16 = vld [vmem:[%s26306_s23] ss:$8 sps:$4 sm:$0xff]   ;;  %v19447_v18 = vld [vmem:[%s26306_s23 + $0x10] ss:$8 sps:$4 sm:$0xff]   ;;  %v19448_v19 = vld [vmem:[%s26306_s23 + $0x24] ss:$8 sps:$4 sm:$0xff]  }
   0xf   :  { %550 = vmatpush1.bf16.msra.mxu0 %v19433_v2  ;;  %v19450_v20 = vld [vmem:[%s26306_s23 + $0x20] ss:$8 sps:$4 sm:$0xff]   ;;  %v19451_v21 = vld [vmem:[%s26306_s23 + $0x34] ss:$8 sps:$4 sm:$0xff]   ;;  %v19453_v22 = vld [vmem:[%s26306_s23 + $0x30] ss:$8 sps:$4 sm:$0xff]  }
  0x10   :  { %551 = vmatprep.subr.bf16.mxu0 %v26213_v1  ;;  %v19454_v23 = vld [vmem:[%s26306_s23 + $0x44] ss:$8 sps:$4 sm:$0xff]   ;;  %v19456_v24 = vld [vmem:[%s26306_s23 + $0x40] ss:$8 sps:$4 sm:$0xff]   ;;  %v19457_v25 = vld [vmem:[%s26306_s23 + $0x54] ss:$8 sps:$4 sm:$0xff]  }
  0x11   :  { %v19459_v26 = vld [vmem:[%s26306_s23 + $0x50] ss:$8 sps:$4 sm:$0xff]   ;;  %v19460_v27 = vld [vmem:[%s26306_s23 + $0x64] ss:$8 sps:$4 sm:$0xff]   ;;  %v19462_v28 = vld [vmem:[%s26306_s23 + $0x60] ss:$8 sps:$4 sm:$0xff]  }
  0x12   :  { %v19463_v29 = vld [vmem:[%s26306_s23 + $0x74] ss:$8 sps:$4 sm:$0xff]   ;;  %v19465_v30 = vld [vmem:[%s26306_s23 + $0x70] ss:$8 sps:$4 sm:$0xff]   ;;  %v19466_v31 = vld [vmem:[%s26306_s23 + $0x84] ss:$8 sps:$4 sm:$0xff]  }
  0x13   :  { %552 = vmatpush1.bf16.msra.mxu0 %v19434_v3  ;;  %v19468_v32 = vld [vmem:[%s26306_s23 + $0x80] ss:$8 sps:$4 sm:$0xff]   ;;  %v19469_v33 = vld [vmem:[%s26306_s23 + $0x94] ss:$8 sps:$4 sm:$0xff]   ;;  %v19471_v34 = vld [vmem:[%s26306_s23 + $0x90] ss:$8 sps:$4 sm:$0xff]  }
  0x14   :  { %553 = vmatprep.subr.bf16.mxu0 %v26213_v1  ;;  %v19472_v35 = vld [vmem:[%s26306_s23 + $0xa4] ss:$8 sps:$4 sm:$0xff]   ;;  %v19474_v36 = vld [vmem:[%s26306_s23 + $0xa0] ss:$8 sps:$4 sm:$0xff]   ;;  %v19475_v37 = vld [vmem:[%s26306_s23 + $0xb4] ss:$8 sps:$4 sm:$0xff]  }
  0x15   :  { %v19477_v38 = vld [vmem:[%s26306_s23 + $0xb0] ss:$8 sps:$4 sm:$0xff]   ;;  %v19478_v39 = vld [vmem:[%s26306_s23 + $0xc4] ss:$8 sps:$4 sm:$0xff]   ;;  %v19480_v40 = vld [vmem:[%s26306_s23 + $0xc0] ss:$8 sps:$4 sm:$0xff]  }
  0x16   :  { %v19481_v41 = vld [vmem:[%s26306_s23 + $0xd4] ss:$8 sps:$4 sm:$0xff]   ;;  %v19483_v42 = vld [vmem:[%s26306_s23 + $0xd0] ss:$8 sps:$4 sm:$0xff]   ;;  %v19484_v43 = vld [vmem:[%s26306_s23 + $0xe4] ss:$8 sps:$4 sm:$0xff]  }
  0x17   :  { %554 = vmatpush1.bf16.msra.mxu0 %v19435_v4  ;;  %v19486_v44 = vld [vmem:[%s26306_s23 + $0xe0] ss:$8 sps:$4 sm:$0xff]   ;;  %v19487_v45 = vld [vmem:[%s26306_s23 + $0xf4] ss:$8 sps:$4 sm:$0xff]   ;;  %v19489_v46 = vld [vmem:[%s26306_s23 + $0xf0] ss:$8 sps:$4 sm:$0xff]  }
  0x18   :  { %555 = vmatprep.subr.bf16.mxu0 %v26213_v1  ;;  %v19490_v47 = vld [vmem:[%s26306_s23 + $0x104] ss:$8 sps:$4 sm:$0xff]   ;;  %v19492_v48 = vld [vmem:[%s26306_s23 + $0x100] ss:$8 sps:$4 sm:$0xff]   ;;  %v19493_v49 = vld [vmem:[%s26306_s23 + $0x114] ss:$8 sps:$4 sm:$0xff]  }
  0x19   :  { %v19495_v50 = vld [vmem:[%s26306_s23 + $0x110] ss:$8 sps:$4 sm:$0xff]   ;;  %v19496_v51 = vld [vmem:[%s26306_s23 + $0x124] ss:$8 sps:$4 sm:$0xff]   ;;  %v19498_v52 = vld [vmem:[%s26306_s23 + $0x120] ss:$8 sps:$4 sm:$0xff]  }
  0x1a   :  { %v19499_v53 = vld [vmem:[%s26306_s23 + $0x134] ss:$8 sps:$4 sm:$0xff]   ;;  %v19501_v54 = vld [vmem:[%s26306_s23 + $0x130] ss:$8 sps:$4 sm:$0xff]   ;;  %v19502_v55 = vld [vmem:[%s26306_s23 + $0x144] ss:$8 sps:$4 sm:$0xff]  }
  0x1b   :  { %556 = vmatpush1.bf16.msra.mxu0 %v19436_v6  ;;  %v19504_v56 = vld [vmem:[%s26306_s23 + $0x140] ss:$8 sps:$4 sm:$0xff]   ;;  %v19505_v57 = vld [vmem:[%s26306_s23 + $0x154] ss:$8 sps:$4 sm:$0xff]   ;;  %v19507_v58 = vld [vmem:[%s26306_s23 + $0x150] ss:$8 sps:$4 sm:$0xff]  }
  0x1c   :  { %557 = vmatprep.subr.bf16.mxu0 %v26213_v1  ;;  %v19508_v59 = vld [vmem:[%s26306_s23 + $0x164] ss:$8 sps:$4 sm:$0xff]   ;;  %v19510_v60 = vld [vmem:[%s26306_s23 + $0x160] ss:$8 sps:$4 sm:$0xff]   ;;  %v19511_v61 = vld [vmem:[%s26306_s23 + $0x174] ss:$8 sps:$4 sm:$0xff]  }
  0x1d   :  { %v19513_v62 = vld [vmem:[%s26306_s23 + $0x170] ss:$8 sps:$4 sm:$0xff]   ;;  %v19514_v63 = vld [vmem:[%s26306_s23 + $0x184] ss:$8 sps:$4 sm:$0xff]   ;;  %v19516_v0 = vld [vmem:[%s26306_s23 + $0x180] ss:$8 sps:$4 sm:$0xff]  }
  0x1e   :  { %v19517_v2 = vld [vmem:[%s26306_s23 + $0x194] ss:$8 sps:$4 sm:$0xff]   ;;  %v19519_v3 = vld [vmem:[%s26306_s23 + $0x190] ss:$8 sps:$4 sm:$0xff]   ;;  %v19520_v4 = vld [vmem:[%s26306_s23 + $0x1a4] ss:$8 sps:$4 sm:$0xff]  }
  0x1f   :  { %558 = vmatpush1.bf16.msra.mxu0 %v19437_v7  ;;  %v19522_v5 = vld [vmem:[%s26306_s23 + $0x1a0] ss:$8 sps:$4 sm:$0xff]   ;;  %v19523_v6 = vld [vmem:[%s26306_s23 + $0x1b4] ss:$8 sps:$4 sm:$0xff]  }
  0x20   :  { %559 = vmatprep.subr.bf16.mxu0 %v26213_v1  ;;  %v117_v7 = vld [vmem:[%s26306_s23 + $0x1c0] sm:$0x11] }
  0x21   :  { %v15078_v13 = vcombine.high %v117_v7, %v117_v7 }
  0x23   :  { %560 = vmatpush1.bf16.msra.mxu0 %v19438_v8  ;;  %v19525_v8 = vld [vmem:[%s26306_s23 + $0x1b0] ss:$8 sps:$4 sm:$0xff]  }
  0x24   :  { %561 = vmatprep.subr.bf16.mxu0 %v26213_v1 }
  0x27   :  { %562 = vmatpush1.bf16.msra.mxu0 %v19439_v9 }
  0x28   :  { %563 = vmatprep.subr.bf16.mxu0 %v26213_v1 }
  0x2b   :  { %564 = vmatpush1.bf16.msra.mxu0 %v19440_v12 }
  0x2c   :  { %565 = vmatprep.subr.bf16.mxu0 %v26213_v1 }
  0x2f   :  { %566 = vmatpush1.bf16.msra.mxu0 %v545_v15 }
  0x32   :  { %580 = vmatmul.mubr.bf16.vlgmr.msra.gmra.mrb[0].mxu0 %v19442_v16 }
  0x33   :  { %15090 = vmatprep.mubr.msk.bf16.mxu0 %vm452_vm0, %v19445_v17 }
  0x3a   :  { %588 = vmatmul.mubr.bf16.gmra.mrb[4].mxu0 %v19447_v18 }
  0x3b   :  { %15091 = vmatprep.mubr.msk.bf16.mxu0 %vm452_vm0, %v19448_v19 }
  0x42   :  { %596 = vmatmul.mubr.bf16.gmra.mrb[8].mxu0 %v19450_v20  ;;  %v15077_v20 = vcombine.low %v117_v7, %v117_v7 }
  0x43   :  { %15092 = vmatprep.mubr.msk.bf16.mxu0 %vm452_vm0, %v19451_v21 }
  0x4a   :  { %604 = vmatmul.mubr.bf16.gmra.mrb[12].mxu0 %v19453_v22 }
  0x4b   :  { %15093 = vmatprep.mubr.msk.bf16.mxu0 %vm452_vm0, %v19454_v23 }
  0x52   :  { %612 = vmatmul.mubr.bf16.gmra.mrb[16].mxu0 %v19456_v24 }
  0x53   :  { %15094 = vmatprep.mubr.msk.bf16.mxu0 %vm452_vm0, %v19457_v25 }
  0x5a   :  { %620 = vmatmul.mubr.bf16.gmra.mrb[20].mxu0 %v19459_v26 }
  0x5b   :  { %15095 = vmatprep.mubr.msk.bf16.mxu0 %vm452_vm0, %v19460_v27 }
  0x62   :  { %628 = vmatmul.mubr.bf16.gmra.mrb[24].mxu0 %v19462_v28 }
  0x63   :  { %15096 = vmatprep.mubr.msk.bf16.mxu0 %vm452_vm0, %v19463_v29 }
  0x6a   :  { %636 = vmatmul.mubr.bf16.gmra.mrb[28].mxu0 %v19465_v30 }
  0x6b   :  { %15097 = vmatprep.mubr.msk.bf16.mxu0 %vm452_vm0, %v19466_v31 }
  0x72   :  { %644 = vmatmul.mubr.bf16.gmra.mrb[32].mxu0 %v19468_v32 }
  0x73   :  { %15098 = vmatprep.mubr.msk.bf16.mxu0 %vm452_vm0, %v19469_v33 }
  0x7a   :  { %652 = vmatmul.mubr.bf16.gmra.mrb[36].mxu0 %v19471_v34 }
  0x7b   :  { %15099 = vmatprep.mubr.msk.bf16.mxu0 %vm452_vm0, %v19472_v35 }
  0x82   :  { %660 = vmatmul.mubr.bf16.gmra.mrb[40].mxu0 %v19474_v36 }
  0x83   :  { %15100 = vmatprep.mubr.msk.bf16.mxu0 %vm452_vm0, %v19475_v37 }
  0x8a   :  { %668 = vmatmul.mubr.bf16.gmra.mrb[44].mxu0 %v19477_v38 }
  0x8b   :  { %15101 = vmatprep.mubr.msk.bf16.mxu0 %vm452_vm0, %v19478_v39 }
  0x92   :  { %676 = vmatmul.mubr.bf16.gmra.mrb[48].mxu0 %v19480_v40 }
  0x93   :  { %15102 = vmatprep.mubr.msk.bf16.mxu0 %vm452_vm0, %v19481_v41 }
  0x9a   :  { %684 = vmatmul.mubr.bf16.gmra.mrb[52].mxu0 %v19483_v42 }
  0x9b   :  { %15103 = vmatprep.mubr.msk.bf16.mxu0 %vm452_vm0, %v19484_v43 }
  0xa2   :  { %692 = vmatmul.mubr.bf16.gmra.mrb[56].mxu0 %v19486_v44 }
  0xa3   :  { %15104 = vmatprep.mubr.msk.bf16.mxu0 %vm452_vm0, %v19487_v45 }
  0xaa   :  { %700 = vmatmul.mubr.bf16.gmra.mrb[60].mxu0 %v19489_v46 }
  0xab   :  { %15105 = vmatprep.mubr.msk.bf16.mxu0 %vm452_vm0, %v19490_v47 }
  0xb2   :  { %708 = vmatmul.mubr.bf16.gmra.mrb[64].mxu0 %v19492_v48 }
  0xb3   :  { %15106 = vmatprep.mubr.msk.bf16.mxu0 %vm452_vm0, %v19493_v49 }
  0xba   :  { %716 = vmatmul.mubr.bf16.gmra.mrb[68].mxu0 %v19495_v50 }
  0xbb   :  { %15107 = vmatprep.mubr.msk.bf16.mxu0 %vm452_vm0, %v19496_v51 }
  0xc2   :  { %724 = vmatmul.mubr.bf16.gmra.mrb[72].mxu0 %v19498_v52 }
  0xc3   :  { %15108 = vmatprep.mubr.msk.bf16.mxu0 %vm452_vm0, %v19499_v53 }
  0xca   :  { %732 = vmatmul.mubr.bf16.gmra.mrb[76].mxu0 %v19501_v54 }
  0xcb   :  { %15109 = vmatprep.mubr.msk.bf16.mxu0 %vm452_vm0, %v19502_v55 }
  0xd2   :  { %740 = vmatmul.mubr.bf16.gmra.mrb[80].mxu0 %v19504_v56 }
  0xd3   :  { %15110 = vmatprep.mubr.msk.bf16.mxu0 %vm452_vm0, %v19505_v57 }
  0xda   :  { %748 = vmatmul.mubr.bf16.gmra.mrb[84].mxu0 %v19507_v58 }
  0xdb   :  { %15111 = vmatprep.mubr.msk.bf16.mxu0 %vm452_vm0, %v19508_v59 }
  0xe2   :  { %756 = vmatmul.mubr.bf16.gmra.mrb[88].mxu0 %v19510_v60 }
  0xe3   :  { %15112 = vmatprep.mubr.msk.bf16.mxu0 %vm452_vm0, %v19511_v61 }
  0xea   :  { %764 = vmatmul.mubr.bf16.gmra.mrb[92].mxu0 %v19513_v62 }
  0xeb   :  { %15113 = vmatprep.mubr.msk.bf16.mxu0 %vm452_vm0, %v19514_v63 }
  0xf2   :  { %772 = vmatmul.mubr.bf16.gmra.mrb[96].mxu0 %v19516_v0 }
  0xf3   :  { %15114 = vmatprep.mubr.msk.bf16.mxu0 %vm452_vm0, %v19517_v2 }
  0xfa   :  { %780 = vmatmul.mubr.bf16.gmra.mrb[100].mxu0 %v19519_v3 }
  0xfb   :  { %15115 = vmatprep.mubr.msk.bf16.mxu0 %vm452_vm0, %v19520_v4 }
 0x102   :  { %788 = vmatmul.mubr.bf16.gmra.mrb[104].mxu0 %v19522_v5 }
 0x103   :  { %15116 = vmatprep.mubr.msk.bf16.mxu0 %vm452_vm0, %v19523_v6 }
 0x105   :  { %v20740_v9 = vpop.f32.mrb[0].mxu0 }
 0x106   :  { %v583_v10 = vpop.f32.mrb[1].mxu0  ;;  %v814_v11 = vsel %vm813_vm3, %v20740_v9, 0.0 }
 0x107   :  { %v20744_v12 = vpop.f32.mrb[2].mxu0 }
 0x108   :  { %v815_v14 = vsel %vm813_vm3, %v20744_v12, 0.0  ;;  %v586_v15 = vpop.f32.mrb[3].mxu0 }
 0x109   :  { %v816_v16 = vadd.f32 %v815_v14, %v814_v11 }
 0x10a   :  { %796 = vmatmul.mubr.bf16.gmra.mrb[108].mxu0 %v19525_v8 }
 0x10b   :  { %15117 = vmatprep.mubr.msk.bf16.mxu0 %vm452_vm0, %v15078_v13 }
 0x10d   :  { %v20749_v17 = vpop.f32.mrb[4].mxu0 }
 0x10e   :  { %v817_v18 = vsel %vm813_vm3, %v20749_v17, 0.0  ;;  %v591_v19 = vpop.f32.mrb[5].mxu0 }
 0x10f   :  { %v818_v21 = vadd.f32 %v817_v18, %v816_v16  ;;  %v20753_v22 = vpop.f32.mrb[6].mxu0 }
 0x110   :  { %v819_v23 = vsel %vm813_vm3, %v20753_v22, 0.0  ;;  %v594_v24 = vpop.f32.mrb[7].mxu0 }
 0x111   :  { %v820_v25 = vadd.f32 %v819_v23, %v818_v21 }
 0x112   :  { %804 = vmatmul.mubr.bf16.gmra.mrb[112].mxu0 %v15077_v20 }
 0x115   :  { %v20757_v26 = vpop.f32.mrb[8].mxu0 }
 0x116   :  { %v821_v27 = vsel %vm813_vm3, %v20757_v26, 0.0  ;;  %v599_v28 = vpop.f32.mrb[9].mxu0 }
 0x117   :  { %v822_v29 = vadd.f32 %v821_v27, %v820_v25  ;;  %v20761_v30 = vpop.f32.mrb[10].mxu0 }
 0x118   :  { %v823_v31 = vsel %vm813_vm3, %v20761_v30, 0.0  ;;  %v602_v32 = vpop.f32.mrb[11].mxu0 }
 0x119   :  { %v824_v33 = vadd.f32 %v823_v31, %v822_v29 }
 0x11d   :  { %v20765_v34 = vpop.f32.mrb[12].mxu0 }
 0x11e   :  { %v825_v35 = vsel %vm813_vm3, %v20765_v34, 0.0  ;;  %v607_v36 = vpop.f32.mrb[13].mxu0 }
 0x11f   :  { %v826_v37 = vadd.f32 %v825_v35, %v824_v33  ;;  %v20769_v38 = vpop.f32.mrb[14].mxu0 }
 0x120   :  { %v827_v39 = vsel %vm813_vm3, %v20769_v38, 0.0  ;;  %v610_v40 = vpop.f32.mrb[15].mxu0 }
 0x121   :  { %v828_v41 = vadd.f32 %v827_v39, %v826_v37 }
 0x125   :  { %v20773_v42 = vpop.f32.mrb[16].mxu0 }
 0x126   :  { %v829_v43 = vsel %vm813_vm3, %v20773_v42, 0.0  ;;  %v615_v44 = vpop.f32.mrb[17].mxu0 }
 0x127   :  { %v830_v45 = vadd.f32 %v829_v43, %v828_v41  ;;  %v20777_v46 = vpop.f32.mrb[18].mxu0 }
 0x128   :  { %v831_v47 = vsel %vm813_vm3, %v20777_v46, 0.0  ;;  %v618_v48 = vpop.f32.mrb[19].mxu0 }
 0x129   :  { %v832_v49 = vadd.f32 %v831_v47, %v830_v45 }
 0x12d   :  { %v20781_v50 = vpop.f32.mrb[20].mxu0 }
 0x12e   :  { %v833_v51 = vsel %vm813_vm3, %v20781_v50, 0.0  ;;  %v623_v52 = vpop.f32.mrb[21].mxu0 }
 0x12f   :  { %v834_v53 = vadd.f32 %v833_v51, %v832_v49  ;;  %v20785_v54 = vpop.f32.mrb[22].mxu0 }
 0x130   :  { %v835_v55 = vsel %vm813_vm3, %v20785_v54, 0.0  ;;  %v626_v56 = vpop.f32.mrb[23].mxu0 }
 0x131   :  { %v836_v57 = vadd.f32 %v835_v55, %v834_v53 }
 0x135   :  { %v20789_v58 = vpop.f32.mrb[24].mxu0 }
 0x136   :  { %v837_v59 = vsel %vm813_vm3, %v20789_v58, 0.0  ;;  %v631_v60 = vpop.f32.mrb[25].mxu0 }
 0x137   :  { %v838_v61 = vadd.f32 %v837_v59, %v836_v57  ;;  %v20793_v62 = vpop.f32.mrb[26].mxu0 }
 0x138   :  { %v839_v63 = vsel %vm813_vm3, %v20793_v62, 0.0  ;;  %v634_v0 = vpop.f32.mrb[27].mxu0 }
 0x139   :  { %v840_v2 = vadd.f32 %v839_v63, %v838_v61 }
 0x13d   :  { %v20797_v3 = vpop.f32.mrb[28].mxu0 }
 0x13e   :  { %v841_v4 = vsel %vm813_vm3, %v20797_v3, 0.0  ;;  %v639_v5 = vpop.f32.mrb[29].mxu0 }
 0x13f   :  { %v842_v6 = vadd.f32 %v841_v4, %v840_v2  ;;  %v20801_v7 = vpop.f32.mrb[30].mxu0 }
 0x140   :  { %v843_v8 = vsel %vm813_vm3, %v20801_v7, 0.0  ;;  %v642_v10 = vpop.f32.mrb[31].mxu0 }
 0x141   :  { %v844_v11 = vadd.f32 %v843_v8, %v842_v6 }
 0x145   :  { %v20805_v13 = vpop.f32.mrb[32].mxu0 }
 0x146   :  { %v845_v14 = vsel %vm813_vm3, %v20805_v13, 0.0  ;;  %v647_v15 = vpop.f32.mrb[33].mxu0 }
 0x147   :  { %v846_v16 = vadd.f32 %v845_v14, %v844_v11  ;;  %v20809_v18 = vpop.f32.mrb[34].mxu0 }
 0x148   :  { %v847_v19 = vsel %vm813_vm3, %v20809_v18, 0.0  ;;  %v650_v20 = vpop.f32.mrb[35].mxu0 }
 0x149   :  { %v848_v21 = vadd.f32 %v847_v19, %v846_v16 }
 0x14d   :  { %v20813_v23 = vpop.f32.mrb[36].mxu0 }
 0x14e   :  { %v849_v24 = vsel %vm813_vm3, %v20813_v23, 0.0  ;;  %v655_v25 = vpop.f32.mrb[37].mxu0 }
 0x14f   :  { %v850_v27 = vadd.f32 %v849_v24, %v848_v21  ;;  %v20817_v28 = vpop.f32.mrb[38].mxu0 }
 0x150   :  { %v851_v29 = vsel %vm813_vm3, %v20817_v28, 0.0  ;;  %v658_v31 = vpop.f32.mrb[39].mxu0 }
 0x151   :  { %v852_v32 = vadd.f32 %v851_v29, %v850_v27 }
 0x155   :  { %v20821_v33 = vpop.f32.mrb[40].mxu0 }
 0x156   :  { %v853_v35 = vsel %vm813_vm3, %v20821_v33, 0.0  ;;  %v663_v36 = vpop.f32.mrb[41].mxu0 }
 0x157   :  { %v854_v37 = vadd.f32 %v853_v35, %v852_v32  ;;  %v20825_v39 = vpop.f32.mrb[42].mxu0 }
 0x158   :  { %v855_v40 = vsel %vm813_vm3, %v20825_v39, 0.0  ;;  %v666_v41 = vpop.f32.mrb[43].mxu0 }
 0x159   :  { %v856_v43 = vadd.f32 %v855_v40, %v854_v37 }
 0x15d   :  { %v20829_v44 = vpop.f32.mrb[44].mxu0 }
 0x15e   :  { %v857_v45 = vsel %vm813_vm3, %v20829_v44, 0.0  ;;  %v671_v47 = vpop.f32.mrb[45].mxu0 }
 0x15f   :  { %v858_v48 = vadd.f32 %v857_v45, %v856_v43  ;;  %v20833_v49 = vpop.f32.mrb[46].mxu0 }
 0x160   :  { %v859_v51 = vsel %vm813_vm3, %v20833_v49, 0.0  ;;  %v674_v52 = vpop.f32.mrb[47].mxu0 }
 0x161   :  { %v860_v53 = vadd.f32 %v859_v51, %v858_v48 }
 0x165   :  { %v20837_v55 = vpop.f32.mrb[48].mxu0 }
 0x166   :  { %v861_v56 = vsel %vm813_vm3, %v20837_v55, 0.0  ;;  %v679_v57 = vpop.f32.mrb[49].mxu0 }
 0x167   :  { %v862_v59 = vadd.f32 %v861_v56, %v860_v53  ;;  %v20841_v60 = vpop.f32.mrb[50].mxu0 }
 0x168   :  { %v863_v61 = vsel %vm813_vm3, %v20841_v60, 0.0  ;;  %v682_v63 = vpop.f32.mrb[51].mxu0 }
 0x169   :  { %v864_v0 = vadd.f32 %v863_v61, %v862_v59 }
 0x16d   :  { %v20845_v2 = vpop.f32.mrb[52].mxu0 }
 0x16e   :  { %v865_v4 = vsel %vm813_vm3, %v20845_v2, 0.0  ;;  %v687_v5 = vpop.f32.mrb[53].mxu0 }
 0x16f   :  { %v866_v6 = vadd.f32 %v865_v4, %v864_v0  ;;  %v20849_v8 = vpop.f32.mrb[54].mxu0 }
 0x170   :  { %v867_v10 = vsel %vm813_vm3, %v20849_v8, 0.0  ;;  %v690_v11 = vpop.f32.mrb[55].mxu0 }
 0x171   :  { %v868_v14 = vadd.f32 %v867_v10, %v866_v6 }
 0x175   :  { %v20853_v15 = vpop.f32.mrb[56].mxu0 }
 0x176   :  { %v869_v16 = vsel %vm813_vm3, %v20853_v15, 0.0  ;;  %v695_v19 = vpop.f32.mrb[57].mxu0 }
 0x177   :  { %v870_v20 = vadd.f32 %v869_v16, %v868_v14  ;;  %v20857_v21 = vpop.f32.mrb[58].mxu0 }
 0x178   :  { %v871_v24 = vsel %vm813_vm3, %v20857_v21, 0.0  ;;  %v698_v25 = vpop.f32.mrb[59].mxu0 }
 0x179   :  { %v872_v27 = vadd.f32 %v871_v24, %v870_v20 }
 0x17d   :  { %v20861_v29 = vpop.f32.mrb[60].mxu0 }
 0x17e   :  { %v873_v31 = vsel %vm813_vm3, %v20861_v29, 0.0  ;;  %v703_v32 = vpop.f32.mrb[61].mxu0 }
 0x17f   :  { %v874_v35 = vadd.f32 %v873_v31, %v872_v27  ;;  %v20865_v36 = vpop.f32.mrb[62].mxu0 }
 0x180   :  { %v875_v37 = vsel %vm813_vm3, %v20865_v36, 0.0  ;;  %v706_v40 = vpop.f32.mrb[63].mxu0 }
 0x181   :  { %v876_v41 = vadd.f32 %v875_v37, %v874_v35 }
 0x185   :  { %v20869_v43 = vpop.f32.mrb[64].mxu0 }
 0x186   :  { %v877_v45 = vsel %vm813_vm3, %v20869_v43, 0.0  ;;  %v711_v47 = vpop.f32.mrb[65].mxu0 }
 0x187   :  { %v878_v48 = vadd.f32 %v877_v45, %v876_v41  ;;  %v20873_v51 = vpop.f32.mrb[66].mxu0 }
 0x188   :  { %v879_v52 = vsel %vm813_vm3, %v20873_v51, 0.0  ;;  %v714_v53 = vpop.f32.mrb[67].mxu0 }
 0x189   :  { %v880_v56 = vadd.f32 %v879_v52, %v878_v48 }
 0x18d   :  { %v20877_v57 = vpop.f32.mrb[68].mxu0 }
 0x18e   :  { %v881_v59 = vsel %vm813_vm3, %v20877_v57, 0.0  ;;  %v719_v61 = vpop.f32.mrb[69].mxu0 }
 0x18f   :  { %v882_v63 = vadd.f32 %v881_v59, %v880_v56  ;;  %v20881_v0 = vpop.f32.mrb[70].mxu0 }
 0x190   :  { %v883_v4 = vsel %vm813_vm3, %v20881_v0, 0.0  ;;  %v722_v5 = vpop.f32.mrb[71].mxu0 }
 0x191   :  { %v884_v6 = vadd.f32 %v883_v4, %v882_v63 }
 0x195   :  { %v20885_v10 = vpop.f32.mrb[72].mxu0 }
 0x196   :  { %v885_v11 = vsel %vm813_vm3, %v20885_v10, 0.0  ;;  %v727_v14 = vpop.f32.mrb[73].mxu0 }
 0x197   :  { %v886_v16 = vadd.f32 %v885_v11, %v884_v6  ;;  %v20889_v19 = vpop.f32.mrb[74].mxu0 }
 0x198   :  { %v887_v20 = vsel %vm813_vm3, %v20889_v19, 0.0  ;;  %v730_v24 = vpop.f32.mrb[75].mxu0 }
 0x199   :  { %v888_v25 = vadd.f32 %v887_v20, %v886_v16 }
 0x19d   :  { %v20893_v27 = vpop.f32.mrb[76].mxu0 }
 0x19e   :  { %v889_v31 = vsel %vm813_vm3, %v20893_v27, 0.0  ;;  %v735_v32 = vpop.f32.mrb[77].mxu0 }
 0x19f   :  { %v890_v35 = vadd.f32 %v889_v31, %v888_v25  ;;  %v20897_v37 = vpop.f32.mrb[78].mxu0 }
 0x1a0   :  { %v891_v40 = vsel %vm813_vm3, %v20897_v37, 0.0  ;;  %v738_v41 = vpop.f32.mrb[79].mxu0 }
 0x1a1   :  { %v892_v45 = vadd.f32 %v891_v40, %v890_v35 }
 0x1a5   :  { %v20901_v47 = vpop.f32.mrb[80].mxu0 }
 0x1a6   :  { %v893_v48 = vsel %vm813_vm3, %v20901_v47, 0.0  ;;  %v743_v52 = vpop.f32.mrb[81].mxu0 }
 0x1a7   :  { %v894_v53 = vadd.f32 %v893_v48, %v892_v45  ;;  %v20905_v56 = vpop.f32.mrb[82].mxu0 }
 0x1a8   :  { %v895_v59 = vsel %vm813_vm3, %v20905_v56, 0.0  ;;  %v746_v61 = vpop.f32.mrb[83].mxu0 }
 0x1a9   :  { %v896_v63 = vadd.f32 %v895_v59, %v894_v53 }
 0x1ad   :  { %v20909_v4 = vpop.f32.mrb[84].mxu0 }
 0x1ae   :  { %v897_v5 = vsel %vm813_vm3, %v20909_v4, 0.0  ;;  %v751_v6 = vpop.f32.mrb[85].mxu0 }
 0x1af   :  { %v898_v11 = vadd.f32 %v897_v5, %v896_v63  ;;  %v20913_v14 = vpop.f32.mrb[86].mxu0 }
 0x1b0   :  { %v899_v16 = vsel %vm813_vm3, %v20913_v14, 0.0  ;;  %v754_v20 = vpop.f32.mrb[87].mxu0 }
 0x1b1   :  { %v900_v24 = vadd.f32 %v899_v16, %v898_v11 }
 0x1b5   :  { %v20917_v25 = vpop.f32.mrb[88].mxu0 }
 0x1b6   :  { %v901_v31 = vsel %vm813_vm3, %v20917_v25, 0.0  ;;  %v759_v32 = vpop.f32.mrb[89].mxu0 }
 0x1b7   :  { %v902_v35 = vadd.f32 %v901_v31, %v900_v24  ;;  %v20921_v40 = vpop.f32.mrb[90].mxu0 }
 0x1b8   :  { %v903_v41 = vsel %vm813_vm3, %v20921_v40, 0.0  ;;  %v762_v45 = vpop.f32.mrb[91].mxu0 }
 0x1b9   :  { %v904_v48 = vadd.f32 %v903_v41, %v902_v35 }
 0x1bd   :  { %v20925_v52 = vpop.f32.mrb[92].mxu0 }
 0x1be   :  { %26307 = vst [vmem:[#allocation5_spill] sm:$0xff] %v20925_v52  ;;  %v905_v53 = vsel %vm813_vm3, %v20925_v52, 0.0  ;;  %v767_v59 = vpop.f32.mrb[93].mxu0 }
 0x1bf   :  { %v906_v61 = vadd.f32 %v905_v53, %v904_v48  ;;  %v20929_v63 = vpop.f32.mrb[94].mxu0 }
 0x1c0   :  { %26308 = vst [vmem:[#allocation6_spill] sm:$0xff] %v20929_v63  ;;  %v907_v5 = vsel %vm813_vm3, %v20929_v63, 0.0  ;;  %v770_v6 = vpop.f32.mrb[95].mxu0 }
 0x1c1   :  { %v908_v11 = vadd.f32 %v907_v5, %v906_v61 }
 0x1c5   :  { %v20933_v16 = vpop.f32.mrb[96].mxu0 }
 0x1c6   :  { %26309 = vst [vmem:[#allocation7_spill] sm:$0xff] %v20933_v16  ;;  %v909_v20 = vsel %vm813_vm3, %v20933_v16, 0.0  ;;  %v775_v24 = vpop.f32.mrb[97].mxu0 }
 0x1c7   :  { %v910_v31 = vadd.f32 %v909_v20, %v908_v11  ;;  %v20937_v32 = vpop.f32.mrb[98].mxu0 }
 0x1c8   :  { %26310 = vst [vmem:[#allocation8_spill] sm:$0xff] %v20937_v32  ;;  %v911_v35 = vsel %vm813_vm3, %v20937_v32, 0.0  ;;  %v778_v41 = vpop.f32.mrb[99].mxu0 }
 0x1c9   :  { %v912_v45 = vadd.f32 %v911_v35, %v910_v31 }
 0x1ca   :  { %23 = vsyncpa [#allocation3], 0  ;;  %vm925_vm4 = vcmask 254976   ;;  %s26345_s27 = sld [smem:[#allocation98_spill]]  ;;  %vm1564_vm5 = vcmask 539648   ;;  %vm6421_vm6 = vcmask 523264  }
 0x1cb   :  { %vm20403_vm7 = vmmov 0   ;;  %s20404_s30 = smov [#allocation2]   ;;  %vm15005_vm8 = vcmask 9216  }
 0x1cd   :  { %v20941_v48 = vpop.f32.mrb[100].mxu0 }
 0x1ce   :  { %26311 = vst [vmem:[#allocation9_spill] sm:$0xff] %v20941_v48  ;;  %v913_v53 = vsel %vm813_vm3, %v20941_v48, 0.0  ;;  %v783_v59 = vpop.f32.mrb[101].mxu0 }
 0x1cf   :  { %v914_v61 = vadd.f32 %v913_v53, %v912_v45  ;;  %v20945_v5 = vpop.f32.mrb[102].mxu0 }
 0x1d0   :  { %26312 = vst [vmem:[#allocation10_spill] sm:$0xff] %v20945_v5  ;;  %v915_v6 = vsel %vm813_vm3, %v20945_v5, 0.0  ;;  %v786_v11 = vpop.f32.mrb[103].mxu0 }
 0x1d1   :  { %v916_v20 = vadd.f32 %v915_v6, %v914_v61 }
 0x1d5   :  { %v20949_v24 = vpop.f32.mrb[104].mxu0 }
 0x1d6   :  { %26313 = vst [vmem:[#allocation11_spill] sm:$0xff] %v20949_v24  ;;  %v917_v31 = vsel %vm813_vm3, %v20949_v24, 0.0  ;;  %v791_v35 = vpop.f32.mrb[105].mxu0 }
 0x1d7   :  { %v918_v41 = vadd.f32 %v917_v31, %v916_v20  ;;  %v20953_v1 = vpop.f32.mrb[106].mxu0 }
 0x1d8   :  { %26314 = vst [vmem:[#allocation12_spill] sm:$0xff] %v20953_v1  ;;  %v919_v59 = vsel %vm813_vm3, %v20953_v1, 0.0  ;;  %v794_v45 = vpop.f32.mrb[107].mxu0 }
 0x1d9   :  { %v920_v53 = vadd.f32 %v919_v59, %v918_v41 }
 0x1dd   :  { %v20957_v48 = vpop.f32.mrb[108].mxu0 }
 0x1de   :  { %26315 = vst [vmem:[#allocation13_spill] sm:$0xff] %v20957_v48  ;;  %v921_v11 = vsel %vm813_vm3, %v20957_v48, 0.0  ;;  %v799_v61 = vpop.f32.mrb[109].mxu0 }
 0x1df   :  { %v922_v6 = vadd.f32 %v921_v11, %v920_v53  ;;  %v20961_v5 = vpop.f32.mrb[110].mxu0 }
 0x1e0   :  { %v923_v35 = vsel %vm813_vm3, %v20961_v5, 0.0  ;;  %v802_v20 = vpop.f32.mrb[111].mxu0 }
 0x1e1   :  { %v924_v31 = vadd.f32 %v923_v35, %v922_v6 }
 0x1e5   :  { %v20965_v24 = vpop.f32.mrb[112].mxu0 }
 0x1e6   :  { %v926_v41 = vsel %vm925_vm4, %v20965_v24, 0.0  ;;  %v807_v59 = vpop.f32.mrb[113].mxu0 }
 0x1e7   :  { %v927_v45 = vadd.f32 %v926_v41, %v924_v31  ;;  %v808_v1 = vpop.f32.mrb[114].mxu0 }
 0x1e8   :  { %v809_v32 = vpop.f32.mrb[115].mxu0 }
 0x1e9   :  { %v928_v48 = vrot.slane %v927_v45, 4 }
 0x1eb   :  { %v929_v61 = vadd.f32 %v928_v48, %v927_v45 }
 0x1ed   :  { %v930_v53 = vrot.slane %v929_v61, 2 }
 0x1ef   :  { %v931_v11 = vadd.f32 %v930_v53, %v929_v61 }
 0x1f1   :  { %v932_v16 = vrot.slane %v931_v11, 1 }
 0x1f3   :  { %v933_v63 = vadd.f32 %v932_v16, %v931_v11  ;;  %v26336_v11 = vld [vmem:[#allocation12_spill] sm:$0xff] }
 0x1f5   :  { %v934_v52 = vmul.f32 0.0022222223, %v933_v63 }
 0x1f7   :  { %v20970_v20 = vsub.f32 %v20740_v9, %v934_v52  ;;  %v20973_v6 = vsub.f32 %v20744_v12, %v934_v52  ;;  %v20976_v35 = vsub.f32 %v20749_v17, %v934_v52  ;;  %v20979_v31 = vsub.f32 %v20753_v22, %v934_v52 }
 0x1f8   :  { %v20982_v1 = vsub.f32 %v20757_v26, %v934_v52  ;;  %v20985_v32 = vsub.f32 %v20761_v30, %v934_v52  ;;  %v20988_v63 = vsub.f32 %v20765_v34, %v934_v52  ;;  %v20991_v9 = vsub.f32 %v20769_v38, %v934_v52 }
 0x1f9   :  { %26316 = vst [vmem:[#allocation14_spill] sm:$0xff] %v20970_v20  ;;  %26317 = vst [vmem:[#allocation15_spill] sm:$0xff] %v20973_v6  ;;  %v20994_v12 = vsub.f32 %v20773_v42, %v934_v52  ;;  %v20997_v17 = vsub.f32 %v20777_v46, %v934_v52  ;;  %v21000_v22 = vsub.f32 %v20781_v50, %v934_v52 }
 0x1fa   :  { %26318 = vst [vmem:[#allocation16_spill] sm:$0xff] %v20976_v35  ;;  %26319 = vst [vmem:[#allocation17_spill] sm:$0xff] %v20979_v31  ;;  %v21003_v26 = vsub.f32 %v20785_v54, %v934_v52  ;;  %v21006_v30 = vsub.f32 %v20789_v58, %v934_v52  ;;  %v21009_v34 = vsub.f32 %v20793_v62, %v934_v52 }
 0x1fb   :  { %v21012_v38 = vsub.f32 %v20797_v3, %v934_v52  ;;  %v21015_v42 = vsub.f32 %v20801_v7, %v934_v52  ;;  %v21018_v46 = vsub.f32 %v20805_v13, %v934_v52  ;;  %v21021_v50 = vsub.f32 %v20809_v18, %v934_v52 }
 0x1fc   :  { %v21024_v54 = vsub.f32 %v20813_v23, %v934_v52  ;;  %v21027_v58 = vsub.f32 %v20817_v28, %v934_v52  ;;  %v21030_v62 = vsub.f32 %v20821_v33, %v934_v52  ;;  %v21033_v3 = vsub.f32 %v20825_v39, %v934_v52 }
 0x1fd   :  { %v21036_v7 = vsub.f32 %v20829_v44, %v934_v52  ;;  %v21039_v13 = vsub.f32 %v20833_v49, %v934_v52  ;;  %v21042_v18 = vsub.f32 %v20837_v55, %v934_v52  ;;  %v21045_v23 = vsub.f32 %v20841_v60, %v934_v52 }
 0x1fe   :  { %v21048_v28 = vsub.f32 %v20845_v2, %v934_v52  ;;  %v21051_v33 = vsub.f32 %v20849_v8, %v934_v52  ;;  %v21054_v39 = vsub.f32 %v20853_v15, %v934_v52  ;;  %v21057_v44 = vsub.f32 %v20857_v21, %v934_v52 }
 0x1ff   :  { %v21060_v49 = vsub.f32 %v20861_v29, %v934_v52  ;;  %v21063_v55 = vsub.f32 %v20865_v36, %v934_v52  ;;  %v21066_v60 = vsub.f32 %v20869_v43, %v934_v52  ;;  %v21069_v2 = vsub.f32 %v20873_v51, %v934_v52 }
 0x200   :  { %v21072_v8 = vsub.f32 %v20877_v57, %v934_v52  ;;  %v21075_v15 = vsub.f32 %v20881_v0, %v934_v52  ;;  %v21078_v21 = vsub.f32 %v20885_v10, %v934_v52  ;;  %v21081_v29 = vsub.f32 %v20889_v19, %v934_v52 }
 0x201   :  { %v21084_v36 = vsub.f32 %v20893_v27, %v934_v52  ;;  %v21087_v43 = vsub.f32 %v20897_v37, %v934_v52  ;;  %v21090_v51 = vsub.f32 %v20901_v47, %v934_v52  ;;  %v21093_v57 = vsub.f32 %v20905_v56, %v934_v52  ;;  %v26327_v37 = vld [vmem:[#allocation5_spill] sm:$0xff]  ;;  %v26329_v47 = vld [vmem:[#allocation6_spill] sm:$0xff]  ;;  %v26331_v56 = vld [vmem:[#allocation7_spill] sm:$0xff] }
 0x202   :  { %v21096_v0 = vsub.f32 %v20909_v4, %v934_v52  ;;  %v21099_v10 = vsub.f32 %v20913_v14, %v934_v52  ;;  %v21102_v19 = vsub.f32 %v20917_v25, %v934_v52  ;;  %v21105_v27 = vsub.f32 %v20921_v40, %v934_v52  ;;  %v26332_v4 = vld [vmem:[#allocation8_spill] sm:$0xff]  ;;  %v26333_v14 = vld [vmem:[#allocation9_spill] sm:$0xff]  ;;  %v26334_v25 = vld [vmem:[#allocation10_spill] sm:$0xff] }
 0x203   :  { %26320 = vst [vmem:[#allocation18_spill] sm:$0xff] %v21087_v43  ;;  %26321 = vst [vmem:[#allocation19_spill] sm:$0xff] %v21090_v51  ;;  %v21108_v16 = vsub.f32 %v26327_v37, %v934_v52  ;;  %v21111_v48 = vsub.f32 %v26329_v47, %v934_v52  ;;  %v21114_v41 = vsub.f32 %v26331_v56, %v934_v52  ;;  %v26335_v40 = vld [vmem:[#allocation11_spill] sm:$0xff]  ;;  %v26337_v47 = vld [vmem:[#allocation13_spill] sm:$0xff] }
 0x204   :  { %26322 = vst [vmem:[#allocation20_spill] sm:$0xff] %v21093_v57  ;;  %26323 = vst [vmem:[#allocation21_spill] sm:$0xff] %v21096_v0  ;;  %v21117_v59 = vsub.f32 %v26332_v4, %v934_v52  ;;  %v21120_v45 = vsub.f32 %v26333_v14, %v934_v52  ;;  %v21123_v61 = vsub.f32 %v26334_v25, %v934_v52 }
 0x205   :  { %26324 = vst [vmem:[#allocation22_spill] sm:$0xff] %v21099_v10  ;;  %26325 = vst [vmem:[#allocation23_spill] sm:$0xff] %v21102_v19  ;;  %v21126_v53 = vsub.f32 %v26335_v40, %v934_v52  ;;  %v21129_v37 = vsub.f32 %v26336_v11, %v934_v52  ;;  %v21135_v56 = vsub.f32 %v20961_v5, %v934_v52 }
 0x206   :  { %26326 = vst [vmem:[#allocation24_spill] sm:$0xff] %v21105_v27  ;;  %26328 = vst [vmem:[#allocation5_spill] sm:$0xff] %v21108_v16  ;;  %v21138_v4 = vsub.f32 %v20965_v24, %v934_v52  ;;  %v992_v14 = vmul.f32 %v20970_v20, %v20970_v20  ;;  %v993_v25 = vmul.f32 %v20973_v6, %v20973_v6 }
 0x207   :  { %26330 = vst [vmem:[#allocation6_spill] sm:$0xff] %v21111_v48  ;;  %v21132_v48 = vsub.f32 %v26337_v47, %v934_v52  ;;  %26339 = vst [vmem:[#allocation8_spill] sm:$0xff] %v21135_v56  ;;  %v994_v40 = vmul.f32 %v20976_v35, %v20976_v35  ;;  %v995_v11 = vmul.f32 %v20979_v31, %v20979_v31 }
 0x208   :  { %26340 = vst [vmem:[#allocation9_spill] sm:$0xff] %v21138_v4  ;;  %v1049_v47 = vsel %vm813_vm3, %v992_v14, 0.0  ;;  %v1050_v5 = vsel %vm813_vm3, %v993_v25, 0.0  ;;  %v996_v52 = vmul.f32 %v20982_v1, %v20982_v1  ;;  %v997_v6 = vmul.f32 %v20985_v32, %v20985_v32 }
 0x209   :  { %26338 = vst [vmem:[#allocation7_spill] sm:$0xff] %v21132_v48  ;;  %v1051_v56 = vadd.f32 %v1050_v5, %v1049_v47  ;;  %v1052_v24 = vsel %vm813_vm3, %v994_v40, 0.0  ;;  %v1054_v4 = vsel %vm813_vm3, %v995_v11, 0.0  ;;  %v998_v31 = vmul.f32 %v20988_v63, %v20988_v63 }
 0x20a   :  { %v1056_v14 = vsel %vm813_vm3, %v996_v52, 0.0  ;;  %v999_v25 = vmul.f32 %v20991_v9, %v20991_v9  ;;  %v1058_v47 = vsel %vm813_vm3, %v997_v6, 0.0  ;;  %v1003_v6 = vmul.f32 %v21003_v26, %v21003_v26 }
 0x20b   :  { %v1053_v20 = vadd.f32 %v1052_v24, %v1051_v56  ;;  %v1000_v56 = vmul.f32 %v20994_v12, %v20994_v12  ;;  %v1060_v40 = vsel %vm813_vm3, %v998_v31, 0.0  ;;  %v1004_v31 = vmul.f32 %v21006_v30, %v21006_v30 }
 0x20d   :  { %v1055_v35 = vadd.f32 %v1054_v4, %v1053_v20  ;;  %v1001_v20 = vmul.f32 %v20997_v17, %v20997_v17  ;;  %v1062_v4 = vsel %vm813_vm3, %v999_v25, 0.0  ;;  %v1064_v52 = vsel %vm813_vm3, %v1000_v56, 0.0 }
 0x20e   :  { %v1005_v25 = vmul.f32 %v21009_v34, %v21009_v34  ;;  %v1006_v56 = vmul.f32 %v21012_v38, %v21012_v38 }
 0x20f   :  { %v1057_v48 = vadd.f32 %v1056_v14, %v1055_v35  ;;  %v1002_v35 = vmul.f32 %v21000_v22, %v21000_v22 }
 0x211   :  { %v1059_v5 = vadd.f32 %v1058_v47, %v1057_v48  ;;  %v1066_v48 = vsel %vm813_vm3, %v1001_v20, 0.0  ;;  %v1007_v20 = vmul.f32 %v21015_v42, %v21015_v42 }
 0x213   :  { %v1061_v24 = vadd.f32 %v1060_v40, %v1059_v5  ;;  %v1068_v5 = vsel %vm813_vm3, %v1002_v35, 0.0  ;;  %v1008_v35 = vmul.f32 %v21018_v46, %v21018_v46 }
 0x215   :  { %v1063_v11 = vadd.f32 %v1062_v4, %v1061_v24  ;;  %v1070_v24 = vsel %vm813_vm3, %v1003_v6, 0.0  ;;  %v1009_v6 = vmul.f32 %v21021_v50, %v21021_v50 }
 0x217   :  { %v1065_v14 = vadd.f32 %v1064_v52, %v1063_v11  ;;  %v1072_v11 = vsel %vm813_vm3, %v1004_v31, 0.0  ;;  %v1010_v31 = vmul.f32 %v21024_v54, %v21024_v54 }
 0x219   :  { %v1067_v47 = vadd.f32 %v1066_v48, %v1065_v14  ;;  %v1074_v14 = vsel %vm813_vm3, %v1005_v25, 0.0  ;;  %v1011_v25 = vmul.f32 %v21027_v58, %v21027_v58 }
 0x21b   :  { %v1069_v40 = vadd.f32 %v1068_v5, %v1067_v47  ;;  %v1076_v47 = vsel %vm813_vm3, %v1006_v56, 0.0  ;;  %v1012_v56 = vmul.f32 %v21030_v62, %v21030_v62 }
 0x21d   :  { %v1071_v4 = vadd.f32 %v1070_v24, %v1069_v40  ;;  %v1078_v40 = vsel %vm813_vm3, %v1007_v20, 0.0  ;;  %v1013_v20 = vmul.f32 %v21033_v3, %v21033_v3 }
 0x21f   :  { %v1073_v52 = vadd.f32 %v1072_v11, %v1071_v4  ;;  %v1080_v4 = vsel %vm813_vm3, %v1008_v35, 0.0  ;;  %v1014_v35 = vmul.f32 %v21036_v7, %v21036_v7 }
 0x221   :  { %v1075_v48 = vadd.f32 %v1074_v14, %v1073_v52  ;;  %v1082_v52 = vsel %vm813_vm3, %v1009_v6, 0.0  ;;  %v1015_v6 = vmul.f32 %v21039_v13, %v21039_v13 }
 0x223   :  { %v1077_v5 = vadd.f32 %v1076_v47, %v1075_v48  ;;  %v1084_v48 = vsel %vm813_vm3, %v1010_v31, 0.0  ;;  %v1016_v31 = vmul.f32 %v21042_v18, %v21042_v18 }
 0x225   :  { %v1079_v24 = vadd.f32 %v1078_v40, %v1077_v5  ;;  %v1086_v5 = vsel %vm813_vm3, %v1011_v25, 0.0  ;;  %v1017_v25 = vmul.f32 %v21045_v23, %v21045_v23 }
 0x227   :  { %v1081_v11 = vadd.f32 %v1080_v4, %v1079_v24  ;;  %v1088_v24 = vsel %vm813_vm3, %v1012_v56, 0.0  ;;  %v1018_v56 = vmul.f32 %v21048_v28, %v21048_v28 }
 0x229   :  { %v1083_v14 = vadd.f32 %v1082_v52, %v1081_v11  ;;  %v1090_v11 = vsel %vm813_vm3, %v1013_v20, 0.0  ;;  %v1019_v20 = vmul.f32 %v21051_v33, %v21051_v33 }
 0x22b   :  { %v1085_v47 = vadd.f32 %v1084_v48, %v1083_v14  ;;  %v1092_v14 = vsel %vm813_vm3, %v1014_v35, 0.0  ;;  %v1020_v35 = vmul.f32 %v21054_v39, %v21054_v39 }
 0x22d   :  { %v1087_v40 = vadd.f32 %v1086_v5, %v1085_v47  ;;  %v1094_v47 = vsel %vm813_vm3, %v1015_v6, 0.0  ;;  %v1021_v6 = vmul.f32 %v21057_v44, %v21057_v44 }
 0x22f   :  { %v1089_v4 = vadd.f32 %v1088_v24, %v1087_v40  ;;  %v1096_v40 = vsel %vm813_vm3, %v1016_v31, 0.0  ;;  %v1022_v31 = vmul.f32 %v21060_v49, %v21060_v49 }
 0x231   :  { %v1091_v52 = vadd.f32 %v1090_v11, %v1089_v4  ;;  %v1098_v4 = vsel %vm813_vm3, %v1017_v25, 0.0  ;;  %v1023_v25 = vmul.f32 %v21063_v55, %v21063_v55 }
 0x233   :  { %v1093_v48 = vadd.f32 %v1092_v14, %v1091_v52  ;;  %v1100_v52 = vsel %vm813_vm3, %v1018_v56, 0.0  ;;  %v1024_v56 = vmul.f32 %v21066_v60, %v21066_v60 }
 0x235   :  { %v1095_v5 = vadd.f32 %v1094_v47, %v1093_v48  ;;  %v1102_v48 = vsel %vm813_vm3, %v1019_v20, 0.0  ;;  %v1025_v20 = vmul.f32 %v21069_v2, %v21069_v2 }
 0x237   :  { %v1097_v24 = vadd.f32 %v1096_v40, %v1095_v5  ;;  %v1104_v5 = vsel %vm813_vm3, %v1020_v35, 0.0  ;;  %v1026_v35 = vmul.f32 %v21072_v8, %v21072_v8 }
 0x239   :  { %v1099_v11 = vadd.f32 %v1098_v4, %v1097_v24  ;;  %v1106_v24 = vsel %vm813_vm3, %v1021_v6, 0.0  ;;  %v1027_v6 = vmul.f32 %v21075_v15, %v21075_v15 }
 0x23b   :  { %v1101_v14 = vadd.f32 %v1100_v52, %v1099_v11  ;;  %v1108_v11 = vsel %vm813_vm3, %v1022_v31, 0.0  ;;  %v1028_v31 = vmul.f32 %v21078_v21, %v21078_v21 }
 0x23d   :  { %v1103_v47 = vadd.f32 %v1102_v48, %v1101_v14  ;;  %v1110_v14 = vsel %vm813_vm3, %v1023_v25, 0.0  ;;  %v1029_v25 = vmul.f32 %v21081_v29, %v21081_v29 }
 0x23f   :  { %v1105_v40 = vadd.f32 %v1104_v5, %v1103_v47  ;;  %v1112_v47 = vsel %vm813_vm3, %v1024_v56, 0.0  ;;  %v1030_v56 = vmul.f32 %v21084_v36, %v21084_v36 }
 0x241   :  { %v1107_v4 = vadd.f32 %v1106_v24, %v1105_v40  ;;  %v1114_v40 = vsel %vm813_vm3, %v1025_v20, 0.0  ;;  %v1031_v20 = vmul.f32 %v21087_v43, %v21087_v43 }
 0x243   :  { %v1109_v52 = vadd.f32 %v1108_v11, %v1107_v4  ;;  %v1116_v4 = vsel %vm813_vm3, %v1026_v35, 0.0  ;;  %v1032_v35 = vmul.f32 %v21090_v51, %v21090_v51 }
 0x245   :  { %v1111_v48 = vadd.f32 %v1110_v14, %v1109_v52  ;;  %v1118_v52 = vsel %vm813_vm3, %v1027_v6, 0.0  ;;  %v1033_v6 = vmul.f32 %v21093_v57, %v21093_v57 }
 0x247   :  { %v1113_v5 = vadd.f32 %v1112_v47, %v1111_v48  ;;  %v1120_v48 = vsel %vm813_vm3, %v1028_v31, 0.0  ;;  %v1034_v31 = vmul.f32 %v21096_v0, %v21096_v0 }
 0x249   :  { %v1115_v24 = vadd.f32 %v1114_v40, %v1113_v5  ;;  %v1122_v5 = vsel %vm813_vm3, %v1029_v25, 0.0  ;;  %v1035_v25 = vmul.f32 %v21099_v10, %v21099_v10 }
 0x24b   :  { %v1117_v11 = vadd.f32 %v1116_v4, %v1115_v24  ;;  %v1124_v24 = vsel %vm813_vm3, %v1030_v56, 0.0  ;;  %v1036_v56 = vmul.f32 %v21102_v19, %v21102_v19 }
 0x24d   :  { %v1119_v14 = vadd.f32 %v1118_v52, %v1117_v11  ;;  %v1126_v11 = vsel %vm813_vm3, %v1031_v20, 0.0  ;;  %v1037_v20 = vmul.f32 %v21105_v27, %v21105_v27 }
 0x24f   :  { %v1121_v47 = vadd.f32 %v1120_v48, %v1119_v14  ;;  %v1128_v14 = vsel %vm813_vm3, %v1032_v35, 0.0  ;;  %v1038_v35 = vmul.f32 %v21108_v16, %v21108_v16 }
 0x251   :  { %v1123_v40 = vadd.f32 %v1122_v5, %v1121_v47  ;;  %v1130_v47 = vsel %vm813_vm3, %v1033_v6, 0.0  ;;  %v26341_v6 = vld [vmem:[#allocation6_spill] sm:$0xff] }
 0x253   :  { %v1125_v4 = vadd.f32 %v1124_v24, %v1123_v40  ;;  %v1132_v40 = vsel %vm813_vm3, %v1034_v31, 0.0  ;;  %v1040_v31 = vmul.f32 %v21114_v41, %v21114_v41 }
 0x255   :  { %v1127_v52 = vadd.f32 %v1126_v11, %v1125_v4  ;;  %v1134_v4 = vsel %vm813_vm3, %v1035_v25, 0.0  ;;  %v1041_v25 = vmul.f32 %v21117_v59, %v21117_v59 }
 0x257   :  { %v1129_v48 = vadd.f32 %v1128_v14, %v1127_v52  ;;  %v1136_v52 = vsel %vm813_vm3, %v1036_v56, 0.0  ;;  %v1042_v56 = vmul.f32 %v21120_v45, %v21120_v45 }
 0x259   :  { %v1131_v5 = vadd.f32 %v1130_v47, %v1129_v48  ;;  %v1039_v48 = vmul.f32 %v26341_v6, %v26341_v6  ;;  %v1138_v47 = vsel %vm813_vm3, %v1037_v20, 0.0  ;;  %v19530_v20 = vld [vmem:[%s26194_s3 + $0x4] ss:$16 sps:$4 sm:$0xff]  }
 0x25a   :  { %1624 = vmatprep.mubr.bf16.mxu0 %v19530_v20 }
 0x25b   :  { %v1133_v24 = vadd.f32 %v1132_v40, %v1131_v5  ;;  %v1140_v5 = vsel %vm813_vm3, %v1038_v35, 0.0  ;;  %v1043_v35 = vmul.f32 %v21123_v61, %v21123_v61 }
 0x25d   :  { %v1135_v11 = vadd.f32 %v1134_v4, %v1133_v24  ;;  %v1142_v24 = vsel %vm813_vm3, %v1039_v48, 0.0 }
 0x25f   :  { %v1137_v14 = vadd.f32 %v1136_v52, %v1135_v11  ;;  %v1144_v11 = vsel %vm813_vm3, %v1040_v31, 0.0  ;;  %v1148_v31 = vsel %vm813_vm3, %v1042_v56, 0.0  ;;  %v26344_v56 = vld [vmem:[#allocation9_spill] sm:$0xff] }
 0x261   :  { %v1139_v19 = vadd.f32 %v1138_v47, %v1137_v14  ;;  %v1146_v14 = vsel %vm813_vm3, %v1041_v25, 0.0  ;;  %v1044_v47 = vmul.f32 %v21126_v53, %v21126_v53 }
 0x263   :  { %v1141_v40 = vadd.f32 %v1140_v5, %v1139_v19  ;;  %v19533_v19 = vld [vmem:[%s26194_s3 + $0x104] ss:$16 sps:$4 sm:$0xff]   ;;  %v1152_v25 = vsel %vm813_vm3, %v1044_v47, 0.0 }
 0x264   :  { %2038 = vmatprep.mubr.bf16.mxu1 %v19533_v19 }
 0x265   :  { %v1143_v4 = vadd.f32 %v1142_v24, %v1141_v40  ;;  %v1045_v40 = vmul.f32 %v21129_v37, %v21129_v37  ;;  %v1150_v24 = vsel %vm813_vm3, %v1043_v35, 0.0 }
 0x267   :  { %v1145_v52 = vadd.f32 %v1144_v11, %v1143_v4  ;;  %v26342_v11 = vld [vmem:[#allocation7_spill] sm:$0xff] }
 0x268   :  { %v1046_v6 = vmul.f32 %v26342_v11, %v26342_v11 }
 0x269   :  { %v1147_v48 = vadd.f32 %v1146_v14, %v1145_v52  ;;  %v26343_v52 = vld [vmem:[#allocation8_spill] sm:$0xff]  ;;  %v1154_v14 = vsel %vm813_vm3, %v1045_v40, 0.0 }
 0x26a   :  { %v1047_v19 = vmul.f32 %v26343_v52, %v26343_v52 }
 0x26b   :  { %v1149_v5 = vadd.f32 %v1148_v31, %v1147_v48  ;;  %v1048_v48 = vmul.f32 %v26344_v56, %v26344_v56  ;;  %v1156_v31 = vsel %vm813_vm3, %v1046_v6, 0.0 }
 0x26c   :  { %v1158_v35 = vsel %vm813_vm3, %v1047_v19, 0.0 }
 0x26d   :  { %v1151_v4 = vadd.f32 %v1150_v24, %v1149_v5  ;;  %v1160_v24 = vsel %vm925_vm4, %v1048_v48, 0.0 }
 0x26f   :  { %v1153_v20 = vadd.f32 %v1152_v25, %v1151_v4 }
 0x271   :  { %v1155_v16 = vadd.f32 %v1154_v14, %v1153_v20  ;;  %v1172_v14 = vlaneseq }
 0x273   :  { %v1157_v27 = vadd.f32 %v1156_v31, %v1155_v16  ;;  %v1173_v43 = vshrl.u32 %v1172_v14, 7  ;;  %v811_v16 = vld [vmem:[%s26345_s27] sm:$0x1] }
 0x275   :  { %v1159_v5 = vadd.f32 %v1158_v35, %v1157_v27  ;;  %v21320_v6 = vsub.s32 0, %v1173_v43 }
 0x277   :  { %v1161_v10 = vadd.f32 %v1160_v24, %v1159_v5  ;;  %26346 = vst [vmem:[#allocation10_spill] sm:$0xff] %v21320_v6 }
 0x279   :  { %v1162_v47 = vrot.slane %v1161_v10, 4 }
 0x27b   :  { %v1163_v4 = vadd.f32 %v1162_v47, %v1161_v10 }
 0x27d   :  { %v1164_v25 = vrot.slane %v1163_v4, 2 }
 0x27f   :  { %v1165_v0 = vadd.f32 %v1164_v25, %v1163_v4  ;;  %v26347_v4 = vld [vmem:[#allocation14_spill] sm:$0xff] }
 0x281   :  { %v1166_v57 = vrot.slane %v1165_v0, 1 }
 0x283   :  { %v1167_v51 = vadd.f32 %v1166_v57, %v1165_v0  ;;  %v21328_v57 = vld [vmem:[%s26345_s27 + $0x1] ss:$0 sm:$0xff] }
 0x285   :  { %v1168_v40 = vmul.f32 0.0022222223, %v1167_v51 }
 0x287   :  { %v1169_v20 = vadd.f32 1e-05, %v1168_v40  ;;  %v26348_v40 = vld [vmem:[#allocation15_spill] sm:$0xff] }
 0x289   :  { %20366 = vrsqrt.f32 %v1169_v20 }
 0x293   :  { %v20367_v27 = vpop.eup %20366 }
 0x294   :  { %v1171_v19 = vmul.f32 %v20367_v27, %v811_v16 }
 0x296   :  { %v21323_v48 = vrot.slane %v1171_v19, %v21320_v6 }
 0x298   :  { %v1232_v51 = vmul.f32 %v21323_v48, %v26344_v56  ;;  %v1224_v43 = vmul.f32 %v21323_v48, %v21114_v41  ;;  %v1225_v10 = vmul.f32 %v21323_v48, %v21117_v59  ;;  %v1226_v31 = vmul.f32 %v21323_v48, %v21120_v45 }
 0x299   :  { %v1227_v35 = vmul.f32 %v21323_v48, %v21123_v61  ;;  %v1228_v5 = vmul.f32 %v21323_v48, %v21126_v53  ;;  %v1229_v56 = vmul.f32 %v21323_v48, %v21129_v37  ;;  %v1230_v24 = vmul.f32 %v21323_v48, %v26342_v11 }
 0x29a   :  { %v21333_v0 = vadd.f32 %v21328_v57, %v1232_v51  ;;  %v1231_v41 = vmul.f32 %v21323_v48, %v26343_v52  ;;  %v21352_v59 = vadd.f32 %v21328_v57, %v1224_v43  ;;  %v21355_v45 = vadd.f32 %v21328_v57, %v1225_v10  ;;  %v26349_v51 = vld [vmem:[#allocation16_spill] sm:$0xff]  ;;  %v26350_v10 = vld [vmem:[#allocation17_spill] sm:$0xff] }
 0x29b   :  { %v21358_v61 = vadd.f32 %v21328_v57, %v1226_v31  ;;  %v21361_v53 = vadd.f32 %v21328_v57, %v1227_v35  ;;  %v21364_v37 = vadd.f32 %v21328_v57, %v1228_v5  ;;  %v21367_v11 = vadd.f32 %v21328_v57, %v1229_v56 }
 0x29c   :  { %v21370_v52 = vadd.f32 %v21328_v57, %v1230_v24  ;;  %v21373_v47 = vadd.f32 %v21328_v57, %v1231_v41  ;;  %v1176_v25 = vmul.f32 %v21323_v48, %v26347_v4  ;;  %v1177_v20 = vmul.f32 %v21323_v48, %v26348_v40 }
 0x29d   :  { %v1192_v14 = vmul.f32 %v21323_v48, %v21018_v46  ;;  %v1193_v16 = vmul.f32 %v21323_v48, %v21021_v50  ;;  %v1194_v27 = vmul.f32 %v21323_v48, %v21024_v54  ;;  %v1195_v19 = vmul.f32 %v21323_v48, %v21027_v58 }
 0x29e   :  { %v1178_v43 = vmul.f32 %v21323_v48, %v26349_v51  ;;  %v1179_v31 = vmul.f32 %v21323_v48, %v26350_v10  ;;  %v1237_v35 = vadd.f32 %v21328_v57, %v1176_v25  ;;  %v1238_v5 = vadd.f32 %v21328_v57, %v1177_v20 }
 0x29f   :  { %v1253_v46 = vadd.f32 %v21328_v57, %v1192_v14  ;;  %v1254_v50 = vadd.f32 %v21328_v57, %v1193_v16  ;;  %v1180_v54 = vmul.f32 %v21323_v48, %v20982_v1  ;;  %v1181_v58 = vmul.f32 %v21323_v48, %v20985_v32 }
 0x2a0   :  { %v1182_v56 = vmul.f32 %v21323_v48, %v20988_v63  ;;  %v1183_v24 = vmul.f32 %v21323_v48, %v20991_v9  ;;  %v1196_v41 = vmul.f32 %v21323_v48, %v21030_v62  ;;  %v1197_v4 = vmul.f32 %v21323_v48, %v21033_v3 }
 0x2a1   :  { %v1255_v25 = vadd.f32 %v21328_v57, %v1194_v27  ;;  %v1256_v40 = vadd.f32 %v21328_v57, %v1195_v19  ;;  %v1184_v1 = vmul.f32 %v21323_v48, %v20994_v12  ;;  %v1185_v32 = vmul.f32 %v21323_v48, %v20997_v17 }
 0x2a2   :  { %v1198_v63 = vmul.f32 %v21323_v48, %v21036_v7  ;;  %v1199_v9 = vmul.f32 %v21323_v48, %v21039_v13  ;;  %v1294_v62 = vmax.f32 %v1237_v35, 0.0  ;;  %v1295_v20 = vmax.f32 %v1238_v5, 0.0 }
 0x2a3   :  { %v1310_v14 = vmax.f32 %v1253_v46, 0.0  ;;  %v1311_v3 = vmax.f32 %v1254_v50, 0.0  ;;  %v1200_v16 = vmul.f32 %v21323_v48, %v21042_v18  ;;  %v1201_v27 = vmul.f32 %v21323_v48, %v21045_v23 }
 0x2a4   :  { %v1239_v12 = vadd.f32 %v21328_v57, %v1178_v43  ;;  %v1240_v17 = vadd.f32 %v21328_v57, %v1179_v31  ;;  %v1257_v19 = vadd.f32 %v21328_v57, %v1196_v41  ;;  %v1258_v7 = vadd.f32 %v21328_v57, %v1197_v4 }
 0x2a5   :  { %v1312_v51 = vmax.f32 %v1255_v25, 0.0  ;;  %v1313_v13 = vmax.f32 %v1256_v40, 0.0  ;;  %v1342_v10 = vmax.f32 %v21352_v59, 0.0  ;;  %v1343_v35 = vmax.f32 %v21355_v45, 0.0 }
 0x2a6   :  { %v1344_v5 = vmax.f32 %v21358_v61, 0.0  ;;  %v1345_v18 = vmax.f32 %v21361_v53, 0.0  ;;  %v1346_v23 = vmax.f32 %v21364_v37, 0.0  ;;  %v1347_v43 = vmax.f32 %v21367_v11, 0.0 }
 0x2a7   :  { %v21431_v46 = vpack.c.bf16 %v1295_v20, %v1294_v62  ;;  %v21433_v31 = vpack.c.bf16 %v1311_v3, %v1310_v14  ;;  %v1202_v50 = vmul.f32 %v21323_v48, %v21048_v28  ;;  %v1241_v41 = vadd.f32 %v21328_v57, %v1180_v54 }
 0x2a8   :  { %v1348_v59 = vmax.f32 %v21370_v52, 0.0  ;;  %v1349_v45 = vmax.f32 %v21373_v47, 0.0  ;;  %v1242_v61 = vadd.f32 %v21328_v57, %v1181_v58  ;;  %v1259_v53 = vadd.f32 %v21328_v57, %v1198_v63 }
 0x2a9   :  { %26351 = vst [vmem:[#allocation11_spill] sm:$0xff] %v21431_v46  ;;  %26352 = vst [vmem:[#allocation12_spill] sm:$0xff] %v21433_v31  ;;  %v1296_v37 = vmax.f32 %v1239_v12, 0.0  ;;  %v1297_v4 = vmax.f32 %v1240_v17, 0.0  ;;  %16084 = vmatprep.subr.bf16.mxu0 %v21433_v31  ;;  %v1260_v11 = vadd.f32 %v21328_v57, %v1199_v9  ;;  %v1314_v25 = vmax.f32 %v1257_v19, 0.0  ;;  %16148 = vmatprep.subr.bf16.mxu1 %v21433_v31 }
 0x2aa   :  { %v1315_v40 = vmax.f32 %v1258_v7, 0.0  ;;  %v21444_v62 = vpack.c.bf16 %v1313_v13, %v1312_v51  ;;  %v1203_v28 = vmul.f32 %v21323_v48, %v21051_v33  ;;  %v21449_v52 = vpack.c.bf16 %v1343_v35, %v1342_v10  ;;  %16085 = vmatpush3.bf16.msra.mxu0 %v21431_v46  ;;  %16149 = vmatpush3.bf16.msra.mxu1 %v21431_v46 }
 0x2ab   :  { %v21451_v47 = vpack.c.bf16 %v1345_v18, %v1344_v5  ;;  %v21453_v54 = vpack.c.bf16 %v1347_v43, %v1346_v23  ;;  %v1243_v58 = vadd.f32 %v21328_v57, %v1182_v56  ;;  %v1244_v63 = vadd.f32 %v21328_v57, %v1183_v24 }
 0x2ac   :  { %26353 = vst [vmem:[#allocation13_spill] sm:$0xff] %v21444_v62  ;;  %26354 = vst [vmem:[#allocation7_spill] sm:$0xff] %v21449_v52  ;;  %v21458_v9 = vpack.c.bf16 %v1349_v45, %v1348_v59  ;;  %16086 = vmatprep.subr.bf16.mxu0 %v21444_v62  ;;  %v1261_v33 = vadd.f32 %v21328_v57, %v1200_v16  ;;  %v1298_v20 = vmax.f32 %v1241_v41, 0.0  ;;  %v1299_v14 = vmax.f32 %v1242_v61, 0.0 }
 0x2ad   :  { %26355 = vst [vmem:[#allocation8_spill] sm:$0xff] %v21451_v47  ;;  %26356 = vst [vmem:[#allocation9_spill] sm:$0xff] %v21453_v54  ;;  %v21463_v3 = vpack.c.bf16 %v1297_v4, %v1296_v37  ;;  %16150 = vmatprep.subr.bf16.mxu1 %v21444_v62  ;;  %v1262_v12 = vadd.f32 %v21328_v57, %v1201_v27  ;;  %v1316_v17 = vmax.f32 %v1259_v53, 0.0  ;;  %v1317_v56 = vmax.f32 %v1260_v11, 0.0 }
 0x2ae   :  { %26357 = vst [vmem:[#allocation14_spill] sm:$0xff] %v21458_v9  ;;  %v21467_v19 = vpack.c.bf16 %v1315_v40, %v1314_v25  ;;  %v1186_v24 = vmul.f32 %v21323_v48, %v21000_v22  ;;  %v1187_v7 = vmul.f32 %v21323_v48, %v21003_v26  ;;  %v1204_v16 = vmul.f32 %v21323_v48, %v21054_v39 }
 0x2af   :  { %26358 = vst [vmem:[#allocation15_spill] sm:$0xff] %v21463_v3  ;;  %16087 = vmatpush3.bf16.msra.mxu0 %v21463_v3  ;;  %v1205_v51 = vmul.f32 %v21323_v48, %v21057_v44  ;;  %v1245_v27 = vadd.f32 %v21328_v57, %v1184_v1  ;;  %v1246_v13 = vadd.f32 %v21328_v57, %v1185_v32  ;;  %v1300_v10 = vmax.f32 %v1243_v58, 0.0 }
 0x2b0   :  { %26359 = vst [vmem:[#allocation16_spill] sm:$0xff] %v21467_v19  ;;  %16151 = vmatpush3.bf16.msra.mxu1 %v21463_v3  ;;  %16088 = vmatprep.subr.bf16.mxu0 %v21467_v19  ;;  %v1263_v22 = vadd.f32 %v21328_v57, %v1202_v50  ;;  %v1301_v26 = vmax.f32 %v1244_v63, 0.0  ;;  %v21483_v35 = vpack.c.bf16 %v1299_v14, %v1298_v20  ;;  %v1318_v5 = vmax.f32 %v1261_v33, 0.0 }
 0x2b1   :  { %16152 = vmatprep.subr.bf16.mxu1 %v21467_v19  ;;  %v1264_v39 = vadd.f32 %v21328_v57, %v1203_v28  ;;  %v1319_v44 = vmax.f32 %v1262_v12, 0.0  ;;  %v21487_v18 = vpack.c.bf16 %v1317_v56, %v1316_v17  ;;  %v1188_v1 = vmul.f32 %v21323_v48, %v21006_v30 }
 0x2b2   :  { %26360 = vst [vmem:[#allocation17_spill] sm:$0xff] %v21483_v35  ;;  %v1189_v32 = vmul.f32 %v21323_v48, %v21009_v34  ;;  %v1206_v23 = vmul.f32 %v21323_v48, %v21060_v49  ;;  %v1207_v43 = vmul.f32 %v21323_v48, %v21063_v55  ;;  %v1247_v50 = vadd.f32 %v21328_v57, %v1186_v24 }
 0x2b3   :  { %26361 = vst [vmem:[#allocation25_spill] sm:$0xff] %v21487_v18  ;;  %16089 = vmatpush3.bf16.msra.mxu0 %v21483_v35  ;;  %v1248_v41 = vadd.f32 %v21328_v57, %v1187_v7  ;;  %v1265_v30 = vadd.f32 %v21328_v57, %v1204_v16  ;;  %v1302_v59 = vmax.f32 %v1245_v27, 0.0  ;;  %v1303_v34 = vmax.f32 %v1246_v13, 0.0 }
 0x2b4   :  { %16153 = vmatpush3.bf16.msra.mxu1 %v21483_v35  ;;  %16090 = vmatprep.subr.bf16.mxu0 %v21487_v18  ;;  %v21503_v45 = vpack.c.bf16 %v1301_v26, %v1300_v10  ;;  %v1266_v49 = vadd.f32 %v21328_v57, %v1205_v51  ;;  %v1320_v61 = vmax.f32 %v1263_v22, 0.0  ;;  %v1321_v55 = vmax.f32 %v1264_v39, 0.0 }
 0x2b5   :  { %16154 = vmatprep.subr.bf16.mxu1 %v21487_v18  ;;  %v21507_v53 = vpack.c.bf16 %v1319_v44, %v1318_v5  ;;  %v1190_v37 = vmul.f32 %v21323_v48, %v21012_v38  ;;  %v1191_v4 = vmul.f32 %v21323_v48, %v21015_v42  ;;  %v1249_v11 = vadd.f32 %v21328_v57, %v1188_v1 }
 0x2b6   :  { %26362 = vst [vmem:[#allocation26_spill] sm:$0xff] %v21503_v45  ;;  %v1250_v25 = vadd.f32 %v21328_v57, %v1189_v32  ;;  %v1267_v40 = vadd.f32 %v21328_v57, %v1206_v23  ;;  %v1304_v28 = vmax.f32 %v1247_v50, 0.0  ;;  %v1305_v58 = vmax.f32 %v1248_v41, 0.0 }
 0x2b7   :  { %26363 = vst [vmem:[#allocation27_spill] sm:$0xff] %v21507_v53  ;;  %16091 = vmatpush3.bf16.msra.mxu0 %v21503_v45  ;;  %v21519_v63 = vpack.c.bf16 %v1303_v34, %v1302_v59  ;;  %v1268_v38 = vadd.f32 %v21328_v57, %v1207_v43  ;;  %v1322_v33 = vmax.f32 %v1265_v30, 0.0  ;;  %v1323_v42 = vmax.f32 %v1266_v49, 0.0  ;;  %v26371_v30 = vld [vmem:[#allocation18_spill] sm:$0xff] }
 0x2b8   :  { %16155 = vmatpush3.bf16.msra.mxu1 %v21503_v45  ;;  %16092 = vmatprep.subr.bf16.mxu0 %v21507_v53  ;;  %v21523_v20 = vpack.c.bf16 %v1321_v55, %v1320_v61  ;;  %v1208_v14 = vmul.f32 %v21323_v48, %v21066_v60  ;;  %v1209_v12 = vmul.f32 %v21323_v48, %v21069_v2  ;;  %v1306_v24 = vmax.f32 %v1249_v11, 0.0  ;;  %v19536_v11 = vld [vmem:[%s26194_s3 + $0x124] ss:$16 sps:$4 sm:$0xff]  }
 0x2b9   :  { %26364 = vst [vmem:[#allocation28_spill] sm:$0xff] %v21519_v63  ;;  %16156 = vmatprep.subr.bf16.mxu1 %v21507_v53  ;;  %v1251_v17 = vadd.f32 %v21328_v57, %v1190_v37  ;;  %v1252_v56 = vadd.f32 %v21328_v57, %v1191_v4  ;;  %v1307_v7 = vmax.f32 %v1250_v25, 0.0  ;;  %v21534_v16 = vpack.c.bf16 %v1305_v58, %v1304_v28  ;;  %v26374_v25 = vld [vmem:[#allocation19_spill] sm:$0xff]  ;;  %v26375_v28 = vld [vmem:[#allocation20_spill] sm:$0xff] }
 0x2ba   :  { %26365 = vst [vmem:[#allocation29_spill] sm:$0xff] %v21523_v20  ;;  %v1324_v51 = vmax.f32 %v1267_v40, 0.0  ;;  %v1325_v27 = vmax.f32 %v1268_v38, 0.0  ;;  %v21537_v60 = vpack.c.bf16 %v1323_v42, %v1322_v33  ;;  %v1210_v2 = vmul.f32 %v21323_v48, %v21072_v8 }
 0x2bb   :  { %16093 = vmatpush3.bf16.msra.mxu0 %v21519_v63  ;;  %26366 = vst [vmem:[#allocation30_spill] sm:$0xff] %v21534_v16  ;;  %v1211_v13 = vmul.f32 %v21323_v48, %v21075_v15  ;;  %v1269_v22 = vadd.f32 %v21328_v57, %v1208_v14  ;;  %v1270_v10 = vadd.f32 %v21328_v57, %v1209_v12  ;;  %v1308_v26 = vmax.f32 %v1251_v17, 0.0  ;;  %v19538_v17 = vld [vmem:[%s26194_s3 + $0x20] ss:$16 sps:$4 sm:$0xff]  }
 0x2bc   :  { %16157 = vmatpush3.bf16.msra.mxu1 %v21519_v63  ;;  %16094 = vmatprep.subr.bf16.mxu0 %v21523_v20  ;;  %26367 = vst [vmem:[#allocation31_spill] sm:$0xff] %v21537_v60  ;;  %v1309_v39 = vmax.f32 %v1252_v56, 0.0  ;;  %v21548_v5 = vpack.c.bf16 %v1307_v7, %v1306_v24  ;;  %v21551_v44 = vpack.c.bf16 %v1325_v27, %v1324_v51  ;;  %v26372_v49 = vmov 0   ;;  %v19539_v56 = vld [vmem:[%s26194_s3 + $0x120] ss:$16 sps:$4 sm:$0xff]  }
 0x2bd   :  { %16158 = vmatprep.subr.bf16.mxu1 %v21523_v20  ;;  %v1212_v8 = vmul.f32 %v21323_v48, %v21078_v21  ;;  %v1213_v15 = vmul.f32 %v21323_v48, %v21081_v29  ;;  %v1271_v1 = vadd.f32 %v21328_v57, %v1210_v2  ;;  %v1272_v32 = vadd.f32 %v21328_v57, %v1211_v13  ;;  %v19528_v21 = vld [vmem:[%s26194_s3] ss:$16 sps:$4 sm:$0xff]  }
 0x2be   :  { %26368 = vst [vmem:[#allocation32_spill] sm:$0xff] %v21548_v5  ;;  %26369 = vst [vmem:[#allocation33_spill] sm:$0xff] %v21551_v44  ;;  %v1326_v23 = vmax.f32 %v1269_v22, 0.0  ;;  %v1327_v43 = vmax.f32 %v1270_v10, 0.0  ;;  %v21562_v50 = vpack.c.bf16 %v1309_v39, %v1308_v26  ;;  %v19531_v29 = vld [vmem:[%s26194_s3 + $0x100] ss:$16 sps:$4 sm:$0xff]   ;;  %v1214_v41 = vmul.f32 %v21323_v48, %v21084_v36 }
 0x2bf   :  { %16095 = vmatpush3.bf16.msra.mxu0 %v21534_v16  ;;  %v1215_v59 = vmul.f32 %v21323_v48, %v26371_v30  ;;  %v1273_v34 = vadd.f32 %v21328_v57, %v1212_v8  ;;  %v1274_v61 = vadd.f32 %v21328_v57, %v1213_v15  ;;  %v1328_v55 = vmax.f32 %v1271_v1, 0.0  ;;  %v19534_v36 = vld [vmem:[%s26194_s3 + $0x24] ss:$16 sps:$4 sm:$0xff]   ;;  %v26378_v51 = vld [vmem:[#allocation22_spill] sm:$0xff] }
 0x2c0   :  { %16159 = vmatpush3.bf16.msra.mxu1 %v21534_v16  ;;  %16096 = vmatprep.subr.bf16.mxu0 %v21537_v60  ;;  %26370 = vst [vmem:[#allocation34_spill] sm:$0xff] %v21562_v50  ;;  %v1329_v37 = vmax.f32 %v1272_v32, 0.0  ;;  %v21580_v4 = vpack.c.bf16 %v1327_v43, %v1326_v23  ;;  %v1216_v40 = vmul.f32 %v21323_v48, %v26374_v25  ;;  %v26377_v24 = vld [vmem:[#allocation21_spill] sm:$0xff]  ;;  %v26380_v15 = vld [vmem:[#allocation23_spill] sm:$0xff]  ;;  %v26381_v32 = vld [vmem:[#allocation24_spill] sm:$0xff] }
 0x2c1   :  { %16160 = vmatprep.subr.bf16.mxu1 %v21537_v60  ;;  %v1217_v58 = vmul.f32 %v21323_v48, %v26375_v28  ;;  %v1275_v38 = vadd.f32 %v21328_v57, %v1214_v41  ;;  %v1276_v33 = vadd.f32 %v21328_v57, %v1215_v59  ;;  %v1330_v42 = vmax.f32 %v1273_v34, 0.0  ;;  %v19540_v39 = vld [vmem:[%s26194_s3 + $0x44] ss:$16 sps:$4 sm:$0xff]   ;;  %v19544_v59 = vld [vmem:[%s26194_s3 + $0x40] ss:$16 sps:$4 sm:$0xff]  }
 0x2c2   :  { %26373 = vst [vmem:[#allocation18_spill] sm:$0xff] %v21580_v4  ;;  %v1331_v14 = vmax.f32 %v1274_v61, 0.0  ;;  %v21598_v12 = vpack.c.bf16 %v1329_v37, %v1328_v55  ;;  %v1218_v7 = vmul.f32 %v21323_v48, %v26377_v24  ;;  %v1219_v27 = vmul.f32 %v21323_v48, %v26378_v51  ;;  %v19542_v8 = vld [vmem:[%s26194_s3 + $0x144] ss:$16 sps:$4 sm:$0xff]   ;;  %v19545_v34 = vld [vmem:[%s26194_s3 + $0x140] ss:$16 sps:$4 sm:$0xff]  }
 0x2c3   :  { %16097 = vmatpush3.bf16.msra.mxu0 %v21548_v5  ;;  %v1277_v2 = vadd.f32 %v21328_v57, %v1216_v40  ;;  %v1278_v13 = vadd.f32 %v21328_v57, %v1217_v58  ;;  %v1332_v22 = vmax.f32 %v1275_v38, 0.0  ;;  %v1333_v10 = vmax.f32 %v1276_v33, 0.0  ;;  %v26383_v61 = vld [vmem:[#allocation5_spill] sm:$0xff]  ;;  %v26384_v37 = vld [vmem:[#allocation6_spill] sm:$0xff] }
 0x2c4   :  { %16161 = vmatpush3.bf16.msra.mxu1 %v21548_v5  ;;  %16098 = vmatprep.subr.bf16.mxu0 %v21551_v44  ;;  %26376 = vst [vmem:[#allocation19_spill] sm:$0xff] %v21598_v12  ;;  %v21616_v26 = vpack.c.bf16 %v1331_v14, %v1330_v42  ;;  %v1220_v1 = vmul.f32 %v21323_v48, %v26380_v15  ;;  %v19546_v38 = vld [vmem:[%s26194_s3 + $0x64] ss:$16 sps:$4 sm:$0xff]   ;;  %v19550_v24 = vld [vmem:[%s26194_s3 + $0x60] ss:$16 sps:$4 sm:$0xff]  }
 0x2c5   :  { %16162 = vmatprep.subr.bf16.mxu1 %v21551_v44  ;;  %v1221_v23 = vmul.f32 %v21323_v48, %v26381_v32  ;;  %v1279_v43 = vadd.f32 %v21328_v57, %v1218_v7  ;;  %v1335_v41 = vmax.f32 %v1278_v13, 0.0  ;;  %v21634_v30 = vpack.c.bf16 %v1333_v10, %v1332_v22  ;;  %v19551_v7 = vld [vmem:[%s26194_s3 + $0x160] ss:$16 sps:$4 sm:$0xff]   ;;  %v19554_v13 = vld [vmem:[%s26194_s3 + $0x184] ss:$16 sps:$4 sm:$0xff]  }
 0x2c6   :  { %26379 = vst [vmem:[#allocation20_spill] sm:$0xff] %v21616_v26  ;;  %v1222_v55 = vmul.f32 %v21323_v48, %v26383_v61  ;;  %v19556_v10 = vld [vmem:[%s26194_s3 + $0x80] ss:$16 sps:$4 sm:$0xff]   ;;  %v19560_v15 = vld [vmem:[%s26194_s3 + $0x1a4] ss:$16 sps:$4 sm:$0xff]  }
 0x2c7   :  { %16099 = vmatpush3.bf16.msra.mxu0 %v21562_v50  ;;  %26382 = vst [vmem:[#allocation21_spill] sm:$0xff] %v21634_v30  ;;  %v1282_v25 = vadd.f32 %v21328_v57, %v1221_v23  ;;  %v1336_v40 = vmax.f32 %v1279_v43, 0.0  ;;  %v19563_v32 = vld [vmem:[%s26194_s3 + $0x1a0] ss:$16 sps:$4 sm:$0xff]   ;;  %v19564_v23 = vld [vmem:[%s26194_s3 + $0xc4] ss:$16 sps:$4 sm:$0xff]  }
 0x2c8   :  { %16163 = vmatpush3.bf16.msra.mxu1 %v21562_v50  ;;  %1689 = vmatprep.subr.bf16.mxu0 %v26372_v49  ;;  %v1283_v33 = vadd.f32 %v21328_v57, %v1222_v55  ;;  %v1350_v43 = vmax.f32 %v21333_v0, 0.0  ;;  %v19568_v0 = vld [vmem:[%s26194_s3 + $0xc0] ss:$16 sps:$4 sm:$0xff]  }
 0x2c9   :  { %19020 = vmatprep.subr.bf16.mxu1 %v26372_v49  ;;  %v19574_v55 = vld [vmem:[%s26194_s3 + $0xe0] ss:$16 sps:$4 sm:$0xff]  }
 0x2ca   :  { %1625 = vmatmul.mubr.bf16.vlgmr.msra.gmra.mrb[116].mxu0 %v19528_v21  ;;  %v1280_v21 = vadd.f32 %v21328_v57, %v1219_v27 }
 0x2cb   :  { %2039 = vmatmul.mubr.bf16.vlgmr.msra.gmra.mrb[0].mxu1 %v19531_v29  ;;  %1690 = vmatpush1.bf16.msra.mxu0 %v21580_v4  ;;  %v1334_v29 = vmax.f32 %v1277_v2, 0.0  ;;  %v19552_v2 = vld [vmem:[%s26194_s3 + $0x84] ss:$16 sps:$4 sm:$0xff]  }
 0x2cc   :  { %19033 = vmatpush1.bf16.msra.mxu1 %v21580_v4  ;;  %1691 = vmatprep.subr.bf16.mxu0 %v26372_v49  ;;  %v1337_v28 = vmax.f32 %v1280_v21, 0.0  ;;  %v19566_v21 = vld [vmem:[%s26194_s3 + $0x1c4] ss:$16 sps:$4 sm:$0xff]  }
 0x2cd   :  { %19021 = vmatprep.subr.bf16.mxu1 %v26372_v49  ;;  %1632 = vmatprep.mubr.bf16.mxu0 %v19534_v36  ;;  %v1223_v36 = vmul.f32 %v21323_v48, %v26384_v37  ;;  %v21652_v58 = vpack.c.bf16 %v1335_v41, %v1334_v29  ;;  %v19548_v48 = vld [vmem:[%s26194_s3 + $0x164] ss:$16 sps:$4 sm:$0xff]   ;;  %v1379_v29 = vpack.c.bf16 %v1350_v43, %v1350_v43  ;;  %v19569_v41 = vld [vmem:[%s26194_s3 + $0x1c0] ss:$16 sps:$4 sm:$0xff]   ;;  %v19612_v43 = vld [vmem:[%s26194_s3 + $0xcc] ss:$16 sps:$4 sm:$0xff]  }
 0x2ce   :  { %2046 = vmatprep.mubr.bf16.mxu1 %v19536_v11  ;;  %v1281_v11 = vadd.f32 %v21328_v57, %v1220_v1  ;;  %v19562_v1 = vld [vmem:[%s26194_s3 + $0xa0] ss:$16 sps:$4 sm:$0xff]  }
 0x2cf   :  { %1692 = vmatpush1.bf16.msra.mxu0 %v21598_v12  ;;  %26385 = vst [vmem:[#allocation22_spill] sm:$0xff] %v21652_v58  ;;  %v1284_v42 = vadd.f32 %v21328_v57, %v1223_v36  ;;  %v1340_v57 = vmax.f32 %v1283_v33, 0.0  ;;  %v21751_v61 = vsel %vm540_vm1, %v1379_v29, 0  ;;  %v19575_v37 = vld [vmem:[%s26194_s3 + $0x1e0] ss:$16 sps:$4 sm:$0xff]  }
 0x2d0   :  { %19034 = vmatpush1.bf16.msra.mxu1 %v21598_v12  ;;  %1693 = vmatprep.subr.bf16.mxu0 %v26372_v49  ;;  %v1338_v14 = vmax.f32 %v1281_v11, 0.0  ;;  %26389 = vst [vmem:[#allocation6_spill] sm:$0xff] %v21751_v61  ;;  %v19578_v36 = vld [vmem:[%s26194_s3 + $0xc] ss:$16 sps:$4 sm:$0xff]   ;;  %v19587_v33 = vld [vmem:[%s26194_s3 + $0x168] ss:$16 sps:$4 sm:$0xff]  }
 0x2d1   :  { %19022 = vmatprep.subr.bf16.mxu1 %v26372_v49  ;;  %v1341_v51 = vmax.f32 %v1284_v42, 0.0  ;;  %v19581_v11 = vld [vmem:[%s26194_s3 + $0x14c] ss:$16 sps:$4 sm:$0xff]   ;;  %v19617_v29 = vld [vmem:[%s26194_s3 + $0xc8] ss:$16 sps:$4 sm:$0xff]  }
 0x2d2   :  { %1633 = vmatmul.mubr.bf16.gmra.mrb[120].mxu0 %v19538_v17  ;;  %v1339_v17 = vmax.f32 %v1282_v25, 0.0  ;;  %v19576_v25 = vld [vmem:[%s26194_s3 + $0x8] ss:$16 sps:$4 sm:$0xff]   ;;  %v19588_v42 = vld [vmem:[%s26194_s3 + $0x4c] ss:$16 sps:$4 sm:$0xff]  }
 0x2d3   :  { %2047 = vmatmul.mubr.bf16.gmra.mrb[4].mxu1 %v19539_v56  ;;  %1694 = vmatpush1.bf16.msra.mxu0 %v21616_v26  ;;  %v21666_v56 = vpack.c.bf16 %v1337_v28, %v1336_v40  ;;  %v21690_v22 = vpack.c.bf16 %v1341_v51, %v1340_v57  ;;  %v19579_v40 = vld [vmem:[%s26194_s3 + $0x148] ss:$16 sps:$4 sm:$0xff]   ;;  %v19582_v28 = vld [vmem:[%s26194_s3 + $0x2c] ss:$16 sps:$4 sm:$0xff]  }
 0x2d4   :  { %19035 = vmatpush1.bf16.msra.mxu1 %v21616_v26  ;;  %1695 = vmatprep.subr.bf16.mxu0 %v26372_v49  ;;  %v21678_v27 = vpack.c.bf16 %v1339_v17, %v1338_v14  ;;  %v19590_v14 = vld [vmem:[%s26194_s3 + $0x18c] ss:$16 sps:$4 sm:$0xff]   ;;  %v19592_v17 = vld [vmem:[%s26194_s3 + $0x48] ss:$16 sps:$4 sm:$0xff]  }
 0x2d5   :  { %19023 = vmatprep.subr.bf16.mxu1 %v26372_v49  ;;  %1640 = vmatprep.mubr.bf16.mxu0 %v19540_v39  ;;  %26386 = vst [vmem:[#allocation23_spill] sm:$0xff] %v21666_v56  ;;  %26388 = vst [vmem:[#allocation5_spill] sm:$0xff] %v21690_v22  ;;  %v19557_v39 = vld [vmem:[%s26194_s3 + $0x180] ss:$16 sps:$4 sm:$0xff]   ;;  %v19596_v57 = vld [vmem:[%s26194_s3 + $0x1ac] ss:$16 sps:$4 sm:$0xff]  }
 0x2d6   :  { %2054 = vmatprep.mubr.bf16.mxu1 %v19542_v8  ;;  %26387 = vst [vmem:[#allocation24_spill] sm:$0xff] %v21678_v27  ;;  %v19558_v8 = vld [vmem:[%s26194_s3 + $0xa4] ss:$16 sps:$4 sm:$0xff]   ;;  %v19598_v51 = vld [vmem:[%s26194_s3 + $0x68] ss:$16 sps:$4 sm:$0xff]  }
 0x2d7   :  { %1696 = vmatpush1.bf16.msra.mxu0 %v21634_v30 }
 0x2d8   :  { %19036 = vmatpush1.bf16.msra.mxu1 %v21634_v30  ;;  %1697 = vmatprep.subr.bf16.mxu0 %v26372_v49 }
 0x2d9   :  { %19024 = vmatprep.subr.bf16.mxu1 %v26372_v49 }
 0x2da   :  { %1641 = vmatmul.mubr.bf16.gmra.mrb[124].mxu0 %v19544_v59  ;;  %v19570_v59 = vld [vmem:[%s26194_s3 + $0xe4] ss:$16 sps:$4 sm:$0xff]  }
 0x2db   :  { %2055 = vmatmul.mubr.bf16.gmra.mrb[8].mxu1 %v19545_v34  ;;  %1698 = vmatpush1.bf16.msra.mxu0 %v21652_v58  ;;  %v19572_v34 = vld [vmem:[%s26194_s3 + $0x1e4] ss:$16 sps:$4 sm:$0xff]  }
 0x2dc   :  { %19037 = vmatpush1.bf16.msra.mxu1 %v21652_v58  ;;  %1699 = vmatprep.subr.bf16.mxu0 %v26372_v49 }
 0x2dd   :  { %19025 = vmatprep.subr.bf16.mxu1 %v26372_v49  ;;  %1648 = vmatprep.mubr.bf16.mxu0 %v19546_v38  ;;  %v19584_v38 = vld [vmem:[%s26194_s3 + $0x16c] ss:$16 sps:$4 sm:$0xff]  }
 0x2de   :  { %2062 = vmatprep.mubr.bf16.mxu1 %v19548_v48  ;;  %v19586_v48 = vld [vmem:[%s26194_s3 + $0x28] ss:$16 sps:$4 sm:$0xff]  }
 0x2df   :  { %1700 = vmatpush1.bf16.msra.mxu0 %v21666_v56 }
 0x2e0   :  { %19038 = vmatpush1.bf16.msra.mxu1 %v21666_v56  ;;  %1701 = vmatprep.subr.bf16.mxu0 %v26372_v49 }
 0x2e1   :  { %19026 = vmatprep.subr.bf16.mxu1 %v26372_v49 }
 0x2e2   :  { %1649 = vmatmul.mubr.bf16.gmra.mrb[128].mxu0 %v19550_v24  ;;  %v19593_v24 = vld [vmem:[%s26194_s3 + $0x188] ss:$16 sps:$4 sm:$0xff]  }
 0x2e3   :  { %2063 = vmatmul.mubr.bf16.gmra.mrb[12].mxu1 %v19551_v7  ;;  %1702 = vmatpush1.bf16.msra.mxu0 %v21678_v27  ;;  %v19594_v7 = vld [vmem:[%s26194_s3 + $0x6c] ss:$16 sps:$4 sm:$0xff]  }
 0x2e4   :  { %19039 = vmatpush1.bf16.msra.mxu1 %v21678_v27  ;;  %1703 = vmatprep.subr.bf16.mxu0 %v26372_v49 }
 0x2e5   :  { %19027 = vmatprep.subr.bf16.mxu1 %v26372_v49  ;;  %1656 = vmatprep.mubr.bf16.mxu0 %v19552_v2  ;;  %v19599_v2 = vld [vmem:[%s26194_s3 + $0x1a8] ss:$16 sps:$4 sm:$0xff]  }
 0x2e6   :  { %2070 = vmatprep.mubr.bf16.mxu1 %v19554_v13  ;;  %v19600_v13 = vld [vmem:[%s26194_s3 + $0x8c] ss:$16 sps:$4 sm:$0xff]  }
 0x2e7   :  { %1704 = vmatpush1.bf16.msra.mxu0 %v21690_v22 }
 0x2e8   :  { %19040 = vmatpush1.bf16.msra.mxu1 %v21690_v22  ;;  %1705 = vmatprep.subr.bf16.mxu0 %v26372_v49 }
 0x2e9   :  { %19028 = vmatprep.subr.bf16.mxu1 %v26372_v49 }
 0x2ea   :  { %1657 = vmatmul.mubr.bf16.gmra.mrb[132].mxu0 %v19556_v10  ;;  %v19602_v10 = vld [vmem:[%s26194_s3 + $0x1cc] ss:$16 sps:$4 sm:$0xff]  }
 0x2eb   :  { %2071 = vmatmul.mubr.bf16.gmra.mrb[16].mxu1 %v19557_v39  ;;  %1706 = vmatpush1.bf16.msra.mxu0 %v21449_v52  ;;  %v19604_v39 = vld [vmem:[%s26194_s3 + $0x88] ss:$16 sps:$4 sm:$0xff]  }
 0x2ec   :  { %19041 = vmatpush1.bf16.msra.mxu1 %v21449_v52  ;;  %1707 = vmatprep.subr.bf16.mxu0 %v26372_v49 }
 0x2ed   :  { %19029 = vmatprep.subr.bf16.mxu1 %v26372_v49  ;;  %1664 = vmatprep.mubr.bf16.mxu0 %v19558_v8  ;;  %v19605_v8 = vld [vmem:[%s26194_s3 + $0x1c8] ss:$16 sps:$4 sm:$0xff]  }
 0x2ee   :  { %2078 = vmatprep.mubr.bf16.mxu1 %v19560_v15  ;;  %v19606_v15 = vld [vmem:[%s26194_s3 + $0xac] ss:$16 sps:$4 sm:$0xff]  }
 0x2ef   :  { %1708 = vmatpush1.bf16.msra.mxu0 %v21451_v47 }
 0x2f0   :  { %19042 = vmatpush1.bf16.msra.mxu1 %v21451_v47  ;;  %1709 = vmatprep.subr.bf16.mxu0 %v26372_v49 }
 0x2f1   :  { %19030 = vmatprep.subr.bf16.mxu1 %v26372_v49 }
 0x2f2   :  { %1665 = vmatmul.mubr.bf16.gmra.mrb[136].mxu0 %v19562_v1  ;;  %v19608_v1 = vld [vmem:[%s26194_s3 + $0x1ec] ss:$16 sps:$4 sm:$0xff]  }
 0x2f3   :  { %2079 = vmatmul.mubr.bf16.gmra.mrb[20].mxu1 %v19563_v32  ;;  %1710 = vmatpush1.bf16.msra.mxu0 %v21453_v54  ;;  %v19610_v32 = vld [vmem:[%s26194_s3 + $0xa8] ss:$16 sps:$4 sm:$0xff]  }
 0x2f4   :  { %19043 = vmatpush1.bf16.msra.mxu1 %v21453_v54  ;;  %1711 = vmatprep.subr.bf16.mxu0 %v26372_v49 }
 0x2f5   :  { %19031 = vmatprep.subr.bf16.mxu1 %v26372_v49  ;;  %1672 = vmatprep.mubr.bf16.mxu0 %v19564_v23  ;;  %v19611_v23 = vld [vmem:[%s26194_s3 + $0x1e8] ss:$16 sps:$4 sm:$0xff]  }
 0x2f6   :  { %2086 = vmatprep.mubr.bf16.mxu1 %v19566_v21  ;;  %v19616_v21 = vld [vmem:[%s26194_s3 + $0x204] ss:$16 sps:$4 sm:$0xff]  }
 0x2f7   :  { %1712 = vmatpush1.bf16.msra.mxu0 %v21458_v9 }
 0x2f8   :  { %19044 = vmatpush1.bf16.msra.mxu1 %v21458_v9  ;;  %1713 = vmatprep.subr.bf16.mxu0 %v26372_v49 }
 0x2f9   :  { %19032 = vmatprep.subr.bf16.mxu1 %v26372_v49 }
 0x2fa   :  { %1673 = vmatmul.mubr.bf16.gmra.mrb[140].mxu0 %v19568_v0  ;;  %v19614_v0 = vld [vmem:[%s26194_s3 + $0x200] ss:$16 sps:$4 sm:$0xff]  }
 0x2fb   :  { %2087 = vmatmul.mubr.bf16.gmra.mrb[24].mxu1 %v19569_v41  ;;  %1714 = vmatpush1.bf16.msra.mxu0 %v21751_v61  ;;  %v19618_v41 = vld [vmem:[%s26194_s3 + $0xec] ss:$16 sps:$4 sm:$0xff]  }
 0x2fc   :  { %19045 = vmatpush1.bf16.msra.mxu1 %v21751_v61  ;;  %1680 = vmatprep.mubr.bf16.mxu0 %v19570_v59  ;;  %v19620_v59 = vld [vmem:[%s26194_s3 + $0x224] ss:$16 sps:$4 sm:$0xff]  }
 0x2fd   :  { %16232 = vmatprep.subr.bf16.mxu1 %v21433_v31  ;;  %2094 = vmatprep.mubr.bf16.mxu1 %v19572_v34  ;;  %v19622_v34 = vld [vmem:[%s26194_s3 + $0xe8] ss:$16 sps:$4 sm:$0xff]  }
 0x2fe   :  { %2103 = vmatprep.subr.bf16.mxu0 %v26372_v49 }
 0x302   :  { %1681 = vmatmul.mubr.bf16.gmra.mrb[144].mxu0 %v19574_v55  ;;  %v19623_v55 = vld [vmem:[%s26194_s3 + $0x220] ss:$16 sps:$4 sm:$0xff]  }
 0x303   :  { %2095 = vmatmul.mubr.bf16.gmra.mrb[28].mxu1 %v19575_v37  ;;  %15151 = vmatprep.mubr.msk.bf16.mxu0 %vm1564_vm5, %v19578_v36  ;;  %v19626_v37 = vld [vmem:[%s26194_s3 + $0x10c] ss:$16 sps:$4 sm:$0xff]   ;;  %v19627_v36 = vld [vmem:[%s26194_s3 + $0x244] ss:$16 sps:$4 sm:$0xff]  }
 0x304   :  { %15193 = vmatprep.mubr.msk.bf16.mxu1 %vm1564_vm5, %v19581_v11  ;;  %v19624_v11 = vld [vmem:[%s26194_s3 + $0x108] ss:$16 sps:$4 sm:$0xff]  }
 0x30a   :  { %1722 = vmatmul.mubr.bf16.vlgmr.msra.gmra.mrb[148].mxu0 %v19576_v25  ;;  %v19629_v25 = vld [vmem:[%s26194_s3 + $0x240] ss:$16 sps:$4 sm:$0xff]  }
 0x30b   :  { %2104 = vmatpush1.bf16.msra.mxu0 %v21580_v4  ;;  %2152 = vmatmul.mubr.bf16.vlgmr.msra.gmra.mrb[32].mxu1 %v19579_v40  ;;  %v19630_v40 = vld [vmem:[%s26194_s3 + $0x12c] ss:$16 sps:$4 sm:$0xff]  }
 0x30c   :  { %16233 = vmatpush3.bf16.msra.mxu1 %v21431_v46  ;;  %2105 = vmatprep.subr.bf16.mxu0 %v26372_v49 }
 0x30d   :  { %16234 = vmatprep.subr.bf16.mxu1 %v21444_v62  ;;  %15152 = vmatprep.mubr.msk.bf16.mxu0 %vm1564_vm5, %v19582_v28  ;;  %v19632_v28 = vld [vmem:[%s26194_s3 + $0x264] ss:$16 sps:$4 sm:$0xff]  }
 0x30e   :  { %15194 = vmatprep.mubr.msk.bf16.mxu1 %vm1564_vm5, %v19584_v38  ;;  %v19634_v38 = vld [vmem:[%s26194_s3 + $0x128] ss:$16 sps:$4 sm:$0xff]  }
 0x30f   :  { %2106 = vmatpush1.bf16.msra.mxu0 %v21598_v12 }
 0x310   :  { %16235 = vmatpush3.bf16.msra.mxu1 %v21463_v3  ;;  %2107 = vmatprep.subr.bf16.mxu0 %v26372_v49 }
 0x311   :  { %16236 = vmatprep.subr.bf16.mxu1 %v21467_v19 }
 0x312   :  { %1730 = vmatmul.mubr.bf16.gmra.mrb[152].mxu0 %v19586_v48  ;;  %v19635_v48 = vld [vmem:[%s26194_s3 + $0x260] ss:$16 sps:$4 sm:$0xff]  }
 0x313   :  { %2108 = vmatpush1.bf16.msra.mxu0 %v21616_v26  ;;  %2160 = vmatmul.mubr.bf16.gmra.mrb[36].mxu1 %v19587_v33  ;;  %v19636_v33 = vld [vmem:[%s26194_s3 + $0x284] ss:$16 sps:$4 sm:$0xff]  }
 0x314   :  { %16237 = vmatpush3.bf16.msra.mxu1 %v21483_v35  ;;  %2109 = vmatprep.subr.bf16.mxu0 %v26372_v49 }
 0x315   :  { %16238 = vmatprep.subr.bf16.mxu1 %v21487_v18  ;;  %15153 = vmatprep.mubr.msk.bf16.mxu0 %vm1564_vm5, %v19588_v42  ;;  %v19638_v42 = vld [vmem:[%s26194_s3 + $0x280] ss:$16 sps:$4 sm:$0xff]  }
 0x316   :  { %15195 = vmatprep.mubr.msk.bf16.mxu1 %vm1564_vm5, %v19590_v14  ;;  %v19639_v14 = vld [vmem:[%s26194_s3 + $0x2a4] ss:$16 sps:$4 sm:$0xff]  }
 0x317   :  { %2110 = vmatpush1.bf16.msra.mxu0 %v21634_v30 }
 0x318   :  { %16239 = vmatpush3.bf16.msra.mxu1 %v21503_v45  ;;  %2111 = vmatprep.subr.bf16.mxu0 %v26372_v49 }
 0x319   :  { %16240 = vmatprep.subr.bf16.mxu1 %v21507_v53 }
 0x31a   :  { %1738 = vmatmul.mubr.bf16.gmra.mrb[156].mxu0 %v19592_v17  ;;  %v19641_v17 = vld [vmem:[%s26194_s3 + $0x2a0] ss:$16 sps:$4 sm:$0xff]  }
 0x31b   :  { %2112 = vmatpush1.bf16.msra.mxu0 %v21652_v58  ;;  %2168 = vmatmul.mubr.bf16.gmra.mrb[40].mxu1 %v19593_v24  ;;  %v19642_v24 = vld [vmem:[%s26194_s3 + $0x2c4] ss:$16 sps:$4 sm:$0xff]  }
 0x31c   :  { %16241 = vmatpush3.bf16.msra.mxu1 %v21519_v63  ;;  %2113 = vmatprep.subr.bf16.mxu0 %v26372_v49 }
 0x31d   :  { %16242 = vmatprep.subr.bf16.mxu1 %v21523_v20  ;;  %15154 = vmatprep.mubr.msk.bf16.mxu0 %vm1564_vm5, %v19594_v7  ;;  %v19644_v7 = vld [vmem:[%s26194_s3 + $0x2c0] ss:$16 sps:$4 sm:$0xff]  }
 0x31e   :  { %15196 = vmatprep.mubr.msk.bf16.mxu1 %vm1564_vm5, %v19596_v57  ;;  %v19645_v57 = vld [vmem:[%s26194_s3 + $0x2e4] ss:$16 sps:$4 sm:$0xff]  }
 0x31f   :  { %2114 = vmatpush1.bf16.msra.mxu0 %v21666_v56 }
 0x320   :  { %16243 = vmatpush3.bf16.msra.mxu1 %v21534_v16  ;;  %2115 = vmatprep.subr.bf16.mxu0 %v26372_v49 }
 0x321   :  { %16244 = vmatprep.subr.bf16.mxu1 %v21537_v60 }
 0x322   :  { %1746 = vmatmul.mubr.bf16.gmra.mrb[160].mxu0 %v19598_v51  ;;  %v19647_v51 = vld [vmem:[%s26194_s3 + $0x2e0] ss:$16 sps:$4 sm:$0xff]  }
 0x323   :  { %2116 = vmatpush1.bf16.msra.mxu0 %v21678_v27  ;;  %2176 = vmatmul.mubr.bf16.gmra.mrb[44].mxu1 %v19599_v2  ;;  %v19650_v2 = vld [vmem:[%s26194_s3 + $0x20c] ss:$16 sps:$4 sm:$0xff]  }
 0x324   :  { %16245 = vmatpush3.bf16.msra.mxu1 %v21548_v5  ;;  %2117 = vmatprep.subr.bf16.mxu0 %v26372_v49 }
 0x325   :  { %16246 = vmatprep.subr.bf16.mxu1 %v21551_v44  ;;  %15155 = vmatprep.mubr.msk.bf16.mxu0 %vm1564_vm5, %v19600_v13  ;;  %v19648_v13 = vld [vmem:[%s26194_s3 + $0x208] ss:$16 sps:$4 sm:$0xff]  }
 0x326   :  { %15197 = vmatprep.mubr.msk.bf16.mxu1 %vm1564_vm5, %v19602_v10  ;;  %v19651_v10 = vld [vmem:[%s26194_s3 + $0x22c] ss:$16 sps:$4 sm:$0xff]  }
 0x327   :  { %2118 = vmatpush1.bf16.msra.mxu0 %v21690_v22 }
 0x328   :  { %16247 = vmatpush3.bf16.msra.mxu1 %v21562_v50  ;;  %2119 = vmatprep.subr.bf16.mxu0 %v26372_v49 }
 0x329   :  { %2783 = vmatprep.subr.bf16.mxu1 %v26372_v49 }
 0x32a   :  { %1754 = vmatmul.mubr.bf16.gmra.mrb[164].mxu0 %v19604_v39  ;;  %v19653_v39 = vld [vmem:[%s26194_s3 + $0x228] ss:$16 sps:$4 sm:$0xff]  }
 0x32b   :  { %2120 = vmatpush1.bf16.msra.mxu0 %v21449_v52  ;;  %2184 = vmatmul.mubr.bf16.gmra.mrb[48].mxu1 %v19605_v8  ;;  %v19654_v8 = vld [vmem:[%s26194_s3 + $0x24c] ss:$16 sps:$4 sm:$0xff]  }
 0x32c   :  { %2121 = vmatprep.subr.bf16.mxu0 %v26372_v49  ;;  %15156 = vmatprep.mubr.msk.bf16.mxu0 %vm1564_vm5, %v19606_v15  ;;  %v19656_v15 = vld [vmem:[%s26194_s3 + $0x248] ss:$16 sps:$4 sm:$0xff]  }
 0x32d   :  { %15198 = vmatprep.mubr.msk.bf16.mxu1 %vm1564_vm5, %v19608_v1  ;;  %v19657_v1 = vld [vmem:[%s26194_s3 + $0x26c] ss:$16 sps:$4 sm:$0xff]  }
 0x32f   :  { %2122 = vmatpush1.bf16.msra.mxu0 %v21451_v47 }
 0x330   :  { %2123 = vmatprep.subr.bf16.mxu0 %v26372_v49 }
 0x332   :  { %1762 = vmatmul.mubr.bf16.gmra.mrb[168].mxu0 %v19610_v32  ;;  %v19659_v32 = vld [vmem:[%s26194_s3 + $0x268] ss:$16 sps:$4 sm:$0xff]  }
 0x333   :  { %2124 = vmatpush1.bf16.msra.mxu0 %v21453_v54  ;;  %2192 = vmatmul.mubr.bf16.gmra.mrb[52].mxu1 %v19611_v23  ;;  %v19660_v23 = vld [vmem:[%s26194_s3 + $0x28c] ss:$16 sps:$4 sm:$0xff]  }
 0x334   :  { %2125 = vmatprep.subr.bf16.mxu0 %v26372_v49  ;;  %15157 = vmatprep.mubr.msk.bf16.mxu0 %vm1564_vm5, %v19612_v43  ;;  %v19662_v43 = vld [vmem:[%s26194_s3 + $0x288] ss:$16 sps:$4 sm:$0xff]  }
 0x335   :  { %2718 = vmatprep.mubr.bf16.mxu1 %v19616_v21  ;;  %v19663_v21 = vld [vmem:[%s26194_s3 + $0x2ac] ss:$16 sps:$4 sm:$0xff]  }
 0x337   :  { %2126 = vmatpush1.bf16.msra.mxu0 %v21458_v9 }
 0x338   :  { %2127 = vmatprep.subr.bf16.mxu0 %v26372_v49 }
 0x33a   :  { %1770 = vmatmul.mubr.bf16.gmra.mrb[172].mxu0 %v19617_v29 }
 0x33b   :  { %2128 = vmatpush1.bf16.msra.mxu0 %v21751_v61  ;;  %2719 = vmatmul.mubr.bf16.vlgmr.msra.gmra.mrb[56].mxu1 %v19614_v0 }
 0x33c   :  { %2784 = vmatpush1.bf16.msra.mxu1 %v21580_v4  ;;  %15158 = vmatprep.mubr.msk.bf16.mxu0 %vm1564_vm5, %v19618_v41 }
 0x33d   :  { %2785 = vmatprep.subr.bf16.mxu1 %v26372_v49  ;;  %2726 = vmatprep.mubr.bf16.mxu1 %v19620_v59  ;;  %v19665_v59 = vld [vmem:[%s26194_s3 + $0x2a8] ss:$16 sps:$4 sm:$0xff]  }
 0x340   :  { %2786 = vmatpush1.bf16.msra.mxu1 %v21598_v12 }
 0x341   :  { %2787 = vmatprep.subr.bf16.mxu1 %v26372_v49 }
 0x342   :  { %1778 = vmatmul.mubr.bf16.gmra.mrb[176].mxu0 %v19622_v34 }
 0x343   :  { %2727 = vmatmul.mubr.bf16.gmra.mrb[60].mxu1 %v19623_v55  ;;  %15191 = vmatprep.mubr.msk.bf16.mxu0 %vm1564_vm5, %v19626_v37 }
 0x344   :  { %2788 = vmatpush1.bf16.msra.mxu1 %v21616_v26  ;;  %2734 = vmatprep.mubr.bf16.mxu1 %v19627_v36  ;;  %v19666_v36 = vld [vmem:[%s26194_s3 + $0x2cc] ss:$16 sps:$4 sm:$0xff]  }
 0x345   :  { %2789 = vmatprep.subr.bf16.mxu1 %v26372_v49 }
 0x348   :  { %2790 = vmatpush1.bf16.msra.mxu1 %v21634_v30 }
 0x349   :  { %2791 = vmatprep.subr.bf16.mxu1 %v26372_v49 }
 0x34a   :  { %2136 = vmatmul.mubr.bf16.vlgmr.msra.gmra.mrb[180].mxu0 %v19624_v11 }
 0x34b   :  { %2735 = vmatmul.mubr.bf16.gmra.mrb[64].mxu1 %v19629_v25  ;;  %15192 = vmatprep.mubr.msk.bf16.mxu0 %vm1564_vm5, %v19630_v40 }
 0x34c   :  { %2792 = vmatpush1.bf16.msra.mxu1 %v21652_v58  ;;  %2742 = vmatprep.mubr.bf16.mxu1 %v19632_v28 }
 0x34d   :  { %2793 = vmatprep.subr.bf16.mxu1 %v26372_v49 }
 0x350   :  { %2794 = vmatpush1.bf16.msra.mxu1 %v21666_v56 }
 0x351   :  { %2795 = vmatprep.subr.bf16.mxu1 %v26372_v49 }
 0x352   :  { %2144 = vmatmul.mubr.bf16.gmra.mrb[184].mxu0 %v19634_v38 }
 0x353   :  { %2743 = vmatmul.mubr.bf16.gmra.mrb[68].mxu1 %v19635_v48 }
 0x354   :  { %2796 = vmatpush1.bf16.msra.mxu1 %v21678_v27  ;;  %2750 = vmatprep.mubr.bf16.mxu1 %v19636_v33  ;;  %v19714_v33 = vld [vmem:[%s26196_s5 + $0x10] sm:$0xff]  }
 0x355   :  { %2797 = vmatprep.subr.bf16.mxu1 %v26372_v49  ;;  %17436 = vmatprep.subr.bf16.mxu0 %v19714_v33 }
 0x356   :  { %17437 = vmatpush3.bf16.msra.mxu0 %v19714_v33 }
 0x358   :  { %2798 = vmatpush1.bf16.msra.mxu1 %v21690_v22 }
 0x359   :  { %2799 = vmatprep.subr.bf16.mxu1 %v26372_v49 }
 0x35b   :  { %2751 = vmatmul.mubr.bf16.gmra.mrb[72].mxu1 %v19638_v42 }
 0x35c   :  { %2800 = vmatpush1.bf16.msra.mxu1 %v21449_v52  ;;  %2758 = vmatprep.mubr.bf16.mxu1 %v19639_v14 }
 0x35d   :  { %2801 = vmatprep.subr.bf16.mxu1 %v26372_v49 }
 0x360   :  { %2802 = vmatpush1.bf16.msra.mxu1 %v21451_v47 }
 0x361   :  { %2803 = vmatprep.subr.bf16.mxu1 %v26372_v49 }
 0x363   :  { %2759 = vmatmul.mubr.bf16.gmra.mrb[76].mxu1 %v19641_v17 }
 0x364   :  { %2804 = vmatpush1.bf16.msra.mxu1 %v21453_v54  ;;  %2766 = vmatprep.mubr.bf16.mxu1 %v19642_v24  ;;  %v19668_v24 = vld [vmem:[%s26194_s3 + $0x2c8] ss:$16 sps:$4 sm:$0xff]  }
 0x365   :  { %2805 = vmatprep.subr.bf16.mxu1 %v26372_v49 }
 0x368   :  { %2806 = vmatpush1.bf16.msra.mxu1 %v21458_v9 }
 0x369   :  { %2807 = vmatprep.subr.bf16.mxu1 %v26372_v49 }
 0x36b   :  { %2767 = vmatmul.mubr.bf16.gmra.mrb[80].mxu1 %v19644_v7 }
 0x36c   :  { %2808 = vmatpush1.bf16.msra.mxu1 %v21751_v61  ;;  %2774 = vmatprep.mubr.bf16.mxu1 %v19645_v57 }
 0x36d   :  { %3346 = vmatprep.subr.bf16.mxu1 %v26372_v49 }
 0x373   :  { %2775 = vmatmul.mubr.bf16.gmra.mrb[84].mxu1 %v19647_v51 }
 0x374   :  { %15251 = vmatprep.mubr.msk.bf16.mxu1 %vm1564_vm5, %v19650_v2  ;;  %v19669_v2 = vld [vmem:[%s26194_s3 + $0x2ec] ss:$16 sps:$4 sm:$0xff]  }
 0x37b   :  { %2816 = vmatmul.mubr.bf16.vlgmr.msra.gmra.mrb[88].mxu1 %v19648_v13 }
 0x37c   :  { %3347 = vmatpush1.bf16.msra.mxu1 %v21580_v4  ;;  %15252 = vmatprep.mubr.msk.bf16.mxu1 %vm1564_vm5, %v19651_v10 }
 0x37d   :  { %3348 = vmatprep.subr.bf16.mxu1 %v26372_v49 }
 0x380   :  { %3349 = vmatpush1.bf16.msra.mxu1 %v21598_v12 }
 0x381   :  { %3350 = vmatprep.subr.bf16.mxu1 %v26372_v49 }
 0x383   :  { %2824 = vmatmul.mubr.bf16.gmra.mrb[92].mxu1 %v19653_v39 }
 0x384   :  { %3351 = vmatpush1.bf16.msra.mxu1 %v21616_v26  ;;  %15253 = vmatprep.mubr.msk.bf16.mxu1 %vm1564_vm5, %v19654_v8 }
 0x385   :  { %3352 = vmatprep.subr.bf16.mxu1 %v26372_v49 }
 0x388   :  { %3353 = vmatpush1.bf16.msra.mxu1 %v21634_v30 }
 0x389   :  { %3354 = vmatprep.subr.bf16.mxu1 %v26372_v49 }
 0x38b   :  { %2832 = vmatmul.mubr.bf16.gmra.mrb[96].mxu1 %v19656_v15 }
 0x38c   :  { %3355 = vmatpush1.bf16.msra.mxu1 %v21652_v58  ;;  %15254 = vmatprep.mubr.msk.bf16.mxu1 %vm1564_vm5, %v19657_v1 }
 0x38d   :  { %3356 = vmatprep.subr.bf16.mxu1 %v26372_v49 }
 0x390   :  { %3357 = vmatpush1.bf16.msra.mxu1 %v21666_v56 }
 0x391   :  { %3358 = vmatprep.subr.bf16.mxu1 %v26372_v49 }
 0x393   :  { %2840 = vmatmul.mubr.bf16.gmra.mrb[100].mxu1 %v19659_v32  ;;  %v19715_v32 = vld [vmem:[%s26196_s5 + $0x18] sm:$0xff]  }
 0x394   :  { %3359 = vmatpush1.bf16.msra.mxu1 %v21678_v27  ;;  %15255 = vmatprep.mubr.msk.bf16.mxu1 %vm1564_vm5, %v19660_v23 }
 0x395   :  { %3360 = vmatprep.subr.bf16.mxu1 %v26372_v49  ;;  %17438 = vmatprep.subr.bf16.mxu0 %v19715_v32 }
 0x396   :  { %17439 = vmatpush3.bf16.msra.mxu0 %v19715_v32 }
 0x398   :  { %3361 = vmatpush1.bf16.msra.mxu1 %v21690_v22 }
 0x399   :  { %3362 = vmatprep.subr.bf16.mxu1 %v26372_v49 }
 0x39b   :  { %2848 = vmatmul.mubr.bf16.gmra.mrb[104].mxu1 %v19662_v43 }
 0x39c   :  { %3363 = vmatpush1.bf16.msra.mxu1 %v21449_v52  ;;  %15256 = vmatprep.mubr.msk.bf16.mxu1 %vm1564_vm5, %v19663_v21 }
 0x39d   :  { %3364 = vmatprep.subr.bf16.mxu1 %v26372_v49  ;;  %v16100_v29 = vpop.f32.mrb[116].mxu0 }
 0x39e   :  { %v16101_v0 = vpop.f32.mrb[117].mxu0  ;;  %v16164_v41 = vpop.f32.mrb[0].mxu1 }
 0x39f   :  { %v22050_v34 = vadd.f32 %v16101_v0, %v16100_v29  ;;  %v16103_v55 = vpop.f32.mrb[118].mxu0  ;;  %v16165_v37 = vpop.f32.mrb[1].mxu1  ;;  %v19671_v29 = vld [vmem:[%s26194_s3 + $0x2e8] ss:$16 sps:$4 sm:$0xff]  }
 0x3a0   :  { %3365 = vmatpush1.bf16.msra.mxu1 %v21451_v47  ;;  %v16104_v11 = vpop.f32.mrb[119].mxu0  ;;  %v22056_v25 = vadd.f32 %v16165_v37, %v16164_v41  ;;  %v16167_v40 = vpop.f32.mrb[2].mxu1 }
 0x3a1   :  { %3366 = vmatprep.subr.bf16.mxu1 %v26372_v49  ;;  %v22059_v28 = vadd.f32 %v16104_v11, %v16103_v55  ;;  %v16168_v38 = vpop.f32.mrb[3].mxu1  ;;  %v19674_v55 = vld [vmem:[%s26194_s3 + $0x30c] ss:$16 sps:$4 sm:$0xff]  }
 0x3a2   :  { %v22061_v48 = vadd.f32 %v16168_v38, %v16167_v40 }
 0x3a3   :  { %2856 = vmatmul.mubr.bf16.gmra.mrb[108].mxu1 %v19665_v59 }
 0x3a4   :  { %3367 = vmatpush1.bf16.msra.mxu1 %v21453_v54  ;;  %15257 = vmatprep.mubr.msk.bf16.mxu1 %vm1564_vm5, %v19666_v36 }
 0x3a5   :  { %3368 = vmatprep.subr.bf16.mxu1 %v26372_v49  ;;  %v16106_v42 = vpop.f32.mrb[120].mxu0 }
 0x3a6   :  { %v16107_v14 = vpop.f32.mrb[121].mxu0  ;;  %v16170_v17 = vpop.f32.mrb[4].mxu1 }
 0x3a7   :  { %v22072_v7 = vadd.f32 %v16107_v14, %v16106_v42  ;;  %v16109_v57 = vpop.f32.mrb[122].mxu0  ;;  %v16171_v51 = vpop.f32.mrb[5].mxu1 }
 0x3a8   :  { %3369 = vmatpush1.bf16.msra.mxu1 %v21458_v9  ;;  %v16110_v13 = vpop.f32.mrb[123].mxu0  ;;  %v22078_v10 = vadd.f32 %v16171_v51, %v16170_v17  ;;  %v16173_v39 = vpop.f32.mrb[6].mxu1 }
 0x3a9   :  { %3370 = vmatprep.subr.bf16.mxu1 %v26372_v49  ;;  %v22081_v8 = vadd.f32 %v16110_v13, %v16109_v57  ;;  %v16174_v15 = vpop.f32.mrb[7].mxu1  ;;  %v19675_v13 = vld [vmem:[%s26194_s3 + $0x32c] ss:$16 sps:$4 sm:$0xff]  }
 0x3aa   :  { %v22083_v1 = vadd.f32 %v16174_v15, %v16173_v39 }
 0x3ab   :  { %2864 = vmatmul.mubr.bf16.gmra.mrb[112].mxu1 %v19668_v24  ;;  %v19672_v24 = vld [vmem:[%s26194_s3 + $0x308] ss:$16 sps:$4 sm:$0xff]  }
 0x3ac   :  { %26390 = vst [vmem:[#allocation35_spill] sm:$0xff] %v22083_v1  ;;  %3371 = vmatpush1.bf16.msra.mxu1 %v21751_v61  ;;  %15258 = vmatprep.mubr.msk.bf16.mxu1 %vm1564_vm5, %v19669_v2 }
 0x3ad   :  { %3909 = vmatprep.subr.bf16.mxu1 %v26372_v49  ;;  %v16112_v23 = vpop.f32.mrb[124].mxu0 }
 0x3ae   :  { %v16113_v43 = vpop.f32.mrb[125].mxu0  ;;  %v16176_v21 = vpop.f32.mrb[8].mxu1 }
 0x3af   :  { %v22094_v0 = vadd.f32 %v16113_v43, %v16112_v23  ;;  %v16115_v41 = vpop.f32.mrb[126].mxu0  ;;  %v16177_v59 = vpop.f32.mrb[9].mxu1 }
 0x3b0   :  { %v16116_v37 = vpop.f32.mrb[127].mxu0  ;;  %v22099_v36 = vadd.f32 %v16177_v59, %v16176_v21  ;;  %v16179_v11 = vpop.f32.mrb[10].mxu1 }
 0x3b1   :  { %v22101_v40 = vadd.f32 %v16116_v37, %v16115_v41  ;;  %v16180_v38 = vpop.f32.mrb[11].mxu1 }
 0x3b2   :  { %v22103_v33 = vadd.f32 %v16180_v38, %v16179_v11 }
 0x3b3   :  { %2872 = vmatmul.mubr.bf16.gmra.mrb[116].mxu1 %v19671_v29 }
 0x3b4   :  { %15301 = vmatprep.mubr.msk.bf16.mxu1 %vm1564_vm5, %v19674_v55  ;;  %v19677_v55 = vld [vmem:[%s26194_s3 + $0x328] ss:$16 sps:$4 sm:$0xff]  }
 0x3b5   :  { %v16118_v42 = vpop.f32.mrb[128].mxu0 }
 0x3b6   :  { %v16119_v14 = vpop.f32.mrb[129].mxu0  ;;  %v16182_v17 = vpop.f32.mrb[12].mxu1 }
 0x3b7   :  { %v22109_v57 = vadd.f32 %v16119_v14, %v16118_v42  ;;  %v16121_v51 = vpop.f32.mrb[130].mxu0  ;;  %v16183_v2 = vpop.f32.mrb[13].mxu1  ;;  %v19678_v42 = vld [vmem:[%s26194_s3 + $0x34c] ss:$16 sps:$4 sm:$0xff]  }
 0x3b8   :  { %v16122_v39 = vpop.f32.mrb[131].mxu0  ;;  %v22114_v15 = vadd.f32 %v16183_v2, %v16182_v17  ;;  %v16185_v32 = vpop.f32.mrb[14].mxu1 }
 0x3b9   :  { %v22116_v23 = vadd.f32 %v16122_v39, %v16121_v51  ;;  %v16186_v43 = vpop.f32.mrb[15].mxu1  ;;  %v22144_v39 = vld [vmem:[%s26196_s5] sm:$0xff]  }
 0x3ba   :  { %v22118_v21 = vadd.f32 %v16186_v43, %v16185_v32  ;;  %26391 = vst [vmem:[#allocation36_spill] sm:$0xff] %v22144_v39  ;;  %17456 = vmatprep.subr.bf16.mxu0 %v22144_v39 }
 0x3bb   :  { %3379 = vmatmul.mubr.bf16.vlgmr.msra.gmra.mrb[120].mxu1 %v19672_v24 }
 0x3bc   :  { %3910 = vmatpush1.bf16.msra.mxu1 %v21580_v4  ;;  %15302 = vmatprep.mubr.msk.bf16.mxu1 %vm1564_vm5, %v19675_v13 }
 0x3bd   :  { %3911 = vmatprep.subr.bf16.mxu1 %v26372_v49  ;;  %v16124_v29 = vpop.f32.mrb[132].mxu0 }
 0x3be   :  { %v16125_v41 = vpop.f32.mrb[133].mxu0  ;;  %v16188_v59 = vpop.f32.mrb[16].mxu1 }
 0x3bf   :  { %v22126_v37 = vadd.f32 %v16125_v41, %v16124_v29  ;;  %v16127_v11 = vpop.f32.mrb[134].mxu0  ;;  %v16189_v38 = vpop.f32.mrb[17].mxu1  ;;  %v19680_v41 = vld [vmem:[%s26194_s3 + $0x348] ss:$16 sps:$4 sm:$0xff]  }
 0x3c0   :  { %3912 = vmatpush1.bf16.msra.mxu1 %v21598_v12  ;;  %v16128_v14 = vpop.f32.mrb[135].mxu0  ;;  %v22132_v17 = vadd.f32 %v16189_v38, %v16188_v59  ;;  %v16191_v24 = vpop.f32.mrb[18].mxu1  ;;  %v19681_v38 = vld [vmem:[%s26194_s3 + $0x36c] ss:$16 sps:$4 sm:$0xff]  }
 0x3c1   :  { %3913 = vmatprep.subr.bf16.mxu1 %v26372_v49  ;;  %v22135_v51 = vadd.f32 %v16128_v14, %v16127_v11  ;;  %v16192_v2 = vpop.f32.mrb[19].mxu1 }
 0x3c2   :  { %v22137_v13 = vadd.f32 %v16192_v2, %v16191_v24 }
 0x3c3   :  { %3387 = vmatmul.mubr.bf16.gmra.mrb[124].mxu1 %v19677_v55 }
 0x3c4   :  { %3914 = vmatpush1.bf16.msra.mxu1 %v21616_v26  ;;  %15303 = vmatprep.mubr.msk.bf16.mxu1 %vm1564_vm5, %v19678_v42 }
 0x3c5   :  { %3915 = vmatprep.subr.bf16.mxu1 %v26372_v49  ;;  %v16130_v32 = vpop.f32.mrb[136].mxu0 }
 0x3c6   :  { %v16131_v43 = vpop.f32.mrb[137].mxu0  ;;  %v16194_v29 = vpop.f32.mrb[20].mxu1 }
 0x3c7   :  { %v22151_v59 = vadd.f32 %v16131_v43, %v16130_v32  ;;  %v16133_v55 = vpop.f32.mrb[138].mxu0  ;;  %v16195_v11 = vpop.f32.mrb[21].mxu1 }
 0x3c8   :  { %3916 = vmatpush1.bf16.msra.mxu1 %v21634_v30  ;;  %v16134_v42 = vpop.f32.mrb[139].mxu0  ;;  %v22157_v14 = vadd.f32 %v16195_v11, %v16194_v29  ;;  %v16197_v24 = vpop.f32.mrb[22].mxu1  ;;  %v19683_v29 = vld [vmem:[%s26194_s3 + $0x368] ss:$16 sps:$4 sm:$0xff]  }
 0x3c9   :  { %3917 = vmatprep.subr.bf16.mxu1 %v26372_v49  ;;  %v22160_v2 = vadd.f32 %v16134_v42, %v16133_v55  ;;  %v16198_v6 = vpop.f32.mrb[23].mxu1 }
 0x3ca   :  { %v22162_v26 = vadd.f32 %v16198_v6, %v16197_v24  ;;  %v19684_v6 = vld [vmem:[%s26194_s3 + $0x38c] ss:$16 sps:$4 sm:$0xff]  }
 0x3cb   :  { %3395 = vmatmul.mubr.bf16.gmra.mrb[128].mxu1 %v19680_v41 }
 0x3cc   :  { %3918 = vmatpush1.bf16.msra.mxu1 %v21652_v58  ;;  %15304 = vmatprep.mubr.msk.bf16.mxu1 %vm1564_vm5, %v19681_v38 }
 0x3cd   :  { %3919 = vmatprep.subr.bf16.mxu1 %v26372_v49  ;;  %v16136_v32 = vpop.f32.mrb[140].mxu0 }
 0x3ce   :  { %v16137_v43 = vpop.f32.mrb[141].mxu0  ;;  %v16200_v30 = vpop.f32.mrb[24].mxu1 }
 0x3cf   :  { %v22170_v11 = vadd.f32 %v16137_v43, %v16136_v32  ;;  %v16139_v55 = vpop.f32.mrb[142].mxu0  ;;  %v16201_v42 = vpop.f32.mrb[25].mxu1 }
 0x3d0   :  { %3920 = vmatpush1.bf16.msra.mxu1 %v21666_v56  ;;  %v16140_v41 = vpop.f32.mrb[143].mxu0  ;;  %v22176_v38 = vadd.f32 %v16201_v42, %v16200_v30  ;;  %v16203_v24 = vpop.f32.mrb[26].mxu1  ;;  %v19686_v30 = vld [vmem:[%s26194_s3 + $0x388] ss:$16 sps:$4 sm:$0xff]  }
 0x3d1   :  { %3921 = vmatprep.subr.bf16.mxu1 %v26372_v49  ;;  %v22179_v58 = vadd.f32 %v16140_v41, %v16139_v55  ;;  %v16204_v12 = vpop.f32.mrb[27].mxu1 }
 0x3d2   :  { %v22181_v4 = vadd.f32 %v16204_v12, %v16203_v24  ;;  %v19687_v12 = vld [vmem:[%s26194_s3 + $0x3ac] ss:$16 sps:$4 sm:$0xff]  }
 0x3d3   :  { %3403 = vmatmul.mubr.bf16.gmra.mrb[132].mxu1 %v19683_v29 }
 0x3d4   :  { %3922 = vmatpush1.bf16.msra.mxu1 %v21678_v27  ;;  %15305 = vmatprep.mubr.msk.bf16.mxu1 %vm1564_vm5, %v19684_v6 }
 0x3d5   :  { %3923 = vmatprep.subr.bf16.mxu1 %v26372_v49  ;;  %v16142_v32 = vpop.f32.mrb[144].mxu0 }
 0x3d6   :  { %v16143_v43 = vpop.f32.mrb[145].mxu0  ;;  %v16206_v56 = vpop.f32.mrb[28].mxu1 }
 0x3d7   :  { %v22189_v42 = vadd.f32 %v16143_v43, %v16142_v32  ;;  %v16145_v55 = vpop.f32.mrb[146].mxu0  ;;  %v16207_v41 = vpop.f32.mrb[29].mxu1 }
 0x3d8   :  { %3924 = vmatpush1.bf16.msra.mxu1 %v21690_v22  ;;  %v16146_v29 = vpop.f32.mrb[147].mxu0  ;;  %v22195_v6 = vadd.f32 %v16207_v41, %v16206_v56  ;;  %v16209_v24 = vpop.f32.mrb[30].mxu1 }
 0x3d9   :  { %3925 = vmatprep.subr.bf16.mxu1 %v26372_v49  ;;  %v22198_v27 = vadd.f32 %v16146_v29, %v16145_v55  ;;  %v16210_v39 = vpop.f32.mrb[31].mxu1  ;;  %v19689_v55 = vld [vmem:[%s26194_s3 + $0x3a8] ss:$16 sps:$4 sm:$0xff]  }
 0x3da   :  { %v22200_v1 = vadd.f32 %v16210_v39, %v16209_v24 }
 0x3db   :  { %3411 = vmatmul.mubr.bf16.gmra.mrb[136].mxu1 %v19686_v30 }
 0x3dc   :  { %3926 = vmatpush1.bf16.msra.mxu1 %v21449_v52  ;;  %15306 = vmatprep.mubr.msk.bf16.mxu1 %vm1564_vm5, %v19687_v12  ;;  %v19690_v12 = vld [vmem:[%s26194_s3 + $0x3cc] ss:$16 sps:$4 sm:$0xff]  }
 0x3dd   :  { %3927 = vmatprep.subr.bf16.mxu1 %v26372_v49  ;;  %v1723_v32 = vpop.f32.mrb[148].mxu0 }
 0x3de   :  { %v22206_v43 = vadd.f32 %v22050_v34, %v1723_v32  ;;  %v1725_v56 = vpop.f32.mrb[149].mxu0  ;;  %v2153_v41 = vpop.f32.mrb[32].mxu1 }
 0x3df   :  { %v1726_v29 = vpop.f32.mrb[150].mxu0  ;;  %v22212_v39 = vadd.f32 %v22099_v36, %v2153_v41  ;;  %v2155_v30 = vpop.f32.mrb[33].mxu1 }
 0x3e0   :  { %3928 = vmatpush1.bf16.msra.mxu1 %v21451_v47  ;;  %v22219_v34 = vadd.f32 %v22059_v28, %v1726_v29  ;;  %v1728_v24 = vpop.f32.mrb[151].mxu0  ;;  %v2156_v32 = vpop.f32.mrb[34].mxu1 }
 0x3e1   :  { %3929 = vmatprep.subr.bf16.mxu1 %v26372_v49  ;;  %v22223_v56 = vadd.f32 %v22103_v33, %v2156_v32  ;;  %v2158_v52 = vpop.f32.mrb[35].mxu1 }
 0x3e2   :  { %v19692_v52 = vld [vmem:[%s26194_s3 + $0x3c8] ss:$16 sps:$4 sm:$0xff]  }
 0x3e3   :  { %3419 = vmatmul.mubr.bf16.gmra.mrb[140].mxu1 %v19689_v55 }
 0x3e4   :  { %3930 = vmatpush1.bf16.msra.mxu1 %v21453_v54  ;;  %15307 = vmatprep.mubr.msk.bf16.mxu1 %vm1564_vm5, %v19690_v12  ;;  %v19693_v12 = vld [vmem:[%s26194_s3 + $0x3ec] ss:$16 sps:$4 sm:$0xff]  }
 0x3e5   :  { %3931 = vmatprep.subr.bf16.mxu1 %v26372_v49  ;;  %v1731_v28 = vpop.f32.mrb[152].mxu0 }
 0x3e6   :  { %v22233_v29 = vadd.f32 %v22072_v7, %v1731_v28  ;;  %v1733_v33 = vpop.f32.mrb[153].mxu0  ;;  %v2161_v30 = vpop.f32.mrb[36].mxu1 }
 0x3e7   :  { %v1734_v55 = vpop.f32.mrb[154].mxu0  ;;  %v22239_v24 = vadd.f32 %v22114_v15, %v2161_v30  ;;  %v2163_v32 = vpop.f32.mrb[37].mxu1 }
 0x3e8   :  { %3932 = vmatpush1.bf16.msra.mxu1 %v21458_v9  ;;  %v22246_v7 = vadd.f32 %v22081_v8, %v1734_v55  ;;  %v1736_v28 = vpop.f32.mrb[155].mxu0  ;;  %v2164_v33 = vpop.f32.mrb[38].mxu1 }
 0x3e9   :  { %3933 = vmatprep.subr.bf16.mxu1 %v26372_v49  ;;  %v22250_v36 = vadd.f32 %v22118_v21, %v2164_v33  ;;  %v2166_v41 = vpop.f32.mrb[39].mxu1 }
 0x3ea   :  { %v19695_v41 = vld [vmem:[%s26194_s3 + $0x3e8] ss:$16 sps:$4 sm:$0xff]  }
 0x3eb   :  { %3427 = vmatmul.mubr.bf16.gmra.mrb[144].mxu1 %v19692_v52 }
 0x3ec   :  { %3934 = vmatpush1.bf16.msra.mxu1 %v21751_v61  ;;  %15308 = vmatprep.mubr.msk.bf16.mxu1 %vm1564_vm5, %v19693_v12  ;;  %v19698_v12 = vld [vmem:[%s26194_s3 + $0x40c] ss:$16 sps:$4 sm:$0xff]  }
 0x3ed   :  { %16454 = vmatprep.subr.bf16.mxu1 %v21433_v31  ;;  %v1739_v8 = vpop.f32.mrb[156].mxu0 }
 0x3ee   :  { %v22260_v55 = vadd.f32 %v22094_v0, %v1739_v8  ;;  %v1741_v21 = vpop.f32.mrb[157].mxu0  ;;  %v2169_v32 = vpop.f32.mrb[40].mxu1 }
 0x3ef   :  { %v1742_v52 = vpop.f32.mrb[158].mxu0  ;;  %v22266_v28 = vadd.f32 %v22132_v17, %v2169_v32  ;;  %v2171_v33 = vpop.f32.mrb[41].mxu1 }
 0x3f0   :  { %v22272_v15 = vadd.f32 %v22101_v40, %v1742_v52  ;;  %v1744_v0 = vpop.f32.mrb[159].mxu0  ;;  %v2172_v8 = vpop.f32.mrb[42].mxu1 }
 0x3f1   :  { %v22275_v21 = vadd.f32 %v22137_v13, %v2172_v8  ;;  %v2174_v30 = vpop.f32.mrb[43].mxu1  ;;  %v19696_v13 = vld [vmem:[%s26194_s3 + $0x408] ss:$16 sps:$4 sm:$0xff]   ;;  %v19699_v8 = vld [vmem:[%s26194_s3 + $0x42c] ss:$16 sps:$4 sm:$0xff]  }
 0x3f3   :  { %3435 = vmatmul.mubr.bf16.gmra.mrb[148].mxu1 %v19695_v41 }
 0x3f4   :  { %15351 = vmatprep.mubr.msk.bf16.mxu1 %vm1564_vm5, %v19698_v12 }
 0x3f5   :  { %v1747_v32 = vpop.f32.mrb[160].mxu0 }
 0x3f6   :  { %v22283_v33 = vadd.f32 %v22109_v57, %v1747_v32  ;;  %v1749_v40 = vpop.f32.mrb[161].mxu0  ;;  %v2177_v52 = vpop.f32.mrb[44].mxu1 }
 0x3f7   :  { %v1750_v30 = vpop.f32.mrb[162].mxu0  ;;  %v22289_v0 = vadd.f32 %v22157_v14, %v2177_v52  ;;  %v2179_v41 = vpop.f32.mrb[45].mxu1 }
 0x3f8   :  { %v22295_v12 = vadd.f32 %v22116_v23, %v1750_v30  ;;  %v1752_v57 = vpop.f32.mrb[163].mxu0  ;;  %v2180_v32 = vpop.f32.mrb[46].mxu1 }
 0x3f9   :  { %v22298_v40 = vadd.f32 %v22162_v26, %v2180_v32  ;;  %v2182_v61 = vpop.f32.mrb[47].mxu1 }
 0x3fa   :  { %v19701_v61 = vld [vmem:[%s26194_s3 + $0x428] ss:$16 sps:$4 sm:$0xff]  }
 0x3fb   :  { %3942 = vmatmul.mubr.bf16.vlgmr.msra.gmra.mrb[152].mxu1 %v19696_v13 }
 0x3fc   :  { %16455 = vmatpush3.bf16.msra.mxu1 %v21431_v46  ;;  %15352 = vmatprep.mubr.msk.bf16.mxu1 %vm1564_vm5, %v19699_v8  ;;  %v19702_v8 = vld [vmem:[%s26194_s3 + $0x44c] ss:$16 sps:$4 sm:$0xff]  }
 0x3fd   :  { %16456 = vmatprep.subr.bf16.mxu1 %v21444_v62  ;;  %v1755_v23 = vpop.f32.mrb[164].mxu0 }
 0x3fe   :  { %v22308_v52 = vadd.f32 %v22126_v37, %v1755_v23  ;;  %v1757_v26 = vpop.f32.mrb[165].mxu0  ;;  %v2185_v30 = vpop.f32.mrb[48].mxu1 }
 0x3ff   :  { %v1758_v13 = vpop.f32.mrb[166].mxu0  ;;  %v22314_v41 = vadd.f32 %v22176_v38, %v2185_v30  ;;  %v2187_v57 = vpop.f32.mrb[49].mxu1 }
 0x400   :  { %16457 = vmatpush3.bf16.msra.mxu1 %v21463_v3  ;;  %v22321_v37 = vadd.f32 %v22135_v51, %v1758_v13  ;;  %v1760_v32 = vpop.f32.mrb[167].mxu0  ;;  %v2188_v23 = vpop.f32.mrb[50].mxu1 }
 0x401   :  { %16458 = vmatprep.subr.bf16.mxu1 %v21467_v19  ;;  %v22325_v26 = vadd.f32 %v22181_v4, %v2188_v23  ;;  %v2190_v17 = vpop.f32.mrb[51].mxu1 }
 0x402   :  { %v19704_v17 = vld [vmem:[%s26194_s3 + $0x448] ss:$16 sps:$4 sm:$0xff]  }
 0x403   :  { %3950 = vmatmul.mubr.bf16.gmra.mrb[156].mxu1 %v19701_v61 }
 0x404   :  { %16459 = vmatpush3.bf16.msra.mxu1 %v21483_v35  ;;  %15353 = vmatprep.mubr.msk.bf16.mxu1 %vm1564_vm5, %v19702_v8  ;;  %v19705_v8 = vld [vmem:[%s26194_s3 + $0x46c] ss:$16 sps:$4 sm:$0xff]  }
 0x405   :  { %16460 = vmatprep.subr.bf16.mxu1 %v21487_v18  ;;  %v1763_v51 = vpop.f32.mrb[168].mxu0 }
 0x406   :  { %v22335_v13 = vadd.f32 %v22151_v59, %v1763_v51  ;;  %v1765_v4 = vpop.f32.mrb[169].mxu0  ;;  %v2193_v57 = vpop.f32.mrb[52].mxu1 }
 0x407   :  { %v1766_v61 = vpop.f32.mrb[170].mxu0  ;;  %v22341_v32 = vadd.f32 %v22195_v6, %v2193_v57  ;;  %v2195_v23 = vpop.f32.mrb[53].mxu1 }
 0x408   :  { %16461 = vmatpush3.bf16.msra.mxu1 %v21503_v45  ;;  %v22348_v59 = vadd.f32 %v22160_v2, %v1766_v61  ;;  %v1768_v51 = vpop.f32.mrb[171].mxu0  ;;  %v2196_v4 = vpop.f32.mrb[54].mxu1 }
 0x409   :  { %16462 = vmatprep.subr.bf16.mxu1 %v21507_v53  ;;  %v22352_v38 = vadd.f32 %v22200_v1, %v2196_v4  ;;  %v2198_v30 = vpop.f32.mrb[55].mxu1 }
 0x40a   :  { %v19707_v30 = vld [vmem:[%s26194_s3 + $0x468] ss:$16 sps:$4 sm:$0xff]  }
 0x40b   :  { %3958 = vmatmul.mubr.bf16.gmra.mrb[160].mxu1 %v19704_v17 }
 0x40c   :  { %16463 = vmatpush3.bf16.msra.mxu1 %v21519_v63  ;;  %15354 = vmatprep.mubr.msk.bf16.mxu1 %vm1564_vm5, %v19705_v8  ;;  %v19708_v8 = vld [vmem:[%s26194_s3 + $0x48c] ss:$16 sps:$4 sm:$0xff]  }
 0x40d   :  { %16464 = vmatprep.subr.bf16.mxu1 %v21523_v20  ;;  %v1771_v2 = vpop.f32.mrb[172].mxu0 }
 0x40e   :  { %v22362_v61 = vadd.f32 %v22170_v11, %v1771_v2  ;;  %v1773_v1 = vpop.f32.mrb[173].mxu0  ;;  %v16248_v23 = vpop.f32.mrb[56].mxu1 }
 0x40f   :  { %v1774_v17 = vpop.f32.mrb[174].mxu0  ;;  %v16249_v51 = vpop.f32.mrb[57].mxu1 }
 0x410   :  { %26392 = vst [vmem:[#allocation37_spill] sm:$0xff] %v22362_v61  ;;  %16465 = vmatpush3.bf16.msra.mxu1 %v21534_v16  ;;  %v22372_v4 = vadd.f32 %v22179_v58, %v1774_v17  ;;  %v1776_v6 = vpop.f32.mrb[175].mxu0  ;;  %v22374_v11 = vadd.f32 %v16249_v51, %v16248_v23  ;;  %v16251_v2 = vpop.f32.mrb[58].mxu1  ;;  %v19710_v51 = vld [vmem:[%s26194_s3 + $0x488] ss:$16 sps:$4 sm:$0xff]  }
 0x411   :  { %16466 = vmatprep.subr.bf16.mxu1 %v21537_v60  ;;  %v16252_v1 = vpop.f32.mrb[59].mxu1 }
 0x412   :  { %26393 = vst [vmem:[#allocation38_spill] sm:$0xff] %v22372_v4  ;;  %v22379_v14 = vadd.f32 %v16252_v1, %v16251_v2  ;;  %v19711_v1 = vld [vmem:[%s26194_s3 + $0x4ac] ss:$16 sps:$4 sm:$0xff]  }
 0x413   :  { %3966 = vmatmul.mubr.bf16.gmra.mrb[164].mxu1 %v19707_v30 }
 0x414   :  { %16467 = vmatpush3.bf16.msra.mxu1 %v21548_v5  ;;  %15355 = vmatprep.mubr.msk.bf16.mxu1 %vm1564_vm5, %v19708_v8 }
 0x415   :  { %16468 = vmatprep.subr.bf16.mxu1 %v21551_v44  ;;  %v1779_v58 = vpop.f32.mrb[176].mxu0 }
 0x416   :  { %v22385_v6 = vadd.f32 %v22189_v42, %v1779_v58  ;;  %v1781_v23 = vpop.f32.mrb[177].mxu0  ;;  %v16254_v17 = vpop.f32.mrb[60].mxu1 }
 0x417   :  { %v1782_v57 = vpop.f32.mrb[178].mxu0  ;;  %v16255_v2 = vpop.f32.mrb[61].mxu1 }
 0x418   :  { %26394 = vst [vmem:[#allocation39_spill] sm:$0xff] %v22385_v6  ;;  %16469 = vmatpush3.bf16.msra.mxu1 %v21562_v50  ;;  %v22392_v30 = vadd.f32 %v22198_v27, %v1782_v57  ;;  %v1784_v8 = vpop.f32.mrb[179].mxu0  ;;  %v22397_v42 = vadd.f32 %v16255_v2, %v16254_v17  ;;  %v16257_v58 = vpop.f32.mrb[62].mxu1  ;;  %v19713_v17 = vld [vmem:[%s26194_s3 + $0x4a8] ss:$16 sps:$4 sm:$0xff]  }
 0x419   :  { %16528 = vmatprep.subr.bf16.mxu1 %v21433_v31  ;;  %v16258_v23 = vpop.f32.mrb[63].mxu1  ;;  %v26395_v6 = vld [vmem:[#allocation35_spill] sm:$0xff] }
 0x41a   :  { %v22402_v54 = vadd.f32 %v16258_v23, %v16257_v58 }
 0x41b   :  { %3974 = vmatmul.mubr.bf16.gmra.mrb[168].mxu1 %v19710_v51  ;;  %v19716_v51 = vld [vmem:[%s26194_s3 + $0x4cc] ss:$16 sps:$4 sm:$0xff]  }
 0x41c   :  { %15356 = vmatprep.mubr.msk.bf16.mxu1 %vm1564_vm5, %v19711_v1 }
 0x41d   :  { %v2137_v27 = vpop.f32.mrb[180].mxu0 }
 0x41e   :  { %v2138_v57 = vadd.f32 %v22056_v25, %v2137_v27  ;;  %v2139_v8 = vpop.f32.mrb[181].mxu0  ;;  %v16260_v47 = vpop.f32.mrb[64].mxu1 }
 0x41f   :  { %v2140_v2 = vpop.f32.mrb[182].mxu0  ;;  %v16261_v22 = vpop.f32.mrb[65].mxu1 }
 0x420   :  { %v2141_v61 = vadd.f32 %v22061_v48, %v2140_v2  ;;  %v2142_v4 = vpop.f32.mrb[183].mxu0  ;;  %v22413_v58 = vadd.f32 %v16261_v22, %v16260_v47  ;;  %v16263_v1 = vpop.f32.mrb[66].mxu1  ;;  %v19718_v47 = vld [vmem:[%s26194_s3 + $0x4c8] ss:$16 sps:$4 sm:$0xff]  }
 0x421   :  { %v16264_v23 = vpop.f32.mrb[67].mxu1 }
 0x422   :  { %v2204_v25 = vpack.c.bf16 %v2141_v61, %v2138_v57  ;;  %v22415_v27 = vadd.f32 %v16264_v23, %v16263_v1  ;;  %v19719_v57 = vld [vmem:[%s26194_s3 + $0x4ec] ss:$16 sps:$4 sm:$0xff]  }
 0x423   :  { %3982 = vmatmul.mubr.bf16.gmra.mrb[172].mxu1 %v19713_v17 }
 0x424   :  { %15357 = vmatprep.mubr.msk.bf16.mxu1 %vm1564_vm5, %v19716_v51  ;;  %17440 = vmatprep.mubr.msk.bf16.mxu0 %vm813_vm3, %v2204_v25  ;;  %v19729_v25 = vld [vmem:[%s26196_s5 + $0x8] sm:$0xff]  }
 0x425   :  { %v2145_v8 = vpop.f32.mrb[184].mxu0 }
 0x426   :  { %v2146_v48 = vadd.f32 %v22078_v10, %v2145_v8  ;;  %v2147_v4 = vpop.f32.mrb[185].mxu0  ;;  %v16266_v2 = vpop.f32.mrb[68].mxu1 }
 0x427   :  { %v2148_v9 = vpop.f32.mrb[186].mxu0  ;;  %v16267_v22 = vpop.f32.mrb[69].mxu1 }
 0x428   :  { %v2149_v61 = vadd.f32 %v26395_v6, %v2148_v9  ;;  %v22427_v17 = vadd.f32 %v16267_v22, %v16266_v2  ;;  %v16269_v51 = vpop.f32.mrb[70].mxu1  ;;  %v2150_v1 = vpop.f32.mrb[187].mxu0  ;;  %v26396_v9 = vpack.c.bf16 %v22223_v56, %v22212_v39  ;;  %v26397_v6 = vld [vmem:[#allocation36_spill] sm:$0xff]  ;;  %v19724_v22 = vld [vmem:[%s26194_s3 + $0x504] ss:$16 sps:$4 sm:$0xff]  }
 0x429   :  { %v16270_v23 = vpop.f32.mrb[71].mxu1  ;;  %v19721_v2 = vld [vmem:[%s26194_s3 + $0x4e8] ss:$16 sps:$4 sm:$0xff]   ;;  %v26399_v1 = vpack.c.bf16 %v22275_v21, %v22266_v28  ;;  %v26400_v28 = vpack.c.bf16 %v22298_v40, %v22289_v0  ;;  %v26401_v21 = vpack.c.bf16 %v22325_v26, %v22314_v41  ;;  %v19730_v40 = vld [vmem:[%s26194_s3 + $0x544] ss:$16 sps:$4 sm:$0xff]  }
 0x42a   :  { %v2205_v10 = vpack.c.bf16 %v2149_v61, %v2146_v48  ;;  %v22432_v8 = vadd.f32 %v16270_v23, %v16269_v51  ;;  %v19733_v48 = vld [vmem:[%s26196_s5 + $0x20] sm:$0xff]   ;;  %v26398_v51 = vpack.c.bf16 %v22250_v36, %v22239_v24 }
 0x42b   :  { %3990 = vmatmul.mubr.bf16.gmra.mrb[176].mxu1 %v19718_v47  ;;  %v19725_v36 = vld [vmem:[%s26194_s3 + $0x524] ss:$16 sps:$4 sm:$0xff]  }
 0x42c   :  { %17441 = vmatmul.mubr.msk.bf16.vlgmr.msra.gmra.mrb[188].mxu0 %vm813_vm3, %v2205_v10  ;;  %15358 = vmatprep.mubr.msk.bf16.mxu1 %vm1564_vm5, %v19719_v57  ;;  %v19722_v10 = vld [vmem:[%s26194_s3 + $0x500] ss:$16 sps:$4 sm:$0xff]  }
 0x42d   :  { %17444 = vmatprep.mubr.msk.bf16.mxu0 %vm813_vm3, %v26396_v9  ;;  %17457 = vmatpush3.bf16.msra.mxu0 %v26397_v6 }
 0x42e   :  { %17458 = vmatprep.subr.bf16.mxu0 %v19729_v25  ;;  %v16272_v4 = vpop.f32.mrb[72].mxu1 }
 0x42f   :  { %v16273_v47 = vpop.f32.mrb[73].mxu1 }
 0x430   :  { %v22450_v39 = vadd.f32 %v16273_v47, %v16272_v4  ;;  %v16275_v56 = vpop.f32.mrb[74].mxu1  ;;  %v19727_v47 = vld [vmem:[%s26194_s3 + $0x520] ss:$16 sps:$4 sm:$0xff]  }
 0x431   :  { %17459 = vmatpush3.bf16.msra.mxu0 %v19729_v25  ;;  %v16276_v61 = vpop.f32.mrb[75].mxu1 }
 0x432   :  { %17476 = vmatprep.subr.bf16.mxu0 %v19733_v48  ;;  %v22452_v57 = vadd.f32 %v16276_v61, %v16275_v56  ;;  %v26402_v61 = vpack.c.bf16 %v22352_v38, %v22341_v32 }
 0x433   :  { %3998 = vmatmul.mubr.bf16.gmra.mrb[180].mxu1 %v19721_v2 }
 0x434   :  { %17445 = vmatmul.mubr.msk.bf16.gmra.mrb[192].mxu0 %vm813_vm3, %v26398_v51  ;;  %4407 = vmatprep.mubr.bf16.mxu1 %v19724_v22  ;;  %v26403_v51 = vpack.c.bf16 %v22219_v34, %v22206_v43  ;;  %v19734_v43 = vld [vmem:[%s26196_s5 + $0x28] sm:$0xff]   ;;  %v19735_v34 = vld [vmem:[%s26194_s3 + $0x564] ss:$16 sps:$4 sm:$0xff]  }
 0x435   :  { %17448 = vmatprep.mubr.msk.bf16.mxu0 %vm813_vm3, %v26399_v1 }
 0x436   :  { %v16278_v23 = vpop.f32.mrb[76].mxu1 }
 0x437   :  { %v16279_v25 = vpop.f32.mrb[77].mxu1 }
 0x438   :  { %v22465_v9 = vadd.f32 %v16279_v25, %v16278_v23  ;;  %v16281_v6 = vpop.f32.mrb[78].mxu1  ;;  %v19732_v23 = vld [vmem:[%s26194_s3 + $0x540] ss:$16 sps:$4 sm:$0xff]  }
 0x439   :  { %v16282_v24 = vpop.f32.mrb[79].mxu1 }
 0x43a   :  { %v22470_v4 = vadd.f32 %v16282_v24, %v16281_v6 }
 0x43b   :  { %4408 = vmatmul.mubr.bf16.vlgmr.msra.gmra.mrb[184].mxu1 %v19722_v10 }
 0x43c   :  { %16529 = vmatpush3.bf16.msra.mxu1 %v21431_v46  ;;  %17449 = vmatmul.mubr.msk.bf16.gmra.mrb[196].mxu0 %vm813_vm3, %v26400_v28  ;;  %v19737_v28 = vld [vmem:[%s26194_s3 + $0x560] ss:$16 sps:$4 sm:$0xff]  }
 0x43d   :  { %16530 = vmatprep.subr.bf16.mxu1 %v21444_v62  ;;  %4415 = vmatprep.mubr.bf16.mxu1 %v19725_v36  ;;  %v26404_v36 = vpack.c.bf16 %v22246_v7, %v22233_v29 }
 0x43e   :  { %17452 = vmatprep.mubr.msk.bf16.mxu0 %vm813_vm3, %v26401_v21  ;;  %v16284_v2 = vpop.f32.mrb[80].mxu1  ;;  %v26405_v21 = vpack.c.bf16 %v22272_v15, %v22260_v55  ;;  %v26406_v55 = vpack.c.bf16 %v22295_v12, %v22283_v33  ;;  %v19741_v33 = vld [vmem:[%s26194_s3 + $0x5a4] ss:$16 sps:$4 sm:$0xff]  }
 0x43f   :  { %v16285_v22 = vpop.f32.mrb[81].mxu1 }
 0x440   :  { %16531 = vmatpush3.bf16.msra.mxu1 %v21463_v3  ;;  %v22486_v56 = vadd.f32 %v16285_v22, %v16284_v2  ;;  %v16287_v0 = vpop.f32.mrb[82].mxu1 }
 0x441   :  { %16532 = vmatprep.subr.bf16.mxu1 %v21467_v19  ;;  %v16288_v41 = vpop.f32.mrb[83].mxu1 }
 0x442   :  { %v22492_v26 = vadd.f32 %v16288_v41, %v16287_v0  ;;  %v19740_v0 = vld [vmem:[%s26194_s3 + $0x580] ss:$16 sps:$4 sm:$0xff]  }
 0x443   :  { %4416 = vmatmul.mubr.bf16.gmra.mrb[188].mxu1 %v19727_v47 }
 0x444   :  { %16533 = vmatpush3.bf16.msra.mxu1 %v21483_v35  ;;  %17453 = vmatmul.mubr.msk.bf16.gmra.mrb[200].mxu0 %vm813_vm3, %v26402_v61 }
 0x445   :  { %16534 = vmatprep.subr.bf16.mxu1 %v21487_v18  ;;  %4423 = vmatprep.mubr.bf16.mxu1 %v19730_v40 }
 0x446   :  { %17460 = vmatprep.mubr.msk.bf16.mxu0 %vm813_vm3, %v26403_v51  ;;  %v16290_v1 = vpop.f32.mrb[84].mxu1  ;;  %v26408_v51 = vpack.c.bf16 %v22348_v59, %v22335_v13  ;;  %v19744_v13 = vld [vmem:[%s26194_s3 + $0x5c4] ss:$16 sps:$4 sm:$0xff]  }
 0x447   :  { %v16291_v10 = vpop.f32.mrb[85].mxu1 }
 0x448   :  { %16535 = vmatpush3.bf16.msra.mxu1 %v21503_v45  ;;  %v22508_v25 = vadd.f32 %v16291_v10, %v16290_v1  ;;  %v16293_v38 = vpop.f32.mrb[86].mxu1  ;;  %v26410_v1 = vld [vmem:[#allocation37_spill] sm:$0xff] }
 0x449   :  { %16536 = vmatprep.subr.bf16.mxu1 %v21507_v53  ;;  %v16294_v32 = vpop.f32.mrb[87].mxu1 }
 0x44a   :  { %v22517_v6 = vadd.f32 %v16294_v32, %v16293_v38 }
 0x44b   :  { %4424 = vmatmul.mubr.bf16.gmra.mrb[192].mxu1 %v19732_v23 }
 0x44c   :  { %16537 = vmatpush3.bf16.msra.mxu1 %v21519_v63  ;;  %17461 = vmatmul.mubr.msk.bf16.vlgmr.msra.gmra.mrb[188].mxu0 %vm813_vm3, %v26404_v36 }
 0x44d   :  { %16538 = vmatprep.subr.bf16.mxu1 %v21523_v20  ;;  %17477 = vmatpush3.bf16.msra.mxu0 %v19733_v48  ;;  %v19738_v48 = vld [vmem:[%s26194_s3 + $0x584] ss:$16 sps:$4 sm:$0xff]  }
 0x44e   :  { %17478 = vmatprep.subr.bf16.mxu0 %v19734_v43  ;;  %4431 = vmatprep.mubr.bf16.mxu1 %v19735_v34  ;;  %v2817_v24 = vpop.f32.mrb[88].mxu1 }
 0x44f   :  { %17464 = vmatprep.mubr.msk.bf16.mxu0 %vm813_vm3, %v26405_v21  ;;  %v2818_v2 = vadd.f32 %v22374_v11, %v2817_v24  ;;  %v2819_v29 = vpop.f32.mrb[89].mxu1  ;;  %v26407_v11 = vpack.c.bf16 %v22321_v37, %v22308_v52  ;;  %v26412_v24 = vld [vmem:[#allocation39_spill] sm:$0xff] }
 0x450   :  { %16539 = vmatpush3.bf16.msra.mxu1 %v21534_v16  ;;  %v2820_v7 = vpop.f32.mrb[90].mxu1  ;;  %v19746_v21 = vld [vmem:[%s26194_s3 + $0x5c0] ss:$16 sps:$4 sm:$0xff]  }
 0x451   :  { %16540 = vmatprep.subr.bf16.mxu1 %v21537_v60  ;;  %17479 = vmatpush3.bf16.msra.mxu0 %v19734_v43  ;;  %v2821_v47 = vadd.f32 %v22379_v14, %v2820_v7  ;;  %v2822_v22 = vpop.f32.mrb[91].mxu1 }
 0x452   :  { %16306 = vmatprep.subr.bf16.mxu0 %v21433_v31  ;;  %v19749_v22 = vld [vmem:[%s26194_s3 + $0x5e0] ss:$16 sps:$4 sm:$0xff]  }
 0x453   :  { %4432 = vmatmul.mubr.bf16.gmra.mrb[196].mxu1 %v19737_v28  ;;  %v2884_v15 = vpack.c.bf16 %v2821_v47, %v2818_v2  ;;  %v26413_v28 = vpack.c.bf16 %v22392_v30, %v26412_v24  ;;  %v19758_v24 = vld [vmem:[%s26194_s3 + $0x640] ss:$16 sps:$4 sm:$0xff]  }
 0x454   :  { %16541 = vmatpush3.bf16.msra.mxu1 %v21548_v5  ;;  %17465 = vmatmul.mubr.msk.bf16.gmra.mrb[192].mxu0 %vm813_vm3, %v26406_v55  ;;  %v19752_v55 = vld [vmem:[%s26194_s3 + $0x604] ss:$16 sps:$4 sm:$0xff]  }
 0x455   :  { %16542 = vmatprep.subr.bf16.mxu1 %v21551_v44  ;;  %4439 = vmatprep.mubr.bf16.mxu1 %v19738_v48 }
 0x456   :  { %17468 = vmatprep.mubr.msk.bf16.mxu0 %vm813_vm3, %v26407_v11  ;;  %v2825_v14 = vpop.f32.mrb[92].mxu1 }
 0x457   :  { %v2826_v40 = vadd.f32 %v22397_v42, %v2825_v14  ;;  %v2827_v41 = vpop.f32.mrb[93].mxu1  ;;  %v26409_v42 = vld [vmem:[#allocation38_spill] sm:$0xff] }
 0x458   :  { %16543 = vmatpush3.bf16.msra.mxu1 %v21562_v50  ;;  %v2828_v12 = vpop.f32.mrb[94].mxu1  ;;  %v26411_v23 = vpack.c.bf16 %v26409_v42, %v26410_v1  ;;  %v19750_v41 = vld [vmem:[%s26194_s3 + $0x600] ss:$16 sps:$4 sm:$0xff]  }
 0x459   :  { %v2829_v61 = vadd.f32 %v22402_v54, %v2828_v12  ;;  %v2830_v52 = vpop.f32.mrb[95].mxu1  ;;  %5035 = vmatprep.subr.bf16.mxu1 %v26372_v49  ;;  %v19743_v54 = vld [vmem:[%s26194_s3 + $0x5a0] ss:$16 sps:$4 sm:$0xff]  }
 0x45a   :  { %v26414_v42 = vld [vmem:[#allocation18_spill] sm:$0xff] }
 0x45b   :  { %4440 = vmatmul.mubr.bf16.gmra.mrb[200].mxu1 %v19740_v0  ;;  %v2885_v37 = vpack.c.bf16 %v2829_v61, %v2826_v40  ;;  %v19753_v61 = vld [vmem:[%s26194_s3 + $0x624] ss:$16 sps:$4 sm:$0xff]  }
 0x45c   :  { %17469 = vmatmul.mubr.msk.bf16.gmra.mrb[196].mxu0 %vm813_vm3, %v26408_v51  ;;  %4447 = vmatprep.mubr.bf16.mxu1 %v19741_v33 }
 0x45d   :  { %17472 = vmatprep.mubr.msk.bf16.mxu0 %vm813_vm3, %v26411_v23  ;;  %v19755_v23 = vld [vmem:[%s26194_s3 + $0x620] ss:$16 sps:$4 sm:$0xff]  }
 0x45e   :  { %v2833_v10 = vpop.f32.mrb[96].mxu1 }
 0x45f   :  { %v2834_v38 = vadd.f32 %v22413_v58, %v2833_v10  ;;  %v2835_v32 = vpop.f32.mrb[97].mxu1  ;;  %v26415_v10 = vld [vmem:[#allocation19_spill] sm:$0xff] }
 0x460   :  { %v2836_v59 = vpop.f32.mrb[98].mxu1 }
 0x461   :  { %v2837_v43 = vadd.f32 %v22415_v27, %v2836_v59  ;;  %v2838_v34 = vpop.f32.mrb[99].mxu1  ;;  %v19747_v27 = vld [vmem:[%s26194_s3 + $0x5e4] ss:$16 sps:$4 sm:$0xff]   ;;  %v26416_v59 = vld [vmem:[#allocation20_spill] sm:$0xff] }
 0x463   :  { %4448 = vmatmul.mubr.bf16.gmra.mrb[204].mxu1 %v19743_v54  ;;  %v2886_v36 = vpack.c.bf16 %v2837_v43, %v2834_v38  ;;  %v19756_v38 = vld [vmem:[%s26194_s3 + $0x644] ss:$16 sps:$4 sm:$0xff]  }
 0x464   :  { %17473 = vmatmul.mubr.msk.bf16.gmra.mrb[200].mxu0 %vm813_vm3, %v26413_v28  ;;  %4455 = vmatprep.mubr.bf16.mxu1 %v19744_v13  ;;  %v26417_v28 = vld [vmem:[#allocation21_spill] sm:$0xff] }
 0x465   :  { %17480 = vmatprep.mubr.msk.bf16.mxu0 %vm813_vm3, %v2884_v15 }
 0x466   :  { %v2841_v58 = vpop.f32.mrb[100].mxu1 }
 0x467   :  { %v2842_v2 = vadd.f32 %v22427_v17, %v2841_v58  ;;  %v2843_v29 = vpop.f32.mrb[101].mxu1 }
 0x468   :  { %v2844_v7 = vpop.f32.mrb[102].mxu1 }
 0x469   :  { %v2845_v30 = vadd.f32 %v22432_v8, %v2844_v7  ;;  %v2846_v48 = vpop.f32.mrb[103].mxu1  ;;  %v26418_v7 = vld [vmem:[#allocation22_spill] sm:$0xff] }
 0x46a   :  { %v19767_v48 = vld [vmem:[%s26194_s3 + $0x684] ss:$16 sps:$4 sm:$0xff]  }
 0x46b   :  { %4456 = vmatmul.mubr.bf16.gmra.mrb[208].mxu1 %v19746_v21  ;;  %v2887_v47 = vpack.c.bf16 %v2845_v30, %v2842_v2  ;;  %v19759_v21 = vld [vmem:[%s26194_s3 + $0x664] ss:$16 sps:$4 sm:$0xff]  }
 0x46c   :  { %17481 = vmatmul.mubr.msk.bf16.vlgmr.msra.gmra.mrb[188].mxu0 %vm813_vm3, %v2885_v37  ;;  %4463 = vmatprep.mubr.bf16.mxu1 %v19747_v27  ;;  %v26419_v30 = vld [vmem:[#allocation23_spill] sm:$0xff] }
 0x46d   :  { %16307 = vmatpush3.bf16.msra.mxu0 %v21431_v46  ;;  %17484 = vmatprep.mubr.msk.bf16.mxu0 %vm813_vm3, %v2886_v36 }
 0x46e   :  { %16308 = vmatprep.subr.bf16.mxu0 %v21444_v62  ;;  %v2849_v17 = vpop.f32.mrb[104].mxu1 }
 0x46f   :  { %v2850_v15 = vadd.f32 %v22450_v39, %v2849_v17  ;;  %v2851_v8 = vpop.f32.mrb[105].mxu1  ;;  %v19770_v17 = vld [vmem:[%s26194_s3 + $0x324] ss:$16 sps:$4 sm:$0xff]  }
 0x470   :  { %v2852_v11 = vpop.f32.mrb[106].mxu1  ;;  %v19769_v8 = vld [vmem:[%s26194_s3 + $0x680] ss:$16 sps:$4 sm:$0xff]  }
 0x471   :  { %16309 = vmatpush3.bf16.msra.mxu0 %v21463_v3  ;;  %v2853_v14 = vadd.f32 %v22452_v57, %v2852_v11  ;;  %v2854_v0 = vpop.f32.mrb[107].mxu1  ;;  %v19773_v11 = vld [vmem:[%s26194_s3 + $0x6a4] ss:$16 sps:$4 sm:$0xff]  }
 0x472   :  { %16310 = vmatprep.subr.bf16.mxu0 %v21467_v19  ;;  %v19776_v0 = vld [vmem:[%s26194_s3 + $0x344] ss:$16 sps:$4 sm:$0xff]  }
 0x473   :  { %4464 = vmatmul.mubr.bf16.gmra.mrb[212].mxu1 %v19749_v22  ;;  %v2888_v40 = vpack.c.bf16 %v2853_v14, %v2850_v15  ;;  %v19766_v22 = vld [vmem:[%s26196_s5 + $0x38] sm:$0xff]   ;;  %v19772_v14 = vld [vmem:[%s26194_s3 + $0x320] ss:$16 sps:$4 sm:$0xff]  }
 0x474   :  { %4970 = vmatprep.mubr.bf16.mxu1 %v19752_v55  ;;  %17485 = vmatmul.mubr.msk.bf16.gmra.mrb[192].mxu0 %vm813_vm3, %v2887_v47  ;;  %v19762_v47 = vld [vmem:[%s26194_s3 + $0x300] ss:$16 sps:$4 sm:$0xff]  }
 0x475   :  { %16311 = vmatpush3.bf16.msra.mxu0 %v21483_v35  ;;  %17488 = vmatprep.mubr.msk.bf16.mxu0 %vm813_vm3, %v2888_v40  ;;  %v26420_v15 = vld [vmem:[#allocation24_spill] sm:$0xff]  ;;  %v26421_v55 = vld [vmem:[#allocation5_spill] sm:$0xff]  ;;  %v26422_v40 = vld [vmem:[#allocation7_spill] sm:$0xff] }
 0x476   :  { %16312 = vmatprep.subr.bf16.mxu0 %v21487_v18  ;;  %v2857_v39 = vpop.f32.mrb[108].mxu1 }
 0x477   :  { %v2858_v57 = vadd.f32 %v22465_v9, %v2857_v39  ;;  %v2859_v33 = vpop.f32.mrb[109].mxu1  ;;  %v19775_v39 = vld [vmem:[%s26194_s3 + $0x6a0] ss:$16 sps:$4 sm:$0xff]  }
 0x478   :  { %v2860_v12 = vpop.f32.mrb[110].mxu1  ;;  %v19778_v33 = vld [vmem:[%s26194_s3 + $0x340] ss:$16 sps:$4 sm:$0xff]  }
 0x479   :  { %16313 = vmatpush3.bf16.msra.mxu0 %v21503_v45  ;;  %v2861_v52 = vadd.f32 %v22470_v4, %v2860_v12  ;;  %v2862_v37 = vpop.f32.mrb[111].mxu1  ;;  %v19782_v12 = vld [vmem:[%s26194_s3 + $0x364] ss:$16 sps:$4 sm:$0xff]  }
 0x47a   :  { %16314 = vmatprep.subr.bf16.mxu0 %v21507_v53  ;;  %v26425_v37 = vld [vmem:[#allocation14_spill] sm:$0xff] }
 0x47b   :  { %4971 = vmatmul.mubr.bf16.vlgmr.msra.gmra.mrb[216].mxu1 %v19750_v41  ;;  %v2889_v51 = vpack.c.bf16 %v2861_v52, %v2858_v57  ;;  %v26423_v41 = vld [vmem:[#allocation8_spill] sm:$0xff]  ;;  %v19779_v57 = vld [vmem:[%s26194_s3 + $0x6c4] ss:$16 sps:$4 sm:$0xff]  }
 0x47c   :  { %5036 = vmatpush1.bf16.msra.mxu1 %v26414_v42  ;;  %4978 = vmatprep.mubr.bf16.mxu1 %v19753_v61  ;;  %v26424_v61 = vld [vmem:[#allocation9_spill] sm:$0xff] }
 0x47d   :  { %16315 = vmatpush3.bf16.msra.mxu0 %v21519_v63  ;;  %5037 = vmatprep.subr.bf16.mxu1 %v26372_v49  ;;  %v19781_v52 = vld [vmem:[%s26194_s3 + $0x6c0] ss:$16 sps:$4 sm:$0xff]  }
 0x47e   :  { %16316 = vmatprep.subr.bf16.mxu0 %v21523_v20  ;;  %v2865_v9 = vpop.f32.mrb[112].mxu1  ;;  %17489 = vmatmul.mubr.msk.bf16.gmra.mrb[196].mxu0 %vm813_vm3, %v2889_v51  ;;  %v19785_v51 = vld [vmem:[%s26194_s3 + $0x6e4] ss:$16 sps:$4 sm:$0xff]  }
 0x47f   :  { %v2866_v1 = vadd.f32 %v22486_v56, %v2865_v9  ;;  %v2867_v4 = vpop.f32.mrb[113].mxu1  ;;  %v19784_v9 = vld [vmem:[%s26194_s3 + $0x360] ss:$16 sps:$4 sm:$0xff]  }
 0x480   :  { %5038 = vmatpush1.bf16.msra.mxu1 %v26415_v10  ;;  %v2868_v54 = vpop.f32.mrb[114].mxu1  ;;  %v26426_v4 = vld [vmem:[#allocation6_spill] sm:$0xff] }
 0x481   :  { %16317 = vmatpush3.bf16.msra.mxu0 %v21534_v16  ;;  %5039 = vmatprep.subr.bf16.mxu1 %v26372_v49  ;;  %v2869_v32 = vadd.f32 %v22492_v26, %v2868_v54  ;;  %v2870_v13 = vpop.f32.mrb[115].mxu1  ;;  %v19765_v26 = vld [vmem:[%s26196_s5 + $0x30] sm:$0xff]   ;;  %v19793_v54 = vld [vmem:[%s26194_s3 + $0x60c] ss:$16 sps:$4 sm:$0xff]  }
 0x482   :  { %16318 = vmatprep.subr.bf16.mxu0 %v21537_v60  ;;  %v19791_v13 = vld [vmem:[%s26194_s3 + $0x608] ss:$16 sps:$4 sm:$0xff]  }
 0x483   :  { %4979 = vmatmul.mubr.bf16.gmra.mrb[220].mxu1 %v19755_v23  ;;  %v2890_v56 = vpack.c.bf16 %v2869_v32, %v2866_v1  ;;  %v19788_v1 = vld [vmem:[%s26194_s3 + $0x384] ss:$16 sps:$4 sm:$0xff]   ;;  %v19787_v23 = vld [vmem:[%s26194_s3 + $0x6e0] ss:$16 sps:$4 sm:$0xff]  }
 0x484   :  { %5040 = vmatpush1.bf16.msra.mxu1 %v26416_v59  ;;  %4986 = vmatprep.mubr.bf16.mxu1 %v19756_v38  ;;  %v19790_v38 = vld [vmem:[%s26194_s3 + $0x380] ss:$16 sps:$4 sm:$0xff]   ;;  %v19794_v32 = vld [vmem:[%s26194_s3 + $0x3a4] ss:$16 sps:$4 sm:$0xff]  }
 0x485   :  { %16319 = vmatpush3.bf16.msra.mxu0 %v21548_v5  ;;  %5041 = vmatprep.subr.bf16.mxu1 %v26372_v49 }
 0x486   :  { %v2873_v43 = vpop.f32.mrb[116].mxu1  ;;  %16320 = vmatprep.subr.bf16.mxu0 %v21551_v44  ;;  %17492 = vmatprep.mubr.msk.bf16.mxu0 %vm813_vm3, %v2890_v56  ;;  %v19797_v56 = vld [vmem:[%s26194_s3 + $0x62c] ss:$16 sps:$4 sm:$0xff]  }
 0x487   :  { %v2874_v34 = vadd.f32 %v22508_v25, %v2873_v43  ;;  %v2875_v36 = vpop.f32.mrb[117].mxu1  ;;  %v19764_v25 = vld [vmem:[%s26194_s3 + $0x304] ss:$16 sps:$4 sm:$0xff]   ;;  %v19796_v43 = vld [vmem:[%s26194_s3 + $0x3a0] ss:$16 sps:$4 sm:$0xff]  }
 0x488   :  { %5042 = vmatpush1.bf16.msra.mxu1 %v26417_v28  ;;  %v2876_v58 = vpop.f32.mrb[118].mxu1  ;;  %v19805_v36 = vld [vmem:[%s26194_s3 + $0x64c] ss:$16 sps:$4 sm:$0xff]  }
 0x489   :  { %v2877_v2 = vadd.f32 %v22517_v6, %v2876_v58  ;;  %16321 = vmatpush3.bf16.msra.mxu0 %v21562_v50  ;;  %5043 = vmatprep.subr.bf16.mxu1 %v26372_v49  ;;  %v2878_v29 = vpop.f32.mrb[119].mxu1  ;;  %v19761_v6 = vld [vmem:[%s26194_s3 + $0x660] ss:$16 sps:$4 sm:$0xff]   ;;  %v19806_v58 = vld [vmem:[%s26194_s3 + $0x3e4] ss:$16 sps:$4 sm:$0xff]  }
 0x48a   :  { %17496 = vmatprep.subr.bf16.mxu0 %v19765_v26  ;;  %v19808_v29 = vld [vmem:[%s26194_s3 + $0x3e0] ss:$16 sps:$4 sm:$0xff]  }
 0x48b   :  { %v2891_v27 = vpack.c.bf16 %v2877_v2, %v2874_v34  ;;  %4987 = vmatmul.mubr.bf16.gmra.mrb[224].mxu1 %v19758_v24  ;;  %v19799_v34 = vld [vmem:[%s26194_s3 + $0x628] ss:$16 sps:$4 sm:$0xff]   ;;  %v19802_v24 = vld [vmem:[%s26194_s3 + $0x3c0] ss:$16 sps:$4 sm:$0xff]   ;;  %v19811_v2 = vld [vmem:[%s26194_s3 + $0x66c] ss:$16 sps:$4 sm:$0xff]  }
 0x48c   :  { %5044 = vmatpush1.bf16.msra.mxu1 %v26418_v7  ;;  %4994 = vmatprep.mubr.bf16.mxu1 %v19759_v21  ;;  %v19803_v21 = vld [vmem:[%s26194_s3 + $0x648] ss:$16 sps:$4 sm:$0xff]  }
 0x48d   :  { %17493 = vmatmul.mubr.msk.bf16.gmra.mrb[200].mxu0 %vm813_vm3, %v2891_v27  ;;  %5045 = vmatprep.subr.bf16.mxu1 %v26372_v49  ;;  %v19814_v27 = vld [vmem:[%s26194_s3 + $0x68c] ss:$16 sps:$4 sm:$0xff]  }
 0x48e   :  { %3281 = vmatprep.mubr.bf16.mxu0 %v19764_v25  ;;  %v19809_v25 = vld [vmem:[%s26194_s3 + $0x668] ss:$16 sps:$4 sm:$0xff]  }
 0x490   :  { %5046 = vmatpush1.bf16.msra.mxu1 %v26419_v30 }
 0x491   :  { %5047 = vmatprep.subr.bf16.mxu1 %v26372_v49 }
 0x493   :  { %4995 = vmatmul.mubr.bf16.gmra.mrb[228].mxu1 %v19761_v6  ;;  %v19812_v6 = vld [vmem:[%s26194_s3 + $0x688] ss:$16 sps:$4 sm:$0xff]  }
 0x494   :  { %5048 = vmatpush1.bf16.msra.mxu1 %v26420_v15  ;;  %5002 = vmatprep.mubr.bf16.mxu1 %v19767_v48  ;;  %v19817_v48 = vld [vmem:[%s26194_s3 + $0x6ac] ss:$16 sps:$4 sm:$0xff]  }
 0x495   :  { %3282 = vmatmul.mubr.bf16.vlgmr.msra.gmra.mrb[204].mxu0 %v19762_v47  ;;  %5049 = vmatprep.subr.bf16.mxu1 %v26372_v49  ;;  %v19815_v47 = vld [vmem:[%s26194_s3 + $0x6a8] ss:$16 sps:$4 sm:$0xff]  }
 0x496   :  { %17497 = vmatpush3.bf16.msra.mxu0 %v19765_v26  ;;  %3289 = vmatprep.mubr.bf16.mxu0 %v19770_v17  ;;  %v19800_v26 = vld [vmem:[%s26194_s3 + $0x3c4] ss:$16 sps:$4 sm:$0xff]   ;;  %v19820_v17 = vld [vmem:[%s26194_s3 + $0x6cc] ss:$16 sps:$4 sm:$0xff]  }
 0x497   :  { %17498 = vmatprep.subr.bf16.mxu0 %v19766_v22 }
 0x498   :  { %5050 = vmatpush1.bf16.msra.mxu1 %v26421_v55 }
 0x499   :  { %5051 = vmatprep.subr.bf16.mxu1 %v26372_v49 }
 0x49a   :  { %17499 = vmatpush3.bf16.msra.mxu0 %v19766_v22  ;;  %v19818_v22 = vld [vmem:[%s26194_s3 + $0x6c8] ss:$16 sps:$4 sm:$0xff]  }
 0x49b   :  { %16380 = vmatprep.subr.bf16.mxu0 %v21433_v31  ;;  %5003 = vmatmul.mubr.bf16.gmra.mrb[232].mxu1 %v19769_v8  ;;  %v19823_v8 = vld [vmem:[%s26194_s3 + $0x6ec] ss:$16 sps:$4 sm:$0xff]  }
 0x49c   :  { %5052 = vmatpush1.bf16.msra.mxu1 %v26422_v40  ;;  %5010 = vmatprep.mubr.bf16.mxu1 %v19773_v11  ;;  %v3380_v11 = vpop.f32.mrb[120].mxu1 }
 0x49d   :  { %3290 = vmatmul.mubr.bf16.gmra.mrb[208].mxu0 %v19772_v14  ;;  %5053 = vmatprep.subr.bf16.mxu1 %v26372_v49  ;;  %v3382_v14 = vpop.f32.mrb[121].mxu1 }
 0x49e   :  { %3297 = vmatprep.mubr.bf16.mxu0 %v19776_v0  ;;  %v3383_v0 = vpop.f32.mrb[122].mxu1 }
 0x4a0   :  { %5054 = vmatpush1.bf16.msra.mxu1 %v26423_v41 }
 0x4a1   :  { %5055 = vmatprep.subr.bf16.mxu1 %v26372_v49 }
 0x4a3   :  { %5011 = vmatmul.mubr.bf16.gmra.mrb[236].mxu1 %v19775_v39  ;;  %v3385_v39 = vpop.f32.mrb[123].mxu1 }
 0x4a4   :  { %5056 = vmatpush1.bf16.msra.mxu1 %v26424_v61  ;;  %5018 = vmatprep.mubr.bf16.mxu1 %v19779_v57  ;;  %v19821_v57 = vld [vmem:[%s26194_s3 + $0x6e8] ss:$16 sps:$4 sm:$0xff]  }
 0x4a5   :  { %3298 = vmatmul.mubr.bf16.gmra.mrb[212].mxu0 %v19778_v33  ;;  %5057 = vmatprep.subr.bf16.mxu1 %v26372_v49  ;;  %v19826_v33 = vld [vmem:[%s26194_s3 + $0x70c] ss:$16 sps:$4 sm:$0xff]  }
 0x4a6   :  { %3305 = vmatprep.mubr.bf16.mxu0 %v19782_v12  ;;  %v3388_v12 = vpop.f32.mrb[124].mxu1 }
 0x4a8   :  { %5058 = vmatpush1.bf16.msra.mxu1 %v26425_v37 }
 0x4a9   :  { %5059 = vmatprep.subr.bf16.mxu1 %v26372_v49 }
 0x4ab   :  { %5019 = vmatmul.mubr.bf16.gmra.mrb[240].mxu1 %v19781_v52  ;;  %v3390_v52 = vpop.f32.mrb[125].mxu1 }
 0x4ac   :  { %5060 = vmatpush1.bf16.msra.mxu1 %v26426_v4  ;;  %5026 = vmatprep.mubr.bf16.mxu1 %v19785_v51  ;;  %v3391_v51 = vpop.f32.mrb[126].mxu1 }
 0x4ad   :  { %3306 = vmatmul.mubr.bf16.gmra.mrb[216].mxu0 %v19784_v9  ;;  %5598 = vmatprep.subr.bf16.mxu1 %v26372_v49  ;;  %v3393_v9 = vpop.f32.mrb[127].mxu1 }
 0x4ae   :  { %3313 = vmatprep.mubr.bf16.mxu0 %v19788_v1  ;;  %v19824_v1 = vld [vmem:[%s26194_s3 + $0x708] ss:$16 sps:$4 sm:$0xff]  }
 0x4b3   :  { %5027 = vmatmul.mubr.bf16.gmra.mrb[244].mxu1 %v19787_v23  ;;  %v22840_v23 = vpop.f32.mrb[128].mxu1 }
 0x4b4   :  { %15451 = vmatprep.mubr.msk.bf16.mxu1 %vm1564_vm5, %v19793_v54  ;;  %v3398_v54 = vpop.f32.mrb[129].mxu1 }
 0x4b5   :  { %3314 = vmatmul.mubr.bf16.gmra.mrb[220].mxu0 %v19790_v38  ;;  %v22844_v38 = vpop.f32.mrb[130].mxu1 }
 0x4b6   :  { %3321 = vmatprep.mubr.bf16.mxu0 %v19794_v32  ;;  %v3401_v32 = vpop.f32.mrb[131].mxu1 }
 0x4bb   :  { %5068 = vmatmul.mubr.bf16.vlgmr.msra.gmra.mrb[248].mxu1 %v19791_v13  ;;  %v22848_v13 = vpop.f32.mrb[132].mxu1 }
 0x4bc   :  { %5599 = vmatpush1.bf16.msra.mxu1 %v26414_v42  ;;  %15452 = vmatprep.mubr.msk.bf16.mxu1 %vm1564_vm5, %v19797_v56  ;;  %v3406_v56 = vpop.f32.mrb[133].mxu1 }
 0x4bd   :  { %3322 = vmatmul.mubr.bf16.gmra.mrb[224].mxu0 %v19796_v43  ;;  %5600 = vmatprep.subr.bf16.mxu1 %v26372_v49  ;;  %v22852_v43 = vpop.f32.mrb[134].mxu1 }
 0x4be   :  { %3329 = vmatprep.mubr.bf16.mxu0 %v19800_v26  ;;  %v3409_v26 = vpop.f32.mrb[135].mxu1 }
 0x4c0   :  { %5601 = vmatpush1.bf16.msra.mxu1 %v26415_v10 }
 0x4c1   :  { %5602 = vmatprep.subr.bf16.mxu1 %v26372_v49 }
 0x4c3   :  { %5076 = vmatmul.mubr.bf16.gmra.mrb[252].mxu1 %v19799_v34  ;;  %v22856_v34 = vpop.f32.mrb[136].mxu1 }
 0x4c4   :  { %5603 = vmatpush1.bf16.msra.mxu1 %v26416_v59  ;;  %15453 = vmatprep.mubr.msk.bf16.mxu1 %vm1564_vm5, %v19805_v36  ;;  %v3414_v36 = vpop.f32.mrb[137].mxu1 }
 0x4c5   :  { %3330 = vmatmul.mubr.bf16.gmra.mrb[228].mxu0 %v19802_v24  ;;  %5604 = vmatprep.subr.bf16.mxu1 %v26372_v49  ;;  %v22860_v24 = vpop.f32.mrb[138].mxu1 }
 0x4c6   :  { %3337 = vmatprep.mubr.bf16.mxu0 %v19806_v58  ;;  %v3417_v58 = vpop.f32.mrb[139].mxu1 }
 0x4c8   :  { %5605 = vmatpush1.bf16.msra.mxu1 %v26417_v28 }
 0x4c9   :  { %5606 = vmatprep.subr.bf16.mxu1 %v26372_v49 }
 0x4cb   :  { %5084 = vmatmul.mubr.bf16.gmra.mrb[0].mxu1 %v19803_v21  ;;  %v22864_v21 = vpop.f32.mrb[140].mxu1 }
 0x4cc   :  { %5607 = vmatpush1.bf16.msra.mxu1 %v26418_v7  ;;  %15454 = vmatprep.mubr.msk.bf16.mxu1 %vm1564_vm5, %v19811_v2  ;;  %v3422_v2 = vpop.f32.mrb[141].mxu1 }
 0x4cd   :  { %3338 = vmatmul.mubr.bf16.gmra.mrb[232].mxu0 %v19808_v29  ;;  %5608 = vmatprep.subr.bf16.mxu1 %v26372_v49  ;;  %v22868_v29 = vpop.f32.mrb[142].mxu1 }
 0x4d0   :  { %5609 = vmatpush1.bf16.msra.mxu1 %v26419_v30 }
 0x4d1   :  { %5610 = vmatprep.subr.bf16.mxu1 %v26372_v49 }
 0x4d3   :  { %5092 = vmatmul.mubr.bf16.gmra.mrb[4].mxu1 %v19809_v25  ;;  %v3425_v25 = vpop.f32.mrb[143].mxu1 }
 0x4d4   :  { %5611 = vmatpush1.bf16.msra.mxu1 %v26420_v15  ;;  %15455 = vmatprep.mubr.msk.bf16.mxu1 %vm1564_vm5, %v19814_v27  ;;  %v22871_v27 = vpop.f32.mrb[144].mxu1 }
 0x4d5   :  { %5612 = vmatprep.subr.bf16.mxu1 %v26372_v49 }
 0x4d8   :  { %5613 = vmatpush1.bf16.msra.mxu1 %v26421_v55 }
 0x4d9   :  { %5614 = vmatprep.subr.bf16.mxu1 %v26372_v49 }
 0x4db   :  { %5100 = vmatmul.mubr.bf16.gmra.mrb[8].mxu1 %v19812_v6  ;;  %v3430_v6 = vpop.f32.mrb[145].mxu1 }
 0x4dc   :  { %5615 = vmatpush1.bf16.msra.mxu1 %v26422_v40  ;;  %15456 = vmatprep.mubr.msk.bf16.mxu1 %vm1564_vm5, %v19817_v48  ;;  %v22873_v48 = vpop.f32.mrb[146].mxu1 }
 0x4dd   :  { %5616 = vmatprep.subr.bf16.mxu1 %v26372_v49 }
 0x4e0   :  { %5617 = vmatpush1.bf16.msra.mxu1 %v26423_v41 }
 0x4e1   :  { %5618 = vmatprep.subr.bf16.mxu1 %v26372_v49 }
 0x4e3   :  { %5108 = vmatmul.mubr.bf16.gmra.mrb[12].mxu1 %v19815_v47  ;;  %v3433_v47 = vpop.f32.mrb[147].mxu1 }
 0x4e4   :  { %5619 = vmatpush1.bf16.msra.mxu1 %v26424_v61  ;;  %15457 = vmatprep.mubr.msk.bf16.mxu1 %vm1564_vm5, %v19820_v17  ;;  %v22875_v17 = vpop.f32.mrb[148].mxu1 }
 0x4e5   :  { %5620 = vmatprep.subr.bf16.mxu1 %v26372_v49 }
 0x4e8   :  { %5621 = vmatpush1.bf16.msra.mxu1 %v26425_v37 }
 0x4e9   :  { %5622 = vmatprep.subr.bf16.mxu1 %v26372_v49 }
 0x4eb   :  { %5116 = vmatmul.mubr.bf16.gmra.mrb[16].mxu1 %v19818_v22  ;;  %v3438_v22 = vpop.f32.mrb[149].mxu1 }
 0x4ec   :  { %5623 = vmatpush1.bf16.msra.mxu1 %v26426_v4  ;;  %15458 = vmatprep.mubr.msk.bf16.mxu1 %vm1564_vm5, %v19823_v8  ;;  %v22877_v8 = vpop.f32.mrb[150].mxu1 }
 0x4ed   :  { %16676 = vmatprep.subr.bf16.mxu1 %v21433_v31  ;;  %v3441_v14 = vpop.f32.mrb[151].mxu1 }
 0x4f3   :  { %5124 = vmatmul.mubr.bf16.gmra.mrb[20].mxu1 %v19821_v57 }
 0x4f4   :  { %15501 = vmatprep.mubr.msk.bf16.mxu1 %vm1564_vm5, %v19826_v33 }
 0x4fb   :  { %5631 = vmatmul.mubr.bf16.vlgmr.msra.gmra.mrb[24].mxu1 %v19824_v1 }
 0x4fc   :  { %16677 = vmatpush3.bf16.msra.mxu1 %v21431_v46 }
 0x4fd   :  { %16678 = vmatprep.subr.bf16.mxu1 %v21444_v62 }
 0x500   :  { %16679 = vmatpush3.bf16.msra.mxu1 %v21463_v3 }
 0x501   :  { %16680 = vmatprep.subr.bf16.mxu1 %v21467_v19 }
 0x504   :  { %16681 = vmatpush3.bf16.msra.mxu1 %v21483_v35 }
 0x505   :  { %16682 = vmatprep.subr.bf16.mxu1 %v21487_v18 }
 0x508   :  { %16683 = vmatpush3.bf16.msra.mxu1 %v21503_v45 }
 0x509   :  { %16684 = vmatprep.subr.bf16.mxu1 %v21507_v53 }
 0x50c   :  { %16685 = vmatpush3.bf16.msra.mxu1 %v21519_v63 }
 0x50d   :  { %16686 = vmatprep.subr.bf16.mxu1 %v21523_v20 }
 0x510   :  { %16687 = vmatpush3.bf16.msra.mxu1 %v21534_v16 }
 0x511   :  { %16688 = vmatprep.subr.bf16.mxu1 %v21537_v60 }
 0x514   :  { %16689 = vmatpush3.bf16.msra.mxu1 %v21548_v5 }
 0x515   :  { %16690 = vmatprep.subr.bf16.mxu1 %v21551_v44 }
 0x518   :  { %16691 = vmatpush3.bf16.msra.mxu1 %v21562_v50 }
 0x568   :  { %v16322_v39 = vpop.f32.mrb[204].mxu0 }
 0x569   :  { %v16323_v57 = vpop.f32.mrb[205].mxu0 }
 0x56a   :  { %v16324_v33 = vadd.f32 %v16323_v57, %v16322_v39  ;;  %v16325_v52 = vpop.f32.mrb[206].mxu0 }
 0x56b   :  { %v16326_v9 = vpop.f32.mrb[207].mxu0 }
 0x56c   :  { %v16327_v1 = vadd.f32 %v16326_v9, %v16325_v52  ;;  %v3381_v54 = vadd.f32 %v16324_v33, %v3380_v11 }
 0x56e   :  { %v3384_v32 = vadd.f32 %v16327_v1, %v3383_v0 }
 0x570   :  { %v16328_v56 = vpop.f32.mrb[208].mxu0  ;;  %v3447_v26 = vpack.c.bf16 %v3384_v32, %v3381_v54 }
 0x571   :  { %v16329_v36 = vpop.f32.mrb[209].mxu0 }
 0x572   :  { %v16330_v58 = vadd.f32 %v16329_v36, %v16328_v56  ;;  %v16331_v2 = vpop.f32.mrb[210].mxu0  ;;  %17500 = vmatprep.mubr.msk.bf16.mxu0 %vm813_vm3, %v3447_v26 }
 0x573   :  { %v16332_v25 = vpop.f32.mrb[211].mxu0 }
 0x574   :  { %v16333_v6 = vadd.f32 %v16332_v25, %v16331_v2  ;;  %v3389_v47 = vadd.f32 %v16330_v58, %v3388_v12 }
 0x576   :  { %v3392_v22 = vadd.f32 %v16333_v6, %v3391_v51 }
 0x578   :  { %v3448_v14 = vpack.c.bf16 %v3392_v22, %v3389_v47  ;;  %v16334_v31 = vpop.f32.mrb[212].mxu0 }
 0x579   :  { %v16335_v4 = vpop.f32.mrb[213].mxu0 }
 0x57a   :  { %17501 = vmatmul.mubr.msk.bf16.vlgmr.msra.gmra.mrb[188].mxu0 %vm813_vm3, %v3448_v14  ;;  %v16336_v39 = vadd.f32 %v16335_v4, %v16334_v31  ;;  %v16337_v57 = vpop.f32.mrb[214].mxu0 }
 0x57b   :  { %16381 = vmatpush3.bf16.msra.mxu0 %v21431_v46  ;;  %v16338_v11 = vpop.f32.mrb[215].mxu0 }
 0x57c   :  { %16382 = vmatprep.subr.bf16.mxu0 %v21444_v62  ;;  %v16339_v0 = vadd.f32 %v16338_v11, %v16337_v57  ;;  %v3397_v33 = vadd.f32 %v16336_v39, %v22840_v23 }
 0x57e   :  { %v3400_v52 = vadd.f32 %v16339_v0, %v22844_v38 }
 0x57f   :  { %16383 = vmatpush3.bf16.msra.mxu0 %v21463_v3 }
 0x580   :  { %16384 = vmatprep.subr.bf16.mxu0 %v21467_v19  ;;  %v16340_v12 = vpop.f32.mrb[216].mxu0  ;;  %v3449_v51 = vpack.c.bf16 %v3400_v52, %v3397_v33 }
 0x581   :  { %v16341_v9 = vpop.f32.mrb[217].mxu0 }
 0x582   :  { %v16342_v1 = vadd.f32 %v16341_v9, %v16340_v12  ;;  %v16343_v31 = vpop.f32.mrb[218].mxu0  ;;  %17504 = vmatprep.mubr.msk.bf16.mxu0 %vm813_vm3, %v3449_v51 }
 0x583   :  { %16385 = vmatpush3.bf16.msra.mxu0 %v21483_v35  ;;  %v16344_v4 = vpop.f32.mrb[219].mxu0 }
 0x584   :  { %16386 = vmatprep.subr.bf16.mxu0 %v21487_v18  ;;  %v16345_v54 = vadd.f32 %v16344_v4, %v16343_v31  ;;  %v3405_v23 = vadd.f32 %v16342_v1, %v22848_v13 }
 0x586   :  { %v3408_v38 = vadd.f32 %v16345_v54, %v22852_v43 }
 0x587   :  { %16387 = vmatpush3.bf16.msra.mxu0 %v21503_v45 }
 0x588   :  { %16388 = vmatprep.subr.bf16.mxu0 %v21507_v53  ;;  %v16346_v32 = vpop.f32.mrb[220].mxu0  ;;  %v3450_v56 = vpack.c.bf16 %v3408_v38, %v3405_v23 }
 0x589   :  { %v16347_v26 = vpop.f32.mrb[221].mxu0 }
 0x58a   :  { %v16348_v36 = vadd.f32 %v16347_v26, %v16346_v32  ;;  %v16349_v58 = vpop.f32.mrb[222].mxu0  ;;  %17505 = vmatmul.mubr.msk.bf16.gmra.mrb[192].mxu0 %vm813_vm3, %v3450_v56 }
 0x58b   :  { %16389 = vmatpush3.bf16.msra.mxu0 %v21519_v63  ;;  %v16350_v2 = vpop.f32.mrb[223].mxu0 }
 0x58c   :  { %16390 = vmatprep.subr.bf16.mxu0 %v21523_v20  ;;  %v16351_v25 = vadd.f32 %v16350_v2, %v16349_v58  ;;  %v3413_v13 = vadd.f32 %v16348_v36, %v22856_v34  ;;  %v19867_v58 = vld [vmem:[%s26194_s3 + $0x74c] ss:$16 sps:$4 sm:$0xff]   ;;  %v19829_v2 = vld [vmem:[%s26194_s3 + $0x404] ss:$16 sps:$4 sm:$0xff]  }
 0x58e   :  { %v3416_v43 = vadd.f32 %v16351_v25, %v22860_v24  ;;  %v19865_v25 = vld [vmem:[%s26194_s3 + $0x748] ss:$16 sps:$4 sm:$0xff]  }
 0x58f   :  { %16391 = vmatpush3.bf16.msra.mxu0 %v21534_v16 }
 0x590   :  { %16392 = vmatprep.subr.bf16.mxu0 %v21537_v60  ;;  %v16352_v6 = vpop.f32.mrb[224].mxu0  ;;  %v3451_v47 = vpack.c.bf16 %v3416_v43, %v3413_v13  ;;  %v19830_v43 = vld [vmem:[%s26194_s3 + $0x424] ss:$16 sps:$4 sm:$0xff]  }
 0x591   :  { %v16353_v22 = vpop.f32.mrb[225].mxu0 }
 0x592   :  { %v16354_v14 = vadd.f32 %v16353_v22, %v16352_v6  ;;  %v16355_v39 = vpop.f32.mrb[226].mxu0  ;;  %17508 = vmatprep.mubr.msk.bf16.mxu0 %vm813_vm3, %v3451_v47  ;;  %v19871_v6 = vld [vmem:[%s26194_s3 + $0x768] ss:$16 sps:$4 sm:$0xff]   ;;  %v19832_v47 = vld [vmem:[%s26194_s3 + $0x420] ss:$16 sps:$4 sm:$0xff]  }
 0x593   :  { %16393 = vmatpush3.bf16.msra.mxu0 %v21548_v5  ;;  %v16356_v57 = vpop.f32.mrb[227].mxu0  ;;  %v19879_v22 = vld [vmem:[%s26194_s3 + $0x78c] ss:$16 sps:$4 sm:$0xff]  }
 0x594   :  { %16394 = vmatprep.subr.bf16.mxu0 %v21551_v44  ;;  %v16357_v11 = vadd.f32 %v16356_v57, %v16355_v39  ;;  %v3421_v34 = vadd.f32 %v16354_v14, %v22864_v21  ;;  %v19861_v21 = vld [vmem:[%s26194_s3 + $0x72c] ss:$16 sps:$4 sm:$0xff]   ;;  %v19833_v14 = vld [vmem:[%s26194_s3 + $0x444] ss:$16 sps:$4 sm:$0xff]   ;;  %v19877_v39 = vld [vmem:[%s26194_s3 + $0x788] ss:$16 sps:$4 sm:$0xff]  }
 0x595   :  { %15502 = vmatprep.mubr.msk.bf16.mxu1 %vm1564_vm5, %v19861_v21  ;;  %v19835_v57 = vld [vmem:[%s26194_s3 + $0x440] ss:$16 sps:$4 sm:$0xff]   ;;  %v19900_v21 = vld [vmem:[%s26194_s3 + $0x804] ss:$16 sps:$4 sm:$0xff]  }
 0x596   :  { %v3424_v24 = vadd.f32 %v16357_v11, %v22868_v29  ;;  %v19859_v29 = vld [vmem:[%s26194_s3 + $0x728] ss:$16 sps:$4 sm:$0xff]   ;;  %v19885_v11 = vld [vmem:[%s26194_s3 + $0x7ac] ss:$16 sps:$4 sm:$0xff]  }
 0x597   :  { %16395 = vmatpush3.bf16.msra.mxu0 %v21562_v50  ;;  %5639 = vmatmul.mubr.bf16.gmra.mrb[28].mxu1 %v19859_v29  ;;  %v19847_v29 = vld [vmem:[%s26194_s3 + $0x4c4] ss:$16 sps:$4 sm:$0xff]  }
 0x598   :  { %v16358_v0 = vpop.f32.mrb[228].mxu0  ;;  %v3452_v33 = vpack.c.bf16 %v3424_v24, %v3421_v34  ;;  %15503 = vmatprep.mubr.msk.bf16.mxu1 %vm1564_vm5, %v19867_v58  ;;  %v19836_v34 = vld [vmem:[%s26194_s3 + $0x464] ss:$16 sps:$4 sm:$0xff]   ;;  %v19883_v24 = vld [vmem:[%s26194_s3 + $0x7a8] ss:$16 sps:$4 sm:$0xff]  }
 0x599   :  { %v16359_v52 = vpop.f32.mrb[229].mxu0  ;;  %v19907_v58 = vld [vmem:[%s26194_s3 + $0x860] ss:$16 sps:$4 sm:$0xff]  }
 0x59a   :  { %v16360_v12 = vadd.f32 %v16359_v52, %v16358_v0  ;;  %v16361_v51 = vpop.f32.mrb[230].mxu0  ;;  %17509 = vmatmul.mubr.msk.bf16.gmra.mrb[196].mxu0 %vm813_vm3, %v3452_v33  ;;  %v19838_v0 = vld [vmem:[%s26194_s3 + $0x460] ss:$16 sps:$4 sm:$0xff]   ;;  %v19891_v33 = vld [vmem:[%s26194_s3 + $0x7cc] ss:$16 sps:$4 sm:$0xff]  }
 0x59b   :  { %v16362_v9 = vpop.f32.mrb[231].mxu0  ;;  %v19839_v52 = vld [vmem:[%s26194_s3 + $0x484] ss:$16 sps:$4 sm:$0xff]  }
 0x59c   :  { %v16363_v1 = vadd.f32 %v16362_v9, %v16361_v51  ;;  %v3429_v31 = vadd.f32 %v16360_v12, %v22871_v27  ;;  %v19889_v12 = vld [vmem:[%s26194_s3 + $0x7c8] ss:$16 sps:$4 sm:$0xff]   ;;  %v19841_v51 = vld [vmem:[%s26194_s3 + $0x480] ss:$16 sps:$4 sm:$0xff]   ;;  %v19897_v9 = vld [vmem:[%s26194_s3 + $0x7ec] ss:$16 sps:$4 sm:$0xff]  }
 0x59e   :  { %v3432_v4 = vadd.f32 %v16363_v1, %v22873_v48  ;;  %v19844_v1 = vld [vmem:[%s26194_s3 + $0x4a4] ss:$16 sps:$4 sm:$0xff]  }
 0x59f   :  { %5647 = vmatmul.mubr.bf16.gmra.mrb[32].mxu1 %v19865_v25  ;;  %v19910_v25 = vld [vmem:[%s26194_s3 + $0x880] ss:$16 sps:$4 sm:$0xff]  }
 0x5a0   :  { %v16364_v54 = vpop.f32.mrb[232].mxu0  ;;  %v3453_v23 = vpack.c.bf16 %v3432_v4, %v3429_v31  ;;  %v19895_v31 = vld [vmem:[%s26194_s3 + $0x7e8] ss:$16 sps:$4 sm:$0xff]   ;;  %v19842_v4 = vld [vmem:[%s26194_s3 + $0x4a0] ss:$16 sps:$4 sm:$0xff]  }
 0x5a1   :  { %v16365_v38 = vpop.f32.mrb[233].mxu0 }
 0x5a2   :  { %v16366_v32 = vadd.f32 %v16365_v38, %v16364_v54  ;;  %v16367_v56 = vpop.f32.mrb[234].mxu0  ;;  %17512 = vmatprep.mubr.msk.bf16.mxu0 %vm813_vm3, %v3453_v23  ;;  %v19898_v54 = vld [vmem:[%s26194_s3 + $0x800] ss:$16 sps:$4 sm:$0xff]   ;;  %v19903_v38 = vld [vmem:[%s26194_s3 + $0x824] ss:$16 sps:$4 sm:$0xff]  }
 0x5a3   :  { %v16368_v27 = vpop.f32.mrb[235].mxu0  ;;  %v19845_v23 = vld [vmem:[%s26194_s3 + $0x4c0] ss:$16 sps:$4 sm:$0xff]  }
 0x5a4   :  { %v16369_v48 = vadd.f32 %v16368_v27, %v16367_v56  ;;  %v3437_v26 = vadd.f32 %v16366_v32, %v22875_v17  ;;  %v19827_v17 = vld [vmem:[%s26194_s3 + $0x400] ss:$16 sps:$4 sm:$0xff]   ;;  %v19850_v32 = vld [vmem:[%s26194_s3 + $0x4e4] ss:$16 sps:$4 sm:$0xff]  }
 0x5a5   :  { %v19901_v56 = vld [vmem:[%s26194_s3 + $0x820] ss:$16 sps:$4 sm:$0xff]  }
 0x5a6   :  { %v3440_v36 = vadd.f32 %v16369_v48, %v22877_v8  ;;  %v19873_v8 = vld [vmem:[%s26194_s3 + $0x76c] ss:$16 sps:$4 sm:$0xff]   ;;  %v19848_v27 = vld [vmem:[%s26194_s3 + $0x4e0] ss:$16 sps:$4 sm:$0xff]   ;;  %v19906_v48 = vld [vmem:[%s26194_s3 + $0x844] ss:$16 sps:$4 sm:$0xff]  }
 0x5a7   :  { %15504 = vmatprep.mubr.msk.bf16.mxu1 %vm1564_vm5, %v19873_v8  ;;  %v19918_v8 = vld [vmem:[%s26194_s3 + $0x8c4] ss:$16 sps:$4 sm:$0xff]  }
 0x5a8   :  { %v3454_v13 = vpack.c.bf16 %v3440_v36, %v3437_v26  ;;  %5655 = vmatmul.mubr.bf16.gmra.mrb[36].mxu1 %v19871_v6  ;;  %v19904_v26 = vld [vmem:[%s26194_s3 + $0x840] ss:$16 sps:$4 sm:$0xff]   ;;  %v19909_v36 = vld [vmem:[%s26194_s3 + $0x864] ss:$16 sps:$4 sm:$0xff]   ;;  %v23053_v6 = vpop.f32.mrb[152].mxu1 }
 0x5a9   :  { %15505 = vmatprep.mubr.msk.bf16.mxu1 %vm1564_vm5, %v19879_v22 }
 0x5aa   :  { %17513 = vmatmul.mubr.msk.bf16.gmra.mrb[200].mxu0 %vm813_vm3, %v3454_v13  ;;  %v19915_v13 = vld [vmem:[%s26194_s3 + $0x8a4] ss:$16 sps:$4 sm:$0xff]  }
 0x5ab   :  { %3844 = vmatprep.mubr.bf16.mxu0 %v19829_v2  ;;  %v19912_v2 = vld [vmem:[%s26194_s3 + $0x884] ss:$16 sps:$4 sm:$0xff]  }
 0x5b0   :  { %5663 = vmatmul.mubr.bf16.gmra.mrb[40].mxu1 %v19877_v39  ;;  %v19921_v39 = vld [vmem:[%s26194_s3 + $0x8e4] ss:$16 sps:$4 sm:$0xff]  }
 0x5b1   :  { %15506 = vmatprep.mubr.msk.bf16.mxu1 %vm1564_vm5, %v19885_v11  ;;  %v19919_v11 = vld [vmem:[%s26194_s3 + $0x8e0] ss:$16 sps:$4 sm:$0xff]  }
 0x5b2   :  { %3845 = vmatmul.mubr.bf16.vlgmr.msra.gmra.mrb[236].mxu0 %v19827_v17  ;;  %v19913_v17 = vld [vmem:[%s26194_s3 + $0x8a0] ss:$16 sps:$4 sm:$0xff]  }
 0x5b3   :  { %3852 = vmatprep.mubr.bf16.mxu0 %v19830_v43  ;;  %v19916_v43 = vld [vmem:[%s26194_s3 + $0x8c0] ss:$16 sps:$4 sm:$0xff]  }
 0x5b8   :  { %5671 = vmatmul.mubr.bf16.gmra.mrb[44].mxu1 %v19883_v24  ;;  %v19922_v24 = vld [vmem:[%s26198_s7] sm:$0xff]  }
 0x5b9   :  { %15507 = vmatprep.mubr.msk.bf16.mxu1 %vm1564_vm5, %v19891_v33  ;;  %17616 = vmatprep.subr.bf16.mxu1 %v19922_v24 }
 0x5ba   :  { %3853 = vmatmul.mubr.bf16.gmra.mrb[240].mxu0 %v19832_v47  ;;  %v3945_v47 = vpop.f32.mrb[153].mxu1 }
 0x5bb   :  { %3860 = vmatprep.mubr.bf16.mxu0 %v19833_v14  ;;  %v23055_v22 = vpop.f32.mrb[154].mxu1 }
 0x5bc   :  { %v3948_v14 = vpop.f32.mrb[155].mxu1 }
 0x5c0   :  { %5679 = vmatmul.mubr.bf16.gmra.mrb[48].mxu1 %v19889_v12 }
 0x5c1   :  { %15508 = vmatprep.mubr.msk.bf16.mxu1 %vm1564_vm5, %v19897_v9 }
 0x5c2   :  { %3861 = vmatmul.mubr.bf16.gmra.mrb[244].mxu0 %v19835_v57  ;;  %v19851_v57 = vld [vmem:[%s26196_s5 + $0x40] sm:$0xff]  }
 0x5c3   :  { %3868 = vmatprep.mubr.bf16.mxu0 %v19836_v34  ;;  %v23066_v34 = vpop.f32.mrb[156].mxu1  ;;  %17516 = vmatprep.subr.bf16.mxu0 %v19851_v57 }
 0x5c4   :  { %17517 = vmatpush3.bf16.msra.mxu0 %v19851_v57 }
 0x5c8   :  { %5687 = vmatmul.mubr.bf16.gmra.mrb[52].mxu1 %v19895_v31 }
 0x5c9   :  { %6096 = vmatprep.mubr.bf16.mxu1 %v19900_v21 }
 0x5ca   :  { %3869 = vmatmul.mubr.bf16.gmra.mrb[248].mxu0 %v19838_v0  ;;  %v3953_v0 = vpop.f32.mrb[157].mxu1 }
 0x5cb   :  { %3876 = vmatprep.mubr.bf16.mxu0 %v19839_v52  ;;  %v23071_v33 = vpop.f32.mrb[158].mxu1  ;;  %v19852_v52 = vld [vmem:[%s26196_s5 + $0x48] sm:$0xff]  }
 0x5cc   :  { %v3956_v12 = vpop.f32.mrb[159].mxu1  ;;  %17518 = vmatprep.subr.bf16.mxu0 %v19852_v52 }
 0x5cd   :  { %17519 = vmatpush3.bf16.msra.mxu0 %v19852_v52  ;;  %v23080_v9 = vpop.f32.mrb[160].mxu1 }
 0x5ce   :  { %4472 = vmatprep.subr.bf16.mxu0 %v26372_v49 }
 0x5d0   :  { %6097 = vmatmul.mubr.bf16.vlgmr.msra.gmra.mrb[56].mxu1 %v19898_v54 }
 0x5d1   :  { %6104 = vmatprep.mubr.bf16.mxu1 %v19903_v38  ;;  %17617 = vmatpush3.bf16.msra.mxu1 %v19922_v24 }
 0x5d2   :  { %3877 = vmatmul.mubr.bf16.gmra.mrb[252].mxu0 %v19841_v51  ;;  %v19923_v51 = vld [vmem:[%s26198_s7 + $0x8] sm:$0xff]  }
 0x5d3   :  { %3884 = vmatprep.mubr.bf16.mxu0 %v19844_v1  ;;  %17618 = vmatprep.subr.bf16.mxu1 %v19923_v51  ;;  %v3961_v1 = vpop.f32.mrb[161].mxu1 }
 0x5d4   :  { %v23082_v31 = vpop.f32.mrb[162].mxu1 }
 0x5d5   :  { %17619 = vmatpush3.bf16.msra.mxu1 %v19923_v51 }
 0x5d8   :  { %6105 = vmatmul.mubr.bf16.gmra.mrb[60].mxu1 %v19901_v56 }
 0x5d9   :  { %6112 = vmatprep.mubr.bf16.mxu1 %v19906_v48 }
 0x5da   :  { %3885 = vmatmul.mubr.bf16.gmra.mrb[0].mxu0 %v19842_v4  ;;  %v3964_v4 = vpop.f32.mrb[163].mxu1 }
 0x5db   :  { %3892 = vmatprep.mubr.bf16.mxu0 %v19847_v29  ;;  %v23084_v21 = vpop.f32.mrb[164].mxu1 }
 0x5dc   :  { %v3969_v29 = vpop.f32.mrb[165].mxu1 }
 0x5dd   :  { %v23086_v54 = vpop.f32.mrb[166].mxu1 }
 0x5e0   :  { %6113 = vmatmul.mubr.bf16.gmra.mrb[64].mxu1 %v19904_v26 }
 0x5e1   :  { %6120 = vmatprep.mubr.bf16.mxu1 %v19909_v36 }
 0x5e2   :  { %3893 = vmatmul.mubr.bf16.gmra.mrb[4].mxu0 %v19845_v23  ;;  %v3972_v23 = vpop.f32.mrb[167].mxu1 }
 0x5e3   :  { %3900 = vmatprep.mubr.bf16.mxu0 %v19850_v32  ;;  %v23088_v38 = vpop.f32.mrb[168].mxu1 }
 0x5e4   :  { %v3977_v32 = vpop.f32.mrb[169].mxu1 }
 0x5e5   :  { %v23090_v56 = vpop.f32.mrb[170].mxu1 }
 0x5e8   :  { %6121 = vmatmul.mubr.bf16.gmra.mrb[68].mxu1 %v19907_v58 }
 0x5e9   :  { %6128 = vmatprep.mubr.bf16.mxu1 %v19912_v2 }
 0x5ea   :  { %3901 = vmatmul.mubr.bf16.gmra.mrb[8].mxu0 %v19848_v27  ;;  %v3980_v27 = vpop.f32.mrb[171].mxu1 }
 0x5eb   :  { %v23092_v48 = vpop.f32.mrb[172].mxu1 }
 0x5ec   :  { %26427 = vst [vmem:[#allocation35_spill] sm:$0xff] %v23092_v48  ;;  %v3985_v26 = vpop.f32.mrb[173].mxu1 }
 0x5ed   :  { %v23094_v36 = vpop.f32.mrb[174].mxu1 }
 0x5ee   :  { %26428 = vst [vmem:[#allocation36_spill] sm:$0xff] %v23094_v36  ;;  %v3988_v58 = vpop.f32.mrb[175].mxu1 }
 0x5ef   :  { %v23096_v2 = vpop.f32.mrb[176].mxu1 }
 0x5f0   :  { %6129 = vmatmul.mubr.bf16.gmra.mrb[72].mxu1 %v19910_v25  ;;  %26429 = vst [vmem:[#allocation38_spill] sm:$0xff] %v23096_v2  ;;  %v3993_v25 = vpop.f32.mrb[177].mxu1 }
 0x5f1   :  { %6136 = vmatprep.mubr.bf16.mxu1 %v19915_v13  ;;  %v23098_v13 = vpop.f32.mrb[178].mxu1 }
 0x5f2   :  { %26430 = vst [vmem:[#allocation37_spill] sm:$0xff] %v23098_v13 }
 0x5f8   :  { %6137 = vmatmul.mubr.bf16.gmra.mrb[76].mxu1 %v19913_v17  ;;  %v3996_v17 = vpop.f32.mrb[179].mxu1 }
 0x5f9   :  { %6144 = vmatprep.mubr.bf16.mxu1 %v19918_v8  ;;  %v23100_v8 = vpop.f32.mrb[180].mxu1 }
 0x5fa   :  { %26431 = vst [vmem:[#allocation39_spill] sm:$0xff] %v23100_v8 }
 0x600   :  { %6145 = vmatmul.mubr.bf16.gmra.mrb[80].mxu1 %v19916_v43  ;;  %v4001_v43 = vpop.f32.mrb[181].mxu1 }
 0x601   :  { %6152 = vmatprep.mubr.bf16.mxu1 %v19921_v39  ;;  %v23102_v47 = vpop.f32.mrb[182].mxu1 }
 0x602   :  { %26432 = vst [vmem:[#allocation40_spill] sm:$0xff] %v23102_v47  ;;  %v4004_v14 = vpop.f32.mrb[183].mxu1 }
 0x603   :  { %v16470_v39 = vpop.f32.mrb[184].mxu1 }
 0x604   :  { %v16471_v57 = vpop.f32.mrb[185].mxu1 }
 0x605   :  { %v23152_v15 = vadd.f32 %v16471_v57, %v16470_v39 }
 0x607   :  { %26457 = vst [vmem:[#allocation65_spill] sm:$0xff] %v23152_v15 }
 0x608   :  { %6153 = vmatmul.mubr.bf16.gmra.mrb[84].mxu1 %v19919_v11  ;;  %v16473_v11 = vpop.f32.mrb[186].mxu1 }
 0x609   :  { %v16474_v24 = vpop.f32.mrb[187].mxu1 }
 0x60a   :  { %v16476_v0 = vpop.f32.mrb[188].mxu1 }
 0x60b   :  { %v16477_v52 = vpop.f32.mrb[189].mxu1 }
 0x60c   :  { %v16479_v12 = vpop.f32.mrb[190].mxu1 }
 0x60d   :  { %v16480_v51 = vpop.f32.mrb[191].mxu1 }
 0x60e   :  { %v16482_v1 = vpop.f32.mrb[192].mxu1 }
 0x60f   :  { %v16483_v4 = vpop.f32.mrb[193].mxu1 }
 0x610   :  { %v16485_v29 = vpop.f32.mrb[194].mxu1 }
 0x611   :  { %v16486_v23 = vpop.f32.mrb[195].mxu1 }
 0x612   :  { %v16488_v32 = vpop.f32.mrb[196].mxu1  ;;  %v23164_v30 = vadd.f32 %v16486_v23, %v16485_v29 }
 0x613   :  { %v16489_v27 = vpop.f32.mrb[197].mxu1 }
 0x614   :  { %v16491_v26 = vpop.f32.mrb[198].mxu1  ;;  %26462 = vst [vmem:[#allocation70_spill] sm:$0xff] %v23164_v30  ;;  %v19888_v30 = vld [vmem:[%s26194_s3 + $0x5cc] ss:$16 sps:$4 sm:$0xff]  }
 0x615   :  { %v16492_v58 = vpop.f32.mrb[199].mxu1 }
 0x616   :  { %v16494_v25 = vpop.f32.mrb[200].mxu1  ;;  %v23171_v39 = vadd.f32 %v16492_v58, %v16491_v26 }
 0x617   :  { %v16495_v17 = vpop.f32.mrb[201].mxu1 }
 0x618   :  { %v16497_v43 = vpop.f32.mrb[202].mxu1  ;;  %26464 = vst [vmem:[#allocation72_spill] sm:$0xff] %v23171_v39  ;;  %v23173_v57 = vadd.f32 %v16495_v17, %v16494_v25 }
 0x619   :  { %v16498_v14 = vpop.f32.mrb[203].mxu1 }
 0x61a   :  { %v16500_v50 = vpop.f32.mrb[204].mxu1  ;;  %26465 = vst [vmem:[#allocation73_spill] sm:$0xff] %v23173_v57  ;;  %v19874_v57 = vld [vmem:[%s26194_s3 + $0x588] ss:$16 sps:$4 sm:$0xff]  }
 0x61b   :  { %v16501_v44 = vpop.f32.mrb[205].mxu1 }
 0x61c   :  { %v16503_v5 = vpop.f32.mrb[206].mxu1 }
 0x61d   :  { %v16504_v60 = vpop.f32.mrb[207].mxu1 }
 0x61e   :  { %v16506_v16 = vpop.f32.mrb[208].mxu1 }
 0x61f   :  { %v16507_v20 = vpop.f32.mrb[209].mxu1 }
 0x620   :  { %v16509_v63 = vpop.f32.mrb[210].mxu1 }
 0x621   :  { %v16510_v53 = vpop.f32.mrb[211].mxu1 }
 0x622   :  { %v16512_v45 = vpop.f32.mrb[212].mxu1 }
 0x623   :  { %v16513_v18 = vpop.f32.mrb[213].mxu1 }
 0x624   :  { %v16515_v35 = vpop.f32.mrb[214].mxu1 }
 0x625   :  { %v16516_v19 = vpop.f32.mrb[215].mxu1 }
 0x626   :  { %v16544_v3 = vpop.f32.mrb[216].mxu1 }
 0x627   :  { %v16545_v62 = vpop.f32.mrb[217].mxu1 }
 0x628   :  { %v23104_v46 = vpop.f32.mrb[218].mxu1 }
 0x629   :  { %26433 = vst [vmem:[#allocation41_spill] sm:$0xff] %v23104_v46  ;;  %v23106_v37 = vpop.f32.mrb[219].mxu1 }
 0x62a   :  { %26434 = vst [vmem:[#allocation42_spill] sm:$0xff] %v23106_v37  ;;  %v23108_v47 = vpop.f32.mrb[220].mxu1 }
 0x62b   :  { %26435 = vst [vmem:[#allocation43_spill] sm:$0xff] %v23108_v47  ;;  %v23110_v8 = vpop.f32.mrb[221].mxu1 }
 0x62c   :  { %26436 = vst [vmem:[#allocation44_spill] sm:$0xff] %v23110_v8  ;;  %v23112_v61 = vpop.f32.mrb[222].mxu1 }
 0x62d   :  { %26437 = vst [vmem:[#allocation45_spill] sm:$0xff] %v23112_v61  ;;  %v23114_v41 = vpop.f32.mrb[223].mxu1 }
 0x62e   :  { %26438 = vst [vmem:[#allocation46_spill] sm:$0xff] %v23114_v41  ;;  %v23116_v13 = vpop.f32.mrb[224].mxu1 }
 0x62f   :  { %26439 = vst [vmem:[#allocation47_spill] sm:$0xff] %v23116_v13  ;;  %v23118_v2 = vpop.f32.mrb[225].mxu1 }
 0x630   :  { %26440 = vst [vmem:[#allocation48_spill] sm:$0xff] %v23118_v2  ;;  %v23120_v40 = vpop.f32.mrb[226].mxu1 }
 0x631   :  { %26441 = vst [vmem:[#allocation49_spill] sm:$0xff] %v23120_v40  ;;  %v23122_v55 = vpop.f32.mrb[227].mxu1 }
 0x632   :  { %26442 = vst [vmem:[#allocation50_spill] sm:$0xff] %v23122_v55  ;;  %v23124_v36 = vpop.f32.mrb[228].mxu1  ;;  %v26510_v15 = vld [vmem:[#allocation43_spill] sm:$0xff] }
 0x633   :  { %26443 = vst [vmem:[#allocation51_spill] sm:$0xff] %v23124_v36  ;;  %v23126_v46 = vpop.f32.mrb[229].mxu1 }
 0x634   :  { %26444 = vst [vmem:[#allocation52_spill] sm:$0xff] %v23126_v46  ;;  %v23128_v37 = vpop.f32.mrb[230].mxu1 }
 0x635   :  { %26445 = vst [vmem:[#allocation53_spill] sm:$0xff] %v23128_v37  ;;  %v23130_v47 = vpop.f32.mrb[231].mxu1 }
 0x636   :  { %26446 = vst [vmem:[#allocation54_spill] sm:$0xff] %v23130_v47  ;;  %v23132_v8 = vpop.f32.mrb[232].mxu1 }
 0x637   :  { %26447 = vst [vmem:[#allocation55_spill] sm:$0xff] %v23132_v8  ;;  %v23134_v61 = vpop.f32.mrb[233].mxu1 }
 0x638   :  { %26448 = vst [vmem:[#allocation56_spill] sm:$0xff] %v23134_v61  ;;  %v23136_v41 = vpop.f32.mrb[234].mxu1 }
 0x639   :  { %26449 = vst [vmem:[#allocation57_spill] sm:$0xff] %v23136_v41  ;;  %v23138_v13 = vpop.f32.mrb[235].mxu1  ;;  %v23154_v41 = vadd.f32 %v16474_v24, %v16473_v11  ;;  %v23177_v24 = vadd.f32 %v16498_v14, %v16497_v43 }
 0x63a   :  { %26450 = vst [vmem:[#allocation58_spill] sm:$0xff] %v23138_v13  ;;  %v23140_v2 = vpop.f32.mrb[236].mxu1  ;;  %v23156_v13 = vadd.f32 %v16477_v52, %v16476_v0  ;;  %v23179_v0 = vadd.f32 %v16501_v44, %v16500_v50  ;;  %v23181_v52 = vadd.f32 %v16504_v60, %v16503_v5 }
 0x63b   :  { %26451 = vst [vmem:[#allocation59_spill] sm:$0xff] %v23140_v2  ;;  %v23142_v40 = vpop.f32.mrb[237].mxu1  ;;  %26458 = vst [vmem:[#allocation66_spill] sm:$0xff] %v23154_v41 }
 0x63c   :  { %26452 = vst [vmem:[#allocation60_spill] sm:$0xff] %v23142_v40  ;;  %v23144_v55 = vpop.f32.mrb[238].mxu1  ;;  %26459 = vst [vmem:[#allocation67_spill] sm:$0xff] %v23156_v13  ;;  %v26509_v13 = vld [vmem:[#allocation42_spill] sm:$0xff] }
 0x63d   :  { %26453 = vst [vmem:[#allocation61_spill] sm:$0xff] %v23144_v55  ;;  %v23146_v36 = vpop.f32.mrb[239].mxu1  ;;  %v23160_v55 = vadd.f32 %v16480_v51, %v16479_v12  ;;  %26466 = vst [vmem:[#allocation74_spill] sm:$0xff] %v23177_v24  ;;  %v23183_v12 = vadd.f32 %v16507_v20, %v16506_v16 }
 0x63e   :  { %26454 = vst [vmem:[#allocation62_spill] sm:$0xff] %v23146_v36  ;;  %v23148_v37 = vpop.f32.mrb[240].mxu1  ;;  %v23162_v36 = vadd.f32 %v16483_v4, %v16482_v1  ;;  %26467 = vst [vmem:[#allocation75_spill] sm:$0xff] %v23179_v0  ;;  %v23196_v4 = vadd.f32 %v16545_v62, %v16544_v3 }
 0x63f   :  { %26455 = vst [vmem:[#allocation63_spill] sm:$0xff] %v23148_v37  ;;  %v23150_v48 = vpop.f32.mrb[241].mxu1  ;;  %26460 = vst [vmem:[#allocation68_spill] sm:$0xff] %v23160_v55  ;;  %v23166_v37 = vadd.f32 %v16489_v27, %v16488_v32  ;;  %v26508_v55 = vld [vmem:[#allocation41_spill] sm:$0xff] }
 0x640   :  { %26456 = vst [vmem:[#allocation64_spill] sm:$0xff] %v23150_v48  ;;  %v23158_v2 = vpop.f32.mrb[242].mxu1  ;;  %26461 = vst [vmem:[#allocation69_spill] sm:$0xff] %v23162_v36  ;;  %v19886_v36 = vld [vmem:[%s26194_s3 + $0x5c8] ss:$16 sps:$4 sm:$0xff]  }
 0x641   :  { %26463 = vst [vmem:[#allocation71_spill] sm:$0xff] %v23166_v37  ;;  %v23168_v48 = vpop.f32.mrb[243].mxu1  ;;  %26468 = vst [vmem:[#allocation76_spill] sm:$0xff] %v23181_v52 }
 0x642   :  { %v23175_v11 = vpop.f32.mrb[244].mxu1  ;;  %26469 = vst [vmem:[#allocation77_spill] sm:$0xff] %v23183_v12 }
 0x643   :  { %v23185_v51 = vpop.f32.mrb[245].mxu1 }
 0x644   :  { %v23194_v1 = vpop.f32.mrb[246].mxu1 }
 0x645   :  { %v23198_v44 = vpop.f32.mrb[247].mxu1 }
 0x646   :  { %v23200_v20 = vpop.f32.mrb[248].mxu1 }
 0x647   :  { %v5071_v50 = vpop.f32.mrb[249].mxu1 }
 0x685   :  { %v16396_v46 = vpop.f32.mrb[236].mxu0 }
 0x686   :  { %v16397_v47 = vpop.f32.mrb[237].mxu0 }
 0x687   :  { %v16398_v8 = vadd.f32 %v16397_v47, %v16396_v46  ;;  %v16399_v61 = vpop.f32.mrb[238].mxu0 }
 0x688   :  { %v16400_v40 = vpop.f32.mrb[239].mxu0 }
 0x689   :  { %v16401_v46 = vadd.f32 %v16400_v40, %v16399_v61  ;;  %v3944_v47 = vadd.f32 %v16398_v8, %v23053_v6  ;;  %v23188_v61 = vadd.f32 %v16510_v53, %v16509_v63  ;;  %v23190_v6 = vadd.f32 %v16513_v18, %v16512_v45 }
 0x68a   :  { %v23192_v8 = vadd.f32 %v16516_v19, %v16515_v35  ;;  %v23204_v19 = vpop.f32.mrb[250].mxu1 }
 0x68b   :  { %v3947_v40 = vadd.f32 %v16401_v46, %v23055_v22  ;;  %26470 = vst [vmem:[#allocation78_spill] sm:$0xff] %v23188_v61  ;;  %26471 = vst [vmem:[#allocation79_spill] sm:$0xff] %v23190_v6  ;;  %v5074_v18 = vpop.f32.mrb[251].mxu1 }
 0x68c   :  { %26472 = vst [vmem:[#allocation80_spill] sm:$0xff] %v23192_v8  ;;  %v23207_v45 = vpop.f32.mrb[252].mxu1 }
 0x68d   :  { %v16402_v60 = vpop.f32.mrb[240].mxu0  ;;  %v4010_v5 = vpack.c.bf16 %v3947_v40, %v3944_v47  ;;  %v5079_v53 = vpop.f32.mrb[253].mxu1 }
 0x68e   :  { %v16403_v16 = vpop.f32.mrb[241].mxu0  ;;  %v23210_v23 = vpop.f32.mrb[254].mxu1 }
 0x68f   :  { %v16404_v29 = vadd.f32 %v16403_v16, %v16402_v60  ;;  %v16405_v22 = vpop.f32.mrb[242].mxu0  ;;  %17520 = vmatprep.mubr.msk.bf16.mxu0 %vm813_vm3, %v4010_v5  ;;  %17620 = vmatprep.mubr.msk.bf16.mxu1 %vm813_vm3, %v4010_v5  ;;  %v5082_v32 = vpop.f32.mrb[255].mxu1 }
 0x690   :  { %v16406_v35 = vpop.f32.mrb[243].mxu0  ;;  %v23212_v58 = vpop.f32.mrb[0].mxu1 }
 0x691   :  { %v16407_v62 = vadd.f32 %v16406_v35, %v16405_v22  ;;  %v3952_v3 = vadd.f32 %v16404_v29, %v23066_v34  ;;  %v5087_v17 = vpop.f32.mrb[1].mxu1 }
 0x692   :  { %v23216_v34 = vpop.f32.mrb[2].mxu1 }
 0x693   :  { %v3955_v63 = vadd.f32 %v16407_v62, %v23071_v33  ;;  %v5090_v46 = vpop.f32.mrb[3].mxu1 }
 0x694   :  { %v23221_v60 = vpop.f32.mrb[4].mxu1 }
 0x695   :  { %v4011_v27 = vpack.c.bf16 %v3955_v63, %v3952_v3  ;;  %v16408_v26 = vpop.f32.mrb[244].mxu0  ;;  %v5095_v5 = vpop.f32.mrb[5].mxu1 }
 0x696   :  { %v16409_v25 = vpop.f32.mrb[245].mxu0  ;;  %v23224_v50 = vpop.f32.mrb[6].mxu1 }
 0x697   :  { %17521 = vmatmul.mubr.msk.bf16.vlgmr.msra.gmra.mrb[188].mxu0 %vm813_vm3, %v4011_v27  ;;  %v16410_v43 = vadd.f32 %v16409_v25, %v16408_v26  ;;  %v16411_v14 = vpop.f32.mrb[246].mxu0  ;;  %17621 = vmatmul.mubr.msk.bf16.vlgmr.msra.gmra.mrb[88].mxu1 %vm813_vm3, %v4011_v27  ;;  %v5098_v29 = vpop.f32.mrb[7].mxu1 }
 0x698   :  { %4473 = vmatpush1.bf16.msra.mxu0 %v26414_v42  ;;  %v16412_v33 = vpop.f32.mrb[247].mxu0  ;;  %v23228_v18 = vpop.f32.mrb[8].mxu1 }
 0x699   :  { %4474 = vmatprep.subr.bf16.mxu0 %v26372_v49  ;;  %v16413_v47 = vadd.f32 %v16412_v33, %v16411_v14  ;;  %v3960_v40 = vadd.f32 %v16410_v43, %v23080_v9  ;;  %v5103_v3 = vpop.f32.mrb[9].mxu1 }
 0x69b   :  { %v3963_v16 = vadd.f32 %v16413_v47, %v23082_v31  ;;  %v23232_v31 = vpop.f32.mrb[10].mxu1 }
 0x69c   :  { %4475 = vmatpush1.bf16.msra.mxu0 %v26415_v10  ;;  %v5106_v32 = vpop.f32.mrb[11].mxu1 }
 0x69d   :  { %4476 = vmatprep.subr.bf16.mxu0 %v26372_v49  ;;  %v16414_v22 = vpop.f32.mrb[248].mxu0  ;;  %v4012_v35 = vpack.c.bf16 %v3963_v16, %v3960_v40  ;;  %v23237_v25 = vpop.f32.mrb[12].mxu1 }
 0x69e   :  { %v16415_v62 = vpop.f32.mrb[249].mxu0  ;;  %v5111_v17 = vpop.f32.mrb[13].mxu1 }
 0x69f   :  { %v16416_v53 = vadd.f32 %v16415_v62, %v16414_v22  ;;  %v16417_v9 = vpop.f32.mrb[250].mxu0  ;;  %17524 = vmatprep.mubr.msk.bf16.mxu0 %vm813_vm3, %v4012_v35  ;;  %17624 = vmatprep.mubr.msk.bf16.mxu1 %vm813_vm3, %v4012_v35  ;;  %v23240_v14 = vpop.f32.mrb[14].mxu1 }
 0x6a0   :  { %4477 = vmatpush1.bf16.msra.mxu0 %v26416_v59  ;;  %v16418_v63 = vpop.f32.mrb[251].mxu0  ;;  %v5114_v33 = vpop.f32.mrb[15].mxu1 }
 0x6a1   :  { %4478 = vmatprep.subr.bf16.mxu0 %v26372_v49  ;;  %v16419_v27 = vadd.f32 %v16418_v63, %v16417_v9  ;;  %v3968_v26 = vadd.f32 %v16416_v53, %v23084_v21  ;;  %v23244_v40 = vpop.f32.mrb[16].mxu1 }
 0x6a2   :  { %v5119_v16 = vpop.f32.mrb[17].mxu1 }
 0x6a3   :  { %v3971_v43 = vadd.f32 %v16419_v27, %v23086_v54  ;;  %v23248_v54 = vpop.f32.mrb[18].mxu1  ;;  %v26473_v27 = vld [vmem:[#allocation23_spill] sm:$0xff]  ;;  %v26476_v16 = vld [vmem:[#allocation24_spill] sm:$0xff] }
 0x6a4   :  { %4479 = vmatpush1.bf16.msra.mxu0 %v26417_v28  ;;  %v5122_v35 = vpop.f32.mrb[19].mxu1  ;;  %v26489_v28 = vld [vmem:[#allocation8_spill] sm:$0xff] }
 0x6a5   :  { %4480 = vmatprep.subr.bf16.mxu0 %v26372_v49  ;;  %v16420_v46 = vpop.f32.mrb[252].mxu0  ;;  %v4013_v47 = vpack.c.bf16 %v3971_v43, %v3968_v26  ;;  %v23253_v53 = vpop.f32.mrb[20].mxu1  ;;  %v26477_v35 = vld [vmem:[#allocation35_spill] sm:$0xff] }
 0x6a6   :  { %v16421_v5 = vpop.f32.mrb[253].mxu0  ;;  %v5127_v9 = vpop.f32.mrb[21].mxu1 }
 0x6a7   :  { %v16422_v29 = vadd.f32 %v16421_v5, %v16420_v46  ;;  %v16423_v21 = vpop.f32.mrb[254].mxu0  ;;  %17525 = vmatmul.mubr.msk.bf16.gmra.mrb[192].mxu0 %vm813_vm3, %v4013_v47  ;;  %17625 = vmatmul.mubr.msk.bf16.gmra.mrb[92].mxu1 %vm813_vm3, %v4013_v47  ;;  %v23256_v32 = vpop.f32.mrb[22].mxu1 }
 0x6a8   :  { %4481 = vmatpush1.bf16.msra.mxu0 %v26418_v7  ;;  %v16424_v22 = vpop.f32.mrb[255].mxu0  ;;  %v5130_v26 = vpop.f32.mrb[23].mxu1 }
 0x6a9   :  { %4482 = vmatprep.subr.bf16.mxu0 %v26372_v49  ;;  %v16425_v62 = vadd.f32 %v16424_v22, %v16423_v21  ;;  %v3976_v3 = vadd.f32 %v16422_v29, %v23088_v38  ;;  %v23260_v33 = vpop.f32.mrb[24].mxu1 }
 0x6aa   :  { %26474 = vst [vmem:[#allocation81_spill] sm:$0xff] %v23260_v33  ;;  %v5634_v47 = vpop.f32.mrb[25].mxu1 }
 0x6ab   :  { %v3979_v63 = vadd.f32 %v16425_v62, %v23090_v56  ;;  %v23264_v56 = vpop.f32.mrb[26].mxu1 }
 0x6ac   :  { %4483 = vmatpush1.bf16.msra.mxu0 %v26473_v27  ;;  %26475 = vst [vmem:[#allocation82_spill] sm:$0xff] %v23264_v56  ;;  %v5637_v21 = vpop.f32.mrb[27].mxu1 }
 0x6ad   :  { %4484 = vmatprep.subr.bf16.mxu0 %v26372_v49  ;;  %v16426_v17 = vpop.f32.mrb[0].mxu0  ;;  %v4014_v43 = vpack.c.bf16 %v3979_v63, %v3976_v3  ;;  %v23269_v3 = vpop.f32.mrb[28].mxu1  ;;  %v26479_v63 = vld [vmem:[#allocation36_spill] sm:$0xff] }
 0x6ae   :  { %v16427_v46 = vpop.f32.mrb[1].mxu0  ;;  %26478 = vst [vmem:[#allocation35_spill] sm:$0xff] %v23269_v3  ;;  %v5642_v9 = vpop.f32.mrb[29].mxu1 }
 0x6af   :  { %v16428_v5 = vadd.f32 %v16427_v46, %v16426_v17  ;;  %v16429_v38 = vpop.f32.mrb[2].mxu0  ;;  %17528 = vmatprep.mubr.msk.bf16.mxu0 %vm813_vm3, %v4014_v43  ;;  %17628 = vmatprep.mubr.msk.bf16.mxu1 %vm813_vm3, %v4014_v43  ;;  %v23272_v17 = vpop.f32.mrb[30].mxu1  ;;  %v26481_v46 = vld [vmem:[#allocation5_spill] sm:$0xff] }
 0x6b0   :  { %4485 = vmatpush1.bf16.msra.mxu0 %v26476_v16  ;;  %v16430_v29 = vpop.f32.mrb[3].mxu0  ;;  %26480 = vst [vmem:[#allocation36_spill] sm:$0xff] %v23272_v17  ;;  %v5645_v43 = vpop.f32.mrb[31].mxu1 }
 0x6b1   :  { %4486 = vmatprep.subr.bf16.mxu0 %v26372_v49  ;;  %v16431_v22 = vadd.f32 %v16430_v29, %v16429_v38  ;;  %v3984_v62 = vadd.f32 %v16428_v5, %v26477_v35  ;;  %v23276_v21 = vpop.f32.mrb[32].mxu1  ;;  %v26484_v35 = vld [vmem:[#allocation7_spill] sm:$0xff] }
 0x6b2   :  { %26482 = vst [vmem:[#allocation83_spill] sm:$0xff] %v23276_v21  ;;  %v5650_v38 = vpop.f32.mrb[33].mxu1 }
 0x6b3   :  { %v3987_v26 = vadd.f32 %v16431_v22, %v26479_v63  ;;  %v23280_v22 = vpop.f32.mrb[34].mxu1 }
 0x6b4   :  { %4487 = vmatpush1.bf16.msra.mxu0 %v26481_v46  ;;  %26483 = vst [vmem:[#allocation84_spill] sm:$0xff] %v23280_v22  ;;  %v5653_v63 = vpop.f32.mrb[35].mxu1 }
 0x6b5   :  { %4488 = vmatprep.subr.bf16.mxu0 %v26372_v49  ;;  %v16432_v47 = vpop.f32.mrb[4].mxu0  ;;  %v4015_v16 = vpack.c.bf16 %v3987_v26, %v3984_v62  ;;  %v26485_v62 = vld [vmem:[#allocation38_spill] sm:$0xff]  ;;  %v23285_v46 = vpop.f32.mrb[36].mxu1 }
 0x6b6   :  { %v16433_v27 = vpop.f32.mrb[5].mxu0  ;;  %26486 = vst [vmem:[#allocation38_spill] sm:$0xff] %v23285_v46  ;;  %v5658_v38 = vpop.f32.mrb[37].mxu1  ;;  %v19862_v46 = vld [vmem:[%s26194_s3 + $0x548] ss:$16 sps:$4 sm:$0xff]  }
 0x6b7   :  { %v16434_v29 = vadd.f32 %v16433_v27, %v16432_v47  ;;  %v16435_v5 = vpop.f32.mrb[6].mxu0  ;;  %17529 = vmatmul.mubr.msk.bf16.gmra.mrb[196].mxu0 %vm813_vm3, %v4015_v16  ;;  %17629 = vmatmul.mubr.msk.bf16.gmra.mrb[96].mxu1 %vm813_vm3, %v4015_v16  ;;  %v26487_v27 = vld [vmem:[#allocation37_spill] sm:$0xff]  ;;  %v23288_v7 = vpop.f32.mrb[38].mxu1 }
 0x6b8   :  { %4489 = vmatpush1.bf16.msra.mxu0 %v26484_v35  ;;  %v16436_v9 = vpop.f32.mrb[7].mxu0  ;;  %26488 = vst [vmem:[#allocation37_spill] sm:$0xff] %v23288_v7  ;;  %v5661_v16 = vpop.f32.mrb[39].mxu1  ;;  %v26497_v7 = vld [vmem:[#allocation14_spill] sm:$0xff] }
 0x6b9   :  { %4490 = vmatprep.subr.bf16.mxu0 %v26372_v49  ;;  %v16437_v43 = vadd.f32 %v16436_v9, %v16435_v5  ;;  %v3992_v26 = vadd.f32 %v16434_v29, %v26485_v62  ;;  %v23292_v63 = vpop.f32.mrb[40].mxu1  ;;  %v26492_v62 = vld [vmem:[#allocation9_spill] sm:$0xff] }
 0x6ba   :  { %26490 = vst [vmem:[#allocation85_spill] sm:$0xff] %v23292_v63  ;;  %v5666_v5 = vpop.f32.mrb[41].mxu1 }
 0x6bb   :  { %v3995_v47 = vadd.f32 %v16437_v43, %v26487_v27  ;;  %v23296_v43 = vpop.f32.mrb[42].mxu1 }
 0x6bc   :  { %4491 = vmatpush1.bf16.msra.mxu0 %v26489_v28  ;;  %26491 = vst [vmem:[#allocation86_spill] sm:$0xff] %v23296_v43  ;;  %v5669_v27 = vpop.f32.mrb[43].mxu1 }
 0x6bd   :  { %v16438_v59 = vpop.f32.mrb[8].mxu0  ;;  %v4016_v10 = vpack.c.bf16 %v3995_v47, %v3992_v26  ;;  %4492 = vmatprep.subr.bf16.mxu0 %v26372_v49  ;;  %v26493_v26 = vld [vmem:[#allocation39_spill] sm:$0xff]  ;;  %v23301_v28 = vpop.f32.mrb[44].mxu1 }
 0x6be   :  { %v16439_v35 = vpop.f32.mrb[9].mxu0  ;;  %26494 = vst [vmem:[#allocation39_spill] sm:$0xff] %v23301_v28  ;;  %v5674_v5 = vpop.f32.mrb[45].mxu1 }
 0x6bf   :  { %v16440_v9 = vadd.f32 %v16439_v35, %v16438_v59  ;;  %v16441_v29 = vpop.f32.mrb[10].mxu0  ;;  %17532 = vmatprep.mubr.msk.bf16.mxu0 %vm813_vm3, %v4016_v10  ;;  %17632 = vmatprep.mubr.msk.bf16.mxu1 %vm813_vm3, %v4016_v10  ;;  %v26495_v59 = vld [vmem:[#allocation40_spill] sm:$0xff]  ;;  %v23304_v63 = vpop.f32.mrb[46].mxu1 }
 0x6c0   :  { %4493 = vmatpush1.bf16.msra.mxu0 %v26492_v62  ;;  %v16442_v38 = vpop.f32.mrb[11].mxu0  ;;  %26496 = vst [vmem:[#allocation40_spill] sm:$0xff] %v23304_v63  ;;  %v19855_v10 = vld [vmem:[%s26194_s3 + $0x50c] ss:$16 sps:$4 sm:$0xff]   ;;  %v5677_v62 = vpop.f32.mrb[47].mxu1 }
 0x6c1   :  { %v16443_v16 = vadd.f32 %v16442_v38, %v16441_v29  ;;  %4494 = vmatprep.subr.bf16.mxu0 %v26372_v49  ;;  %v4000_v47 = vadd.f32 %v16440_v9, %v26493_v26  ;;  %v23311_v38 = vpop.f32.mrb[48].mxu1 }
 0x6c2   :  { %26498 = vst [vmem:[#allocation87_spill] sm:$0xff] %v23311_v38  ;;  %v5682_v9 = vpop.f32.mrb[49].mxu1 }
 0x6c3   :  { %v4003_v35 = vadd.f32 %v16443_v16, %v26495_v59  ;;  %v23315_v27 = vpop.f32.mrb[50].mxu1  ;;  %v26500_v16 = vld [vmem:[#allocation6_spill] sm:$0xff] }
 0x6c4   :  { %4495 = vmatpush1.bf16.msra.mxu0 %v26497_v7  ;;  %26499 = vst [vmem:[#allocation88_spill] sm:$0xff] %v23315_v27  ;;  %v5685_v26 = vpop.f32.mrb[51].mxu1 }
 0x6c5   :  { %4496 = vmatprep.subr.bf16.mxu0 %v26372_v49  ;;  %v4017_v29 = vpack.c.bf16 %v4003_v35, %v4000_v47  ;;  %v23319_v5 = vpop.f32.mrb[52].mxu1  ;;  %v19853_v47 = vld [vmem:[%s26194_s3 + $0x508] ss:$16 sps:$4 sm:$0xff]   ;;  %v19858_v35 = vld [vmem:[%s26194_s3 + $0x52c] ss:$16 sps:$4 sm:$0xff]  }
 0x6c6   :  { %26501 = vst [vmem:[#allocation89_spill] sm:$0xff] %v23319_v5  ;;  %v5690_v62 = vpop.f32.mrb[53].mxu1  ;;  %v19868_v49 = vld [vmem:[%s26194_s3 + $0x568] ss:$16 sps:$4 sm:$0xff]  }
 0x6c7   :  { %17533 = vmatmul.mubr.msk.bf16.gmra.mrb[200].mxu0 %vm813_vm3, %v4017_v29  ;;  %17633 = vmatmul.mubr.msk.bf16.gmra.mrb[100].mxu1 %vm813_vm3, %v4017_v29  ;;  %v23324_v59 = vpop.f32.mrb[54].mxu1 }
 0x6c8   :  { %4497 = vmatpush1.bf16.msra.mxu0 %v26500_v16  ;;  %15401 = vmatprep.mubr.msk.bf16.mxu0 %vm1564_vm5, %v19855_v10  ;;  %26502 = vst [vmem:[#allocation90_spill] sm:$0xff] %v23324_v59  ;;  %v5693_v29 = vpop.f32.mrb[55].mxu1  ;;  %v19856_v59 = vld [vmem:[%s26194_s3 + $0x528] ss:$16 sps:$4 sm:$0xff]  }
 0x6c9   :  { %v23329_v9 = vpop.f32.mrb[56].mxu1 }
 0x6ca   :  { %v23331_v16 = vpop.f32.mrb[57].mxu1 }
 0x6cb   :  { %v23333_v10 = vpop.f32.mrb[58].mxu1 }
 0x6cc   :  { %v23336_v26 = vpop.f32.mrb[59].mxu1 }
 0x6cd   :  { %v23338_v62 = vpop.f32.mrb[60].mxu1 }
 0x6ce   :  { %v23340_v7 = vpop.f32.mrb[61].mxu1 }
 0x6cf   :  { %4505 = vmatmul.mubr.bf16.vlgmr.msra.gmra.mrb[12].mxu0 %v19853_v47  ;;  %v23345_v29 = vpop.f32.mrb[62].mxu1  ;;  %v19864_v47 = vld [vmem:[%s26194_s3 + $0x54c] ss:$16 sps:$4 sm:$0xff]  }
 0x6d0   :  { %15402 = vmatprep.mubr.msk.bf16.mxu0 %vm1564_vm5, %v19858_v35  ;;  %v23350_v5 = vpop.f32.mrb[63].mxu1 }
 0x6d1   :  { %v23352_v27 = vpop.f32.mrb[64].mxu1 }
 0x6d2   :  { %v23354_v35 = vpop.f32.mrb[65].mxu1 }
 0x6d3   :  { %v23356_v38 = vpop.f32.mrb[66].mxu1 }
 0x6d4   :  { %v23359_v63 = vpop.f32.mrb[67].mxu1 }
 0x6d5   :  { %v23361_v28 = vpop.f32.mrb[68].mxu1 }
 0x6d6   :  { %v23363_v43 = vpop.f32.mrb[69].mxu1 }
 0x6d7   :  { %4513 = vmatmul.mubr.bf16.gmra.mrb[16].mxu0 %v19856_v59  ;;  %v23368_v22 = vpop.f32.mrb[70].mxu1  ;;  %v19870_v59 = vld [vmem:[%s26194_s3 + $0x56c] ss:$16 sps:$4 sm:$0xff]  }
 0x6d8   :  { %15403 = vmatprep.mubr.msk.bf16.mxu0 %vm1564_vm5, %v19864_v47  ;;  %v23373_v21 = vpop.f32.mrb[71].mxu1 }
 0x6d9   :  { %v23375_v42 = vpop.f32.mrb[72].mxu1 }
 0x6da   :  { %v23377_v47 = vpop.f32.mrb[73].mxu1 }
 0x6db   :  { %v23379_v17 = vpop.f32.mrb[74].mxu1 }
 0x6dc   :  { %v23382_v3 = vpop.f32.mrb[75].mxu1 }
 0x6dd   :  { %v23384_v56 = vpop.f32.mrb[76].mxu1 }
 0x6de   :  { %v23386_v33 = vpop.f32.mrb[77].mxu1 }
 0x6df   :  { %4521 = vmatmul.mubr.bf16.gmra.mrb[20].mxu0 %v19862_v46  ;;  %v23391_v8 = vpop.f32.mrb[78].mxu1  ;;  %v19876_v46 = vld [vmem:[%s26194_s3 + $0x58c] ss:$16 sps:$4 sm:$0xff]  }
 0x6e0   :  { %15404 = vmatprep.mubr.msk.bf16.mxu0 %vm1564_vm5, %v19870_v59  ;;  %v23396_v6 = vpop.f32.mrb[79].mxu1 }
 0x6e1   :  { %v23398_v61 = vpop.f32.mrb[80].mxu1 }
 0x6e2   :  { %v23400_v59 = vpop.f32.mrb[81].mxu1 }
 0x6e3   :  { %v23402_v12 = vpop.f32.mrb[82].mxu1 }
 0x6e4   :  { %v23405_v52 = vpop.f32.mrb[83].mxu1 }
 0x6e5   :  { %26503 = vst [vmem:[#allocation91_spill] sm:$0xff] %v23405_v52  ;;  %v23407_v0 = vpop.f32.mrb[84].mxu1 }
 0x6e6   :  { %26504 = vst [vmem:[#allocation92_spill] sm:$0xff] %v23407_v0  ;;  %v23409_v24 = vpop.f32.mrb[85].mxu1 }
 0x6e7   :  { %4529 = vmatmul.mubr.bf16.gmra.mrb[24].mxu0 %v19868_v49  ;;  %26505 = vst [vmem:[#allocation93_spill] sm:$0xff] %v23409_v24  ;;  %v23414_v39 = vpop.f32.mrb[86].mxu1  ;;  %v19882_v49 = vld [vmem:[%s26194_s3 + $0x5ac] ss:$16 sps:$4 sm:$0xff]  }
 0x6e8   :  { %15405 = vmatprep.mubr.msk.bf16.mxu0 %vm1564_vm5, %v19876_v46  ;;  %26506 = vst [vmem:[#allocation94_spill] sm:$0xff] %v23414_v39  ;;  %v23419_v37 = vpop.f32.mrb[87].mxu1  ;;  %v19880_v46 = vld [vmem:[%s26194_s3 + $0x5a8] ss:$16 sps:$4 sm:$0xff]  }
 0x6e9   :  { %26507 = vst [vmem:[#allocation95_spill] sm:$0xff] %v23419_v37  ;;  %v26512_v39 = vld [vmem:[#allocation45_spill] sm:$0xff]  ;;  %v26513_v24 = vld [vmem:[#allocation46_spill] sm:$0xff] }
 0x6ea   :  { %v16555_v0 = vadd.f32 %v26513_v24, %v26512_v39  ;;  %v26518_v24 = vld [vmem:[#allocation51_spill] sm:$0xff] }
 0x6ef   :  { %4537 = vmatmul.mubr.bf16.gmra.mrb[28].mxu0 %v19874_v57  ;;  %v19894_v57 = vld [vmem:[%s26194_s3 + $0x5ec] ss:$16 sps:$4 sm:$0xff]  }
 0x6f0   :  { %15406 = vmatprep.mubr.msk.bf16.mxu0 %vm1564_vm5, %v19882_v49  ;;  %v19892_v49 = vld [vmem:[%s26194_s3 + $0x5e8] ss:$16 sps:$4 sm:$0xff]  }
 0x6f7   :  { %4545 = vmatmul.mubr.bf16.gmra.mrb[32].mxu0 %v19880_v46  ;;  %v16549_v46 = vadd.f32 %v26509_v13, %v26508_v55  ;;  %v23458_v55 = vadd.f32 %v16555_v0, %v23210_v23  ;;  %v26519_v0 = vld [vmem:[#allocation52_spill] sm:$0xff]  ;;  %v26520_v23 = vld [vmem:[#allocation53_spill] sm:$0xff] }
 0x6f8   :  { %15407 = vmatprep.mubr.msk.bf16.mxu0 %vm1564_vm5, %v19888_v30  ;;  %v23443_v30 = vadd.f32 %v23196_v4, %v23200_v20  ;;  %v26514_v4 = vld [vmem:[#allocation47_spill] sm:$0xff]  ;;  %v26515_v20 = vld [vmem:[#allocation48_spill] sm:$0xff] }
 0x6f9   :  { %v23446_v41 = vadd.f32 %v16549_v46, %v23204_v19  ;;  %v16558_v19 = vadd.f32 %v26515_v20, %v26514_v4  ;;  %v26517_v46 = vld [vmem:[#allocation50_spill] sm:$0xff] }
 0x6ff   :  { %4553 = vmatmul.mubr.bf16.gmra.mrb[36].mxu0 %v19886_v36 }
 0x700   :  { %15408 = vmatprep.mubr.msk.bf16.mxu0 %vm1564_vm5, %v19894_v57  ;;  %v26511_v57 = vld [vmem:[#allocation44_spill] sm:$0xff] }
 0x701   :  { %v16552_v37 = vadd.f32 %v26511_v57, %v26510_v15  ;;  %v23467_v15 = vadd.f32 %v16558_v19, %v23212_v58  ;;  %v26521_v57 = vld [vmem:[#allocation54_spill] sm:$0xff]  ;;  %v26542_v58 = vld [vmem:[#allocation67_spill] sm:$0xff] }
 0x702   :  { %v16567_v13 = vadd.f32 %v26521_v57, %v26520_v23  ;;  %v26527_v23 = vld [vmem:[#allocation60_spill] sm:$0xff] }
 0x703   :  { %v23455_v52 = vadd.f32 %v16552_v37, %v23207_v45  ;;  %v16564_v45 = vadd.f32 %v26519_v0, %v26518_v24  ;;  %v19924_v24 = vld [vmem:[%s26196_s5 + $0x50] sm:$0xff]  }
 0x704   :  { %v23482_v20 = vadd.f32 %v16567_v13, %v23224_v50  ;;  %17536 = vmatprep.subr.bf16.mxu0 %v19924_v24  ;;  %v19925_v13 = vld [vmem:[%s26196_s5 + $0x58] sm:$0xff]  }
 0x705   :  { %v23479_v4 = vadd.f32 %v16564_v45, %v23221_v60  ;;  %17537 = vmatpush3.bf16.msra.mxu0 %v19924_v24  ;;  %v26526_v45 = vld [vmem:[#allocation59_spill] sm:$0xff]  ;;  %v26531_v24 = vld [vmem:[#allocation64_spill] sm:$0xff] }
 0x706   :  { %v16576_v57 = vadd.f32 %v26527_v23, %v26526_v45  ;;  %17538 = vmatprep.subr.bf16.mxu0 %v19925_v13  ;;  %v16585_v23 = vadd.f32 %v23168_v48, %v23158_v2 }
 0x707   :  { %4561 = vmatmul.mubr.bf16.gmra.mrb[40].mxu0 %v19892_v49  ;;  %v26516_v49 = vld [vmem:[#allocation49_spill] sm:$0xff] }
 0x708   :  { %v16561_v36 = vadd.f32 %v26517_v46, %v26516_v49  ;;  %v26524_v49 = vld [vmem:[#allocation57_spill] sm:$0xff]  ;;  %v26525_v46 = vld [vmem:[#allocation58_spill] sm:$0xff] }
 0x709   :  { %v16573_v37 = vadd.f32 %v26525_v46, %v26524_v49  ;;  %17539 = vmatpush3.bf16.msra.mxu0 %v19925_v13  ;;  %v26530_v46 = vld [vmem:[#allocation63_spill] sm:$0xff]  ;;  %v16588_v13 = vadd.f32 %v23185_v51, %v23175_v11 }
 0x70a   :  { %v23470_v39 = vadd.f32 %v16561_v36, %v23216_v34  ;;  %v26522_v34 = vld [vmem:[#allocation55_spill] sm:$0xff]  ;;  %v26523_v36 = vld [vmem:[#allocation56_spill] sm:$0xff]  ;;  %v16582_v45 = vadd.f32 %v26531_v24, %v26530_v46  ;;  %v23568_v46 = vadd.f32 %v23336_v26, %v23333_v10  ;;  %v23572_v24 = vadd.f32 %v23340_v7, %v23338_v62 }
 0x70b   :  { %v16570_v19 = vadd.f32 %v26523_v36, %v26522_v34  ;;  %v23497_v60 = vadd.f32 %v16573_v37, %v23232_v31  ;;  %v26528_v34 = vld [vmem:[#allocation61_spill] sm:$0xff]  ;;  %v26529_v36 = vld [vmem:[#allocation62_spill] sm:$0xff]  ;;  %v23514_v31 = vadd.f32 %v16576_v57, %v23237_v25  ;;  %v16591_v25 = vadd.f32 %v23198_v44, %v23194_v1 }
 0x70c   :  { %v16579_v49 = vadd.f32 %v26529_v36, %v26528_v34  ;;  %v23534_v57 = vadd.f32 %v16585_v23, %v23248_v54  ;;  %v23539_v36 = vadd.f32 %v16588_v13, %v23253_v53  ;;  %v23580_v23 = vadd.f32 %v23354_v35, %v23352_v27  ;;  %v26539_v35 = vld [vmem:[#allocation95_spill] sm:$0xff] }
 0x70d   :  { %v23494_v0 = vadd.f32 %v16570_v19, %v23228_v18  ;;  %v23511_v18 = vld [vmem:[%s26196_s5 + $0x60] sm:$0xff]   ;;  %v23542_v48 = vadd.f32 %v16591_v25, %v23256_v32  ;;  %v23564_v32 = vadd.f32 %v23331_v16, %v23329_v9  ;;  %v23584_v16 = vadd.f32 %v23359_v63, %v23356_v38 }
 0x70e   :  { %v23517_v37 = vadd.f32 %v16579_v49, %v23240_v14  ;;  %17556 = vmatprep.subr.bf16.mxu0 %v23511_v18  ;;  %v23531_v14 = vadd.f32 %v16582_v45, %v23244_v40  ;;  %v23576_v45 = vadd.f32 %v23350_v5, %v23345_v29  ;;  %v23596_v5 = vadd.f32 %v23363_v43, %v23361_v28  ;;  %v26537_v29 = vld [vmem:[#allocation93_spill] sm:$0xff] }
 0x70f   :  { %v23600_v27 = vadd.f32 %v23373_v21, %v23368_v22  ;;  %v23604_v63 = vadd.f32 %v23377_v47, %v23375_v42  ;;  %v23608_v38 = vadd.f32 %v23382_v3, %v23379_v17  ;;  %v23612_v62 = vadd.f32 %v23386_v33, %v23384_v56  ;;  %v26532_v22 = vld [vmem:[#allocation91_spill] sm:$0xff]  ;;  %v26536_v56 = vld [vmem:[#allocation92_spill] sm:$0xff] }
 0x710   :  { %v23616_v28 = vadd.f32 %v23396_v6, %v23391_v8  ;;  %v23620_v21 = vadd.f32 %v23400_v59, %v23398_v61  ;;  %v23624_v42 = vadd.f32 %v26532_v22, %v23402_v12  ;;  %v23636_v6 = vadd.f32 %v26537_v29, %v26536_v56  ;;  %v26538_v8 = vld [vmem:[#allocation94_spill] sm:$0xff]  ;;  %v26540_v59 = vld [vmem:[#allocation65_spill] sm:$0xff] }
 0x711   :  { %v23640_v61 = vadd.f32 %v26539_v35, %v26538_v8  ;;  %v26541_v22 = vld [vmem:[#allocation66_spill] sm:$0xff] }
 0x76a   :  { %v23546_v11 = vpop.f32.mrb[88].mxu1 }
 0x76b   :  { %v23548_v51 = vpop.f32.mrb[89].mxu1 }
 0x76c   :  { %v23550_v1 = vpop.f32.mrb[90].mxu1 }
 0x76d   :  { %v23552_v44 = vpop.f32.mrb[91].mxu1 }
 0x77a   :  { %v23554_v40 = vpop.f32.mrb[92].mxu1 }
 0x77b   :  { %v23556_v54 = vpop.f32.mrb[93].mxu1 }
 0x77c   :  { %v23558_v53 = vpop.f32.mrb[94].mxu1 }
 0x77d   :  { %v23560_v49 = vpop.f32.mrb[95].mxu1 }
 0x78a   :  { %v23586_v9 = vpop.f32.mrb[96].mxu1 }
 0x78b   :  { %v23588_v10 = vpop.f32.mrb[97].mxu1 }
 0x78c   :  { %v23590_v26 = vpop.f32.mrb[98].mxu1 }
 0x78d   :  { %v23592_v7 = vpop.f32.mrb[99].mxu1 }
 0x79a   :  { %v23626_v43 = vpop.f32.mrb[100].mxu1 }
 0x79b   :  { %v23628_v3 = vpop.f32.mrb[101].mxu1 }
 0x79c   :  { %26533 = vst [vmem:[#allocation41_spill] sm:$0xff] %v23628_v3  ;;  %v23630_v17 = vpop.f32.mrb[102].mxu1 }
 0x79d   :  { %26534 = vst [vmem:[#allocation42_spill] sm:$0xff] %v23630_v17  ;;  %v23632_v33 = vpop.f32.mrb[103].mxu1  ;;  %v26543_v17 = vld [vmem:[#allocation68_spill] sm:$0xff] }
 0x79e   :  { %26535 = vst [vmem:[#allocation43_spill] sm:$0xff] %v23632_v33 }
 0x7a2   :  { %v4506_v47 = vpop.f32.mrb[12].mxu0 }
 0x7a3   :  { %v4507_v12 = vadd.f32 %v26540_v59, %v4506_v47  ;;  %v4508_v13 = vpop.f32.mrb[13].mxu0  ;;  %v19927_v47 = vld [vmem:[%s26196_s5 + $0x68] sm:$0xff]  }
 0x7a4   :  { %v4509_v25 = vpop.f32.mrb[14].mxu0 }
 0x7a5   :  { %v4510_v2 = vadd.f32 %v26541_v22, %v4509_v25  ;;  %v4511_v34 = vpop.f32.mrb[15].mxu0  ;;  %v26547_v25 = vld [vmem:[#allocation71_spill] sm:$0xff] }
 0x7a7   :  { %v4573_v19 = vpack.c.bf16 %v4510_v2, %v4507_v12 }
 0x7a9   :  { %17540 = vmatprep.mubr.msk.bf16.mxu0 %vm813_vm3, %v4573_v19  ;;  %v26544_v19 = vld [vmem:[#allocation69_spill] sm:$0xff] }
 0x7aa   :  { %v4514_v50 = vpop.f32.mrb[16].mxu0 }
 0x7ab   :  { %v4515_v33 = vadd.f32 %v26542_v58, %v4514_v50  ;;  %v4516_v56 = vpop.f32.mrb[17].mxu0  ;;  %v26545_v50 = vld [vmem:[#allocation70_spill] sm:$0xff] }
 0x7ac   :  { %v4517_v29 = vpop.f32.mrb[18].mxu0 }
 0x7ad   :  { %v4518_v3 = vadd.f32 %v26543_v17, %v4517_v29  ;;  %v4519_v8 = vpop.f32.mrb[19].mxu0  ;;  %v26546_v17 = vld [vmem:[#allocation12_spill] sm:$0xff] }
 0x7ae   :  { %v26548_v29 = vld [vmem:[#allocation72_spill] sm:$0xff] }
 0x7af   :  { %v4574_v35 = vpack.c.bf16 %v4518_v3, %v4515_v33 }
 0x7b1   :  { %17541 = vmatmul.mubr.msk.bf16.vlgmr.msra.gmra.mrb[188].mxu0 %vm813_vm3, %v4574_v35 }
 0x7b2   :  { %17557 = vmatpush3.bf16.msra.mxu0 %v23511_v18  ;;  %v4522_v34 = vpop.f32.mrb[20].mxu0 }
 0x7b3   :  { %17558 = vmatprep.subr.bf16.mxu0 %v19927_v47  ;;  %v4523_v2 = vadd.f32 %v26544_v19, %v4522_v34  ;;  %v4524_v59 = vpop.f32.mrb[21].mxu0 }
 0x7b4   :  { %v4525_v58 = vpop.f32.mrb[22].mxu0  ;;  %v26549_v59 = vld [vmem:[#allocation73_spill] sm:$0xff] }
 0x7b5   :  { %v4526_v12 = vadd.f32 %v26545_v50, %v4525_v58  ;;  %v4527_v13 = vpop.f32.mrb[23].mxu0 }
 0x7b6   :  { %17559 = vmatpush3.bf16.msra.mxu0 %v19927_v47  ;;  %v26550_v13 = vld [vmem:[#allocation74_spill] sm:$0xff] }
 0x7b7   :  { %16602 = vmatprep.subr.bf16.mxu0 %v26546_v17  ;;  %v4575_v3 = vpack.c.bf16 %v4526_v12, %v4523_v2 }
 0x7b9   :  { %17544 = vmatprep.mubr.msk.bf16.mxu0 %vm813_vm3, %v4575_v3 }
 0x7ba   :  { %v4530_v33 = vpop.f32.mrb[24].mxu0 }
 0x7bb   :  { %v4531_v22 = vadd.f32 %v26547_v25, %v4530_v33  ;;  %v4532_v56 = vpop.f32.mrb[25].mxu0  ;;  %v26551_v33 = vld [vmem:[#allocation75_spill] sm:$0xff] }
 0x7bc   :  { %v4533_v18 = vpop.f32.mrb[26].mxu0 }
 0x7bd   :  { %v4534_v8 = vadd.f32 %v26548_v29, %v4533_v18  ;;  %v4535_v35 = vpop.f32.mrb[27].mxu0  ;;  %v26552_v29 = vld [vmem:[#allocation76_spill] sm:$0xff] }
 0x7bf   :  { %v4576_v34 = vpack.c.bf16 %v4534_v8, %v4531_v22 }
 0x7c1   :  { %17545 = vmatmul.mubr.msk.bf16.gmra.mrb[192].mxu0 %vm813_vm3, %v4576_v34 }
 0x7c2   :  { %v4538_v19 = vpop.f32.mrb[28].mxu0 }
 0x7c3   :  { %v4539_v58 = vadd.f32 %v26549_v59, %v4538_v19  ;;  %v4540_v47 = vpop.f32.mrb[29].mxu0  ;;  %v26553_v59 = vld [vmem:[#allocation77_spill] sm:$0xff] }
 0x7c4   :  { %v4541_v50 = vpop.f32.mrb[30].mxu0 }
 0x7c5   :  { %v4542_v2 = vadd.f32 %v26550_v13, %v4541_v50  ;;  %v4543_v12 = vpop.f32.mrb[31].mxu0 }
 0x7c7   :  { %v4577_v17 = vpack.c.bf16 %v4542_v2, %v4539_v58  ;;  %v26554_v58 = vld [vmem:[#allocation78_spill] sm:$0xff] }
 0x7c9   :  { %17548 = vmatprep.mubr.msk.bf16.mxu0 %vm813_vm3, %v4577_v17 }
 0x7ca   :  { %v4546_v3 = vpop.f32.mrb[32].mxu0 }
 0x7cb   :  { %v4547_v25 = vadd.f32 %v26551_v33, %v4546_v3  ;;  %v4548_v56 = vpop.f32.mrb[33].mxu0  ;;  %v26555_v3 = vld [vmem:[#allocation79_spill] sm:$0xff] }
 0x7cc   :  { %v4549_v18 = vpop.f32.mrb[34].mxu0 }
 0x7cd   :  { %v4550_v22 = vadd.f32 %v26552_v29, %v4549_v18  ;;  %v4551_v8 = vpop.f32.mrb[35].mxu0  ;;  %v26556_v29 = vld [vmem:[#allocation80_spill] sm:$0xff] }
 0x7cf   :  { %v4578_v35 = vpack.c.bf16 %v4550_v22, %v4547_v25 }
 0x7d1   :  { %17549 = vmatmul.mubr.msk.bf16.gmra.mrb[196].mxu0 %vm813_vm3, %v4578_v35  ;;  %v26557_v35 = vpack.c.bf16 %v23446_v41, %v23443_v30  ;;  %v26564_v41 = vpack.c.bf16 %v23482_v20, %v23479_v4  ;;  %v26566_v30 = vpack.c.bf16 %v23497_v60, %v23494_v0  ;;  %v26571_v4 = vld [vmem:[#allocation28_spill] sm:$0xff]  ;;  %v26572_v20 = vpack.c.bf16 %v23534_v57, %v23531_v14  ;;  %v26573_v0 = vld [vmem:[#allocation29_spill] sm:$0xff]  ;;  %v26574_v60 = vld [vmem:[#allocation30_spill] sm:$0xff] }
 0x7d2   :  { %v4554_v34 = vpop.f32.mrb[36].mxu0  ;;  %v26578_v14 = vld [vmem:[#allocation33_spill] sm:$0xff] }
 0x7d3   :  { %v4556_v19 = vpop.f32.mrb[37].mxu0  ;;  %v4555_v47 = vadd.f32 %v26553_v59, %v4554_v34  ;;  %v26558_v34 = vpack.c.bf16 %v23458_v55, %v23455_v52  ;;  %v26560_v59 = vpack.c.bf16 %v23470_v39, %v23467_v15  ;;  %v26565_v52 = vld [vmem:[#allocation17_spill] sm:$0xff]  ;;  %v26568_v15 = vld [vmem:[#allocation26_spill] sm:$0xff]  ;;  %v26569_v39 = vld [vmem:[#allocation27_spill] sm:$0xff] }
 0x7d4   :  { %v4557_v50 = vpop.f32.mrb[38].mxu0  ;;  %v26559_v19 = vld [vmem:[#allocation11_spill] sm:$0xff]  ;;  %v26567_v55 = vld [vmem:[#allocation25_spill] sm:$0xff] }
 0x7d5   :  { %v4559_v13 = vpop.f32.mrb[39].mxu0  ;;  %v4558_v2 = vadd.f32 %v26554_v58, %v4557_v50  ;;  %v26562_v50 = vld [vmem:[#allocation15_spill] sm:$0xff]  ;;  %v26570_v58 = vpack.c.bf16 %v23517_v37, %v23514_v31  ;;  %v26576_v31 = vpack.c.bf16 %v23542_v48, %v23539_v36  ;;  %v26577_v37 = vld [vmem:[#allocation32_spill] sm:$0xff] }
 0x7d6   :  { %v26563_v13 = vld [vmem:[#allocation16_spill] sm:$0xff]  ;;  %v19936_v48 = vld [vmem:[%s26194_s3 + $0x744] ss:$16 sps:$4 sm:$0xff]  }
 0x7d7   :  { %v4579_v12 = vpack.c.bf16 %v4558_v2, %v4555_v47  ;;  %v26561_v47 = vld [vmem:[#allocation13_spill] sm:$0xff] }
 0x7d8   :  { %v19930_v2 = vld [vmem:[%s26194_s3 + $0x704] ss:$16 sps:$4 sm:$0xff]   ;;  %v19928_v57 = vld [vmem:[%s26194_s3 + $0x700] ss:$16 sps:$4 sm:$0xff]  }
 0x7d9   :  { %17552 = vmatprep.mubr.msk.bf16.mxu0 %vm813_vm3, %v4579_v12  ;;  %v26575_v12 = vld [vmem:[#allocation31_spill] sm:$0xff] }
 0x7da   :  { %v4562_v17 = vpop.f32.mrb[40].mxu0  ;;  %v19931_v36 = vld [vmem:[%s26194_s3 + $0x720] ss:$16 sps:$4 sm:$0xff]  }
 0x7db   :  { %v4563_v33 = vadd.f32 %v26555_v3, %v4562_v17  ;;  %v4564_v56 = vpop.f32.mrb[41].mxu0  ;;  %v26579_v17 = vld [vmem:[#allocation34_spill] sm:$0xff]  ;;  %v19933_v3 = vld [vmem:[%s26194_s3 + $0x724] ss:$16 sps:$4 sm:$0xff]  }
 0x7dc   :  { %v4565_v18 = vpop.f32.mrb[42].mxu0  ;;  %v19939_v56 = vld [vmem:[%s26194_s3 + $0x764] ss:$16 sps:$4 sm:$0xff]  }
 0x7dd   :  { %v4566_v25 = vadd.f32 %v26556_v29, %v4565_v18  ;;  %v4567_v22 = vpop.f32.mrb[43].mxu0  ;;  %v19937_v18 = vld [vmem:[%s26194_s3 + $0x760] ss:$16 sps:$4 sm:$0xff]   ;;  %v19942_v29 = vld [vmem:[%s26194_s3 + $0x784] ss:$16 sps:$4 sm:$0xff]  }
 0x7de   :  { %v19945_v22 = vld [vmem:[%s26194_s3 + $0x7a4] ss:$16 sps:$4 sm:$0xff]  }
 0x7df   :  { %v4580_v8 = vpack.c.bf16 %v4566_v25, %v4563_v33  ;;  %v19934_v33 = vld [vmem:[%s26194_s3 + $0x740] ss:$16 sps:$4 sm:$0xff]  }
 0x7e0   :  { %v19940_v25 = vld [vmem:[%s26194_s3 + $0x780] ss:$16 sps:$4 sm:$0xff]  }
 0x7e1   :  { %17553 = vmatmul.mubr.msk.bf16.gmra.mrb[200].mxu0 %vm813_vm3, %v4580_v8  ;;  %v19943_v8 = vld [vmem:[%s26194_s3 + $0x7a0] ss:$16 sps:$4 sm:$0xff]  }
 0x7e2   :  { %17560 = vmatprep.mubr.msk.bf16.mxu0 %vm813_vm3, %v26557_v35  ;;  %v19948_v35 = vld [vmem:[%s26194_s3 + $0x7c4] ss:$16 sps:$4 sm:$0xff]  }
 0x7e9   :  { %17561 = vmatmul.mubr.msk.bf16.vlgmr.msra.gmra.mrb[188].mxu0 %vm813_vm3, %v26558_v34  ;;  %v19946_v34 = vld [vmem:[%s26194_s3 + $0x7c0] ss:$16 sps:$4 sm:$0xff]  }
 0x7ea   :  { %16603 = vmatpush3.bf16.msra.mxu0 %v26559_v19  ;;  %17564 = vmatprep.mubr.msk.bf16.mxu0 %vm813_vm3, %v26560_v59  ;;  %v19951_v19 = vld [vmem:[%s26194_s3 + $0x7e4] ss:$16 sps:$4 sm:$0xff]   ;;  %v19949_v59 = vld [vmem:[%s26194_s3 + $0x7e0] ss:$16 sps:$4 sm:$0xff]  }
 0x7eb   :  { %16604 = vmatprep.subr.bf16.mxu0 %v26561_v47  ;;  %v19952_v47 = vld [vmem:[%s26196_s5 + $0x70] sm:$0xff]  }
 0x7ee   :  { %16605 = vmatpush3.bf16.msra.mxu0 %v26562_v50  ;;  %v19953_v50 = vld [vmem:[%s26196_s5 + $0x78] sm:$0xff]  }
 0x7ef   :  { %16606 = vmatprep.subr.bf16.mxu0 %v26563_v13  ;;  %v26580_v13 = vmov 0  }
 0x7f1   :  { %17565 = vmatmul.mubr.msk.bf16.gmra.mrb[192].mxu0 %vm813_vm3, %v26564_v41 }
 0x7f2   :  { %16607 = vmatpush3.bf16.msra.mxu0 %v26565_v52  ;;  %17568 = vmatprep.mubr.msk.bf16.mxu0 %vm813_vm3, %v26566_v30 }
 0x7f3   :  { %16608 = vmatprep.subr.bf16.mxu0 %v26567_v55 }
 0x7f6   :  { %16609 = vmatpush3.bf16.msra.mxu0 %v26568_v15 }
 0x7f7   :  { %16610 = vmatprep.subr.bf16.mxu0 %v26569_v39  ;;  %v26581_v39 = vld [vmem:[#allocation81_spill] sm:$0xff] }
 0x7f9   :  { %17569 = vmatmul.mubr.msk.bf16.gmra.mrb[196].mxu0 %vm813_vm3, %v26570_v58 }
 0x7fa   :  { %16611 = vmatpush3.bf16.msra.mxu0 %v26571_v4  ;;  %17572 = vmatprep.mubr.msk.bf16.mxu0 %vm813_vm3, %v26572_v20  ;;  %v26582_v20 = vld [vmem:[#allocation82_spill] sm:$0xff] }
 0x7fb   :  { %16612 = vmatprep.subr.bf16.mxu0 %v26573_v0 }
 0x7fe   :  { %16613 = vmatpush3.bf16.msra.mxu0 %v26574_v60 }
 0x7ff   :  { %16614 = vmatprep.subr.bf16.mxu0 %v26575_v12 }
 0x801   :  { %17573 = vmatmul.mubr.msk.bf16.gmra.mrb[200].mxu0 %vm813_vm3, %v26576_v31 }
 0x802   :  { %16615 = vmatpush3.bf16.msra.mxu0 %v26577_v37  ;;  %5533 = vmatprep.mubr.bf16.mxu0 %v19930_v2 }
 0x803   :  { %16616 = vmatprep.subr.bf16.mxu0 %v26578_v14 }
 0x806   :  { %16617 = vmatpush3.bf16.msra.mxu0 %v26579_v17 }
 0x807   :  { %17576 = vmatprep.subr.bf16.mxu0 %v19952_v47 }
 0x809   :  { %5534 = vmatmul.mubr.bf16.vlgmr.msra.gmra.mrb[44].mxu0 %v19928_v57  ;;  %v26583_v57 = vld [vmem:[#allocation35_spill] sm:$0xff] }
 0x80a   :  { %5541 = vmatprep.mubr.bf16.mxu0 %v19933_v3  ;;  %17577 = vmatpush3.bf16.msra.mxu0 %v19952_v47 }
 0x80b   :  { %17578 = vmatprep.subr.bf16.mxu0 %v19953_v50 }
 0x80e   :  { %17579 = vmatpush3.bf16.msra.mxu0 %v19953_v50  ;;  %v26588_v50 = vld [vmem:[#allocation19_spill] sm:$0xff] }
 0x80f   :  { %6161 = vmatprep.subr.bf16.mxu0 %v26580_v13 }
 0x811   :  { %5542 = vmatmul.mubr.bf16.gmra.mrb[48].mxu0 %v19931_v36  ;;  %v26584_v36 = vld [vmem:[#allocation36_spill] sm:$0xff] }
 0x812   :  { %5549 = vmatprep.mubr.bf16.mxu0 %v19936_v48 }
 0x819   :  { %5550 = vmatmul.mubr.bf16.gmra.mrb[52].mxu0 %v19934_v33 }
 0x81a   :  { %5557 = vmatprep.mubr.bf16.mxu0 %v19939_v56 }
 0x821   :  { %5558 = vmatmul.mubr.bf16.gmra.mrb[56].mxu0 %v19937_v18 }
 0x822   :  { %5565 = vmatprep.mubr.bf16.mxu0 %v19942_v29 }
 0x829   :  { %5566 = vmatmul.mubr.bf16.gmra.mrb[60].mxu0 %v19940_v25 }
 0x82a   :  { %5573 = vmatprep.mubr.bf16.mxu0 %v19945_v22  ;;  %v26585_v22 = vld [vmem:[#allocation18_spill] sm:$0xff] }
 0x831   :  { %5574 = vmatmul.mubr.bf16.gmra.mrb[64].mxu0 %v19943_v8 }
 0x832   :  { %5581 = vmatprep.mubr.bf16.mxu0 %v19948_v35  ;;  %v26586_v35 = vld [vmem:[#allocation83_spill] sm:$0xff] }
 0x839   :  { %5582 = vmatmul.mubr.bf16.gmra.mrb[68].mxu0 %v19946_v34 }
 0x83a   :  { %5589 = vmatprep.mubr.bf16.mxu0 %v19951_v19 }
 0x841   :  { %5590 = vmatmul.mubr.bf16.gmra.mrb[72].mxu0 %v19949_v59  ;;  %v26587_v59 = vld [vmem:[#allocation84_spill] sm:$0xff] }
 0x8dc   :  { %v16618_v41 = vpop.f32.mrb[44].mxu0 }
 0x8dd   :  { %v16619_v52 = vpop.f32.mrb[45].mxu0 }
 0x8de   :  { %v16620_v30 = vadd.f32 %v16619_v52, %v16618_v41  ;;  %v16621_v55 = vpop.f32.mrb[46].mxu0 }
 0x8df   :  { %v16622_v15 = vpop.f32.mrb[47].mxu0 }
 0x8e0   :  { %v5633_v58 = vadd.f32 %v16620_v30, %v26581_v39  ;;  %v16623_v4 = vadd.f32 %v16622_v15, %v16621_v55  ;;  %v26589_v39 = vld [vmem:[#allocation20_spill] sm:$0xff] }
 0x8e2   :  { %v5636_v0 = vadd.f32 %v16623_v4, %v26582_v20  ;;  %v26590_v4 = vld [vmem:[#allocation38_spill] sm:$0xff] }
 0x8e4   :  { %v5699_v60 = vpack.c.bf16 %v5636_v0, %v5633_v58  ;;  %v16624_v2 = vpop.f32.mrb[48].mxu0 }
 0x8e5   :  { %v16625_v12 = vpop.f32.mrb[49].mxu0 }
 0x8e6   :  { %v16626_v31 = vadd.f32 %v16625_v12, %v16624_v2  ;;  %v16627_v37 = vpop.f32.mrb[50].mxu0  ;;  %17580 = vmatprep.mubr.msk.bf16.mxu0 %vm813_vm3, %v5699_v60  ;;  %v26591_v60 = vld [vmem:[#allocation37_spill] sm:$0xff] }
 0x8e7   :  { %v16628_v14 = vpop.f32.mrb[51].mxu0  ;;  %v26592_v12 = vld [vmem:[#allocation21_spill] sm:$0xff] }
 0x8e8   :  { %v5641_v17 = vadd.f32 %v16626_v31, %v26583_v57  ;;  %v16629_v3 = vadd.f32 %v16628_v14, %v16627_v37 }
 0x8ea   :  { %v5644_v48 = vadd.f32 %v16629_v3, %v26584_v36  ;;  %v26593_v3 = vld [vmem:[#allocation22_spill] sm:$0xff] }
 0x8ec   :  { %v5700_v33 = vpack.c.bf16 %v5644_v48, %v5641_v17  ;;  %v16630_v56 = vpop.f32.mrb[52].mxu0  ;;  %v26594_v48 = vld [vmem:[#allocation85_spill] sm:$0xff] }
 0x8ed   :  { %v16631_v18 = vpop.f32.mrb[53].mxu0 }
 0x8ee   :  { %17581 = vmatmul.mubr.msk.bf16.vlgmr.msra.gmra.mrb[188].mxu0 %vm813_vm3, %v5700_v33  ;;  %v16632_v29 = vadd.f32 %v16631_v18, %v16630_v56  ;;  %v16633_v25 = vpop.f32.mrb[54].mxu0  ;;  %v26595_v18 = vld [vmem:[#allocation86_spill] sm:$0xff] }
 0x8ef   :  { %6162 = vmatpush1.bf16.msra.mxu0 %v26585_v22  ;;  %v16634_v8 = vpop.f32.mrb[55].mxu0 }
 0x8f0   :  { %6163 = vmatprep.subr.bf16.mxu0 %v26580_v13  ;;  %v5649_v34 = vadd.f32 %v16632_v29, %v26586_v35  ;;  %v16635_v19 = vadd.f32 %v16634_v8, %v16633_v25  ;;  %v26596_v25 = vld [vmem:[#allocation23_spill] sm:$0xff] }
 0x8f2   :  { %v5652_v47 = vadd.f32 %v16635_v19, %v26587_v59  ;;  %v26597_v59 = vld [vmem:[#allocation24_spill] sm:$0xff] }
 0x8f3   :  { %6164 = vmatpush1.bf16.msra.mxu0 %v26588_v50  ;;  %v26598_v50 = vld [vmem:[#allocation39_spill] sm:$0xff] }
 0x8f4   :  { %6165 = vmatprep.subr.bf16.mxu0 %v26580_v13  ;;  %v5701_v41 = vpack.c.bf16 %v5652_v47, %v5649_v34  ;;  %v16636_v52 = vpop.f32.mrb[56].mxu0 }
 0x8f5   :  { %v16637_v30 = vpop.f32.mrb[57].mxu0 }
 0x8f6   :  { %v16638_v55 = vadd.f32 %v16637_v30, %v16636_v52  ;;  %v16639_v15 = vpop.f32.mrb[58].mxu0  ;;  %17584 = vmatprep.mubr.msk.bf16.mxu0 %vm813_vm3, %v5701_v41  ;;  %v26599_v30 = vld [vmem:[#allocation40_spill] sm:$0xff] }
 0x8f7   :  { %6166 = vmatpush1.bf16.msra.mxu0 %v26589_v39  ;;  %v16640_v58 = vpop.f32.mrb[59].mxu0 }
 0x8f8   :  { %6167 = vmatprep.subr.bf16.mxu0 %v26580_v13  ;;  %v5657_v20 = vadd.f32 %v16638_v55, %v26590_v4  ;;  %v16641_v0 = vadd.f32 %v16640_v58, %v16639_v15  ;;  %v26600_v15 = vld [vmem:[#allocation5_spill] sm:$0xff] }
 0x8fa   :  { %v5660_v2 = vadd.f32 %v16641_v0, %v26591_v60  ;;  %v26601_v60 = vld [vmem:[#allocation7_spill] sm:$0xff] }
 0x8fb   :  { %6168 = vmatpush1.bf16.msra.mxu0 %v26592_v12  ;;  %v26602_v12 = vld [vmem:[#allocation87_spill] sm:$0xff] }
 0x8fc   :  { %6169 = vmatprep.subr.bf16.mxu0 %v26580_v13  ;;  %v5702_v31 = vpack.c.bf16 %v5660_v2, %v5657_v20  ;;  %v16642_v37 = vpop.f32.mrb[60].mxu0 }
 0x8fd   :  { %v16643_v14 = vpop.f32.mrb[61].mxu0 }
 0x8fe   :  { %v16644_v57 = vadd.f32 %v16643_v14, %v16642_v37  ;;  %v16645_v17 = vpop.f32.mrb[62].mxu0  ;;  %17585 = vmatmul.mubr.msk.bf16.gmra.mrb[192].mxu0 %vm813_vm3, %v5702_v31  ;;  %v26603_v14 = vld [vmem:[#allocation88_spill] sm:$0xff] }
 0x8ff   :  { %6170 = vmatpush1.bf16.msra.mxu0 %v26593_v3  ;;  %v16646_v36 = vpop.f32.mrb[63].mxu0 }
 0x900   :  { %6171 = vmatprep.subr.bf16.mxu0 %v26580_v13  ;;  %v5665_v33 = vadd.f32 %v16644_v57, %v26594_v48  ;;  %v16647_v56 = vadd.f32 %v16646_v36, %v16645_v17  ;;  %v26604_v17 = vld [vmem:[#allocation8_spill] sm:$0xff] }
 0x902   :  { %v5668_v29 = vadd.f32 %v16647_v56, %v26595_v18  ;;  %v26605_v18 = vld [vmem:[#allocation9_spill] sm:$0xff] }
 0x903   :  { %6172 = vmatpush1.bf16.msra.mxu0 %v26596_v25  ;;  %v26606_v25 = vld [vmem:[#allocation89_spill] sm:$0xff] }
 0x904   :  { %6173 = vmatprep.subr.bf16.mxu0 %v26580_v13  ;;  %v5703_v22 = vpack.c.bf16 %v5668_v29, %v5665_v33  ;;  %v16648_v8 = vpop.f32.mrb[64].mxu0 }
 0x905   :  { %v16649_v35 = vpop.f32.mrb[65].mxu0 }
 0x906   :  { %v16650_v34 = vadd.f32 %v16649_v35, %v16648_v8  ;;  %v16651_v19 = vpop.f32.mrb[66].mxu0  ;;  %17588 = vmatprep.mubr.msk.bf16.mxu0 %vm813_vm3, %v5703_v22  ;;  %v26607_v35 = vld [vmem:[#allocation90_spill] sm:$0xff] }
 0x907   :  { %6174 = vmatpush1.bf16.msra.mxu0 %v26597_v59  ;;  %v16652_v47 = vpop.f32.mrb[67].mxu0  ;;  %v19956_v59 = vld [vmem:[%s26194_s3 + $0x80c] ss:$16 sps:$4 sm:$0xff]  }
 0x908   :  { %6175 = vmatprep.subr.bf16.mxu0 %v26580_v13  ;;  %v5673_v41 = vadd.f32 %v16650_v34, %v26598_v50  ;;  %v16653_v52 = vadd.f32 %v16652_v47, %v16651_v19  ;;  %v26608_v19 = vld [vmem:[#allocation14_spill] sm:$0xff] }
 0x909   :  { %v26609_v50 = vld [vmem:[#allocation6_spill] sm:$0xff] }
 0x90a   :  { %v5676_v55 = vadd.f32 %v16653_v52, %v26599_v30  ;;  %v19959_v52 = vld [vmem:[%s26194_s3 + $0x82c] ss:$16 sps:$4 sm:$0xff]  }
 0x90b   :  { %6176 = vmatpush1.bf16.msra.mxu0 %v26600_v15  ;;  %v19962_v30 = vld [vmem:[%s26194_s3 + $0x84c] ss:$16 sps:$4 sm:$0xff]  }
 0x90c   :  { %6177 = vmatprep.subr.bf16.mxu0 %v26580_v13  ;;  %v5704_v39 = vpack.c.bf16 %v5676_v55, %v5673_v41  ;;  %v16654_v58 = vpop.f32.mrb[68].mxu0  ;;  %v19954_v41 = vld [vmem:[%s26194_s3 + $0x808] ss:$16 sps:$4 sm:$0xff]   ;;  %v19965_v15 = vld [vmem:[%s26194_s3 + $0x86c] ss:$16 sps:$4 sm:$0xff]  }
 0x90d   :  { %v16655_v4 = vpop.f32.mrb[69].mxu0  ;;  %v19960_v55 = vld [vmem:[%s26194_s3 + $0x848] ss:$16 sps:$4 sm:$0xff]  }
 0x90e   :  { %v16656_v20 = vadd.f32 %v16655_v4, %v16654_v58  ;;  %v16657_v0 = vpop.f32.mrb[70].mxu0  ;;  %17589 = vmatmul.mubr.msk.bf16.gmra.mrb[196].mxu0 %vm813_vm3, %v5704_v39  ;;  %v19963_v39 = vld [vmem:[%s26194_s3 + $0x868] ss:$16 sps:$4 sm:$0xff]   ;;  %v19968_v58 = vld [vmem:[%s26194_s3 + $0x88c] ss:$16 sps:$4 sm:$0xff]  }
 0x90f   :  { %6178 = vmatpush1.bf16.msra.mxu0 %v26601_v60  ;;  %v16658_v2 = vpop.f32.mrb[71].mxu0  ;;  %v19966_v4 = vld [vmem:[%s26194_s3 + $0x888] ss:$16 sps:$4 sm:$0xff]   ;;  %v19974_v60 = vld [vmem:[%s26194_s3 + $0x8cc] ss:$16 sps:$4 sm:$0xff]  }
 0x910   :  { %v5681_v31 = vadd.f32 %v16656_v20, %v26602_v12  ;;  %6179 = vmatprep.subr.bf16.mxu0 %v26580_v13  ;;  %v16659_v37 = vadd.f32 %v16658_v2, %v16657_v0  ;;  %v19971_v20 = vld [vmem:[%s26194_s3 + $0x8ac] ss:$16 sps:$4 sm:$0xff]   ;;  %v19969_v0 = vld [vmem:[%s26194_s3 + $0x8a8] ss:$16 sps:$4 sm:$0xff]  }
 0x911   :  { %v19972_v2 = vld [vmem:[%s26194_s3 + $0x8c8] ss:$16 sps:$4 sm:$0xff]   ;;  %v19977_v12 = vld [vmem:[%s26194_s3 + $0x8ec] ss:$16 sps:$4 sm:$0xff]  }
 0x912   :  { %v5684_v57 = vadd.f32 %v16659_v37, %v26603_v14  ;;  %v19978_v37 = vld [vmem:[%s26196_s5 + $0x80] sm:$0xff]   ;;  %v19979_v14 = vld [vmem:[%s26196_s5 + $0x88] sm:$0xff]  }
 0x913   :  { %6180 = vmatpush1.bf16.msra.mxu0 %v26604_v17 }
 0x914   :  { %v5705_v3 = vpack.c.bf16 %v5684_v57, %v5681_v31  ;;  %v16660_v36 = vpop.f32.mrb[72].mxu0  ;;  %6181 = vmatprep.subr.bf16.mxu0 %v26580_v13  ;;  %v19975_v31 = vld [vmem:[%s26194_s3 + $0x8e8] ss:$16 sps:$4 sm:$0xff]  }
 0x915   :  { %v16661_v48 = vpop.f32.mrb[73].mxu0 }
 0x916   :  { %v16662_v33 = vadd.f32 %v16661_v48, %v16660_v36  ;;  %v16663_v56 = vpop.f32.mrb[74].mxu0  ;;  %17592 = vmatprep.mubr.msk.bf16.mxu0 %vm813_vm3, %v5705_v3 }
 0x917   :  { %6182 = vmatpush1.bf16.msra.mxu0 %v26605_v18  ;;  %v16664_v29 = vpop.f32.mrb[75].mxu0 }
 0x918   :  { %v5689_v22 = vadd.f32 %v16662_v33, %v26606_v25  ;;  %v16665_v8 = vadd.f32 %v16664_v29, %v16663_v56  ;;  %6183 = vmatprep.subr.bf16.mxu0 %v26580_v13 }
 0x91a   :  { %v5692_v34 = vadd.f32 %v16665_v8, %v26607_v35 }
 0x91b   :  { %6184 = vmatpush1.bf16.msra.mxu0 %v26608_v19 }
 0x91c   :  { %v5706_v47 = vpack.c.bf16 %v5692_v34, %v5689_v22  ;;  %6185 = vmatprep.subr.bf16.mxu0 %v26580_v13  ;;  %v19957_v13 = vld [vmem:[%s26194_s3 + $0x828] ss:$16 sps:$4 sm:$0xff]  }
 0x91e   :  { %17593 = vmatmul.mubr.msk.bf16.gmra.mrb[200].mxu0 %vm813_vm3, %v5706_v47 }
 0x91f   :  { %6186 = vmatpush1.bf16.msra.mxu0 %v26609_v50  ;;  %15551 = vmatprep.mubr.msk.bf16.mxu0 %vm1564_vm5, %v19956_v59 }
 0x920   :  { %17596 = vmatprep.subr.bf16.mxu0 %v19978_v37 }
 0x926   :  { %6194 = vmatmul.mubr.bf16.vlgmr.msra.gmra.mrb[76].mxu0 %v19954_v41 }
 0x927   :  { %15552 = vmatprep.mubr.msk.bf16.mxu0 %vm1564_vm5, %v19959_v52  ;;  %17597 = vmatpush3.bf16.msra.mxu0 %v19978_v37 }
 0x928   :  { %17598 = vmatprep.subr.bf16.mxu0 %v19979_v14 }
 0x92b   :  { %17599 = vmatpush3.bf16.msra.mxu0 %v19979_v14 }
 0x92e   :  { %6202 = vmatmul.mubr.bf16.gmra.mrb[80].mxu0 %v19957_v13 }
 0x92f   :  { %15553 = vmatprep.mubr.msk.bf16.mxu0 %vm1564_vm5, %v19962_v30 }
 0x936   :  { %6210 = vmatmul.mubr.bf16.gmra.mrb[84].mxu0 %v19960_v55 }
 0x937   :  { %15554 = vmatprep.mubr.msk.bf16.mxu0 %vm1564_vm5, %v19965_v15 }
 0x93e   :  { %6218 = vmatmul.mubr.bf16.gmra.mrb[88].mxu0 %v19963_v39 }
 0x93f   :  { %15555 = vmatprep.mubr.msk.bf16.mxu0 %vm1564_vm5, %v19968_v58 }
 0x946   :  { %6226 = vmatmul.mubr.bf16.gmra.mrb[92].mxu0 %v19966_v4 }
 0x947   :  { %15556 = vmatprep.mubr.msk.bf16.mxu0 %vm1564_vm5, %v19971_v20 }
 0x94e   :  { %6234 = vmatmul.mubr.bf16.gmra.mrb[96].mxu0 %v19969_v0 }
 0x94f   :  { %15557 = vmatprep.mubr.msk.bf16.mxu0 %vm1564_vm5, %v19974_v60 }
 0x956   :  { %6242 = vmatmul.mubr.bf16.gmra.mrb[100].mxu0 %v19972_v2 }
 0x957   :  { %15558 = vmatprep.mubr.msk.bf16.mxu0 %vm1564_vm5, %v19977_v12 }
 0x95e   :  { %6250 = vmatmul.mubr.bf16.gmra.mrb[104].mxu0 %v19975_v31 }
 0x9f9   :  { %v6195_v57 = vpop.f32.mrb[76].mxu0 }
 0x9fa   :  { %v6196_v17 = vadd.f32 %v23564_v32, %v6195_v57  ;;  %v6197_v3 = vpop.f32.mrb[77].mxu0 }
 0x9fb   :  { %v6198_v36 = vpop.f32.mrb[78].mxu0 }
 0x9fc   :  { %v6199_v48 = vadd.f32 %v23568_v46, %v6198_v36  ;;  %v6200_v33 = vpop.f32.mrb[79].mxu0 }
 0x9fe   :  { %v6262_v56 = vpack.c.bf16 %v6199_v48, %v6196_v17 }
 0xa00   :  { %17600 = vmatprep.mubr.msk.bf16.mxu0 %vm813_vm3, %v6262_v56 }
 0xa01   :  { %v6203_v18 = vpop.f32.mrb[80].mxu0 }
 0xa02   :  { %v6204_v29 = vadd.f32 %v23572_v24, %v6203_v18  ;;  %v6205_v25 = vpop.f32.mrb[81].mxu0 }
 0xa03   :  { %v6206_v22 = vpop.f32.mrb[82].mxu0 }
 0xa04   :  { %v6207_v8 = vadd.f32 %v23576_v45, %v6206_v22  ;;  %v6208_v35 = vpop.f32.mrb[83].mxu0 }
 0xa06   :  { %v6263_v34 = vpack.c.bf16 %v6207_v8, %v6204_v29 }
 0xa08   :  { %17601 = vmatmul.mubr.msk.bf16.vlgmr.msra.gmra.mrb[188].mxu0 %vm813_vm3, %v6263_v34 }
 0xa09   :  { %v6211_v32 = vpop.f32.mrb[84].mxu0 }
 0xa0a   :  { %v6212_v19 = vadd.f32 %v23580_v23, %v6211_v32  ;;  %v6213_v59 = vpop.f32.mrb[85].mxu0 }
 0xa0b   :  { %v6214_v46 = vpop.f32.mrb[86].mxu0 }
 0xa0c   :  { %v6215_v47 = vadd.f32 %v23584_v16, %v6214_v46  ;;  %v6216_v50 = vpop.f32.mrb[87].mxu0 }
 0xa0e   :  { %v6264_v41 = vpack.c.bf16 %v6215_v47, %v6212_v19 }
 0xa10   :  { %17604 = vmatprep.mubr.msk.bf16.mxu0 %vm813_vm3, %v6264_v41 }
 0xa11   :  { %v6219_v24 = vpop.f32.mrb[88].mxu0 }
 0xa12   :  { %v6220_v52 = vadd.f32 %v23596_v5, %v6219_v24  ;;  %v6221_v13 = vpop.f32.mrb[89].mxu0 }
 0xa13   :  { %v6222_v45 = vpop.f32.mrb[90].mxu0 }
 0xa14   :  { %v6223_v30 = vadd.f32 %v23600_v27, %v6222_v45  ;;  %v6224_v55 = vpop.f32.mrb[91].mxu0 }
 0xa16   :  { %v6265_v15 = vpack.c.bf16 %v6223_v30, %v6220_v52 }
 0xa18   :  { %17605 = vmatmul.mubr.msk.bf16.gmra.mrb[192].mxu0 %vm813_vm3, %v6265_v15 }
 0xa19   :  { %v6227_v23 = vpop.f32.mrb[92].mxu0 }
 0xa1a   :  { %v6228_v39 = vadd.f32 %v23604_v63, %v6227_v23  ;;  %v6229_v58 = vpop.f32.mrb[93].mxu0 }
 0xa1b   :  { %v6230_v16 = vpop.f32.mrb[94].mxu0 }
 0xa1c   :  { %v6231_v4 = vadd.f32 %v23608_v38, %v6230_v16  ;;  %v6232_v20 = vpop.f32.mrb[95].mxu0 }
 0xa1e   :  { %v6266_v0 = vpack.c.bf16 %v6231_v4, %v6228_v39 }
 0xa20   :  { %17608 = vmatprep.mubr.msk.bf16.mxu0 %vm813_vm3, %v6266_v0 }
 0xa21   :  { %v6235_v5 = vpop.f32.mrb[96].mxu0 }
 0xa22   :  { %v6236_v60 = vadd.f32 %v23612_v62, %v6235_v5  ;;  %v6237_v2 = vpop.f32.mrb[97].mxu0 }
 0xa23   :  { %v6238_v27 = vpop.f32.mrb[98].mxu0 }
 0xa24   :  { %v6239_v12 = vadd.f32 %v23616_v28, %v6238_v27  ;;  %v6240_v31 = vpop.f32.mrb[99].mxu0 }
 0xa26   :  { %v6267_v37 = vpack.c.bf16 %v6239_v12, %v6236_v60 }
 0xa28   :  { %17609 = vmatmul.mubr.msk.bf16.gmra.mrb[196].mxu0 %vm813_vm3, %v6267_v37 }
 0xa29   :  { %v6243_v63 = vpop.f32.mrb[100].mxu0 }
 0xa2a   :  { %v6244_v14 = vadd.f32 %v23620_v21, %v6243_v63  ;;  %v6245_v57 = vpop.f32.mrb[101].mxu0 }
 0xa2b   :  { %v6246_v38 = vpop.f32.mrb[102].mxu0 }
 0xa2c   :  { %v6247_v17 = vadd.f32 %v23624_v42, %v6246_v38  ;;  %v6248_v3 = vpop.f32.mrb[103].mxu0 }
 0xa2e   :  { %v6268_v36 = vpack.c.bf16 %v6247_v17, %v6244_v14 }
 0xa30   :  { %17612 = vmatprep.mubr.msk.bf16.mxu0 %vm813_vm3, %v6268_v36 }
 0xa31   :  { %v6251_v62 = vpop.f32.mrb[104].mxu0 }
 0xa32   :  { %v6252_v48 = vadd.f32 %v23636_v6, %v6251_v62  ;;  %v6253_v33 = vpop.f32.mrb[105].mxu0 }
 0xa33   :  { %v6254_v28 = vpop.f32.mrb[106].mxu0 }
 0xa34   :  { %v6255_v56 = vadd.f32 %v23640_v61, %v6254_v28  ;;  %v6256_v18 = vpop.f32.mrb[107].mxu0 }
 0xa36   :  { %v6269_v29 = vpack.c.bf16 %v6255_v56, %v6252_v48  ;;  %v19980_v56 = vld [vmem:[%s26195_s4 + $0x40] sm:$0xff]  }
 0xa38   :  { %17613 = vmatmul.mubr.msk.bf16.gmra.mrb[200].mxu0 %vm813_vm3, %v6269_v29 }
 0xa39   :  { %17684 = vmatprep.mubr.bf16.mxu0 %v19980_v56 }
 0xadb   :  { %v17602_v21 = vpop.f32.mrb[188].mxu0 }
 0xadc   :  { %v6340_v25 = vpop.f32.mrb[189].mxu0  ;;  %v6425_v6 = vsel %vm6421_vm6, %v17602_v21, 0.0 }
 0xadd   :  { %v17603_v22 = vpop.f32.mrb[190].mxu0  ;;  %v6422_v8 = vsel %vm6421_vm6, %v6340_v25, 0.0 }
 0xade   :  { %v6343_v42 = vpop.f32.mrb[191].mxu0  ;;  %v6427_v19 = vsel %vm6421_vm6, %v17603_v22, 0.0 }
 0xadf   :  { %v6423_v35 = vsel %vm6421_vm6, %v6343_v42, 0.0 }
 0xae0   :  { %v6424_v34 = vadd.f32 %v6423_v35, %v6422_v8 }
 0xae2   :  { %v6426_v32 = vadd.f32 %v6425_v6, %v6424_v34 }
 0xae4   :  { %v6428_v61 = vadd.f32 %v6427_v19, %v6426_v32 }
 0xaeb   :  { %v17606_v59 = vpop.f32.mrb[192].mxu0 }
 0xaec   :  { %v6356_v46 = vpop.f32.mrb[193].mxu0  ;;  %v6433_v45 = vsel %vm6421_vm6, %v17606_v59, 0.0 }
 0xaed   :  { %v6429_v47 = vsel %vm6421_vm6, %v6356_v46, 0.0  ;;  %v17607_v50 = vpop.f32.mrb[194].mxu0 }
 0xaee   :  { %v6430_v41 = vadd.f32 %v6429_v47, %v6428_v61  ;;  %v6359_v24 = vpop.f32.mrb[195].mxu0  ;;  %v6435_v55 = vsel %vm6421_vm6, %v17607_v50, 0.0 }
 0xaef   :  { %v6431_v52 = vsel %vm6421_vm6, %v6359_v24, 0.0 }
 0xaf0   :  { %v6432_v13 = vadd.f32 %v6431_v52, %v6430_v41 }
 0xaf2   :  { %v6434_v30 = vadd.f32 %v6433_v45, %v6432_v13 }
 0xaf4   :  { %v6436_v15 = vadd.f32 %v6435_v55, %v6434_v30 }
 0xafb   :  { %v17610_v23 = vpop.f32.mrb[196].mxu0 }
 0xafc   :  { %v6372_v39 = vpop.f32.mrb[197].mxu0  ;;  %v6441_v60 = vsel %vm6421_vm6, %v17610_v23, 0.0 }
 0xafd   :  { %v6437_v58 = vsel %vm6421_vm6, %v6372_v39, 0.0  ;;  %v17611_v16 = vpop.f32.mrb[198].mxu0 }
 0xafe   :  { %v6438_v4 = vadd.f32 %v6437_v58, %v6436_v15  ;;  %v6375_v20 = vpop.f32.mrb[199].mxu0  ;;  %v6443_v27 = vsel %vm6421_vm6, %v17611_v16, 0.0 }
 0xaff   :  { %v6439_v0 = vsel %vm6421_vm6, %v6375_v20, 0.0 }
 0xb00   :  { %v6440_v5 = vadd.f32 %v6439_v0, %v6438_v4 }
 0xb02   :  { %v6442_v2 = vadd.f32 %v6441_v60, %v6440_v5 }
 0xb04   :  { %v6444_v12 = vadd.f32 %v6443_v27, %v6442_v2 }
 0xb0b   :  { %v17614_v31 = vpop.f32.mrb[200].mxu0 }
 0xb0c   :  { %v6388_v37 = vpop.f32.mrb[201].mxu0  ;;  %v6449_v36 = vsel %vm6421_vm6, %v17614_v31, 0.0 }
 0xb0d   :  { %v6445_v63 = vsel %vm6421_vm6, %v6388_v37, 0.0  ;;  %v17615_v14 = vpop.f32.mrb[202].mxu0 }
 0xb0e   :  { %v6446_v57 = vadd.f32 %v6445_v63, %v6444_v12  ;;  %v6391_v38 = vpop.f32.mrb[203].mxu0  ;;  %v6451_v48 = vsel %vm6421_vm6, %v17615_v14, 0.0 }
 0xb0f   :  { %v6447_v17 = vsel %vm6421_vm6, %v6391_v38, 0.0 }
 0xb10   :  { %v6448_v3 = vadd.f32 %v6447_v17, %v6446_v57 }
 0xb12   :  { %v6450_v62 = vadd.f32 %v6449_v36, %v6448_v3 }
 0xb14   :  { %v6452_v33 = vadd.f32 %v6451_v48, %v6450_v62 }
 0xb16   :  { %v6453_v28 = vrot.slane %v6452_v33, 4 }
 0xb18   :  { %v6454_v18 = vadd.f32 %v6453_v28, %v6452_v33 }
 0xb1a   :  { %v6455_v29 = vrot.slane %v6454_v18, 2 }
 0xb1c   :  { %v6456_v8 = vadd.f32 %v6455_v29, %v6454_v18 }
 0xb1e   :  { %v6457_v35 = vrot.slane %v6456_v8, 1 }
 0xb20   :  { %v6458_v34 = vadd.f32 %v6457_v35, %v6456_v8 }
 0xb22   :  { %v6459_v6 = vmul.f32 0.0078125, %v6458_v34 }
 0xb24   :  { %v23927_v32 = vsub.f32 %v6340_v25, %v6459_v6  ;;  %v23929_v19 = vsub.f32 %v6343_v42, %v6459_v6  ;;  %v23931_v61 = vsub.f32 %v17602_v21, %v6459_v6  ;;  %v23933_v47 = vsub.f32 %v17603_v22, %v6459_v6 }
 0xb25   :  { %v23935_v41 = vsub.f32 %v6356_v46, %v6459_v6  ;;  %v23937_v52 = vsub.f32 %v6359_v24, %v6459_v6  ;;  %v23939_v13 = vsub.f32 %v17606_v59, %v6459_v6  ;;  %v23941_v45 = vsub.f32 %v17607_v50, %v6459_v6 }
 0xb26   :  { %v23943_v30 = vsub.f32 %v6372_v39, %v6459_v6  ;;  %v23945_v55 = vsub.f32 %v6375_v20, %v6459_v6  ;;  %v23947_v25 = vsub.f32 %v17610_v23, %v6459_v6  ;;  %v23949_v42 = vsub.f32 %v17611_v16, %v6459_v6 }
 0xb27   :  { %v23951_v21 = vsub.f32 %v6388_v37, %v6459_v6  ;;  %v23953_v22 = vsub.f32 %v6391_v38, %v6459_v6  ;;  %v23955_v46 = vsub.f32 %v17614_v31, %v6459_v6  ;;  %v23957_v24 = vsub.f32 %v17615_v14, %v6459_v6  ;;  %v19988_v37 = vld [vmem:[%s26195_s4] sm:$0xff]  }
 0xb28   :  { %v6476_v59 = vmul.f32 %v23927_v32, %v23927_v32  ;;  %v6477_v50 = vmul.f32 %v23929_v19, %v23929_v19  ;;  %v6478_v15 = vmul.f32 %v23931_v61, %v23931_v61  ;;  %v6479_v23 = vmul.f32 %v23933_v47, %v23933_v47  ;;  %17652 = vmatprep.mubr.bf16.mxu1 %v19988_v37 }
 0xb29   :  { %v6480_v4 = vmul.f32 %v23935_v41, %v23935_v41  ;;  %v6481_v5 = vmul.f32 %v23937_v52, %v23937_v52  ;;  %v6482_v27 = vmul.f32 %v23939_v13, %v23939_v13  ;;  %v6483_v63 = vmul.f32 %v23941_v45, %v23941_v45 }
 0xb2a   :  { %v6492_v39 = vsel %vm6421_vm6, %v6476_v59, 0.0  ;;  %v6493_v58 = vsel %vm6421_vm6, %v6477_v50, 0.0  ;;  %v6495_v20 = vsel %vm6421_vm6, %v6478_v15, 0.0  ;;  %v6497_v60 = vsel %vm6421_vm6, %v6479_v23, 0.0 }
 0xb2b   :  { %v6494_v16 = vadd.f32 %v6493_v58, %v6492_v39  ;;  %v6499_v12 = vsel %vm6421_vm6, %v6480_v4, 0.0  ;;  %v6501_v14 = vsel %vm6421_vm6, %v6481_v5, 0.0  ;;  %v6484_v38 = vmul.f32 %v23943_v30, %v23943_v30 }
 0xb2c   :  { %v6503_v17 = vsel %vm6421_vm6, %v6482_v27, 0.0  ;;  %v6485_v36 = vmul.f32 %v23945_v55, %v23945_v55  ;;  %v6505_v62 = vsel %vm6421_vm6, %v6483_v63, 0.0  ;;  %v6486_v33 = vmul.f32 %v23947_v25, %v23947_v25 }
 0xb2d   :  { %v6496_v0 = vadd.f32 %v6495_v20, %v6494_v16  ;;  %v6507_v28 = vsel %vm6421_vm6, %v6484_v38, 0.0  ;;  %v6487_v18 = vmul.f32 %v23949_v42, %v23949_v42  ;;  %v6488_v35 = vmul.f32 %v23951_v21, %v23951_v21 }
 0xb2e   :  { %v6509_v29 = vsel %vm6421_vm6, %v6485_v36, 0.0  ;;  %v6511_v34 = vsel %vm6421_vm6, %v6486_v33, 0.0  ;;  %v6489_v59 = vmul.f32 %v23953_v22, %v23953_v22  ;;  %v6490_v23 = vmul.f32 %v23955_v46, %v23955_v46 }
 0xb2f   :  { %v6498_v2 = vadd.f32 %v6497_v60, %v6496_v0  ;;  %v6513_v50 = vsel %vm6421_vm6, %v6487_v18, 0.0  ;;  %v6515_v39 = vsel %vm6421_vm6, %v6488_v35, 0.0  ;;  %v6491_v16 = vmul.f32 %v23957_v24, %v23957_v24 }
 0xb30   :  { %v6517_v4 = vsel %vm6421_vm6, %v6489_v59, 0.0  ;;  %v6519_v0 = vsel %vm6421_vm6, %v6490_v23, 0.0 }
 0xb31   :  { %v6500_v31 = vadd.f32 %v6499_v12, %v6498_v2  ;;  %v6521_v60 = vsel %vm6421_vm6, %v6491_v16, 0.0 }
 0xb33   :  { %v6502_v57 = vadd.f32 %v6501_v14, %v6500_v31 }
 0xb35   :  { %v6504_v3 = vadd.f32 %v6503_v17, %v6502_v57  ;;  %v6419_v17 = vld [vmem:[%s26199_s8] sm:$0x1] }
 0xb37   :  { %v6506_v48 = vadd.f32 %v6505_v62, %v6504_v3  ;;  %v26610_v62 = vld [vmem:[#allocation10_spill] sm:$0xff] }
 0xb39   :  { %v6508_v56 = vadd.f32 %v6507_v28, %v6506_v48 }
 0xb3b   :  { %v6510_v8 = vadd.f32 %v6509_v29, %v6508_v56  ;;  %v15569_v29 = vld [vmem:[%s26199_s8 + $0x1] ss:$0 sm:$0xff] }
 0xb3d   :  { %v6512_v6 = vadd.f32 %v6511_v34, %v6510_v8 }
 0xb3f   :  { %v6514_v15 = vadd.f32 %v6513_v50, %v6512_v6 }
 0xb41   :  { %v6516_v58 = vadd.f32 %v6515_v39, %v6514_v15 }
 0xb43   :  { %v6518_v20 = vadd.f32 %v6517_v4, %v6516_v58 }
 0xb45   :  { %v6520_v5 = vadd.f32 %v6519_v0, %v6518_v20 }
 0xb47   :  { %v6522_v2 = vadd.f32 %v6521_v60, %v6520_v5 }
 0xb49   :  { %v6523_v27 = vrot.slane %v6522_v2, 4 }
 0xb4b   :  { %v6524_v12 = vadd.f32 %v6523_v27, %v6522_v2 }
 0xb4d   :  { %v6525_v31 = vrot.slane %v6524_v12, 2 }
 0xb4f   :  { %v6526_v37 = vadd.f32 %v6525_v31, %v6524_v12 }
 0xb51   :  { %v6527_v63 = vrot.slane %v6526_v37, 1 }
 0xb53   :  { %v6528_v14 = vadd.f32 %v6527_v63, %v6526_v37 }
 0xb55   :  { %v6529_v57 = vmul.f32 0.0078125, %v6528_v14 }
 0xb57   :  { %v6530_v38 = vadd.f32 1e-05, %v6529_v57 }
 0xb59   :  { %20368 = vrsqrt.f32 %v6530_v38 }
 0xb63   :  { %v20369_v3 = vpop.eup %20368 }
 0xb64   :  { %v6532_v36 = vmul.f32 %v20369_v3, %v6419_v17 }
 0xb66   :  { %v6536_v48 = vrot.slane %v6532_v36, %v26610_v62 }
 0xb68   :  { %v6537_v33 = vmul.f32 %v6536_v48, %v23927_v32  ;;  %v6538_v28 = vmul.f32 %v6536_v48, %v23929_v19  ;;  %v6539_v56 = vmul.f32 %v6536_v48, %v23931_v61  ;;  %v6540_v18 = vmul.f32 %v6536_v48, %v23933_v47 }
 0xb69   :  { %v6541_v8 = vmul.f32 %v6536_v48, %v23935_v41  ;;  %v6542_v35 = vmul.f32 %v6536_v48, %v23937_v52  ;;  %v6543_v34 = vmul.f32 %v6536_v48, %v23939_v13  ;;  %v6544_v6 = vmul.f32 %v6536_v48, %v23941_v45 }
 0xb6a   :  { %v6545_v32 = vmul.f32 %v6536_v48, %v23943_v30  ;;  %v6546_v19 = vmul.f32 %v6536_v48, %v23945_v55  ;;  %v6547_v61 = vmul.f32 %v6536_v48, %v23947_v25  ;;  %v6548_v47 = vmul.f32 %v6536_v48, %v23949_v42 }
 0xb6b   :  { %v6549_v59 = vmul.f32 %v6536_v48, %v23951_v21  ;;  %v6550_v50 = vmul.f32 %v6536_v48, %v23953_v22  ;;  %v6551_v41 = vmul.f32 %v6536_v48, %v23955_v46  ;;  %v6552_v52 = vmul.f32 %v6536_v48, %v23957_v24 }
 0xb6c   :  { %v6557_v15 = vadd.f32 %v15569_v29, %v6537_v33  ;;  %v6558_v13 = vadd.f32 %v15569_v29, %v6538_v28  ;;  %v6559_v23 = vadd.f32 %v15569_v29, %v6539_v56  ;;  %v6560_v45 = vadd.f32 %v15569_v29, %v6540_v18 }
 0xb6d   :  { %v6561_v39 = vadd.f32 %v15569_v29, %v6541_v8  ;;  %v6562_v30 = vadd.f32 %v15569_v29, %v6542_v35  ;;  %v6563_v58 = vadd.f32 %v15569_v29, %v6543_v34  ;;  %v6564_v55 = vadd.f32 %v15569_v29, %v6544_v6  ;;  %v19981_v34 = vld [vmem:[%s26195_s4 + $0x48] sm:$0xff]  }
 0xb6e   :  { %v6565_v16 = vadd.f32 %v15569_v29, %v6545_v32  ;;  %v6566_v25 = vadd.f32 %v15569_v29, %v6546_v19  ;;  %v6567_v4 = vadd.f32 %v15569_v29, %v6547_v61  ;;  %v6568_v42 = vadd.f32 %v15569_v29, %v6548_v47  ;;  %v19989_v6 = vld [vmem:[%s26195_s4 + $0x8] sm:$0xff]   ;;  %v19982_v32 = vld [vmem:[%s26195_s4 + $0x50] sm:$0xff]   ;;  %v19983_v61 = vld [vmem:[%s26195_s4 + $0x58] sm:$0xff]  }
 0xb6f   :  { %v6569_v20 = vadd.f32 %v15569_v29, %v6549_v59  ;;  %v6570_v21 = vadd.f32 %v15569_v29, %v6550_v50  ;;  %v6571_v0 = vadd.f32 %v15569_v29, %v6551_v41  ;;  %v6572_v22 = vadd.f32 %v15569_v29, %v6552_v52  ;;  %v19992_v19 = vld [vmem:[%s26195_s4 + $0x10] sm:$0xff]   ;;  %v19993_v47 = vld [vmem:[%s26195_s4 + $0x18] sm:$0xff]   ;;  %v19984_v59 = vld [vmem:[%s26195_s4 + $0x60] sm:$0xff]  }
 0xb70   :  { %v6573_v5 = vmax.f32 %v6557_v15, 0.0  ;;  %v6574_v46 = vmax.f32 %v6558_v13, 0.0  ;;  %v6575_v60 = vmax.f32 %v6559_v23, 0.0  ;;  %v6576_v24 = vmax.f32 %v6560_v45, 0.0  ;;  %v19996_v50 = vld [vmem:[%s26195_s4 + $0x20] sm:$0xff]   ;;  %v19985_v41 = vld [vmem:[%s26195_s4 + $0x68] sm:$0xff]  }
 0xb71   :  { %v6577_v2 = vmax.f32 %v6561_v39, 0.0  ;;  %v6578_v27 = vmax.f32 %v6562_v30, 0.0  ;;  %v6579_v12 = vmax.f32 %v6563_v58, 0.0  ;;  %v6580_v31 = vmax.f32 %v6564_v55, 0.0  ;;  %v19997_v52 = vld [vmem:[%s26195_s4 + $0x28] sm:$0xff]   ;;  %v19986_v15 = vld [vmem:[%s26195_s4 + $0x70] sm:$0xff]  }
 0xb72   :  { %v6581_v37 = vmax.f32 %v6565_v16, 0.0  ;;  %v6582_v63 = vmax.f32 %v6566_v25, 0.0  ;;  %v6583_v14 = vmax.f32 %v6567_v4, 0.0  ;;  %v6584_v57 = vmax.f32 %v6568_v42, 0.0  ;;  %v20000_v13 = vld [vmem:[%s26195_s4 + $0x30] sm:$0xff]   ;;  %v19987_v23 = vld [vmem:[%s26195_s4 + $0x78] sm:$0xff]  }
 0xb73   :  { %v6585_v38 = vmax.f32 %v6569_v20, 0.0  ;;  %v6586_v17 = vmax.f32 %v6570_v21, 0.0  ;;  %v6587_v3 = vmax.f32 %v6571_v0, 0.0  ;;  %v6588_v36 = vmax.f32 %v6572_v22, 0.0  ;;  %v20001_v45 = vld [vmem:[%s26195_s4 + $0x38] sm:$0xff]   ;;  %v19990_v39 = vld [vmem:[%s26195_s4 + $0x80] sm:$0xff]  }
 0xb74   :  { %v24033_v48 = vpack.c.bf16 %v6574_v46, %v6573_v5  ;;  %v24035_v33 = vpack.c.bf16 %v6576_v24, %v6575_v60  ;;  %v24037_v28 = vpack.c.bf16 %v6578_v27, %v6577_v2  ;;  %v24039_v56 = vpack.c.bf16 %v6580_v31, %v6579_v12  ;;  %v19991_v30 = vld [vmem:[%s26195_s4 + $0x88] sm:$0xff]   ;;  %v19994_v58 = vld [vmem:[%s26195_s4 + $0x90] sm:$0xff]   ;;  %v19995_v55 = vld [vmem:[%s26195_s4 + $0x98] sm:$0xff]  }
 0xb75   :  { %v24041_v18 = vpack.c.bf16 %v6582_v63, %v6581_v37  ;;  %v24043_v29 = vpack.c.bf16 %v6584_v57, %v6583_v14  ;;  %v24045_v8 = vpack.c.bf16 %v6586_v17, %v6585_v38  ;;  %v24047_v35 = vpack.c.bf16 %v6588_v36, %v6587_v3  ;;  %v19998_v16 = vld [vmem:[%s26195_s4 + $0xa0] sm:$0xff]   ;;  %v19999_v25 = vld [vmem:[%s26195_s4 + $0xa8] sm:$0xff]   ;;  %v20002_v4 = vld [vmem:[%s26195_s4 + $0xb0] sm:$0xff]  }
 0xb76   :  { %17636 = vmatprep.subr.bf16.mxu1 %v24033_v48  ;;  %17668 = vmatprep.subr.bf16.mxu0 %v24033_v48  ;;  %v20003_v42 = vld [vmem:[%s26195_s4 + $0xb8] sm:$0xff]   ;;  %v20004_v20 = vld [vmem:[%s26195_s4 + $0xc0] sm:$0xff]   ;;  %v20005_v21 = vld [vmem:[%s26195_s4 + $0xc8] sm:$0xff]  }
 0xb77   :  { %17637 = vmatpush3.bf16.msra.mxu1 %v24033_v48  ;;  %17669 = vmatpush3.bf16.msra.mxu0 %v24033_v48  ;;  %v20006_v0 = vld [vmem:[%s26195_s4 + $0xd0] sm:$0xff]   ;;  %v20007_v22 = vld [vmem:[%s26195_s4 + $0xd8] sm:$0xff]   ;;  %v20008_v5 = vld [vmem:[%s26195_s4 + $0xe0] sm:$0xff]  }
 0xb78   :  { %17638 = vmatprep.subr.bf16.mxu1 %v24035_v33  ;;  %17670 = vmatprep.subr.bf16.mxu0 %v24035_v33  ;;  %v20038_v46 = vld [vmem:[%s26197_s6 + $0x20] sm:$0xff]   ;;  %v20009_v60 = vld [vmem:[%s26195_s4 + $0xe8] sm:$0xff]   ;;  %v20010_v24 = vld [vmem:[%s26195_s4 + $0xf0] sm:$0xff]  }
 0xb79   :  { %v20039_v2 = vld [vmem:[%s26197_s6 + $0x28] sm:$0xff]   ;;  %v20040_v27 = vld [vmem:[%s26197_s6 + $0x30] sm:$0xff]   ;;  %v20011_v12 = vld [vmem:[%s26195_s4 + $0xf8] sm:$0xff]  }
 0xb7a   :  { %v20012_v31 = vld [vmem:[%s26195_s4 + $0x100] sm:$0xff]   ;;  %v20041_v37 = vld [vmem:[%s26197_s6 + $0x38] sm:$0xff]   ;;  %v20013_v63 = vld [vmem:[%s26195_s4 + $0x108] sm:$0xff]  }
 0xb7b   :  { %17639 = vmatpush3.bf16.msra.mxu1 %v24035_v33  ;;  %17671 = vmatpush3.bf16.msra.mxu0 %v24035_v33  ;;  %v20014_v14 = vld [vmem:[%s26195_s4 + $0x110] sm:$0xff]   ;;  %v20015_v57 = vld [vmem:[%s26195_s4 + $0x118] sm:$0xff]   ;;  %v20016_v38 = vld [vmem:[%s26195_s4 + $0x120] sm:$0xff]  }
 0xb7c   :  { %17640 = vmatprep.subr.bf16.mxu1 %v24037_v28  ;;  %17672 = vmatprep.subr.bf16.mxu0 %v24037_v28  ;;  %v24255_v17 = vld [vmem:[%s26197_s6] sm:$0xff]   ;;  %v20017_v3 = vld [vmem:[%s26195_s4 + $0x128] sm:$0xff]   ;;  %v20018_v36 = vld [vmem:[%s26195_s4 + $0x130] sm:$0xff]  }
 0xb7f   :  { %17641 = vmatpush3.bf16.msra.mxu1 %v24037_v28  ;;  %17673 = vmatpush3.bf16.msra.mxu0 %v24037_v28 }
 0xb80   :  { %17642 = vmatprep.subr.bf16.mxu1 %v24039_v56  ;;  %17674 = vmatprep.subr.bf16.mxu0 %v24039_v56 }
 0xb83   :  { %17643 = vmatpush3.bf16.msra.mxu1 %v24039_v56  ;;  %17675 = vmatpush3.bf16.msra.mxu0 %v24039_v56 }
 0xb84   :  { %17644 = vmatprep.subr.bf16.mxu1 %v24041_v18  ;;  %17676 = vmatprep.subr.bf16.mxu0 %v24041_v18 }
 0xb87   :  { %17645 = vmatpush3.bf16.msra.mxu1 %v24041_v18  ;;  %17677 = vmatpush3.bf16.msra.mxu0 %v24041_v18 }
 0xb88   :  { %17646 = vmatprep.subr.bf16.mxu1 %v24043_v29  ;;  %17678 = vmatprep.subr.bf16.mxu0 %v24043_v29 }
 0xb8b   :  { %17647 = vmatpush3.bf16.msra.mxu1 %v24043_v29  ;;  %17679 = vmatpush3.bf16.msra.mxu0 %v24043_v29 }
 0xb8c   :  { %17648 = vmatprep.subr.bf16.mxu1 %v24045_v8  ;;  %17680 = vmatprep.subr.bf16.mxu0 %v24045_v8 }
 0xb8f   :  { %17649 = vmatpush3.bf16.msra.mxu1 %v24045_v8  ;;  %17681 = vmatpush3.bf16.msra.mxu0 %v24045_v8 }
 0xb90   :  { %17650 = vmatprep.subr.bf16.mxu1 %v24047_v35  ;;  %17682 = vmatprep.subr.bf16.mxu0 %v24047_v35 }
 0xb93   :  { %17651 = vmatpush3.bf16.msra.mxu1 %v24047_v35  ;;  %17683 = vmatpush3.bf16.msra.mxu0 %v24047_v35 }
 0xb94   :  { %17748 = vmatprep.subr.bf16.mxu0 %v24033_v48  ;;  %17700 = vmatprep.subr.bf16.mxu1 %v20038_v46 }
 0xb96   :  { %17685 = vmatmul.mubr.bf16.vlgmr.msra.gmra.mrb[108].mxu0 %v19981_v34  ;;  %17653 = vmatmul.mubr.bf16.vlgmr.msra.gmra.mrb[104].mxu1 %v19989_v6  ;;  %v20019_v34 = vld [vmem:[%s26195_s4 + $0x138] sm:$0xff]   ;;  %v20020_v6 = vld [vmem:[%s26195_s4 + $0x140] sm:$0xff]  }
 0xb97   :  { %17749 = vmatpush3.bf16.msra.mxu0 %v24033_v48  ;;  %17688 = vmatprep.mubr.bf16.mxu0 %v19982_v32  ;;  %v20021_v32 = vld [vmem:[%s26195_s4 + $0x148] sm:$0xff]  }
 0xb98   :  { %17750 = vmatprep.subr.bf16.mxu0 %v24035_v33  ;;  %17656 = vmatprep.mubr.bf16.mxu1 %v19992_v19  ;;  %v20022_v19 = vld [vmem:[%s26195_s4 + $0x150] sm:$0xff]  }
 0xb99   :  { %17701 = vmatpush3.bf16.msra.mxu1 %v20038_v46 }
 0xb9a   :  { %17702 = vmatprep.subr.bf16.mxu1 %v20039_v2 }
 0xb9b   :  { %17751 = vmatpush3.bf16.msra.mxu0 %v24035_v33 }
 0xb9c   :  { %17752 = vmatprep.subr.bf16.mxu0 %v24037_v28 }
 0xb9d   :  { %17703 = vmatpush3.bf16.msra.mxu1 %v20039_v2 }
 0xb9e   :  { %17689 = vmatmul.mubr.bf16.gmra.mrb[112].mxu0 %v19983_v61  ;;  %17657 = vmatmul.mubr.bf16.gmra.mrb[108].mxu1 %v19993_v47  ;;  %v20023_v61 = vld [vmem:[%s26195_s4 + $0x158] sm:$0xff]   ;;  %v20024_v47 = vld [vmem:[%s26195_s4 + $0x160] sm:$0xff]  }
 0xb9f   :  { %17753 = vmatpush3.bf16.msra.mxu0 %v24037_v28  ;;  %17692 = vmatprep.mubr.bf16.mxu0 %v19984_v59  ;;  %v20025_v59 = vld [vmem:[%s26195_s4 + $0x168] sm:$0xff]  }
 0xba0   :  { %17754 = vmatprep.subr.bf16.mxu0 %v24039_v56  ;;  %17660 = vmatprep.mubr.bf16.mxu1 %v19996_v50  ;;  %v20026_v50 = vld [vmem:[%s26195_s4 + $0x170] sm:$0xff]  }
 0xba1   :  { %17704 = vmatprep.subr.bf16.mxu1 %v20040_v27 }
 0xba2   :  { %17705 = vmatpush3.bf16.msra.mxu1 %v20040_v27 }
 0xba3   :  { %17755 = vmatpush3.bf16.msra.mxu0 %v24039_v56  ;;  %17706 = vmatprep.subr.bf16.mxu1 %v20041_v37 }
 0xba4   :  { %17756 = vmatprep.subr.bf16.mxu0 %v24041_v18 }
 0xba6   :  { %17693 = vmatmul.mubr.bf16.gmra.mrb[116].mxu0 %v19985_v41  ;;  %17661 = vmatmul.mubr.bf16.gmra.mrb[112].mxu1 %v19997_v52  ;;  %v20027_v41 = vld [vmem:[%s26195_s4 + $0x178] sm:$0xff]   ;;  %v20028_v52 = vld [vmem:[%s26195_s4 + $0x180] sm:$0xff]  }
 0xba7   :  { %17757 = vmatpush3.bf16.msra.mxu0 %v24041_v18  ;;  %17696 = vmatprep.mubr.bf16.mxu0 %v19986_v15  ;;  %v20029_v15 = vld [vmem:[%s26195_s4 + $0x188] sm:$0xff]  }
 0xba8   :  { %17758 = vmatprep.subr.bf16.mxu0 %v24043_v29  ;;  %17664 = vmatprep.mubr.bf16.mxu1 %v20000_v13  ;;  %v20030_v13 = vld [vmem:[%s26195_s4 + $0x190] sm:$0xff]  }
 0xba9   :  { %17707 = vmatpush3.bf16.msra.mxu1 %v20041_v37 }
 0xbaa   :  { %17724 = vmatprep.subr.bf16.mxu1 %v24255_v17 }
 0xbab   :  { %17759 = vmatpush3.bf16.msra.mxu0 %v24043_v29 }
 0xbac   :  { %17760 = vmatprep.subr.bf16.mxu0 %v24045_v8 }
 0xbae   :  { %17697 = vmatmul.mubr.bf16.gmra.mrb[120].mxu0 %v19987_v23  ;;  %17665 = vmatmul.mubr.bf16.gmra.mrb[116].mxu1 %v20001_v45  ;;  %v20031_v23 = vld [vmem:[%s26195_s4 + $0x198] sm:$0xff]   ;;  %v20032_v45 = vld [vmem:[%s26195_s4 + $0x1a0] sm:$0xff]  }
 0xbaf   :  { %17761 = vmatpush3.bf16.msra.mxu0 %v24045_v8  ;;  %17764 = vmatprep.mubr.bf16.mxu0 %v19990_v39  ;;  %v20033_v39 = vld [vmem:[%s26195_s4 + $0x1a8] sm:$0xff]  }
 0xbb0   :  { %17762 = vmatprep.subr.bf16.mxu0 %v24047_v35 }
 0xbb3   :  { %17763 = vmatpush3.bf16.msra.mxu0 %v24047_v35 }
 0xbb4   :  { %17804 = vmatprep.subr.bf16.mxu0 %v24033_v48 }
 0xbb6   :  { %17765 = vmatmul.mubr.bf16.vlgmr.msra.gmra.mrb[124].mxu0 %v19991_v30  ;;  %v20034_v30 = vld [vmem:[%s26195_s4 + $0x1b0] sm:$0xff]  }
 0xbb7   :  { %17805 = vmatpush3.bf16.msra.mxu0 %v24033_v48  ;;  %17768 = vmatprep.mubr.bf16.mxu0 %v19994_v58  ;;  %v20035_v58 = vld [vmem:[%s26195_s4 + $0x1b8] sm:$0xff]  }
 0xbb8   :  { %17806 = vmatprep.subr.bf16.mxu0 %v24035_v33 }
 0xbbb   :  { %17807 = vmatpush3.bf16.msra.mxu0 %v24035_v33 }
 0xbbc   :  { %17808 = vmatprep.subr.bf16.mxu0 %v24037_v28 }
 0xbbe   :  { %17769 = vmatmul.mubr.bf16.gmra.mrb[128].mxu0 %v19995_v55  ;;  %v20036_v55 = vld [vmem:[%s26195_s4 + $0x1c0] sm:$0xff]  }
 0xbbf   :  { %17809 = vmatpush3.bf16.msra.mxu0 %v24037_v28  ;;  %17772 = vmatprep.mubr.bf16.mxu0 %v19998_v16  ;;  %v20037_v16 = vld [vmem:[%s26195_s4 + $0x1c8] sm:$0xff]  }
 0xbc0   :  { %17810 = vmatprep.subr.bf16.mxu0 %v24039_v56 }
 0xbc3   :  { %17811 = vmatpush3.bf16.msra.mxu0 %v24039_v56 }
 0xbc4   :  { %17812 = vmatprep.subr.bf16.mxu0 %v24041_v18 }
 0xbc6   :  { %17773 = vmatmul.mubr.bf16.gmra.mrb[132].mxu0 %v19999_v25  ;;  %v20042_v25 = vld [vmem:[%s26195_s4 + $0x1d0] sm:$0xff]  }
 0xbc7   :  { %17813 = vmatpush3.bf16.msra.mxu0 %v24041_v18  ;;  %17776 = vmatprep.mubr.bf16.mxu0 %v20002_v4  ;;  %v20043_v4 = vld [vmem:[%s26195_s4 + $0x1d8] sm:$0xff]  }
 0xbc8   :  { %17814 = vmatprep.subr.bf16.mxu0 %v24043_v29 }
 0xbcb   :  { %17815 = vmatpush3.bf16.msra.mxu0 %v24043_v29 }
 0xbcc   :  { %17816 = vmatprep.subr.bf16.mxu0 %v24045_v8 }
 0xbce   :  { %17777 = vmatmul.mubr.bf16.gmra.mrb[136].mxu0 %v20003_v42  ;;  %v20046_v42 = vld [vmem:[%s26195_s4 + $0x1e0] sm:$0xff]  }
 0xbcf   :  { %17817 = vmatpush3.bf16.msra.mxu0 %v24045_v8  ;;  %17820 = vmatprep.mubr.bf16.mxu0 %v20004_v20 }
 0xbd0   :  { %17818 = vmatprep.subr.bf16.mxu0 %v24047_v35 }
 0xbd3   :  { %17819 = vmatpush3.bf16.msra.mxu0 %v24047_v35 }
 0xbd4   :  { %17860 = vmatprep.subr.bf16.mxu0 %v24033_v48 }
 0xbd6   :  { %17821 = vmatmul.mubr.bf16.vlgmr.msra.gmra.mrb[140].mxu0 %v20005_v21 }
 0xbd7   :  { %17861 = vmatpush3.bf16.msra.mxu0 %v24033_v48  ;;  %17824 = vmatprep.mubr.bf16.mxu0 %v20006_v0 }
 0xbd8   :  { %17862 = vmatprep.subr.bf16.mxu0 %v24035_v33 }
 0xbdb   :  { %17863 = vmatpush3.bf16.msra.mxu0 %v24035_v33 }
 0xbdc   :  { %17864 = vmatprep.subr.bf16.mxu0 %v24037_v28 }
 0xbde   :  { %17825 = vmatmul.mubr.bf16.gmra.mrb[144].mxu0 %v20007_v22 }
 0xbdf   :  { %17865 = vmatpush3.bf16.msra.mxu0 %v24037_v28  ;;  %17828 = vmatprep.mubr.bf16.mxu0 %v20008_v5 }
 0xbe0   :  { %17866 = vmatprep.subr.bf16.mxu0 %v24039_v56 }
 0xbe3   :  { %17867 = vmatpush3.bf16.msra.mxu0 %v24039_v56 }
 0xbe4   :  { %17868 = vmatprep.subr.bf16.mxu0 %v24041_v18 }
 0xbe6   :  { %17829 = vmatmul.mubr.bf16.gmra.mrb[148].mxu0 %v20009_v60 }
 0xbe7   :  { %17869 = vmatpush3.bf16.msra.mxu0 %v24041_v18  ;;  %17832 = vmatprep.mubr.bf16.mxu0 %v20010_v24 }
 0xbe8   :  { %17870 = vmatprep.subr.bf16.mxu0 %v24043_v29 }
 0xbeb   :  { %17871 = vmatpush3.bf16.msra.mxu0 %v24043_v29 }
 0xbec   :  { %17872 = vmatprep.subr.bf16.mxu0 %v24045_v8 }
 0xbee   :  { %17833 = vmatmul.mubr.bf16.gmra.mrb[152].mxu0 %v20011_v12  ;;  %v20052_v12 = vld [vmem:[%s26195_s4 + $0x200] sm:$0xff]  }
 0xbef   :  { %17873 = vmatpush3.bf16.msra.mxu0 %v24045_v8  ;;  %17876 = vmatprep.mubr.bf16.mxu0 %v20012_v31 }
 0xbf0   :  { %17874 = vmatprep.subr.bf16.mxu0 %v24047_v35 }
 0xbf3   :  { %17875 = vmatpush3.bf16.msra.mxu0 %v24047_v35 }
 0xbf4   :  { %17916 = vmatprep.subr.bf16.mxu0 %v24033_v48 }
 0xbf6   :  { %17877 = vmatmul.mubr.bf16.vlgmr.msra.gmra.mrb[156].mxu0 %v20013_v63 }
 0xbf7   :  { %17917 = vmatpush3.bf16.msra.mxu0 %v24033_v48  ;;  %17880 = vmatprep.mubr.bf16.mxu0 %v20014_v14  ;;  %v20048_v14 = vld [vmem:[%s26197_s6 + $0x10] sm:$0xff]  }
 0xbf8   :  { %17918 = vmatprep.subr.bf16.mxu0 %v24035_v33 }
 0xbfb   :  { %17919 = vmatpush3.bf16.msra.mxu0 %v24035_v33 }
 0xbfc   :  { %17920 = vmatprep.subr.bf16.mxu0 %v24037_v28 }
 0xbfe   :  { %17881 = vmatmul.mubr.bf16.gmra.mrb[160].mxu0 %v20015_v57 }
 0xbff   :  { %17921 = vmatpush3.bf16.msra.mxu0 %v24037_v28  ;;  %17884 = vmatprep.mubr.bf16.mxu0 %v20016_v38 }
 0xc00   :  { %17922 = vmatprep.subr.bf16.mxu0 %v24039_v56 }
 0xc03   :  { %17923 = vmatpush3.bf16.msra.mxu0 %v24039_v56 }
 0xc04   :  { %17924 = vmatprep.subr.bf16.mxu0 %v24041_v18 }
 0xc06   :  { %17885 = vmatmul.mubr.bf16.gmra.mrb[164].mxu0 %v20017_v3 }
 0xc07   :  { %17925 = vmatpush3.bf16.msra.mxu0 %v24041_v18  ;;  %17888 = vmatprep.mubr.bf16.mxu0 %v20018_v36 }
 0xc08   :  { %17926 = vmatprep.subr.bf16.mxu0 %v24043_v29 }
 0xc0b   :  { %17927 = vmatpush3.bf16.msra.mxu0 %v24043_v29 }
 0xc0c   :  { %17928 = vmatprep.subr.bf16.mxu0 %v24045_v8 }
 0xc0e   :  { %17889 = vmatmul.mubr.bf16.gmra.mrb[168].mxu0 %v20019_v34 }
 0xc0f   :  { %17929 = vmatpush3.bf16.msra.mxu0 %v24045_v8  ;;  %17932 = vmatprep.mubr.bf16.mxu0 %v20020_v6 }
 0xc10   :  { %17930 = vmatprep.subr.bf16.mxu0 %v24047_v35 }
 0xc13   :  { %17931 = vmatpush3.bf16.msra.mxu0 %v24047_v35 }
 0xc14   :  { %17972 = vmatprep.subr.bf16.mxu0 %v24033_v48 }
 0xc16   :  { %17933 = vmatmul.mubr.bf16.vlgmr.msra.gmra.mrb[172].mxu0 %v20021_v32 }
 0xc17   :  { %17973 = vmatpush3.bf16.msra.mxu0 %v24033_v48  ;;  %17936 = vmatprep.mubr.bf16.mxu0 %v20022_v19 }
 0xc18   :  { %17974 = vmatprep.subr.bf16.mxu0 %v24035_v33 }
 0xc1b   :  { %17975 = vmatpush3.bf16.msra.mxu0 %v24035_v33 }
 0xc1c   :  { %17976 = vmatprep.subr.bf16.mxu0 %v24037_v28 }
 0xc1e   :  { %17937 = vmatmul.mubr.bf16.gmra.mrb[176].mxu0 %v20023_v61 }
 0xc1f   :  { %17977 = vmatpush3.bf16.msra.mxu0 %v24037_v28  ;;  %17940 = vmatprep.mubr.bf16.mxu0 %v20024_v47 }
 0xc20   :  { %17978 = vmatprep.subr.bf16.mxu0 %v24039_v56 }
 0xc23   :  { %17979 = vmatpush3.bf16.msra.mxu0 %v24039_v56 }
 0xc24   :  { %17980 = vmatprep.subr.bf16.mxu0 %v24041_v18 }
 0xc26   :  { %17941 = vmatmul.mubr.bf16.gmra.mrb[180].mxu0 %v20025_v59 }
 0xc27   :  { %17981 = vmatpush3.bf16.msra.mxu0 %v24041_v18  ;;  %17944 = vmatprep.mubr.bf16.mxu0 %v20026_v50 }
 0xc28   :  { %17982 = vmatprep.subr.bf16.mxu0 %v24043_v29 }
 0xc2b   :  { %17983 = vmatpush3.bf16.msra.mxu0 %v24043_v29 }
 0xc2c   :  { %17984 = vmatprep.subr.bf16.mxu0 %v24045_v8 }
 0xc2e   :  { %17945 = vmatmul.mubr.bf16.gmra.mrb[184].mxu0 %v20027_v41 }
 0xc2f   :  { %17985 = vmatpush3.bf16.msra.mxu0 %v24045_v8  ;;  %17988 = vmatprep.mubr.bf16.mxu0 %v20028_v52  ;;  %v20055_v52 = vld [vmem:[%s26195_s4 + $0x218] sm:$0xff]  }
 0xc30   :  { %17986 = vmatprep.subr.bf16.mxu0 %v24047_v35 }
 0xc33   :  { %17987 = vmatpush3.bf16.msra.mxu0 %v24047_v35 }
 0xc34   :  { %18028 = vmatprep.subr.bf16.mxu0 %v24033_v48 }
 0xc36   :  { %17989 = vmatmul.mubr.bf16.vlgmr.msra.gmra.mrb[204].mxu0 %v20029_v15  ;;  %v20056_v15 = vld [vmem:[%s26197_s6 + $0x40] sm:$0xff]  }
 0xc37   :  { %18029 = vmatpush3.bf16.msra.mxu0 %v24033_v48  ;;  %17992 = vmatprep.mubr.bf16.mxu0 %v20030_v13 }
 0xc38   :  { %18030 = vmatprep.subr.bf16.mxu0 %v24035_v33 }
 0xc3b   :  { %18031 = vmatpush3.bf16.msra.mxu0 %v24035_v33 }
 0xc3c   :  { %18032 = vmatprep.subr.bf16.mxu0 %v24037_v28 }
 0xc3e   :  { %17993 = vmatmul.mubr.bf16.gmra.mrb[208].mxu0 %v20031_v23 }
 0xc3f   :  { %18033 = vmatpush3.bf16.msra.mxu0 %v24037_v28  ;;  %17996 = vmatprep.mubr.bf16.mxu0 %v20032_v45  ;;  %v20058_v45 = vld [vmem:[%s26195_s4 + $0x220] sm:$0xff]  }
 0xc40   :  { %18034 = vmatprep.subr.bf16.mxu0 %v24039_v56 }
 0xc43   :  { %18035 = vmatpush3.bf16.msra.mxu0 %v24039_v56 }
 0xc44   :  { %18036 = vmatprep.subr.bf16.mxu0 %v24041_v18 }
 0xc46   :  { %17997 = vmatmul.mubr.bf16.gmra.mrb[212].mxu0 %v20033_v39 }
 0xc47   :  { %18037 = vmatpush3.bf16.msra.mxu0 %v24041_v18  ;;  %18000 = vmatprep.mubr.bf16.mxu0 %v20034_v30 }
 0xc48   :  { %18038 = vmatprep.subr.bf16.mxu0 %v24043_v29 }
 0xc4b   :  { %18039 = vmatpush3.bf16.msra.mxu0 %v24043_v29 }
 0xc4c   :  { %18040 = vmatprep.subr.bf16.mxu0 %v24045_v8 }
 0xc4e   :  { %18001 = vmatmul.mubr.bf16.gmra.mrb[216].mxu0 %v20035_v58 }
 0xc4f   :  { %18041 = vmatpush3.bf16.msra.mxu0 %v24045_v8  ;;  %18044 = vmatprep.mubr.bf16.mxu0 %v20036_v55 }
 0xc50   :  { %18042 = vmatprep.subr.bf16.mxu0 %v24047_v35 }
 0xc53   :  { %18043 = vmatpush3.bf16.msra.mxu0 %v24047_v35 }
 0xc54   :  { %18084 = vmatprep.subr.bf16.mxu0 %v24033_v48 }
 0xc56   :  { %18045 = vmatmul.mubr.bf16.vlgmr.msra.gmra.mrb[220].mxu0 %v20037_v16 }
 0xc57   :  { %18085 = vmatpush3.bf16.msra.mxu0 %v24033_v48  ;;  %18048 = vmatprep.mubr.bf16.mxu0 %v20042_v25  ;;  %v20047_v48 = vld [vmem:[%s26195_s4 + $0x1e8] sm:$0xff]  }
 0xc58   :  { %18086 = vmatprep.subr.bf16.mxu0 %v24035_v33 }
 0xc5b   :  { %18087 = vmatpush3.bf16.msra.mxu0 %v24035_v33  ;;  %v20050_v33 = vld [vmem:[%s26195_s4 + $0x1f0] sm:$0xff]  }
 0xc5c   :  { %18088 = vmatprep.subr.bf16.mxu0 %v24037_v28 }
 0xc5e   :  { %18049 = vmatmul.mubr.bf16.gmra.mrb[224].mxu0 %v20043_v4 }
 0xc5f   :  { %18089 = vmatpush3.bf16.msra.mxu0 %v24037_v28  ;;  %18052 = vmatprep.mubr.bf16.mxu0 %v20046_v42 }
 0xc60   :  { %18090 = vmatprep.subr.bf16.mxu0 %v24039_v56 }
 0xc63   :  { %18091 = vmatpush3.bf16.msra.mxu0 %v24039_v56  ;;  %v20051_v56 = vld [vmem:[%s26195_s4 + $0x1f8] sm:$0xff]  }
 0xc64   :  { %18092 = vmatprep.subr.bf16.mxu0 %v24041_v18 }
 0xc66   :  { %18053 = vmatmul.mubr.bf16.gmra.mrb[228].mxu0 %v20047_v48 }
 0xc67   :  { %18093 = vmatpush3.bf16.msra.mxu0 %v24041_v18  ;;  %18056 = vmatprep.mubr.bf16.mxu0 %v20050_v33 }
 0xc68   :  { %18094 = vmatprep.subr.bf16.mxu0 %v24043_v29 }
 0xc69   :  { %v17686_v28 = vpop.f32.mrb[108].mxu0  ;;  %v24389_v20 = vpop.f32.mrb[104].mxu1 }
 0xc6a   :  { %v6990_v21 = vpop.f32.mrb[109].mxu0  ;;  %v24391_v0 = vpop.f32.mrb[105].mxu1 }
 0xc6b   :  { %v17687_v22 = vpop.f32.mrb[110].mxu0  ;;  %18095 = vmatpush3.bf16.msra.mxu0 %v24043_v29  ;;  %v24397_v5 = vpop.f32.mrb[106].mxu1  ;;  %v20045_v29 = vld [vmem:[%s26197_s6 + $0x8] sm:$0xff]  }
 0xc6c   :  { %v7062_v46 = vpack.c.bf16 %v17687_v22, %v17686_v28  ;;  %v6993_v18 = vpop.f32.mrb[111].mxu0  ;;  %18096 = vmatprep.subr.bf16.mxu0 %v24045_v8  ;;  %v6885_v60 = vpack.c.bf16 %v24397_v5, %v24389_v20  ;;  %v24402_v24 = vpop.f32.mrb[107].mxu1  ;;  %v20059_v28 = vld [vmem:[%s26195_s4 + $0x228] sm:$0xff]   ;;  %v20062_v22 = vld [vmem:[%s26195_s4 + $0x230] sm:$0xff]   ;;  %v20061_v20 = vld [vmem:[%s26197_s6 + $0x58] sm:$0xff]  }
 0xc6d   :  { %v7061_v2 = vpack.c.bf16 %v6993_v18, %v6990_v21  ;;  %v6884_v27 = vpack.c.bf16 %v24402_v24, %v24391_v0  ;;  %v20060_v24 = vld [vmem:[%s26197_s6 + $0x50] sm:$0xff]  }
 0xc6e   :  { %18057 = vmatmul.mubr.bf16.gmra.mrb[232].mxu0 %v20051_v56 }
 0xc6f   :  { %17708 = vmatprep.mubr.msk.bf16.mxu1 %vm6421_vm6, %v7061_v2  ;;  %18097 = vmatpush3.bf16.msra.mxu0 %v24045_v8  ;;  %v20053_v8 = vld [vmem:[%s26195_s4 + $0x208] sm:$0xff]  }
 0xc70   :  { %17709 = vmatmul.mubr.msk.bf16.vlgmr.msra.gmra.mrb[120].mxu1 %vm6421_vm6, %v7062_v46  ;;  %18098 = vmatprep.subr.bf16.mxu0 %v24047_v35 }
 0xc71   :  { %v17690_v31 = vpop.f32.mrb[112].mxu0  ;;  %17725 = vmatpush3.bf16.msra.mxu1 %v24255_v17  ;;  %v24417_v37 = vpop.f32.mrb[108].mxu1  ;;  %18100 = vmatprep.mubr.bf16.mxu0 %v20052_v12  ;;  %v20054_v17 = vld [vmem:[%s26195_s4 + $0x210] sm:$0xff]  }
 0xc72   :  { %v7006_v63 = vpop.f32.mrb[113].mxu0  ;;  %17726 = vmatprep.subr.bf16.mxu1 %v20045_v29  ;;  %v24422_v57 = vpop.f32.mrb[109].mxu1 }
 0xc73   :  { %v17691_v38 = vpop.f32.mrb[114].mxu0  ;;  %18099 = vmatpush3.bf16.msra.mxu0 %v24047_v35  ;;  %v24428_v3 = vpop.f32.mrb[110].mxu1  ;;  %v20049_v35 = vld [vmem:[%s26197_s6 + $0x18] sm:$0xff]  }
 0xc74   :  { %v7064_v36 = vpack.c.bf16 %v17691_v38, %v17690_v31  ;;  %v7009_v34 = vpop.f32.mrb[115].mxu0  ;;  %v6887_v6 = vpack.c.bf16 %v24428_v3, %v24417_v37  ;;  %v24435_v32 = vpop.f32.mrb[111].mxu1 }
 0xc75   :  { %v7063_v19 = vpack.c.bf16 %v7009_v34, %v7006_v63  ;;  %17727 = vmatpush3.bf16.msra.mxu1 %v20045_v29  ;;  %v6886_v61 = vpack.c.bf16 %v24435_v32, %v24422_v57  ;;  %v20063_v57 = vld [vmem:[%s26195_s4 + $0x238] sm:$0xff]   ;;  %v20057_v34 = vld [vmem:[%s26197_s6 + $0x48] sm:$0xff]  }
 0xc76   :  { %17728 = vmatprep.subr.bf16.mxu1 %v20048_v14  ;;  %18101 = vmatmul.mubr.bf16.vlgmr.msra.gmra.mrb[236].mxu0 %v20053_v8 }
 0xc77   :  { %17712 = vmatprep.mubr.msk.bf16.mxu1 %vm6421_vm6, %v7063_v19  ;;  %18104 = vmatprep.mubr.bf16.mxu0 %v20054_v17 }
 0xc78   :  { %17713 = vmatmul.mubr.msk.bf16.gmra.mrb[124].mxu1 %vm6421_vm6, %v7064_v36 }
 0xc79   :  { %v17694_v47 = vpop.f32.mrb[116].mxu0  ;;  %17729 = vmatpush3.bf16.msra.mxu1 %v20048_v14  ;;  %v24444_v59 = vpop.f32.mrb[112].mxu1 }
 0xc7a   :  { %v7022_v50 = vpop.f32.mrb[117].mxu0  ;;  %17730 = vmatprep.subr.bf16.mxu1 %v20049_v35  ;;  %v6845_v41 = vpop.f32.mrb[113].mxu1 }
 0xc7b   :  { %v17695_v13 = vpop.f32.mrb[118].mxu0  ;;  %v24452_v23 = vpop.f32.mrb[114].mxu1 }
 0xc7c   :  { %v7066_v39 = vpack.c.bf16 %v17695_v13, %v17694_v47  ;;  %v7025_v30 = vpop.f32.mrb[119].mxu0  ;;  %v6889_v58 = vpack.c.bf16 %v24452_v23, %v24444_v59  ;;  %v6848_v55 = vpop.f32.mrb[115].mxu1  ;;  %v20065_v23 = vld [vmem:[%s26197_s6 + $0x68] sm:$0xff]  }
 0xc7d   :  { %v7065_v16 = vpack.c.bf16 %v7025_v30, %v7022_v50  ;;  %17731 = vmatpush3.bf16.msra.mxu1 %v20049_v35  ;;  %v6888_v25 = vpack.c.bf16 %v6848_v55, %v6845_v41 }
 0xc7e   :  { %18105 = vmatmul.mubr.bf16.gmra.mrb[240].mxu0 %v20055_v52  ;;  %17780 = vmatprep.subr.bf16.mxu1 %v20056_v15 }
 0xc7f   :  { %17716 = vmatprep.mubr.msk.bf16.mxu1 %vm6421_vm6, %v7065_v16  ;;  %18108 = vmatprep.mubr.bf16.mxu0 %v20058_v45 }
 0xc80   :  { %17717 = vmatmul.mubr.msk.bf16.gmra.mrb[128].mxu1 %vm6421_vm6, %v7066_v39 }
 0xc81   :  { %v17698_v4 = vpop.f32.mrb[120].mxu0  ;;  %v24461_v42 = vpop.f32.mrb[116].mxu1 }
 0xc82   :  { %v7038_v48 = vpop.f32.mrb[121].mxu0  ;;  %v6861_v33 = vpop.f32.mrb[117].mxu1 }
 0xc83   :  { %v17699_v21 = vpop.f32.mrb[122].mxu0  ;;  %v17667_v56 = vpop.f32.mrb[118].mxu1 }
 0xc84   :  { %v7068_v46 = vpack.c.bf16 %v17699_v21, %v17698_v4  ;;  %v7041_v18 = vpop.f32.mrb[123].mxu0  ;;  %v6891_v2 = vpack.c.bf16 %v17667_v56, %v24461_v42  ;;  %v6864_v12 = vpop.f32.mrb[119].mxu1  ;;  %v20066_v42 = vld [vmem:[%s26197_s6 + $0x70] sm:$0xff]  }
 0xc85   :  { %v7067_v29 = vpack.c.bf16 %v7041_v18, %v7038_v48  ;;  %v6890_v31 = vpack.c.bf16 %v6864_v12, %v6861_v33 }
 0xc86   :  { %18109 = vmatmul.mubr.bf16.gmra.mrb[244].mxu0 %v20059_v28 }
 0xc87   :  { %17720 = vmatprep.mubr.msk.bf16.mxu1 %vm6421_vm6, %v7067_v29  ;;  %18112 = vmatprep.mubr.bf16.mxu0 %v20062_v22  ;;  %v20067_v22 = vld [vmem:[%s26197_s6 + $0x78] sm:$0xff]  }
 0xc88   :  { %17721 = vmatmul.mubr.msk.bf16.gmra.mrb[132].mxu1 %vm6421_vm6, %v7068_v46 }
 0xc89   :  { %17732 = vmatprep.mubr.msk.bf16.mxu1 %vm6421_vm6, %v6884_v27  ;;  %v17766_v63 = vpop.f32.mrb[124].mxu0 }
 0xc8a   :  { %v7457_v14 = vpop.f32.mrb[125].mxu0 }
 0xc8b   :  { %v17767_v8 = vpop.f32.mrb[126].mxu0 }
 0xc8c   :  { %v7529_v38 = vpack.c.bf16 %v17767_v8, %v17766_v63  ;;  %v7460_v17 = vpop.f32.mrb[127].mxu0 }
 0xc8d   :  { %v7528_v36 = vpack.c.bf16 %v7460_v17, %v7457_v14 }
 0xc8e   :  { %18113 = vmatmul.mubr.bf16.gmra.mrb[248].mxu0 %v20063_v57 }
 0xc90   :  { %17733 = vmatmul.mubr.msk.bf16.vlgmr.msra.gmra.mrb[120].mxu1 %vm6421_vm6, %v6885_v60 }
 0xc91   :  { %17736 = vmatprep.mubr.msk.bf16.mxu1 %vm6421_vm6, %v6886_v61  ;;  %17781 = vmatpush3.bf16.msra.mxu1 %v20056_v15  ;;  %v17770_v0 = vpop.f32.mrb[128].mxu0  ;;  %v20064_v61 = vld [vmem:[%s26197_s6 + $0x60] sm:$0xff]  }
 0xc92   :  { %17782 = vmatprep.subr.bf16.mxu1 %v20057_v34  ;;  %v7473_v27 = vpop.f32.mrb[129].mxu0 }
 0xc93   :  { %v17771_v32 = vpop.f32.mrb[130].mxu0 }
 0xc94   :  { %v7531_v19 = vpack.c.bf16 %v17771_v32, %v17770_v0  ;;  %v7476_v35 = vpop.f32.mrb[131].mxu0 }
 0xc95   :  { %17783 = vmatpush3.bf16.msra.mxu1 %v20057_v34  ;;  %v7530_v47 = vpack.c.bf16 %v7476_v35, %v7473_v27  ;;  %v20069_v35 = vld [vmem:[%s26197_s6 + $0x88] sm:$0xff]  }
 0xc96   :  { %17784 = vmatprep.subr.bf16.mxu1 %v20060_v24 }
 0xc98   :  { %17737 = vmatmul.mubr.msk.bf16.gmra.mrb[124].mxu1 %vm6421_vm6, %v6887_v6 }
 0xc99   :  { %17740 = vmatprep.mubr.msk.bf16.mxu1 %vm6421_vm6, %v6888_v25  ;;  %17785 = vmatpush3.bf16.msra.mxu1 %v20060_v24  ;;  %v17774_v5 = vpop.f32.mrb[132].mxu0 }
 0xc9a   :  { %17786 = vmatprep.subr.bf16.mxu1 %v20061_v20  ;;  %v7489_v60 = vpop.f32.mrb[133].mxu0 }
 0xc9b   :  { %v17775_v50 = vpop.f32.mrb[134].mxu0 }
 0xc9c   :  { %v7533_v41 = vpack.c.bf16 %v17775_v50, %v17774_v5  ;;  %v7492_v52 = vpop.f32.mrb[135].mxu0 }
 0xc9d   :  { %17787 = vmatpush3.bf16.msra.mxu1 %v20061_v20  ;;  %v7532_v15 = vpack.c.bf16 %v7492_v52, %v7489_v60  ;;  %v20070_v20 = vld [vmem:[%s26197_s6 + $0x90] sm:$0xff]   ;;  %v20071_v52 = vld [vmem:[%s26197_s6 + $0x98] sm:$0xff]  }
 0xc9e   :  { %17836 = vmatprep.subr.bf16.mxu1 %v20064_v61 }
 0xca0   :  { %17741 = vmatmul.mubr.msk.bf16.gmra.mrb[128].mxu1 %vm6421_vm6, %v6889_v58 }
 0xca1   :  { %17744 = vmatprep.mubr.msk.bf16.mxu1 %vm6421_vm6, %v6890_v31  ;;  %v17778_v37 = vpop.f32.mrb[136].mxu0 }
 0xca2   :  { %v7505_v3 = vpop.f32.mrb[137].mxu0 }
 0xca3   :  { %v17779_v6 = vpop.f32.mrb[138].mxu0 }
 0xca4   :  { %v7535_v13 = vpack.c.bf16 %v17779_v6, %v17778_v37  ;;  %v7508_v45 = vpop.f32.mrb[139].mxu0 }
 0xca5   :  { %v7534_v39 = vpack.c.bf16 %v7508_v45, %v7505_v3  ;;  %v20072_v3 = vld [vmem:[%s26197_s6 + $0xa0] sm:$0xff]  }
 0xca8   :  { %17745 = vmatmul.mubr.msk.bf16.gmra.mrb[132].mxu1 %vm6421_vm6, %v6891_v2  ;;  %v20068_v2 = vld [vmem:[%s26197_s6 + $0x80] sm:$0xff]  }
 0xca9   :  { %17788 = vmatprep.mubr.msk.bf16.mxu1 %vm6421_vm6, %v7528_v36  ;;  %v17822_v30 = vpop.f32.mrb[140].mxu0 }
 0xcaa   :  { %v7795_v55 = vpop.f32.mrb[141].mxu0 }
 0xcab   :  { %v17823_v16 = vpop.f32.mrb[142].mxu0 }
 0xcac   :  { %v7867_v25 = vpack.c.bf16 %v17823_v16, %v17822_v30  ;;  %v7798_v4 = vpop.f32.mrb[143].mxu0 }
 0xcad   :  { %v7866_v59 = vpack.c.bf16 %v7798_v4, %v7795_v55 }
 0xcb0   :  { %17789 = vmatmul.mubr.msk.bf16.vlgmr.msra.gmra.mrb[120].mxu1 %vm6421_vm6, %v7529_v38 }
 0xcb1   :  { %17792 = vmatprep.mubr.msk.bf16.mxu1 %vm6421_vm6, %v7530_v47  ;;  %17837 = vmatpush3.bf16.msra.mxu1 %v20064_v61  ;;  %v17826_v58 = vpop.f32.mrb[144].mxu0 }
 0xcb2   :  { %17838 = vmatprep.subr.bf16.mxu1 %v20065_v23  ;;  %v7811_v48 = vpop.f32.mrb[145].mxu0 }
 0xcb3   :  { %v17827_v33 = vpop.f32.mrb[146].mxu0 }
 0xcb4   :  { %v7869_v28 = vpack.c.bf16 %v17827_v33, %v17826_v58  ;;  %v7814_v21 = vpop.f32.mrb[147].mxu0 }
 0xcb5   :  { %17839 = vmatpush3.bf16.msra.mxu1 %v20065_v23  ;;  %v7868_v56 = vpack.c.bf16 %v7814_v21, %v7811_v48  ;;  %v20073_v21 = vld [vmem:[%s26197_s6 + $0xa8] sm:$0xff]  }
 0xcb6   :  { %17840 = vmatprep.subr.bf16.mxu1 %v20066_v42 }
 0xcb8   :  { %17793 = vmatmul.mubr.msk.bf16.gmra.mrb[124].mxu1 %vm6421_vm6, %v7531_v19 }
 0xcb9   :  { %17796 = vmatprep.mubr.msk.bf16.mxu1 %vm6421_vm6, %v7532_v15  ;;  %17841 = vmatpush3.bf16.msra.mxu1 %v20066_v42  ;;  %v17830_v46 = vpop.f32.mrb[148].mxu0 }
 0xcba   :  { %17842 = vmatprep.subr.bf16.mxu1 %v20067_v22  ;;  %v7827_v18 = vpop.f32.mrb[149].mxu0 }
 0xcbb   :  { %v17831_v12 = vpop.f32.mrb[150].mxu0 }
 0xcbc   :  { %v7871_v29 = vpack.c.bf16 %v17831_v12, %v17830_v46  ;;  %v7830_v31 = vpop.f32.mrb[151].mxu0 }
 0xcbd   :  { %17843 = vmatpush3.bf16.msra.mxu1 %v20067_v22  ;;  %v7870_v63 = vpack.c.bf16 %v7830_v31, %v7827_v18  ;;  %v20074_v22 = vld [vmem:[%s26197_s6 + $0xb0] sm:$0xff]   ;;  %v20075_v31 = vld [vmem:[%s26197_s6 + $0xb8] sm:$0xff]  }
 0xcbe   :  { %17892 = vmatprep.subr.bf16.mxu1 %v20068_v2 }
 0xcc0   :  { %17797 = vmatmul.mubr.msk.bf16.gmra.mrb[128].mxu1 %vm6421_vm6, %v7533_v41 }
 0xcc1   :  { %17800 = vmatprep.mubr.msk.bf16.mxu1 %vm6421_vm6, %v7534_v39  ;;  %v17834_v14 = vpop.f32.mrb[152].mxu0 }
 0xcc2   :  { %v7843_v57 = vpop.f32.mrb[153].mxu0 }
 0xcc3   :  { %v17835_v8 = vpop.f32.mrb[154].mxu0 }
 0xcc4   :  { %v7873_v38 = vpack.c.bf16 %v17835_v8, %v17834_v14  ;;  %v7846_v17 = vpop.f32.mrb[155].mxu0 }
 0xcc5   :  { %v7872_v36 = vpack.c.bf16 %v7846_v17, %v7843_v57  ;;  %v20076_v57 = vld [vmem:[%s26197_s6 + $0xc0] sm:$0xff]  }
 0xcc8   :  { %17801 = vmatmul.mubr.msk.bf16.gmra.mrb[132].mxu1 %vm6421_vm6, %v7535_v13 }
 0xcc9   :  { %17844 = vmatprep.mubr.msk.bf16.mxu1 %vm6421_vm6, %v7866_v59  ;;  %v17878_v34 = vpop.f32.mrb[156].mxu0 }
 0xcca   :  { %v8133_v0 = vpop.f32.mrb[157].mxu0 }
 0xccb   :  { %v17879_v24 = vpop.f32.mrb[158].mxu0 }
 0xccc   :  { %v8205_v27 = vpack.c.bf16 %v17879_v24, %v17878_v34  ;;  %v8136_v32 = vpop.f32.mrb[159].mxu0 }
 0xccd   :  { %v8204_v19 = vpack.c.bf16 %v8136_v32, %v8133_v0 }
 0xcd0   :  { %17845 = vmatmul.mubr.msk.bf16.vlgmr.msra.gmra.mrb[120].mxu1 %vm6421_vm6, %v7867_v25 }
 0xcd1   :  { %17848 = vmatprep.mubr.msk.bf16.mxu1 %vm6421_vm6, %v7868_v56  ;;  %17893 = vmatpush3.bf16.msra.mxu1 %v20068_v2  ;;  %v17882_v47 = vpop.f32.mrb[160].mxu0 }
 0xcd2   :  { %17894 = vmatprep.subr.bf16.mxu1 %v20069_v35  ;;  %v8149_v5 = vpop.f32.mrb[161].mxu0 }
 0xcd3   :  { %v17883_v60 = vpop.f32.mrb[162].mxu0 }
 0xcd4   :  { %v8207_v61 = vpack.c.bf16 %v17883_v60, %v17882_v47  ;;  %v8152_v50 = vpop.f32.mrb[163].mxu0 }
 0xcd5   :  { %17895 = vmatpush3.bf16.msra.mxu1 %v20069_v35  ;;  %v8206_v41 = vpack.c.bf16 %v8152_v50, %v8149_v5  ;;  %v20077_v50 = vld [vmem:[%s26197_s6 + $0xc8] sm:$0xff]  }
 0xcd6   :  { %17896 = vmatprep.subr.bf16.mxu1 %v20070_v20 }
 0xcd8   :  { %17849 = vmatmul.mubr.msk.bf16.gmra.mrb[124].mxu1 %vm6421_vm6, %v7869_v28 }
 0xcd9   :  { %17852 = vmatprep.mubr.msk.bf16.mxu1 %vm6421_vm6, %v7870_v63  ;;  %17897 = vmatpush3.bf16.msra.mxu1 %v20070_v20  ;;  %v17886_v15 = vpop.f32.mrb[164].mxu0 }
 0xcda   :  { %17898 = vmatprep.subr.bf16.mxu1 %v20071_v52  ;;  %v8165_v37 = vpop.f32.mrb[165].mxu0 }
 0xcdb   :  { %v17887_v6 = vpop.f32.mrb[166].mxu0 }
 0xcdc   :  { %v8209_v13 = vpack.c.bf16 %v17887_v6, %v17886_v15  ;;  %v8168_v45 = vpop.f32.mrb[167].mxu0 }
 0xcdd   :  { %17899 = vmatpush3.bf16.msra.mxu1 %v20071_v52  ;;  %v8208_v39 = vpack.c.bf16 %v8168_v45, %v8165_v37  ;;  %v20078_v52 = vld [vmem:[%s26197_s6 + $0xd0] sm:$0xff]   ;;  %v20079_v45 = vld [vmem:[%s26197_s6 + $0xd8] sm:$0xff]  }
 0xcde   :  { %17948 = vmatprep.subr.bf16.mxu1 %v20072_v3 }
 0xce0   :  { %17853 = vmatmul.mubr.msk.bf16.gmra.mrb[128].mxu1 %vm6421_vm6, %v7871_v29 }
 0xce1   :  { %17856 = vmatprep.mubr.msk.bf16.mxu1 %vm6421_vm6, %v7872_v36  ;;  %v17890_v30 = vpop.f32.mrb[168].mxu0 }
 0xce2   :  { %v8181_v55 = vpop.f32.mrb[169].mxu0 }
 0xce3   :  { %v17891_v16 = vpop.f32.mrb[170].mxu0 }
 0xce4   :  { %v8211_v25 = vpack.c.bf16 %v17891_v16, %v17890_v30  ;;  %v8184_v4 = vpop.f32.mrb[171].mxu0 }
 0xce5   :  { %v8210_v59 = vpack.c.bf16 %v8184_v4, %v8181_v55  ;;  %v20080_v55 = vld [vmem:[%s26197_s6 + $0xe0] sm:$0xff]  }
 0xce8   :  { %17857 = vmatmul.mubr.msk.bf16.gmra.mrb[132].mxu1 %vm6421_vm6, %v7873_v38 }
 0xce9   :  { %17900 = vmatprep.mubr.msk.bf16.mxu1 %vm6421_vm6, %v8204_v19  ;;  %v17934_v23 = vpop.f32.mrb[172].mxu0 }
 0xcea   :  { %v8471_v58 = vpop.f32.mrb[173].mxu0 }
 0xceb   :  { %v17935_v42 = vpop.f32.mrb[174].mxu0 }
 0xcec   :  { %v8543_v48 = vpack.c.bf16 %v17935_v42, %v17934_v23  ;;  %v8474_v33 = vpop.f32.mrb[175].mxu0 }
 0xced   :  { %v8542_v28 = vpack.c.bf16 %v8474_v33, %v8471_v58 }
 0xcf0   :  { %17901 = vmatmul.mubr.msk.bf16.vlgmr.msra.gmra.mrb[120].mxu1 %vm6421_vm6, %v8205_v27 }
 0xcf1   :  { %17904 = vmatprep.mubr.msk.bf16.mxu1 %vm6421_vm6, %v8206_v41  ;;  %17949 = vmatpush3.bf16.msra.mxu1 %v20072_v3  ;;  %v17938_v56 = vpop.f32.mrb[176].mxu0 }
 0xcf2   :  { %17950 = vmatprep.subr.bf16.mxu1 %v20073_v21  ;;  %v8487_v46 = vpop.f32.mrb[177].mxu0 }
 0xcf3   :  { %v17939_v18 = vpop.f32.mrb[178].mxu0 }
 0xcf4   :  { %v8545_v2 = vpack.c.bf16 %v17939_v18, %v17938_v56  ;;  %v8490_v12 = vpop.f32.mrb[179].mxu0 }
 0xcf5   :  { %17951 = vmatpush3.bf16.msra.mxu1 %v20073_v21  ;;  %v8544_v29 = vpack.c.bf16 %v8490_v12, %v8487_v46  ;;  %v20081_v12 = vld [vmem:[%s26197_s6 + $0xe8] sm:$0xff]  }
 0xcf6   :  { %17952 = vmatprep.subr.bf16.mxu1 %v20074_v22 }
 0xcf8   :  { %17905 = vmatmul.mubr.msk.bf16.gmra.mrb[124].mxu1 %vm6421_vm6, %v8207_v61 }
 0xcf9   :  { %17908 = vmatprep.mubr.msk.bf16.mxu1 %vm6421_vm6, %v8208_v39  ;;  %17953 = vmatpush3.bf16.msra.mxu1 %v20074_v22  ;;  %v17942_v63 = vpop.f32.mrb[180].mxu0 }
 0xcfa   :  { %17954 = vmatprep.subr.bf16.mxu1 %v20075_v31  ;;  %v8503_v14 = vpop.f32.mrb[181].mxu0 }
 0xcfb   :  { %v17943_v8 = vpop.f32.mrb[182].mxu0 }
 0xcfc   :  { %v8547_v38 = vpack.c.bf16 %v17943_v8, %v17942_v63  ;;  %v8506_v17 = vpop.f32.mrb[183].mxu0 }
 0xcfd   :  { %17955 = vmatpush3.bf16.msra.mxu1 %v20075_v31  ;;  %v8546_v36 = vpack.c.bf16 %v8506_v17, %v8503_v14  ;;  %v20082_v31 = vld [vmem:[%s26197_s6 + $0xf0] sm:$0xff]   ;;  %v20083_v17 = vld [vmem:[%s26197_s6 + $0xf8] sm:$0xff]  }
 0xcfe   :  { %18004 = vmatprep.subr.bf16.mxu1 %v20076_v57 }
 0xd00   :  { %17909 = vmatmul.mubr.msk.bf16.gmra.mrb[128].mxu1 %vm6421_vm6, %v8209_v13 }
 0xd01   :  { %17912 = vmatprep.mubr.msk.bf16.mxu1 %vm6421_vm6, %v8210_v59  ;;  %v17946_v34 = vpop.f32.mrb[184].mxu0 }
 0xd02   :  { %v8519_v0 = vpop.f32.mrb[185].mxu0 }
 0xd03   :  { %v17947_v24 = vpop.f32.mrb[186].mxu0 }
 0xd04   :  { %v8549_v27 = vpack.c.bf16 %v17947_v24, %v17946_v34  ;;  %v8522_v32 = vpop.f32.mrb[187].mxu0 }
 0xd05   :  { %v8548_v19 = vpack.c.bf16 %v8522_v32, %v8519_v0  ;;  %v20084_v0 = vld [vmem:[%s26197_s6 + $0x100] sm:$0xff]  }
 0xd08   :  { %17913 = vmatmul.mubr.msk.bf16.gmra.mrb[132].mxu1 %vm6421_vm6, %v8211_v25 }
 0xd09   :  { %17956 = vmatprep.mubr.msk.bf16.mxu1 %vm6421_vm6, %v8542_v28  ;;  %v17990_v35 = vpop.f32.mrb[204].mxu0 }
 0xd0a   :  { %v8809_v47 = vpop.f32.mrb[205].mxu0 }
 0xd0b   :  { %v17991_v20 = vpop.f32.mrb[206].mxu0 }
 0xd0c   :  { %v8881_v5 = vpack.c.bf16 %v17991_v20, %v17990_v35  ;;  %v8812_v60 = vpop.f32.mrb[207].mxu0 }
 0xd0d   :  { %v8880_v61 = vpack.c.bf16 %v8812_v60, %v8809_v47 }
 0xd10   :  { %17957 = vmatmul.mubr.msk.bf16.vlgmr.msra.gmra.mrb[120].mxu1 %vm6421_vm6, %v8543_v48 }
 0xd11   :  { %17960 = vmatprep.mubr.msk.bf16.mxu1 %vm6421_vm6, %v8544_v29  ;;  %18005 = vmatpush3.bf16.msra.mxu1 %v20076_v57  ;;  %v17994_v41 = vpop.f32.mrb[208].mxu0 }
 0xd12   :  { %18006 = vmatprep.subr.bf16.mxu1 %v20077_v50  ;;  %v8825_v15 = vpop.f32.mrb[209].mxu0 }
 0xd13   :  { %v17995_v37 = vpop.f32.mrb[210].mxu0 }
 0xd14   :  { %v8883_v3 = vpack.c.bf16 %v17995_v37, %v17994_v41  ;;  %v8828_v6 = vpop.f32.mrb[211].mxu0 }
 0xd15   :  { %18007 = vmatpush3.bf16.msra.mxu1 %v20077_v50  ;;  %v8882_v13 = vpack.c.bf16 %v8828_v6, %v8825_v15  ;;  %v20085_v6 = vld [vmem:[%s26197_s6 + $0x108] sm:$0xff]  }
 0xd16   :  { %18008 = vmatprep.subr.bf16.mxu1 %v20078_v52 }
 0xd18   :  { %17961 = vmatmul.mubr.msk.bf16.gmra.mrb[124].mxu1 %vm6421_vm6, %v8545_v2 }
 0xd19   :  { %17964 = vmatprep.mubr.msk.bf16.mxu1 %vm6421_vm6, %v8546_v36  ;;  %18009 = vmatpush3.bf16.msra.mxu1 %v20078_v52  ;;  %v17998_v39 = vpop.f32.mrb[212].mxu0 }
 0xd1a   :  { %18010 = vmatprep.subr.bf16.mxu1 %v20079_v45  ;;  %v8841_v30 = vpop.f32.mrb[213].mxu0 }
 0xd1b   :  { %v17999_v16 = vpop.f32.mrb[214].mxu0 }
 0xd1c   :  { %v8885_v25 = vpack.c.bf16 %v17999_v16, %v17998_v39  ;;  %v8844_v4 = vpop.f32.mrb[215].mxu0 }
 0xd1d   :  { %18011 = vmatpush3.bf16.msra.mxu1 %v20079_v45  ;;  %v8884_v59 = vpack.c.bf16 %v8844_v4, %v8841_v30  ;;  %v20086_v45 = vld [vmem:[%s26197_s6 + $0x110] sm:$0xff]   ;;  %v20087_v4 = vld [vmem:[%s26197_s6 + $0x118] sm:$0xff]  }
 0xd1e   :  { %18060 = vmatprep.subr.bf16.mxu1 %v20080_v55 }
 0xd20   :  { %17965 = vmatmul.mubr.msk.bf16.gmra.mrb[128].mxu1 %vm6421_vm6, %v8547_v38 }
 0xd21   :  { %17968 = vmatprep.mubr.msk.bf16.mxu1 %vm6421_vm6, %v8548_v19  ;;  %v18002_v23 = vpop.f32.mrb[216].mxu0 }
 0xd22   :  { %v8857_v58 = vpop.f32.mrb[217].mxu0 }
 0xd23   :  { %v18003_v42 = vpop.f32.mrb[218].mxu0 }
 0xd24   :  { %v8887_v48 = vpack.c.bf16 %v18003_v42, %v18002_v23  ;;  %v8860_v33 = vpop.f32.mrb[219].mxu0 }
 0xd25   :  { %v8886_v28 = vpack.c.bf16 %v8860_v33, %v8857_v58 }
 0xd28   :  { %17969 = vmatmul.mubr.msk.bf16.gmra.mrb[132].mxu1 %vm6421_vm6, %v8549_v27 }
 0xd29   :  { %18012 = vmatprep.mubr.msk.bf16.mxu1 %vm6421_vm6, %v8880_v61  ;;  %v18046_v21 = vpop.f32.mrb[220].mxu0 }
 0xd2a   :  { %v9147_v56 = vpop.f32.mrb[221].mxu0 }
 0xd2b   :  { %v18047_v22 = vpop.f32.mrb[222].mxu0 }
 0xd2c   :  { %v9219_v46 = vpack.c.bf16 %v18047_v22, %v18046_v21  ;;  %v9150_v18 = vpop.f32.mrb[223].mxu0 }
 0xd2d   :  { %v9218_v2 = vpack.c.bf16 %v9150_v18, %v9147_v56 }
 0xd30   :  { %18013 = vmatmul.mubr.msk.bf16.vlgmr.msra.gmra.mrb[120].mxu1 %vm6421_vm6, %v8881_v5 }
 0xd31   :  { %18016 = vmatprep.mubr.msk.bf16.mxu1 %vm6421_vm6, %v8882_v13  ;;  %18061 = vmatpush3.bf16.msra.mxu1 %v20080_v55  ;;  %v18050_v29 = vpop.f32.mrb[224].mxu0 }
 0xd32   :  { %18062 = vmatprep.subr.bf16.mxu1 %v20081_v12  ;;  %v9163_v63 = vpop.f32.mrb[225].mxu0 }
 0xd33   :  { %v18051_v14 = vpop.f32.mrb[226].mxu0 }
 0xd34   :  { %v9221_v57 = vpack.c.bf16 %v18051_v14, %v18050_v29  ;;  %v9166_v8 = vpop.f32.mrb[227].mxu0 }
 0xd35   :  { %18063 = vmatpush3.bf16.msra.mxu1 %v20081_v12  ;;  %v9220_v38 = vpack.c.bf16 %v9166_v8, %v9163_v63 }
 0xd36   :  { %18064 = vmatprep.subr.bf16.mxu1 %v20082_v31 }
 0xd38   :  { %18017 = vmatmul.mubr.msk.bf16.gmra.mrb[124].mxu1 %vm6421_vm6, %v8883_v3 }
 0xd39   :  { %18020 = vmatprep.mubr.msk.bf16.mxu1 %vm6421_vm6, %v8884_v59  ;;  %18065 = vmatpush3.bf16.msra.mxu1 %v20082_v31  ;;  %v18054_v36 = vpop.f32.mrb[228].mxu0 }
 0xd3a   :  { %18066 = vmatprep.subr.bf16.mxu1 %v20083_v17  ;;  %v9179_v34 = vpop.f32.mrb[229].mxu0 }
 0xd3b   :  { %v18055_v24 = vpop.f32.mrb[230].mxu0 }
 0xd3c   :  { %v9223_v27 = vpack.c.bf16 %v18055_v24, %v18054_v36  ;;  %v9182_v32 = vpop.f32.mrb[231].mxu0 }
 0xd3d   :  { %18067 = vmatpush3.bf16.msra.mxu1 %v20083_v17  ;;  %v9222_v19 = vpack.c.bf16 %v9182_v32, %v9179_v34 }
 0xd3e   :  { %18116 = vmatprep.subr.bf16.mxu1 %v20084_v0 }
 0xd40   :  { %18021 = vmatmul.mubr.msk.bf16.gmra.mrb[128].mxu1 %vm6421_vm6, %v8885_v25 }
 0xd41   :  { %18024 = vmatprep.mubr.msk.bf16.mxu1 %vm6421_vm6, %v8886_v28  ;;  %v18058_v35 = vpop.f32.mrb[232].mxu0 }
 0xd42   :  { %v9195_v47 = vpop.f32.mrb[233].mxu0 }
 0xd43   :  { %v18059_v20 = vpop.f32.mrb[234].mxu0 }
 0xd44   :  { %v9225_v5 = vpack.c.bf16 %v18059_v20, %v18058_v35  ;;  %v9198_v60 = vpop.f32.mrb[235].mxu0 }
 0xd45   :  { %v9224_v61 = vpack.c.bf16 %v9198_v60, %v9195_v47 }
 0xd48   :  { %18025 = vmatmul.mubr.msk.bf16.gmra.mrb[132].mxu1 %vm6421_vm6, %v8887_v48 }
 0xd49   :  { %18068 = vmatprep.mubr.msk.bf16.mxu1 %vm6421_vm6, %v9218_v2  ;;  %v18102_v50 = vpop.f32.mrb[236].mxu0 }
 0xd4a   :  { %v9485_v41 = vpop.f32.mrb[237].mxu0 }
 0xd4b   :  { %v18103_v52 = vpop.f32.mrb[238].mxu0 }
 0xd4c   :  { %v9557_v15 = vpack.c.bf16 %v18103_v52, %v18102_v50  ;;  %v9488_v37 = vpop.f32.mrb[239].mxu0 }
 0xd4d   :  { %v9556_v3 = vpack.c.bf16 %v9488_v37, %v9485_v41 }
 0xd50   :  { %18069 = vmatmul.mubr.msk.bf16.vlgmr.msra.gmra.mrb[120].mxu1 %vm6421_vm6, %v9219_v46 }
 0xd51   :  { %18072 = vmatprep.mubr.msk.bf16.mxu1 %vm6421_vm6, %v9220_v38  ;;  %18117 = vmatpush3.bf16.msra.mxu1 %v20084_v0  ;;  %v18106_v13 = vpop.f32.mrb[240].mxu0 }
 0xd52   :  { %18118 = vmatprep.subr.bf16.mxu1 %v20085_v6  ;;  %v9501_v39 = vpop.f32.mrb[241].mxu0 }
 0xd53   :  { %v18107_v30 = vpop.f32.mrb[242].mxu0 }
 0xd54   :  { %v9559_v55 = vpack.c.bf16 %v18107_v30, %v18106_v13  ;;  %v9504_v16 = vpop.f32.mrb[243].mxu0 }
 0xd55   :  { %18119 = vmatpush3.bf16.msra.mxu1 %v20085_v6  ;;  %v9558_v25 = vpack.c.bf16 %v9504_v16, %v9501_v39 }
 0xd56   :  { %18120 = vmatprep.subr.bf16.mxu1 %v20086_v45 }
 0xd58   :  { %18073 = vmatmul.mubr.msk.bf16.gmra.mrb[124].mxu1 %vm6421_vm6, %v9221_v57 }
 0xd59   :  { %18076 = vmatprep.mubr.msk.bf16.mxu1 %vm6421_vm6, %v9222_v19  ;;  %18121 = vmatpush3.bf16.msra.mxu1 %v20086_v45  ;;  %v18110_v59 = vpop.f32.mrb[244].mxu0 }
 0xd5a   :  { %18122 = vmatprep.subr.bf16.mxu1 %v20087_v4  ;;  %v9517_v23 = vpop.f32.mrb[245].mxu0 }
 0xd5b   :  { %v18111_v58 = vpop.f32.mrb[246].mxu0 }
 0xd5c   :  { %v9561_v42 = vpack.c.bf16 %v18111_v58, %v18110_v59  ;;  %v9520_v48 = vpop.f32.mrb[247].mxu0 }
 0xd5d   :  { %18123 = vmatpush3.bf16.msra.mxu1 %v20087_v4  ;;  %v9560_v33 = vpack.c.bf16 %v9520_v48, %v9517_v23 }
 0xd60   :  { %18077 = vmatmul.mubr.msk.bf16.gmra.mrb[128].mxu1 %vm6421_vm6, %v9223_v27 }
 0xd61   :  { %18080 = vmatprep.mubr.msk.bf16.mxu1 %vm6421_vm6, %v9224_v61  ;;  %v18114_v28 = vpop.f32.mrb[248].mxu0 }
 0xd62   :  { %v9533_v21 = vpop.f32.mrb[249].mxu0 }
 0xd63   :  { %v18115_v56 = vpop.f32.mrb[250].mxu0 }
 0xd64   :  { %v9563_v22 = vpack.c.bf16 %v18115_v56, %v18114_v28  ;;  %v9536_v46 = vpop.f32.mrb[251].mxu0 }
 0xd65   :  { %v9562_v18 = vpack.c.bf16 %v9536_v46, %v9533_v21 }
 0xd68   :  { %18081 = vmatmul.mubr.msk.bf16.gmra.mrb[132].mxu1 %vm6421_vm6, %v9225_v5 }
 0xd69   :  { %18124 = vmatprep.mubr.msk.bf16.mxu1 %vm6421_vm6, %v9556_v3 }
 0xd70   :  { %18125 = vmatmul.mubr.msk.bf16.vlgmr.msra.gmra.mrb[120].mxu1 %vm6421_vm6, %v9557_v15 }
 0xd71   :  { %18128 = vmatprep.mubr.msk.bf16.mxu1 %vm6421_vm6, %v9558_v25 }
 0xd78   :  { %18129 = vmatmul.mubr.msk.bf16.gmra.mrb[124].mxu1 %vm6421_vm6, %v9559_v55 }
 0xd79   :  { %18132 = vmatprep.mubr.msk.bf16.mxu1 %vm6421_vm6, %v9560_v33 }
 0xd80   :  { %18133 = vmatmul.mubr.msk.bf16.gmra.mrb[128].mxu1 %vm6421_vm6, %v9561_v42 }
 0xd81   :  { %18136 = vmatprep.mubr.msk.bf16.mxu1 %vm6421_vm6, %v9562_v18 }
 0xd88   :  { %18137 = vmatmul.mubr.msk.bf16.gmra.mrb[132].mxu1 %vm6421_vm6, %v9563_v22 }
 0xe43   :  { %v18126_v2 = vpop.f32.mrb[120].mxu1 }
 0xe44   :  { %v9646_v12 = vpop.f32.mrb[121].mxu1  ;;  %v9730_v8 = vsel %vm6421_vm6, %v18126_v2, 0.0 }
 0xe45   :  { %v18127_v29 = vpop.f32.mrb[122].mxu1  ;;  %v9727_v63 = vsel %vm6421_vm6, %v9646_v12, 0.0 }
 0xe46   :  { %v9649_v31 = vpop.f32.mrb[123].mxu1  ;;  %v9732_v17 = vsel %vm6421_vm6, %v18127_v29, 0.0 }
 0xe47   :  { %v9728_v14 = vsel %vm6421_vm6, %v9649_v31, 0.0 }
 0xe48   :  { %v9729_v57 = vadd.f32 %v9728_v14, %v9727_v63  ;;  %v20088_v63 = vld [vmem:[%s26200_s9] sm:$0xff]  }
 0xe49   :  { %18156 = vmatprep.mubr.bf16.mxu0 %v20088_v63 }
 0xe4a   :  { %v9731_v38 = vadd.f32 %v9730_v8, %v9729_v57 }
 0xe4b   :  { %v18130_v36 = vpop.f32.mrb[124].mxu1 }
 0xe4c   :  { %v9662_v34 = vpop.f32.mrb[125].mxu1  ;;  %v9733_v0 = vadd.f32 %v9732_v17, %v9731_v38  ;;  %v9738_v20 = vsel %vm6421_vm6, %v18130_v36, 0.0 }
 0xe4d   :  { %v9734_v24 = vsel %vm6421_vm6, %v9662_v34, 0.0  ;;  %v18131_v27 = vpop.f32.mrb[126].mxu1 }
 0xe4e   :  { %v9735_v32 = vadd.f32 %v9734_v24, %v9733_v0  ;;  %v9665_v19 = vpop.f32.mrb[127].mxu1  ;;  %v9740_v60 = vsel %vm6421_vm6, %v18131_v27, 0.0 }
 0xe4f   :  { %v9736_v35 = vsel %vm6421_vm6, %v9665_v19, 0.0 }
 0xe50   :  { %v9737_v47 = vadd.f32 %v9736_v35, %v9735_v32 }
 0xe52   :  { %v9739_v5 = vadd.f32 %v9738_v20, %v9737_v47 }
 0xe53   :  { %v18134_v61 = vpop.f32.mrb[128].mxu1 }
 0xe54   :  { %v9678_v50 = vpop.f32.mrb[129].mxu1  ;;  %v9741_v41 = vadd.f32 %v9740_v60, %v9739_v5  ;;  %v9746_v45 = vsel %vm6421_vm6, %v18134_v61, 0.0 }
 0xe55   :  { %v9742_v52 = vsel %vm6421_vm6, %v9678_v50, 0.0  ;;  %v18135_v15 = vpop.f32.mrb[130].mxu1 }
 0xe56   :  { %v9743_v37 = vadd.f32 %v9742_v52, %v9741_v41  ;;  %v9681_v3 = vpop.f32.mrb[131].mxu1  ;;  %v9748_v30 = vsel %vm6421_vm6, %v18135_v15, 0.0 }
 0xe57   :  { %v9744_v6 = vsel %vm6421_vm6, %v9681_v3, 0.0 }
 0xe58   :  { %v9745_v13 = vadd.f32 %v9744_v6, %v9743_v37 }
 0xe5a   :  { %v9747_v39 = vadd.f32 %v9746_v45, %v9745_v13 }
 0xe5b   :  { %v18138_v55 = vpop.f32.mrb[132].mxu1 }
 0xe5c   :  { %v9694_v16 = vpop.f32.mrb[133].mxu1  ;;  %v9749_v25 = vadd.f32 %v9748_v30, %v9747_v39  ;;  %v9754_v33 = vsel %vm6421_vm6, %v18138_v55, 0.0 }
 0xe5d   :  { %v9750_v4 = vsel %vm6421_vm6, %v9694_v16, 0.0  ;;  %v18139_v59 = vpop.f32.mrb[134].mxu1 }
 0xe5e   :  { %v9751_v23 = vadd.f32 %v9750_v4, %v9749_v25  ;;  %v9697_v58 = vpop.f32.mrb[135].mxu1  ;;  %v9756_v21 = vsel %vm6421_vm6, %v18139_v59, 0.0 }
 0xe5f   :  { %v9752_v42 = vsel %vm6421_vm6, %v9697_v58, 0.0 }
 0xe60   :  { %v9753_v48 = vadd.f32 %v9752_v42, %v9751_v23 }
 0xe62   :  { %v9755_v28 = vadd.f32 %v9754_v33, %v9753_v48 }
 0xe64   :  { %v9757_v56 = vadd.f32 %v9756_v21, %v9755_v28 }
 0xe66   :  { %v9758_v22 = vrot.slane %v9757_v56, 4 }
 0xe68   :  { %v9759_v46 = vadd.f32 %v9758_v22, %v9757_v56 }
 0xe6a   :  { %v9760_v18 = vrot.slane %v9759_v46, 2 }
 0xe6c   :  { %v9761_v14 = vadd.f32 %v9760_v18, %v9759_v46 }
 0xe6e   :  { %v9762_v57 = vrot.slane %v9761_v14, 1 }
 0xe70   :  { %v9763_v8 = vadd.f32 %v9762_v57, %v9761_v14 }
 0xe72   :  { %v9764_v38 = vmul.f32 0.0078125, %v9763_v8 }
 0xe74   :  { %v24651_v17 = vsub.f32 %v9646_v12, %v9764_v38  ;;  %v24653_v0 = vsub.f32 %v9649_v31, %v9764_v38  ;;  %v24655_v24 = vsub.f32 %v18126_v2, %v9764_v38  ;;  %v24657_v32 = vsub.f32 %v18127_v29, %v9764_v38 }
 0xe75   :  { %v24659_v35 = vsub.f32 %v9662_v34, %v9764_v38  ;;  %v24661_v47 = vsub.f32 %v9665_v19, %v9764_v38  ;;  %v24663_v20 = vsub.f32 %v18130_v36, %v9764_v38  ;;  %v24665_v5 = vsub.f32 %v18131_v27, %v9764_v38 }
 0xe76   :  { %v24667_v60 = vsub.f32 %v9678_v50, %v9764_v38  ;;  %v24669_v41 = vsub.f32 %v9681_v3, %v9764_v38  ;;  %v24671_v12 = vsub.f32 %v18134_v61, %v9764_v38  ;;  %v24673_v31 = vsub.f32 %v18135_v15, %v9764_v38 }
 0xe77   :  { %v24675_v2 = vsub.f32 %v9694_v16, %v9764_v38  ;;  %v24677_v29 = vsub.f32 %v9697_v58, %v9764_v38  ;;  %v24679_v34 = vsub.f32 %v18138_v55, %v9764_v38  ;;  %v24681_v19 = vsub.f32 %v18139_v59, %v9764_v38 }
 0xe78   :  { %v9781_v36 = vmul.f32 %v24651_v17, %v24651_v17  ;;  %v9782_v27 = vmul.f32 %v24653_v0, %v24653_v0  ;;  %v9783_v61 = vmul.f32 %v24655_v24, %v24655_v24  ;;  %v9784_v50 = vmul.f32 %v24657_v32, %v24657_v32 }
 0xe79   :  { %v9785_v3 = vmul.f32 %v24659_v35, %v24659_v35  ;;  %v9786_v45 = vmul.f32 %v24661_v47, %v24661_v47  ;;  %v9787_v55 = vmul.f32 %v24663_v20, %v24663_v20  ;;  %v9788_v4 = vmul.f32 %v24665_v5, %v24665_v5 }
 0xe7a   :  { %v9797_v52 = vsel %vm6421_vm6, %v9781_v36, 0.0  ;;  %v9798_v15 = vsel %vm6421_vm6, %v9782_v27, 0.0  ;;  %v9800_v6 = vsel %vm6421_vm6, %v9783_v61, 0.0  ;;  %v9802_v39 = vsel %vm6421_vm6, %v9784_v50, 0.0 }
 0xe7b   :  { %v9799_v37 = vadd.f32 %v9798_v15, %v9797_v52  ;;  %v9804_v16 = vsel %vm6421_vm6, %v9785_v3, 0.0  ;;  %v9806_v59 = vsel %vm6421_vm6, %v9786_v45, 0.0  ;;  %v9789_v58 = vmul.f32 %v24667_v60, %v24667_v60 }
 0xe7c   :  { %v9808_v42 = vsel %vm6421_vm6, %v9787_v55, 0.0  ;;  %v9790_v33 = vmul.f32 %v24669_v41, %v24669_v41  ;;  %v9810_v28 = vsel %vm6421_vm6, %v9788_v4, 0.0  ;;  %v9791_v56 = vmul.f32 %v24671_v12, %v24671_v12 }
 0xe7d   :  { %v9801_v13 = vadd.f32 %v9800_v6, %v9799_v37  ;;  %v9812_v22 = vsel %vm6421_vm6, %v9789_v58, 0.0  ;;  %v9792_v18 = vmul.f32 %v24673_v31, %v24673_v31  ;;  %v9793_v57 = vmul.f32 %v24675_v2, %v24675_v2 }
 0xe7e   :  { %v9814_v63 = vsel %vm6421_vm6, %v9790_v33, 0.0  ;;  %v9816_v8 = vsel %vm6421_vm6, %v9791_v56, 0.0  ;;  %v9794_v36 = vmul.f32 %v24677_v29, %v24677_v29  ;;  %v9795_v50 = vmul.f32 %v24679_v34, %v24679_v34  ;;  %v9725_v33 = vld [vmem:[%s26199_s8 + $0x2] sm:$0x1] }
 0xe7f   :  { %v9803_v30 = vadd.f32 %v9802_v39, %v9801_v13  ;;  %v9818_v27 = vsel %vm6421_vm6, %v9792_v18, 0.0  ;;  %v9820_v52 = vsel %vm6421_vm6, %v9793_v57, 0.0  ;;  %v9796_v37 = vmul.f32 %v24681_v19, %v24681_v19 }
 0xe80   :  { %v9822_v3 = vsel %vm6421_vm6, %v9794_v36, 0.0  ;;  %v9824_v13 = vsel %vm6421_vm6, %v9795_v50, 0.0  ;;  %v26613_v50 = vld [vmem:[#allocation43_spill] sm:$0xff] }
 0xe81   :  { %v9805_v25 = vadd.f32 %v9804_v16, %v9803_v30  ;;  %v9826_v39 = vsel %vm6421_vm6, %v9796_v37, 0.0 }
 0xe83   :  { %v9807_v23 = vadd.f32 %v9806_v59, %v9805_v25 }
 0xe85   :  { %v9809_v48 = vadd.f32 %v9808_v42, %v9807_v23 }
 0xe87   :  { %v9811_v21 = vadd.f32 %v9810_v28, %v9809_v48  ;;  %v15570_v48 = vld [vmem:[%s26199_s8 + $0x4] ss:$0 sm:$0xff] }
 0xe88   :  { %v6645_v56 = vadd.f32 %v15570_v48, %v23548_v51  ;;  %v6669_v18 = vadd.f32 %v23554_v40, %v15570_v48  ;;  %v6672_v57 = vadd.f32 %v23558_v53, %v15570_v48  ;;  %v6677_v36 = vadd.f32 %v15570_v48, %v23588_v10  ;;  %v26611_v40 = vld [vmem:[#allocation41_spill] sm:$0xff] }
 0xe89   :  { %v9813_v46 = vadd.f32 %v9812_v22, %v9811_v21  ;;  %v6653_v21 = vadd.f32 %v23546_v11, %v15570_v48  ;;  %v6656_v22 = vadd.f32 %v23550_v1, %v15570_v48  ;;  %v6688_v11 = vadd.f32 %v23590_v26, %v15570_v48 }
 0xe8a   :  { %v6680_v51 = vadd.f32 %v15570_v48, %v23592_v7  ;;  %v6696_v53 = vadd.f32 %v15570_v48, %v26613_v50  ;;  %v15761_v7 = vld [vmem:[%s26199_s8 + $0x3] ss:$0 sm:$0xff] }
 0xe8b   :  { %v9815_v14 = vadd.f32 %v9814_v63, %v9813_v46  ;;  %v6648_v46 = vadd.f32 %v15570_v48, %v23552_v44  ;;  %v6701_v44 = vadd.f32 %v23626_v43, %v15570_v48 }
 0xe8d   :  { %v9817_v38 = vadd.f32 %v9816_v8, %v9815_v14  ;;  %v6661_v14 = vadd.f32 %v15570_v48, %v23556_v54  ;;  %v6664_v8 = vadd.f32 %v15570_v48, %v23560_v49 }
 0xe8f   :  { %v9819_v61 = vadd.f32 %v9818_v27, %v9817_v38  ;;  %v6685_v38 = vadd.f32 %v23586_v9, %v15570_v48  ;;  %v6693_v27 = vadd.f32 %v15570_v48, %v26611_v40 }
 0xe91   :  { %v9821_v15 = vadd.f32 %v9820_v52, %v9819_v61  ;;  %v26612_v61 = vld [vmem:[#allocation42_spill] sm:$0xff] }
 0xe92   :  { %v6704_v54 = vadd.f32 %v26612_v61, %v15570_v48 }
 0xe93   :  { %v9823_v6 = vadd.f32 %v9822_v3, %v9821_v15 }
 0xe95   :  { %v9825_v45 = vadd.f32 %v9824_v13, %v9823_v6 }
 0xe97   :  { %v9827_v30 = vadd.f32 %v9826_v39, %v9825_v45 }
 0xe99   :  { %v9828_v55 = vrot.slane %v9827_v30, 4 }
 0xe9b   :  { %v9829_v16 = vadd.f32 %v9828_v55, %v9827_v30 }
 0xe9d   :  { %v9830_v25 = vrot.slane %v9829_v16, 2 }
 0xe9f   :  { %v9831_v4 = vadd.f32 %v9830_v25, %v9829_v16 }
 0xea1   :  { %v9832_v59 = vrot.slane %v9831_v4, 1 }
 0xea3   :  { %v9833_v23 = vadd.f32 %v9832_v59, %v9831_v4 }
 0xea5   :  { %v9834_v58 = vmul.f32 0.0078125, %v9833_v23 }
 0xea7   :  { %v9835_v42 = vadd.f32 1e-05, %v9834_v58 }
 0xea9   :  { %20370 = vrsqrt.f32 %v9835_v42 }
 0xeb3   :  { %v20371_v28 = vpop.eup %20370 }
 0xeb4   :  { %v9837_v63 = vmul.f32 %v20371_v28, %v9725_v33 }
 0xeb6   :  { %v9841_v1 = vrot.slane %v9837_v63, %v26610_v62 }
 0xeb8   :  { %v9842_v49 = vmul.f32 %v9841_v1, %v24651_v17  ;;  %v9843_v9 = vmul.f32 %v9841_v1, %v24653_v0  ;;  %v9844_v10 = vmul.f32 %v9841_v1, %v24655_v24  ;;  %v9845_v26 = vmul.f32 %v9841_v1, %v24657_v32 }
 0xeb9   :  { %v9846_v43 = vmul.f32 %v9841_v1, %v24659_v35  ;;  %v9847_v52 = vmul.f32 %v9841_v1, %v24661_v47  ;;  %v9848_v15 = vmul.f32 %v9841_v1, %v24663_v20  ;;  %v9849_v37 = vmul.f32 %v9841_v1, %v24665_v5 }
 0xeba   :  { %v9850_v17 = vmul.f32 %v9841_v1, %v24667_v60  ;;  %v9851_v0 = vmul.f32 %v9841_v1, %v24669_v41  ;;  %v9852_v24 = vmul.f32 %v9841_v1, %v24671_v12  ;;  %v9853_v32 = vmul.f32 %v9841_v1, %v24673_v31 }
 0xebb   :  { %v9854_v3 = vmul.f32 %v9841_v1, %v24675_v2  ;;  %v9855_v6 = vmul.f32 %v9841_v1, %v24677_v29  ;;  %v9856_v35 = vmul.f32 %v9841_v1, %v24679_v34  ;;  %v9857_v47 = vmul.f32 %v9841_v1, %v24681_v19 }
 0xebc   :  { %v9862_v13 = vadd.f32 %v15761_v7, %v9842_v49  ;;  %v9863_v20 = vadd.f32 %v15761_v7, %v9843_v9  ;;  %v9864_v45 = vadd.f32 %v15761_v7, %v9844_v10  ;;  %v9865_v5 = vadd.f32 %v15761_v7, %v9845_v26 }
 0xebd   :  { %v9866_v39 = vadd.f32 %v15761_v7, %v9846_v43  ;;  %v9867_v60 = vadd.f32 %v15761_v7, %v9847_v52  ;;  %v9868_v30 = vadd.f32 %v15761_v7, %v9848_v15  ;;  %v9869_v41 = vadd.f32 %v15761_v7, %v9849_v37 }
 0xebe   :  { %v9870_v55 = vadd.f32 %v15761_v7, %v9850_v17  ;;  %v9871_v12 = vadd.f32 %v15761_v7, %v9851_v0  ;;  %v9872_v16 = vadd.f32 %v15761_v7, %v9852_v24  ;;  %v9873_v31 = vadd.f32 %v15761_v7, %v9853_v32  ;;  %v20089_v0 = vld [vmem:[%s26200_s9 + $0x8] sm:$0xff]   ;;  %v20090_v24 = vld [vmem:[%s26200_s9 + $0x10] sm:$0xff]   ;;  %v20091_v32 = vld [vmem:[%s26200_s9 + $0x18] sm:$0xff]  }
 0xebf   :  { %v9874_v25 = vadd.f32 %v15761_v7, %v9854_v3  ;;  %v9875_v2 = vadd.f32 %v15761_v7, %v9855_v6  ;;  %v9876_v4 = vadd.f32 %v15761_v7, %v9856_v35  ;;  %v9877_v29 = vadd.f32 %v15761_v7, %v9857_v47  ;;  %v20092_v3 = vld [vmem:[%s26200_s9 + $0x20] sm:$0xff]   ;;  %v20093_v6 = vld [vmem:[%s26200_s9 + $0x28] sm:$0xff]   ;;  %v20094_v35 = vld [vmem:[%s26200_s9 + $0x30] sm:$0xff]  }
 0xec0   :  { %v9878_v59 = vadd.f32 %v9862_v13, %v6645_v56  ;;  %v9879_v34 = vadd.f32 %v9863_v20, %v6648_v46  ;;  %v9880_v23 = vadd.f32 %v9864_v45, %v6653_v21  ;;  %v9881_v19 = vadd.f32 %v9865_v5, %v6656_v22  ;;  %v20100_v47 = vld [vmem:[%s26202_s11 + $0x20] sm:$0xff]   ;;  %v20101_v13 = vld [vmem:[%s26202_s11 + $0x28] sm:$0xff]   ;;  %v20102_v20 = vld [vmem:[%s26202_s11 + $0x30] sm:$0xff]  }
 0xec1   :  { %v9882_v58 = vadd.f32 %v9866_v39, %v6661_v14  ;;  %v9883_v42 = vadd.f32 %v9867_v60, %v6664_v8  ;;  %v9884_v48 = vadd.f32 %v9868_v30, %v6669_v18  ;;  %v9885_v33 = vadd.f32 %v9869_v41, %v6672_v57  ;;  %18180 = vmatprep.subr.bf16.mxu1 %v20100_v47  ;;  %v20095_v45 = vld [vmem:[%s26200_s9 + $0x38] sm:$0xff]   ;;  %v20096_v5 = vld [vmem:[%s26200_s9 + $0x50] sm:$0xff]   ;;  %v20104_v60 = vld [vmem:[%s26202_s11] sm:$0xff]  }
 0xec2   :  { %v9886_v28 = vadd.f32 %v9870_v55, %v6677_v36  ;;  %v9887_v63 = vadd.f32 %v9871_v12, %v6680_v51  ;;  %v9888_v1 = vadd.f32 %v9872_v16, %v6685_v38  ;;  %v9889_v40 = vadd.f32 %v9873_v31, %v6688_v11  ;;  %18181 = vmatpush3.bf16.msra.mxu1 %v20100_v47  ;;  %v20103_v39 = vld [vmem:[%s26202_s11 + $0x38] sm:$0xff]   ;;  %v20098_v41 = vld [vmem:[%s26200_s9 + $0x60] sm:$0xff]   ;;  %v20099_v55 = vld [vmem:[%s26200_s9 + $0x68] sm:$0xff]  }
 0xec3   :  { %v9890_v61 = vadd.f32 %v9874_v25, %v6693_v27  ;;  %v9891_v50 = vadd.f32 %v9875_v2, %v6696_v53  ;;  %v9892_v49 = vadd.f32 %v9876_v4, %v6701_v44  ;;  %v9893_v9 = vadd.f32 %v9877_v29, %v6704_v54  ;;  %18182 = vmatprep.subr.bf16.mxu1 %v20101_v13  ;;  %v20097_v30 = vld [vmem:[%s26200_s9 + $0x58] sm:$0xff]   ;;  %v20118_v29 = vld [vmem:[%s26200_s9 + $0x70] sm:$0xff]  }
 0xec4   :  { %v9894_v10 = vmax.f32 %v9878_v59, 0.0  ;;  %v9895_v26 = vmax.f32 %v9879_v34, 0.0  ;;  %v9896_v43 = vmax.f32 %v9880_v23, 0.0  ;;  %v9897_v7 = vmax.f32 %v9881_v19, 0.0  ;;  %v20119_v59 = vld [vmem:[%s26200_s9 + $0x78] sm:$0xff]  }
 0xec5   :  { %v9898_v56 = vmax.f32 %v9882_v58, 0.0  ;;  %v9899_v46 = vmax.f32 %v9883_v42, 0.0  ;;  %v9900_v21 = vmax.f32 %v9884_v48, 0.0  ;;  %v9901_v22 = vmax.f32 %v9885_v33, 0.0  ;;  %v20105_v33 = vld [vmem:[%s26202_s11 + $0x8] sm:$0xff]  }
 0xec6   :  { %v9902_v14 = vmax.f32 %v9886_v28, 0.0  ;;  %v9903_v8 = vmax.f32 %v9887_v63, 0.0  ;;  %v9904_v18 = vmax.f32 %v9888_v1, 0.0  ;;  %v9905_v57 = vmax.f32 %v9889_v40, 0.0  ;;  %18183 = vmatpush3.bf16.msra.mxu1 %v20101_v13  ;;  %v20106_v28 = vld [vmem:[%s26202_s11 + $0x10] sm:$0xff]   ;;  %v20107_v63 = vld [vmem:[%s26202_s11 + $0x18] sm:$0xff]  }
 0xec7   :  { %v9906_v36 = vmax.f32 %v9890_v61, 0.0  ;;  %v9907_v51 = vmax.f32 %v9891_v50, 0.0  ;;  %v9908_v38 = vmax.f32 %v9892_v49, 0.0  ;;  %v9909_v11 = vmax.f32 %v9893_v9, 0.0  ;;  %18184 = vmatprep.subr.bf16.mxu1 %v20102_v20  ;;  %v20108_v1 = vld [vmem:[%s26202_s11 + $0x40] sm:$0xff]   ;;  %v20109_v40 = vld [vmem:[%s26202_s11 + $0x48] sm:$0xff]  }
 0xec8   :  { %v24773_v27 = vpack.c.bf16 %v9895_v26, %v9894_v10  ;;  %v24775_v44 = vpack.c.bf16 %v9897_v7, %v9896_v43  ;;  %v24777_v54 = vpack.c.bf16 %v9899_v46, %v9898_v56  ;;  %v24779_v53 = vpack.c.bf16 %v9901_v22, %v9900_v21  ;;  %v20110_v61 = vld [vmem:[%s26202_s11 + $0x50] sm:$0xff]   ;;  %v20111_v50 = vld [vmem:[%s26202_s11 + $0x58] sm:$0xff]   ;;  %v20112_v10 = vld [vmem:[%s26202_s11 + $0x60] sm:$0xff]  }
 0xec9   :  { %v24781_v52 = vpack.c.bf16 %v9903_v8, %v9902_v14  ;;  %v24783_v15 = vpack.c.bf16 %v9905_v57, %v9904_v18  ;;  %v24785_v37 = vpack.c.bf16 %v9907_v51, %v9906_v36  ;;  %v24787_v17 = vpack.c.bf16 %v9909_v11, %v9908_v38  ;;  %v20113_v46 = vld [vmem:[%s26202_s11 + $0x68] sm:$0xff]   ;;  %v20114_v21 = vld [vmem:[%s26202_s11 + $0x70] sm:$0xff]   ;;  %v20115_v22 = vld [vmem:[%s26202_s11 + $0x78] sm:$0xff]  }
 0xeca   :  { %18140 = vmatprep.subr.bf16.mxu0 %v24773_v27  ;;  %18185 = vmatpush3.bf16.msra.mxu1 %v20102_v20  ;;  %v20116_v38 = vld [vmem:[%s26200_s9 + $0x40] sm:$0xff]  }
 0xecb   :  { %18141 = vmatpush3.bf16.msra.mxu0 %v24773_v27  ;;  %18186 = vmatprep.subr.bf16.mxu1 %v20103_v39  ;;  %v20120_v11 = vld [vmem:[%s26202_s11 + $0x80] sm:$0xff]  }
 0xecc   :  { %18142 = vmatprep.subr.bf16.mxu0 %v24775_v44 }
 0xece   :  { %18187 = vmatpush3.bf16.msra.mxu1 %v20103_v39  ;;  %v20140_v39 = vld [vmem:[%s26204_s13 + $0x10] sm:$0xff]  }
 0xecf   :  { %18143 = vmatpush3.bf16.msra.mxu0 %v24775_v44  ;;  %18192 = vmatprep.subr.bf16.mxu1 %v20104_v60 }
 0xed0   :  { %18144 = vmatprep.subr.bf16.mxu0 %v24777_v54 }
 0xed3   :  { %18145 = vmatpush3.bf16.msra.mxu0 %v24777_v54 }
 0xed4   :  { %18146 = vmatprep.subr.bf16.mxu0 %v24779_v53 }
 0xed7   :  { %18147 = vmatpush3.bf16.msra.mxu0 %v24779_v53 }
 0xed8   :  { %18148 = vmatprep.subr.bf16.mxu0 %v24781_v52 }
 0xedb   :  { %18149 = vmatpush3.bf16.msra.mxu0 %v24781_v52 }
 0xedc   :  { %18150 = vmatprep.subr.bf16.mxu0 %v24783_v15 }
 0xedf   :  { %18151 = vmatpush3.bf16.msra.mxu0 %v24783_v15 }
 0xee0   :  { %18152 = vmatprep.subr.bf16.mxu0 %v24785_v37 }
 0xee3   :  { %18153 = vmatpush3.bf16.msra.mxu0 %v24785_v37 }
 0xee4   :  { %18154 = vmatprep.subr.bf16.mxu0 %v24787_v17 }
 0xee7   :  { %18155 = vmatpush3.bf16.msra.mxu0 %v24787_v17 }
 0xee8   :  { %18160 = vmatprep.subr.bf16.mxu0 %v24773_v27 }
 0xeea   :  { %18157 = vmatmul.mubr.bf16.vlgmr.msra.gmra.mrb[252].mxu0 %v20089_v0  ;;  %v20117_v0 = vld [vmem:[%s26200_s9 + $0x48] sm:$0xff]  }
 0xeeb   :  { %18161 = vmatpush3.bf16.msra.mxu0 %v24773_v27  ;;  %18176 = vmatprep.mubr.bf16.mxu0 %v20090_v24  ;;  %v20121_v24 = vld [vmem:[%s26202_s11 + $0x88] sm:$0xff]  }
 0xeec   :  { %18162 = vmatprep.subr.bf16.mxu0 %v24775_v44 }
 0xeef   :  { %18163 = vmatpush3.bf16.msra.mxu0 %v24775_v44 }
 0xef0   :  { %18164 = vmatprep.subr.bf16.mxu0 %v24777_v54 }
 0xef3   :  { %18165 = vmatpush3.bf16.msra.mxu0 %v24777_v54 }
 0xef4   :  { %18166 = vmatprep.subr.bf16.mxu0 %v24779_v53 }
 0xef7   :  { %18167 = vmatpush3.bf16.msra.mxu0 %v24779_v53 }
 0xef8   :  { %18168 = vmatprep.subr.bf16.mxu0 %v24781_v52 }
 0xefb   :  { %18169 = vmatpush3.bf16.msra.mxu0 %v24781_v52 }
 0xefc   :  { %18170 = vmatprep.subr.bf16.mxu0 %v24783_v15 }
 0xeff   :  { %18171 = vmatpush3.bf16.msra.mxu0 %v24783_v15 }
 0xf00   :  { %18172 = vmatprep.subr.bf16.mxu0 %v24785_v37 }
 0xf03   :  { %18173 = vmatpush3.bf16.msra.mxu0 %v24785_v37 }
 0xf04   :  { %18174 = vmatprep.subr.bf16.mxu0 %v24787_v17 }
 0xf07   :  { %18175 = vmatpush3.bf16.msra.mxu0 %v24787_v17 }
 0xf08   :  { %18204 = vmatprep.subr.bf16.mxu0 %v24773_v27 }
 0xf0a   :  { %18177 = vmatmul.mubr.bf16.vlgmr.msra.gmra.mrb[0].mxu0 %v20091_v32  ;;  %v20122_v32 = vld [vmem:[%s26202_s11 + $0x90] sm:$0xff]  }
 0xf0b   :  { %18205 = vmatpush3.bf16.msra.mxu0 %v24773_v27  ;;  %18220 = vmatprep.mubr.bf16.mxu0 %v20092_v3 }
 0xf0c   :  { %18206 = vmatprep.subr.bf16.mxu0 %v24775_v44 }
 0xf0f   :  { %18207 = vmatpush3.bf16.msra.mxu0 %v24775_v44 }
 0xf10   :  { %18208 = vmatprep.subr.bf16.mxu0 %v24777_v54 }
 0xf13   :  { %18209 = vmatpush3.bf16.msra.mxu0 %v24777_v54 }
 0xf14   :  { %18210 = vmatprep.subr.bf16.mxu0 %v24779_v53 }
 0xf17   :  { %18211 = vmatpush3.bf16.msra.mxu0 %v24779_v53 }
 0xf18   :  { %18212 = vmatprep.subr.bf16.mxu0 %v24781_v52 }
 0xf1b   :  { %18213 = vmatpush3.bf16.msra.mxu0 %v24781_v52 }
 0xf1c   :  { %18214 = vmatprep.subr.bf16.mxu0 %v24783_v15 }
 0xf1f   :  { %18215 = vmatpush3.bf16.msra.mxu0 %v24783_v15 }
 0xf20   :  { %18216 = vmatprep.subr.bf16.mxu0 %v24785_v37 }
 0xf23   :  { %18217 = vmatpush3.bf16.msra.mxu0 %v24785_v37 }
 0xf24   :  { %18218 = vmatprep.subr.bf16.mxu0 %v24787_v17 }
 0xf27   :  { %18219 = vmatpush3.bf16.msra.mxu0 %v24787_v17 }
 0xf28   :  { %18236 = vmatprep.subr.bf16.mxu0 %v24773_v27 }
 0xf2a   :  { %18221 = vmatmul.mubr.bf16.vlgmr.msra.gmra.mrb[4].mxu0 %v20093_v6 }
 0xf2b   :  { %18237 = vmatpush3.bf16.msra.mxu0 %v24773_v27  ;;  %18252 = vmatprep.mubr.bf16.mxu0 %v20094_v35 }
 0xf2c   :  { %18238 = vmatprep.subr.bf16.mxu0 %v24775_v44 }
 0xf2f   :  { %18239 = vmatpush3.bf16.msra.mxu0 %v24775_v44 }
 0xf30   :  { %18240 = vmatprep.subr.bf16.mxu0 %v24777_v54 }
 0xf33   :  { %18241 = vmatpush3.bf16.msra.mxu0 %v24777_v54 }
 0xf34   :  { %18242 = vmatprep.subr.bf16.mxu0 %v24779_v53 }
 0xf37   :  { %18243 = vmatpush3.bf16.msra.mxu0 %v24779_v53 }
 0xf38   :  { %18244 = vmatprep.subr.bf16.mxu0 %v24781_v52 }
 0xf3b   :  { %18245 = vmatpush3.bf16.msra.mxu0 %v24781_v52 }
 0xf3c   :  { %18246 = vmatprep.subr.bf16.mxu0 %v24783_v15 }
 0xf3f   :  { %18247 = vmatpush3.bf16.msra.mxu0 %v24783_v15 }
 0xf40   :  { %18248 = vmatprep.subr.bf16.mxu0 %v24785_v37 }
 0xf43   :  { %18249 = vmatpush3.bf16.msra.mxu0 %v24785_v37 }
 0xf44   :  { %18250 = vmatprep.subr.bf16.mxu0 %v24787_v17 }
 0xf47   :  { %18251 = vmatpush3.bf16.msra.mxu0 %v24787_v17 }
 0xf48   :  { %18300 = vmatprep.subr.bf16.mxu0 %v24773_v27 }
 0xf4a   :  { %18253 = vmatmul.mubr.bf16.vlgmr.msra.gmra.mrb[8].mxu0 %v20095_v45  ;;  %v20138_v45 = vld [vmem:[%s26204_s13] sm:$0xff]  }
 0xf4b   :  { %18301 = vmatpush3.bf16.msra.mxu0 %v24773_v27  ;;  %18316 = vmatprep.mubr.bf16.mxu0 %v20096_v5  ;;  %v20139_v5 = vld [vmem:[%s26204_s13 + $0x8] sm:$0xff]  }
 0xf4c   :  { %18302 = vmatprep.subr.bf16.mxu0 %v24775_v44 }
 0xf4f   :  { %18303 = vmatpush3.bf16.msra.mxu0 %v24775_v44 }
 0xf50   :  { %18304 = vmatprep.subr.bf16.mxu0 %v24777_v54 }
 0xf53   :  { %18305 = vmatpush3.bf16.msra.mxu0 %v24777_v54 }
 0xf54   :  { %18306 = vmatprep.subr.bf16.mxu0 %v24779_v53 }
 0xf57   :  { %18307 = vmatpush3.bf16.msra.mxu0 %v24779_v53 }
 0xf58   :  { %18308 = vmatprep.subr.bf16.mxu0 %v24781_v52 }
 0xf5b   :  { %18309 = vmatpush3.bf16.msra.mxu0 %v24781_v52 }
 0xf5c   :  { %18310 = vmatprep.subr.bf16.mxu0 %v24783_v15 }
 0xf5f   :  { %18311 = vmatpush3.bf16.msra.mxu0 %v24783_v15 }
 0xf60   :  { %18312 = vmatprep.subr.bf16.mxu0 %v24785_v37 }
 0xf63   :  { %18313 = vmatpush3.bf16.msra.mxu0 %v24785_v37 }
 0xf64   :  { %18314 = vmatprep.subr.bf16.mxu0 %v24787_v17 }
 0xf67   :  { %18315 = vmatpush3.bf16.msra.mxu0 %v24787_v17 }
 0xf68   :  { %18332 = vmatprep.subr.bf16.mxu0 %v24773_v27 }
 0xf6a   :  { %18317 = vmatmul.mubr.bf16.vlgmr.msra.gmra.mrb[12].mxu0 %v20097_v30  ;;  %v20141_v30 = vld [vmem:[%s26204_s13 + $0x18] sm:$0xff]  }
 0xf6b   :  { %18333 = vmatpush3.bf16.msra.mxu0 %v24773_v27  ;;  %18348 = vmatprep.mubr.bf16.mxu0 %v20098_v41  ;;  %v20124_v41 = vld [vmem:[%s26202_s11 + $0xa0] sm:$0xff]  }
 0xf6c   :  { %18334 = vmatprep.subr.bf16.mxu0 %v24775_v44 }
 0xf6f   :  { %18335 = vmatpush3.bf16.msra.mxu0 %v24775_v44 }
 0xf70   :  { %18336 = vmatprep.subr.bf16.mxu0 %v24777_v54 }
 0xf73   :  { %18337 = vmatpush3.bf16.msra.mxu0 %v24777_v54 }
 0xf74   :  { %18338 = vmatprep.subr.bf16.mxu0 %v24779_v53 }
 0xf77   :  { %18339 = vmatpush3.bf16.msra.mxu0 %v24779_v53 }
 0xf78   :  { %18340 = vmatprep.subr.bf16.mxu0 %v24781_v52 }
 0xf7b   :  { %18341 = vmatpush3.bf16.msra.mxu0 %v24781_v52 }
 0xf7c   :  { %18342 = vmatprep.subr.bf16.mxu0 %v24783_v15 }
 0xf7f   :  { %18343 = vmatpush3.bf16.msra.mxu0 %v24783_v15 }
 0xf80   :  { %18344 = vmatprep.subr.bf16.mxu0 %v24785_v37 }
 0xf83   :  { %18345 = vmatpush3.bf16.msra.mxu0 %v24785_v37 }
 0xf84   :  { %18346 = vmatprep.subr.bf16.mxu0 %v24787_v17 }
 0xf87   :  { %18347 = vmatpush3.bf16.msra.mxu0 %v24787_v17 }
 0xf88   :  { %18364 = vmatprep.subr.bf16.mxu0 %v24773_v27 }
 0xf8a   :  { %18349 = vmatmul.mubr.bf16.vlgmr.msra.gmra.mrb[16].mxu0 %v20099_v55 }
 0xf8b   :  { %18365 = vmatpush3.bf16.msra.mxu0 %v24773_v27  ;;  %18380 = vmatprep.mubr.bf16.mxu0 %v20118_v29 }
 0xf8c   :  { %18366 = vmatprep.subr.bf16.mxu0 %v24775_v44 }
 0xf8f   :  { %18367 = vmatpush3.bf16.msra.mxu0 %v24775_v44 }
 0xf90   :  { %18368 = vmatprep.subr.bf16.mxu0 %v24777_v54 }
 0xf93   :  { %18369 = vmatpush3.bf16.msra.mxu0 %v24777_v54 }
 0xf94   :  { %18370 = vmatprep.subr.bf16.mxu0 %v24779_v53 }
 0xf97   :  { %18371 = vmatpush3.bf16.msra.mxu0 %v24779_v53 }
 0xf98   :  { %18372 = vmatprep.subr.bf16.mxu0 %v24781_v52 }
 0xf9b   :  { %18373 = vmatpush3.bf16.msra.mxu0 %v24781_v52 }
 0xf9c   :  { %18374 = vmatprep.subr.bf16.mxu0 %v24783_v15 }
 0xf9f   :  { %18375 = vmatpush3.bf16.msra.mxu0 %v24783_v15 }
 0xfa0   :  { %18376 = vmatprep.subr.bf16.mxu0 %v24785_v37 }
 0xfa3   :  { %18377 = vmatpush3.bf16.msra.mxu0 %v24785_v37 }
 0xfa4   :  { %18378 = vmatprep.subr.bf16.mxu0 %v24787_v17 }
 0xfa7   :  { %18379 = vmatpush3.bf16.msra.mxu0 %v24787_v17 }
 0xfa8   :  { %18428 = vmatprep.subr.bf16.mxu0 %v20138_v45 }
 0xfaa   :  { %18381 = vmatmul.mubr.bf16.vlgmr.msra.gmra.mrb[20].mxu0 %v20119_v59 }
 0xfab   :  { %18429 = vmatpush3.bf16.msra.mxu0 %v20138_v45 }
 0xfac   :  { %18430 = vmatprep.subr.bf16.mxu0 %v20139_v5 }
 0xfaf   :  { %18431 = vmatpush3.bf16.msra.mxu0 %v20139_v5 }
 0xfb0   :  { %18432 = vmatprep.subr.bf16.mxu0 %v20140_v39 }
 0xfb3   :  { %18433 = vmatpush3.bf16.msra.mxu0 %v20140_v39 }
 0xfb4   :  { %18434 = vmatprep.subr.bf16.mxu0 %v20141_v30 }
 0xfb7   :  { %18435 = vmatpush3.bf16.msra.mxu0 %v20141_v30 }
 0xfbd   :  { %v18158_v12 = vpop.f32.mrb[252].mxu0 }
 0xfbe   :  { %v9968_v16 = vpop.f32.mrb[253].mxu0 }
 0xfbf   :  { %v18159_v31 = vpop.f32.mrb[254].mxu0 }
 0xfc0   :  { %v9992_v25 = vpack.c.bf16 %v18159_v31, %v18158_v12  ;;  %v9971_v2 = vpop.f32.mrb[255].mxu0 }
 0xfc1   :  { %v9991_v4 = vpack.c.bf16 %v9971_v2, %v9968_v16 }
 0xfdd   :  { %v18178_v34 = vpop.f32.mrb[0].mxu0 }
 0xfde   :  { %v10043_v23 = vpop.f32.mrb[1].mxu0 }
 0xfdf   :  { %v18179_v19 = vpop.f32.mrb[2].mxu0 }
 0xfe0   :  { %v10067_v58 = vpack.c.bf16 %v18179_v19, %v18178_v34  ;;  %v10046_v42 = vpop.f32.mrb[3].mxu0 }
 0xfe1   :  { %v10066_v48 = vpack.c.bf16 %v10046_v42, %v10043_v23 }
 0xfe3   :  { %18188 = vmatprep.mubr.msk.bf16.mxu1 %vm6421_vm6, %v10066_v48 }
 0xfe4   :  { %18189 = vmatmul.mubr.msk.bf16.vlgmr.msra.gmra.mrb[136].mxu1 %vm6421_vm6, %v10067_v58 }
 0xfe5   :  { %18193 = vmatpush3.bf16.msra.mxu1 %v20104_v60  ;;  %18200 = vmatprep.mubr.msk.bf16.mxu1 %vm6421_vm6, %v9991_v4  ;;  %v20123_v60 = vld [vmem:[%s26202_s11 + $0x98] sm:$0xff]  }
 0xfe6   :  { %18194 = vmatprep.subr.bf16.mxu1 %v20105_v33 }
 0xfe9   :  { %18195 = vmatpush3.bf16.msra.mxu1 %v20105_v33 }
 0xfea   :  { %18196 = vmatprep.subr.bf16.mxu1 %v20106_v28 }
 0xfed   :  { %18197 = vmatpush3.bf16.msra.mxu1 %v20106_v28 }
 0xfee   :  { %18198 = vmatprep.subr.bf16.mxu1 %v20107_v63 }
 0xff1   :  { %18199 = vmatpush3.bf16.msra.mxu1 %v20107_v63 }
 0xff2   :  { %18224 = vmatprep.subr.bf16.mxu1 %v20108_v1 }
 0xff4   :  { %18201 = vmatmul.mubr.msk.bf16.vlgmr.msra.gmra.mrb[136].mxu1 %vm6421_vm6, %v9992_v25 }
 0xff5   :  { %18225 = vmatpush3.bf16.msra.mxu1 %v20108_v1  ;;  %v20125_v1 = vld [vmem:[%s26202_s11 + $0xa8] sm:$0xff]  }
 0xff6   :  { %18226 = vmatprep.subr.bf16.mxu1 %v20109_v40 }
 0xff9   :  { %18227 = vmatpush3.bf16.msra.mxu1 %v20109_v40  ;;  %v20126_v40 = vld [vmem:[%s26202_s11 + $0xb0] sm:$0xff]  }
 0xffa   :  { %18228 = vmatprep.subr.bf16.mxu1 %v20110_v61 }
 0xffd   :  { %18229 = vmatpush3.bf16.msra.mxu1 %v20110_v61  ;;  %v18222_v49 = vpop.f32.mrb[4].mxu0  ;;  %v20127_v61 = vld [vmem:[%s26202_s11 + $0xb8] sm:$0xff]  }
 0xffe   :  { %v10276_v9 = vpop.f32.mrb[5].mxu0  ;;  %18230 = vmatprep.subr.bf16.mxu1 %v20111_v50 }
 0xfff   :  { %v18223_v26 = vpop.f32.mrb[6].mxu0 }
0x1000   :  { %v10300_v43 = vpack.c.bf16 %v18223_v26, %v18222_v49  ;;  %v10279_v7 = vpop.f32.mrb[7].mxu0  ;;  %v20129_v49 = vld [vmem:[%s26202_s11 + $0xc8] sm:$0xff]   ;;  %v20132_v26 = vld [vmem:[%s26202_s11 + $0xe0] sm:$0xff]  }
0x1001   :  { %v10299_v56 = vpack.c.bf16 %v10279_v7, %v10276_v9  ;;  %18231 = vmatpush3.bf16.msra.mxu1 %v20111_v50  ;;  %v20128_v50 = vld [vmem:[%s26202_s11 + $0xc0] sm:$0xff]   ;;  %v20130_v9 = vld [vmem:[%s26202_s11 + $0xd0] sm:$0xff]  }
0x1002   :  { %18256 = vmatprep.subr.bf16.mxu1 %v20112_v10  ;;  %v20134_v7 = vld [vmem:[%s26202_s11 + $0xf0] sm:$0xff]  }
0x1003   :  { %18232 = vmatprep.mubr.msk.bf16.mxu1 %vm6421_vm6, %v10299_v56  ;;  %v20135_v56 = vld [vmem:[%s26202_s11 + $0xf8] sm:$0xff]  }
0x1004   :  { %18233 = vmatmul.mubr.msk.bf16.vlgmr.msra.gmra.mrb[136].mxu1 %vm6421_vm6, %v10300_v43  ;;  %v20133_v43 = vld [vmem:[%s26202_s11 + $0xe8] sm:$0xff]  }
0x1005   :  { %18257 = vmatpush3.bf16.msra.mxu1 %v20112_v10  ;;  %v20131_v10 = vld [vmem:[%s26202_s11 + $0xd8] sm:$0xff]  }
0x1006   :  { %18258 = vmatprep.subr.bf16.mxu1 %v20113_v46 }
0x1009   :  { %18259 = vmatpush3.bf16.msra.mxu1 %v20113_v46  ;;  %v20136_v46 = vld [vmem:[%s26200_s9 + $0x80] sm:$0xff]  }
0x100a   :  { %18260 = vmatprep.subr.bf16.mxu1 %v20114_v21 }
0x100d   :  { %18261 = vmatpush3.bf16.msra.mxu1 %v20114_v21 }
0x100e   :  { %18262 = vmatprep.subr.bf16.mxu1 %v20115_v22 }
0x1011   :  { %18263 = vmatpush3.bf16.msra.mxu1 %v20115_v22 }
0x1012   :  { %18268 = vmatprep.subr.bf16.mxu1 %v24773_v27 }
0x101d   :  { %v18254_v14 = vpop.f32.mrb[8].mxu0 }
0x101e   :  { %v10434_v8 = vpop.f32.mrb[9].mxu0 }
0x101f   :  { %v18255_v18 = vpop.f32.mrb[10].mxu0 }
0x1020   :  { %v10458_v57 = vpack.c.bf16 %v18255_v18, %v18254_v14  ;;  %v10437_v36 = vpop.f32.mrb[11].mxu0 }
0x1021   :  { %v10457_v51 = vpack.c.bf16 %v10437_v36, %v10434_v8 }
0x1023   :  { %18264 = vmatprep.mubr.msk.bf16.mxu1 %vm6421_vm6, %v10457_v51  ;;  %v20146_v51 = vld [vmem:[%s26201_s10] sm:$0xff]  }
0x1024   :  { %18265 = vmatmul.mubr.msk.bf16.vlgmr.msra.gmra.mrb[136].mxu1 %vm6421_vm6, %v10458_v57 }
0x1025   :  { %18269 = vmatpush3.bf16.msra.mxu1 %v24773_v27  ;;  %18284 = vmatprep.mubr.bf16.mxu1 %v20116_v38  ;;  %v20148_v38 = vld [vmem:[%s26201_s10 + $0x20] sm:$0xff]  }
0x1026   :  { %18270 = vmatprep.subr.bf16.mxu1 %v24775_v44 }
0x1029   :  { %18271 = vmatpush3.bf16.msra.mxu1 %v24775_v44 }
0x102a   :  { %18272 = vmatprep.subr.bf16.mxu1 %v24777_v54 }
0x102d   :  { %18273 = vmatpush3.bf16.msra.mxu1 %v24777_v54 }
0x102e   :  { %18274 = vmatprep.subr.bf16.mxu1 %v24779_v53 }
0x1031   :  { %18275 = vmatpush3.bf16.msra.mxu1 %v24779_v53 }
0x1032   :  { %18276 = vmatprep.subr.bf16.mxu1 %v24781_v52 }
0x1035   :  { %18277 = vmatpush3.bf16.msra.mxu1 %v24781_v52 }
0x1036   :  { %18278 = vmatprep.subr.bf16.mxu1 %v24783_v15 }
0x1039   :  { %18279 = vmatpush3.bf16.msra.mxu1 %v24783_v15 }
0x103a   :  { %18280 = vmatprep.subr.bf16.mxu1 %v24785_v37 }
0x103d   :  { %18281 = vmatpush3.bf16.msra.mxu1 %v24785_v37  ;;  %v18318_v3 = vpop.f32.mrb[12].mxu0 }
0x103e   :  { %18282 = vmatprep.subr.bf16.mxu1 %v24787_v17  ;;  %v10750_v6 = vpop.f32.mrb[13].mxu0 }
0x103f   :  { %v18319_v35 = vpop.f32.mrb[14].mxu0 }
0x1040   :  { %v10753_v47 = vpop.f32.mrb[15].mxu0  ;;  %v10774_v13 = vpack.c.bf16 %v18319_v35, %v18318_v3 }
0x1041   :  { %18283 = vmatpush3.bf16.msra.mxu1 %v24787_v17  ;;  %v10773_v20 = vpack.c.bf16 %v10753_v47, %v10750_v6 }
0x1042   :  { %18288 = vmatprep.subr.bf16.mxu1 %v20120_v11 }
0x1044   :  { %18285 = vmatmul.mubr.bf16.vlgmr.msra.gmra.mrb[140].mxu1 %v20117_v0 }
0x1045   :  { %18289 = vmatpush3.bf16.msra.mxu1 %v20120_v11 }
0x1046   :  { %18290 = vmatprep.subr.bf16.mxu1 %v20121_v24 }
0x1049   :  { %18291 = vmatpush3.bf16.msra.mxu1 %v20121_v24 }
0x104a   :  { %18292 = vmatprep.subr.bf16.mxu1 %v20122_v32 }
0x104d   :  { %18293 = vmatpush3.bf16.msra.mxu1 %v20122_v32 }
0x104e   :  { %18294 = vmatprep.subr.bf16.mxu1 %v20123_v60 }
0x1051   :  { %18295 = vmatpush3.bf16.msra.mxu1 %v20123_v60 }
0x1052   :  { %18320 = vmatprep.subr.bf16.mxu1 %v20124_v41 }
0x105d   :  { %v18350_v55 = vpop.f32.mrb[16].mxu0 }
0x105e   :  { %v10908_v12 = vpop.f32.mrb[17].mxu0 }
0x105f   :  { %v18351_v16 = vpop.f32.mrb[18].mxu0 }
0x1060   :  { %v10911_v31 = vpop.f32.mrb[19].mxu0  ;;  %v10932_v25 = vpack.c.bf16 %v18351_v16, %v18350_v55 }
0x1061   :  { %v10931_v2 = vpack.c.bf16 %v10911_v31, %v10908_v12 }
0x107d   :  { %v18382_v4 = vpop.f32.mrb[20].mxu0 }
0x107e   :  { %v11066_v29 = vpop.f32.mrb[21].mxu0 }
0x107f   :  { %v18383_v59 = vpop.f32.mrb[22].mxu0 }
0x1080   :  { %v11090_v34 = vpack.c.bf16 %v18383_v59, %v18382_v4  ;;  %v11069_v23 = vpop.f32.mrb[23].mxu0 }
0x1081   :  { %v11089_v19 = vpack.c.bf16 %v11069_v23, %v11066_v29 }
0x1117   :  { %v18286_v58 = vpop.f32.mrb[140].mxu1 }
0x1118   :  { %v10592_v42 = vpop.f32.mrb[141].mxu1 }
0x1119   :  { %v18287_v48 = vpop.f32.mrb[142].mxu1 }
0x111a   :  { %v10616_v33 = vpack.c.bf16 %v18287_v48, %v18286_v58  ;;  %v10595_v28 = vpop.f32.mrb[143].mxu1 }
0x111b   :  { %v10615_v63 = vpack.c.bf16 %v10595_v28, %v10592_v42 }
0x111d   :  { %18296 = vmatprep.mubr.msk.bf16.mxu1 %vm6421_vm6, %v10615_v63  ;;  %18436 = vmatprep.mubr.msk.bf16.mxu0 %vm6421_vm6, %v10615_v63  ;;  %v11332_v63 = vld [vmem:[%s26205_s14] sm:$0x1] }
0x111e   :  { %18297 = vmatmul.mubr.msk.bf16.vlgmr.msra.gmra.mrb[136].mxu1 %vm6421_vm6, %v10616_v33  ;;  %18437 = vmatmul.mubr.msk.bf16.vlgmr.msra.gmra.mrb[24].mxu0 %vm6421_vm6, %v10616_v33 }
0x111f   :  { %18321 = vmatpush3.bf16.msra.mxu1 %v20124_v41  ;;  %18328 = vmatprep.mubr.msk.bf16.mxu1 %vm6421_vm6, %v10773_v20 }
0x1120   :  { %18322 = vmatprep.subr.bf16.mxu1 %v20125_v1  ;;  %18444 = vmatprep.mubr.msk.bf16.mxu0 %vm813_vm3, %v20146_v51  ;;  %v20151_v51 = vld [vmem:[%s26201_s10 + $0x18] sm:$0xff]  }
0x1123   :  { %18323 = vmatpush3.bf16.msra.mxu1 %v20125_v1 }
0x1124   :  { %18324 = vmatprep.subr.bf16.mxu1 %v20126_v40 }
0x1127   :  { %18325 = vmatpush3.bf16.msra.mxu1 %v20126_v40 }
0x1128   :  { %18326 = vmatprep.subr.bf16.mxu1 %v20127_v61 }
0x112b   :  { %18327 = vmatpush3.bf16.msra.mxu1 %v20127_v61 }
0x112c   :  { %18352 = vmatprep.subr.bf16.mxu1 %v20128_v50 }
0x112e   :  { %18329 = vmatmul.mubr.msk.bf16.vlgmr.msra.gmra.mrb[136].mxu1 %vm6421_vm6, %v10774_v13 }
0x112f   :  { %18353 = vmatpush3.bf16.msra.mxu1 %v20128_v50  ;;  %18360 = vmatprep.mubr.msk.bf16.mxu1 %vm6421_vm6, %v10931_v2  ;;  %v15834_v50 = vld [vmem:[%s26205_s14 + $0x1] ss:$0 sm:$0xff] }
0x1130   :  { %18354 = vmatprep.subr.bf16.mxu1 %v20129_v49 }
0x1133   :  { %18355 = vmatpush3.bf16.msra.mxu1 %v20129_v49 }
0x1134   :  { %18356 = vmatprep.subr.bf16.mxu1 %v20130_v9 }
0x1137   :  { %18357 = vmatpush3.bf16.msra.mxu1 %v20130_v9 }
0x1138   :  { %18358 = vmatprep.subr.bf16.mxu1 %v20131_v10 }
0x113b   :  { %18359 = vmatpush3.bf16.msra.mxu1 %v20131_v10 }
0x113c   :  { %18384 = vmatprep.subr.bf16.mxu1 %v20132_v26 }
0x113e   :  { %18361 = vmatmul.mubr.msk.bf16.vlgmr.msra.gmra.mrb[136].mxu1 %vm6421_vm6, %v10932_v25 }
0x113f   :  { %18385 = vmatpush3.bf16.msra.mxu1 %v20132_v26  ;;  %18392 = vmatprep.mubr.msk.bf16.mxu1 %vm6421_vm6, %v11089_v19 }
0x1140   :  { %18386 = vmatprep.subr.bf16.mxu1 %v20133_v43 }
0x1143   :  { %18387 = vmatpush3.bf16.msra.mxu1 %v20133_v43 }
0x1144   :  { %18388 = vmatprep.subr.bf16.mxu1 %v20134_v7 }
0x1147   :  { %18389 = vmatpush3.bf16.msra.mxu1 %v20134_v7 }
0x1148   :  { %18390 = vmatprep.subr.bf16.mxu1 %v20135_v56 }
0x114b   :  { %18391 = vmatpush3.bf16.msra.mxu1 %v20135_v56 }
0x114c   :  { %18396 = vmatprep.subr.bf16.mxu1 %v24773_v27 }
0x114e   :  { %18393 = vmatmul.mubr.msk.bf16.vlgmr.msra.gmra.mrb[136].mxu1 %vm6421_vm6, %v11090_v34 }
0x114f   :  { %18397 = vmatpush3.bf16.msra.mxu1 %v24773_v27  ;;  %18412 = vmatprep.mubr.bf16.mxu1 %v20136_v46  ;;  %v20142_v27 = vld [vmem:[%s26202_s11 + $0x100] sm:$0xff]  }
0x1150   :  { %18398 = vmatprep.subr.bf16.mxu1 %v24775_v44 }
0x1153   :  { %18399 = vmatpush3.bf16.msra.mxu1 %v24775_v44  ;;  %v20137_v44 = vld [vmem:[%s26200_s9 + $0x88] sm:$0xff]   ;;  %s15013_s9 = sshll.u32 %s20404_s30, 4  ;;  %s15014_s9 = int_to_ptr.vmem [resolvable:$true] %s15013_s9 }
0x1154   :  { %18400 = vmatprep.subr.bf16.mxu1 %v24777_v54  ;;  %p20381_p1 = scmp.lt.s32.totalorder %s15014_s9, %s15014_s9 }
0x1157   :  { %18401 = vmatpush3.bf16.msra.mxu1 %v24777_v54  ;;  %v20143_v54 = vld [vmem:[%s26202_s11 + $0x108] sm:$0xff]  }
0x1158   :  { %18402 = vmatprep.subr.bf16.mxu1 %v24779_v53 }
0x115b   :  { %18403 = vmatpush3.bf16.msra.mxu1 %v24779_v53  ;;  %v20144_v53 = vld [vmem:[%s26202_s11 + $0x110] sm:$0xff]  }
0x115c   :  { %18404 = vmatprep.subr.bf16.mxu1 %v24781_v52 }
0x115f   :  { %18405 = vmatpush3.bf16.msra.mxu1 %v24781_v52  ;;  %v20145_v52 = vld [vmem:[%s26202_s11 + $0x118] sm:$0xff]  }
0x1160   :  { %18406 = vmatprep.subr.bf16.mxu1 %v24783_v15 }
0x1163   :  { %18407 = vmatpush3.bf16.msra.mxu1 %v24783_v15 }
0x1164   :  { %18408 = vmatprep.subr.bf16.mxu1 %v24785_v37 }
0x1167   :  { %18409 = vmatpush3.bf16.msra.mxu1 %v24785_v37 }
0x1168   :  { %18410 = vmatprep.subr.bf16.mxu1 %v24787_v17 }
0x116b   :  { %18411 = vmatpush3.bf16.msra.mxu1 %v24787_v17 }
0x116c   :  { %18416 = vmatprep.subr.bf16.mxu1 %v20142_v27 }
0x116e   :  { %18413 = vmatmul.mubr.bf16.vlgmr.msra.gmra.mrb[144].mxu1 %v20137_v44 }
0x116f   :  { %18417 = vmatpush3.bf16.msra.mxu1 %v20142_v27 }
0x1170   :  { %18418 = vmatprep.subr.bf16.mxu1 %v20143_v54 }
0x1173   :  { %18419 = vmatpush3.bf16.msra.mxu1 %v20143_v54 }
0x1174   :  { %18420 = vmatprep.subr.bf16.mxu1 %v20144_v53 }
0x1177   :  { %18421 = vmatpush3.bf16.msra.mxu1 %v20144_v53 }
0x1178   :  { %18422 = vmatprep.subr.bf16.mxu1 %v20145_v52 }
0x117b   :  { %18423 = vmatpush3.bf16.msra.mxu1 %v20145_v52 }
0x11f1   :  { %v25122_v15 = vpop.f32.mrb[24].mxu0 }
0x11f2   :  { %v25124_v37 = vpop.f32.mrb[25].mxu0 }
0x11f3   :  { %v25126_v17 = vpop.f32.mrb[26].mxu0 }
0x11f4   :  { %v25128_v21 = vpop.f32.mrb[27].mxu0 }
0x1241   :  { %v18414_v22 = vpop.f32.mrb[144].mxu1 }
0x1242   :  { %v11224_v14 = vpop.f32.mrb[145].mxu1 }
0x1243   :  { %v18415_v8 = vpop.f32.mrb[146].mxu1 }
0x1244   :  { %v11248_v18 = vpack.c.bf16 %v18415_v8, %v18414_v22  ;;  %v11227_v57 = vpop.f32.mrb[147].mxu1  ;;  %v20149_v8 = vld [vmem:[%s26201_s10 + $0x28] sm:$0xff]  }
0x1245   :  { %v11247_v36 = vpack.c.bf16 %v11227_v57, %v11224_v14  ;;  %v20147_v14 = vld [vmem:[%s26201_s10 + $0x8] sm:$0xff]   ;;  %v20152_v57 = vld [vmem:[%s26201_s10 + $0x30] sm:$0xff]  }
0x1247   :  { %18424 = vmatprep.mubr.msk.bf16.mxu1 %vm6421_vm6, %v11247_v36  ;;  %v20162_v36 = vld [vmem:[%s26203_s12 + $0x40] sm:$0xff]  }
0x1248   :  { %18425 = vmatmul.mubr.msk.bf16.vlgmr.msra.gmra.mrb[136].mxu1 %vm6421_vm6, %v11248_v18  ;;  %v20150_v18 = vld [vmem:[%s26201_s10 + $0x10] sm:$0xff]  }
0x1249   :  { %18500 = vmatprep.mubr.msk.bf16.mxu1 %vm813_vm3, %v20148_v38  ;;  %v20153_v38 = vld [vmem:[%s26201_s10 + $0x38] sm:$0xff]  }
0x131b   :  { %v18426_v11 = vpop.f32.mrb[136].mxu1 }
0x131c   :  { %v11313_v0 = vpop.f32.mrb[137].mxu1 }
0x131d   :  { %v18427_v24 = vpop.f32.mrb[138].mxu1 }
0x131e   :  { %v11316_v32 = vpop.f32.mrb[139].mxu1 }
0x131f   :  { %v11334_v3 = vadd.f32 %v11316_v32, %v11313_v0 }
0x1321   :  { %v11335_v6 = vadd.f32 %v18426_v11, %v11334_v3  ;;  %v20156_v3 = vld [vmem:[%s26201_s10 + $0x50] sm:$0xff]  }
0x1323   :  { %v11336_v35 = vadd.f32 %v18427_v24, %v11335_v6  ;;  %v20165_v6 = vld [vmem:[%s26203_s12 + $0x58] sm:$0xff]  }
0x1325   :  { %v11337_v47 = vrot.slane %v11336_v35, 4 }
0x1327   :  { %v11338_v13 = vadd.f32 %v11337_v47, %v11336_v35  ;;  %v20166_v35 = vld [vmem:[%s26203_s12 + $0x60] sm:$0xff]   ;;  %v20157_v47 = vld [vmem:[%s26201_s10 + $0x58] sm:$0xff]  }
0x1329   :  { %v11339_v20 = vrot.slane %v11338_v13, 2 }
0x132b   :  { %v11340_v45 = vadd.f32 %v11339_v20, %v11338_v13  ;;  %v20158_v13 = vld [vmem:[%s26201_s10 + $0x60] sm:$0xff]   ;;  %v20167_v20 = vld [vmem:[%s26203_s12 + $0x68] sm:$0xff]  }
0x132d   :  { %v11341_v5 = vrot.slane %v11340_v45, 1 }
0x132f   :  { %v11342_v39 = vadd.f32 %v11341_v5, %v11340_v45  ;;  %v20159_v45 = vld [vmem:[%s26201_s10 + $0x68] sm:$0xff]   ;;  %v20160_v5 = vld [vmem:[%s26201_s10 + $0x70] sm:$0xff]  }
0x1331   :  { %v11343_v60 = vmul.f32 0.03125, %v11342_v39  ;;  %v20161_v39 = vld [vmem:[%s26201_s10 + $0x78] sm:$0xff]  }
0x1333   :  { %v11344_v30 = vsub.f32 %v11313_v0, %v11343_v60  ;;  %v11345_v41 = vsub.f32 %v11316_v32, %v11343_v60  ;;  %v11346_v55 = vsub.f32 %v18426_v11, %v11343_v60  ;;  %v11347_v12 = vsub.f32 %v18427_v24, %v11343_v60  ;;  %v20154_v11 = vld [vmem:[%s26201_s10 + $0x40] sm:$0xff]   ;;  %v20163_v0 = vld [vmem:[%s26203_s12 + $0x48] sm:$0xff]   ;;  %v20164_v24 = vld [vmem:[%s26203_s12 + $0x50] sm:$0xff]  }
0x1334   :  { %v20155_v32 = vld [vmem:[%s26201_s10 + $0x48] sm:$0xff]   ;;  %v20168_v60 = vld [vmem:[%s26203_s12 + $0x70] sm:$0xff]  }
0x1335   :  { %v11348_v16 = vmul.f32 %v11344_v30, %v11344_v30  ;;  %v11349_v31 = vmul.f32 %v11345_v41, %v11345_v41  ;;  %v11350_v25 = vmul.f32 %v11346_v55, %v11346_v55  ;;  %v11351_v4 = vmul.f32 %v11347_v12, %v11347_v12 }
0x1337   :  { %v11352_v2 = vadd.f32 %v11349_v31, %v11348_v16 }
0x1339   :  { %v11353_v29 = vadd.f32 %v11352_v2, %v11350_v25 }
0x133b   :  { %v11354_v59 = vadd.f32 %v11353_v29, %v11351_v4 }
0x133d   :  { %v11355_v34 = vrot.slane %v11354_v59, 4 }
0x133f   :  { %v11356_v23 = vadd.f32 %v11355_v34, %v11354_v59 }
0x1341   :  { %v11357_v19 = vrot.slane %v11356_v23, 2 }
0x1343   :  { %v11358_v58 = vadd.f32 %v11357_v19, %v11356_v23 }
0x1345   :  { %v11359_v42 = vrot.slane %v11358_v58, 1 }
0x1347   :  { %v11360_v48 = vadd.f32 %v11359_v42, %v11358_v58 }
0x1349   :  { %v11361_v33 = vmul.f32 0.03125, %v11360_v48 }
0x134b   :  { %v11362_v28 = vadd.f32 1e-05, %v11361_v33 }
0x134d   :  { %20372 = vrsqrt.f32 %v11362_v28 }
0x1357   :  { %v20373_v1 = vpop.eup %20372 }
0x1358   :  { %v11364_v40 = vmul.f32 %v20373_v1, %v11332_v63 }
0x135a   :  { %v11368_v61 = vrot.slane %v11364_v40, %v26610_v62 }
0x135c   :  { %v11369_v49 = vmul.f32 %v11368_v61, %v11344_v30  ;;  %v11370_v9 = vmul.f32 %v11368_v61, %v11345_v41  ;;  %v11371_v10 = vmul.f32 %v11368_v61, %v11346_v55  ;;  %v11372_v26 = vmul.f32 %v11368_v61, %v11347_v12  ;;  %v20169_v30 = vld [vmem:[%s26203_s12 + $0x78] sm:$0xff]   ;;  %v20170_v41 = vld [vmem:[%s26203_s12] sm:$0xff]   ;;  %v20181_v12 = vld [vmem:[%s26201_s10 + $0x88] sm:$0xff]  }
0x135d   :  { %v20180_v55 = vld [vmem:[%s26201_s10 + $0x80] sm:$0xff]  }
0x135e   :  { %v11377_v43 = vadd.f32 %v15834_v50, %v11369_v49  ;;  %v11378_v7 = vadd.f32 %v15834_v50, %v11370_v9  ;;  %v11379_v56 = vadd.f32 %v15834_v50, %v11371_v10  ;;  %v11380_v46 = vadd.f32 %v15834_v50, %v11372_v26 }
0x1360   :  { %v11381_v27 = vmax.f32 %v11377_v43, 0.0  ;;  %v11382_v44 = vmax.f32 %v11378_v7, 0.0  ;;  %v11383_v54 = vmax.f32 %v11379_v56, 0.0  ;;  %v11384_v53 = vmax.f32 %v11380_v46, 0.0  ;;  %v20171_v43 = vld [vmem:[%s26203_s12 + $0x8] sm:$0xff]   ;;  %v20172_v56 = vld [vmem:[%s26203_s12 + $0x10] sm:$0xff]  }
0x1362   :  { %v25147_v52 = vpack.c.bf16 %v11382_v44, %v11381_v27  ;;  %v25149_v22 = vpack.c.bf16 %v11384_v53, %v11383_v54 }
0x1364   :  { %18440 = vmatprep.subr.bf16.mxu0 %v25147_v52  ;;  %18496 = vmatprep.subr.bf16.mxu1 %v25147_v52 }
0x1365   :  { %18441 = vmatpush3.bf16.msra.mxu0 %v25147_v52  ;;  %18497 = vmatpush3.bf16.msra.mxu1 %v25147_v52 }
0x1366   :  { %18442 = vmatprep.subr.bf16.mxu0 %v25149_v22  ;;  %18498 = vmatprep.subr.bf16.mxu1 %v25149_v22 }
0x1369   :  { %18443 = vmatpush3.bf16.msra.mxu0 %v25149_v22  ;;  %18499 = vmatpush3.bf16.msra.mxu1 %v25149_v22 }
0x136a   :  { %18448 = vmatprep.subr.bf16.mxu0 %v25147_v52  ;;  %18524 = vmatprep.subr.bf16.mxu1 %v25147_v52 }
0x136c   :  { %18445 = vmatmul.mubr.msk.bf16.vlgmr.msra.gmra.mrb[28].mxu0 %vm813_vm3, %v20147_v14  ;;  %18501 = vmatmul.mubr.msk.bf16.vlgmr.msra.gmra.mrb[148].mxu1 %vm813_vm3, %v20149_v8  ;;  %v20175_v14 = vld [vmem:[%s26203_s12 + $0x28] sm:$0xff]   ;;  %v20176_v8 = vld [vmem:[%s26203_s12 + $0x30] sm:$0xff]  }
0x136d   :  { %18449 = vmatpush3.bf16.msra.mxu0 %v25147_v52  ;;  %18525 = vmatpush3.bf16.msra.mxu1 %v25147_v52 }
0x136e   :  { %18450 = vmatprep.subr.bf16.mxu0 %v25149_v22  ;;  %18526 = vmatprep.subr.bf16.mxu1 %v25149_v22 }
0x136f   :  { %18452 = vmatprep.mubr.msk.bf16.mxu0 %vm813_vm3, %v20150_v18  ;;  %18528 = vmatprep.mubr.msk.bf16.mxu1 %vm813_vm3, %v20152_v57  ;;  %v20177_v18 = vld [vmem:[%s26203_s12 + $0x38] sm:$0xff]  }
0x1371   :  { %18451 = vmatpush3.bf16.msra.mxu0 %v25149_v22  ;;  %18527 = vmatpush3.bf16.msra.mxu1 %v25149_v22 }
0x1372   :  { %18552 = vmatprep.subr.bf16.mxu1 %v25147_v52  ;;  %18456 = vmatprep.subr.bf16.mxu0 %v20162_v36 }
0x1374   :  { %18453 = vmatmul.mubr.msk.bf16.vlgmr.msra.gmra.mrb[32].mxu0 %vm813_vm3, %v20151_v51  ;;  %18529 = vmatmul.mubr.msk.bf16.vlgmr.msra.gmra.mrb[152].mxu1 %vm813_vm3, %v20153_v38  ;;  %v20178_v38 = vld [vmem:[%s26203_s12 + $0x80] sm:$0xff]  }
0x1375   :  { %18553 = vmatpush3.bf16.msra.mxu1 %v25147_v52  ;;  %18556 = vmatprep.mubr.msk.bf16.mxu1 %vm813_vm3, %v20154_v11 }
0x1376   :  { %18554 = vmatprep.subr.bf16.mxu1 %v25149_v22  ;;  %18457 = vmatpush3.bf16.msra.mxu0 %v20162_v36 }
0x1377   :  { %18458 = vmatprep.subr.bf16.mxu0 %v20163_v0 }
0x1379   :  { %18555 = vmatpush3.bf16.msra.mxu1 %v25149_v22 }
0x137a   :  { %18580 = vmatprep.subr.bf16.mxu1 %v25147_v52  ;;  %18459 = vmatpush3.bf16.msra.mxu0 %v20163_v0 }
0x137b   :  { %18460 = vmatprep.subr.bf16.mxu0 %v20164_v24 }
0x137c   :  { %18557 = vmatmul.mubr.msk.bf16.vlgmr.msra.gmra.mrb[156].mxu1 %vm813_vm3, %v20155_v32  ;;  %v20179_v32 = vld [vmem:[%s26203_s12 + $0x88] sm:$0xff]  }
0x137d   :  { %18581 = vmatpush3.bf16.msra.mxu1 %v25147_v52  ;;  %18584 = vmatprep.mubr.msk.bf16.mxu1 %vm813_vm3, %v20156_v3  ;;  %v20182_v3 = vld [vmem:[%s26203_s12 + $0x90] sm:$0xff]  }
0x137e   :  { %18582 = vmatprep.subr.bf16.mxu1 %v25149_v22  ;;  %18461 = vmatpush3.bf16.msra.mxu0 %v20164_v24 }
0x137f   :  { %18462 = vmatprep.subr.bf16.mxu0 %v20165_v6 }
0x1381   :  { %18583 = vmatpush3.bf16.msra.mxu1 %v25149_v22 }
0x1382   :  { %18608 = vmatprep.subr.bf16.mxu1 %v25147_v52  ;;  %18463 = vmatpush3.bf16.msra.mxu0 %v20165_v6  ;;  %v20183_v6 = vld [vmem:[%s26203_s12 + $0x98] sm:$0xff]  }
0x1383   :  { %18464 = vmatprep.subr.bf16.mxu0 %v20166_v35 }
0x1384   :  { %18585 = vmatmul.mubr.msk.bf16.vlgmr.msra.gmra.mrb[160].mxu1 %vm813_vm3, %v20157_v47  ;;  %v20185_v47 = vld [vmem:[%s26203_s12 + $0xa8] sm:$0xff]  }
0x1385   :  { %18609 = vmatpush3.bf16.msra.mxu1 %v25147_v52  ;;  %18612 = vmatprep.mubr.msk.bf16.mxu1 %vm813_vm3, %v20158_v13  ;;  %v20186_v13 = vld [vmem:[%s26203_s12 + $0xb0] sm:$0xff]  }
0x1386   :  { %18610 = vmatprep.subr.bf16.mxu1 %v25149_v22  ;;  %18465 = vmatpush3.bf16.msra.mxu0 %v20166_v35  ;;  %v20184_v35 = vld [vmem:[%s26203_s12 + $0xa0] sm:$0xff]  }
0x1387   :  { %18466 = vmatprep.subr.bf16.mxu0 %v20167_v20 }
0x1389   :  { %18611 = vmatpush3.bf16.msra.mxu1 %v25149_v22 }
0x138a   :  { %18636 = vmatprep.subr.bf16.mxu1 %v25147_v52  ;;  %18467 = vmatpush3.bf16.msra.mxu0 %v20167_v20  ;;  %v20187_v20 = vld [vmem:[%s26203_s12 + $0xb8] sm:$0xff]  }
0x138b   :  { %18468 = vmatprep.subr.bf16.mxu0 %v20168_v60 }
0x138c   :  { %18613 = vmatmul.mubr.msk.bf16.vlgmr.msra.gmra.mrb[164].mxu1 %vm813_vm3, %v20159_v45 }
0x138d   :  { %18637 = vmatpush3.bf16.msra.mxu1 %v25147_v52  ;;  %18640 = vmatprep.mubr.msk.bf16.mxu1 %vm813_vm3, %v20160_v5 }
0x138e   :  { %18638 = vmatprep.subr.bf16.mxu1 %v25149_v22  ;;  %18469 = vmatpush3.bf16.msra.mxu0 %v20168_v60  ;;  %v20188_v60 = vld [vmem:[%s26203_s12 + $0xc0] sm:$0xff]  }
0x138f   :  { %18470 = vmatprep.subr.bf16.mxu0 %v20169_v30 }
0x1391   :  { %18639 = vmatpush3.bf16.msra.mxu1 %v25149_v22 }
0x1392   :  { %18664 = vmatprep.subr.bf16.mxu1 %v25147_v52  ;;  %18471 = vmatpush3.bf16.msra.mxu0 %v20169_v30 }
0x1393   :  { %18476 = vmatprep.subr.bf16.mxu0 %v20170_v41 }
0x1394   :  { %18641 = vmatmul.mubr.msk.bf16.vlgmr.msra.gmra.mrb[168].mxu1 %vm813_vm3, %v20161_v39 }
0x1395   :  { %18665 = vmatpush3.bf16.msra.mxu1 %v25147_v52  ;;  %18668 = vmatprep.mubr.msk.bf16.mxu1 %vm813_vm3, %v20180_v55  ;;  %v20173_v52 = vld [vmem:[%s26203_s12 + $0x18] sm:$0xff]  }
0x1396   :  { %18666 = vmatprep.subr.bf16.mxu1 %v25149_v22 }
0x1399   :  { %18667 = vmatpush3.bf16.msra.mxu1 %v25149_v22  ;;  %v20174_v22 = vld [vmem:[%s26203_s12 + $0x20] sm:$0xff]  }
0x139c   :  { %18669 = vmatmul.mubr.msk.bf16.vlgmr.msra.gmra.mrb[172].mxu1 %vm813_vm3, %v20181_v12  ;;  %v20189_v12 = vld [vmem:[%s26203_s12 + $0xc8] sm:$0xff]  }
0x143f   :  { %v25278_v16 = vpop.f32.mrb[28].mxu0  ;;  %v25280_v31 = vpop.f32.mrb[148].mxu1 }
0x1440   :  { %v11527_v25 = vpop.f32.mrb[29].mxu0  ;;  %v25282_v2 = vpop.f32.mrb[149].mxu1 }
0x1441   :  { %v18447_v4 = vpop.f32.mrb[30].mxu0  ;;  %v25284_v29 = vpop.f32.mrb[150].mxu1 }
0x1442   :  { %v11559_v59 = vpack.c.bf16 %v18447_v4, %v25278_v16  ;;  %v11530_v34 = vpop.f32.mrb[31].mxu0  ;;  %v11927_v23 = vpack.c.bf16 %v25284_v29, %v25280_v31  ;;  %v11898_v19 = vpop.f32.mrb[151].mxu1  ;;  %v20190_v16 = vld [vmem:[%s26203_s12 + $0xd0] sm:$0xff]   ;;  %v20192_v31 = vld [vmem:[%s26203_s12 + $0xe0] sm:$0xff]   ;;  %v20195_v29 = vld [vmem:[%s26203_s12 + $0xf8] sm:$0xff]  }
0x1443   :  { %v11558_v58 = vpack.c.bf16 %v11530_v34, %v11527_v25  ;;  %v11926_v42 = vpack.c.bf16 %v11898_v19, %v25282_v2  ;;  %v20191_v25 = vld [vmem:[%s26203_s12 + $0xd8] sm:$0xff]   ;;  %v20193_v2 = vld [vmem:[%s26203_s12 + $0xe8] sm:$0xff]   ;;  %v20194_v4 = vld [vmem:[%s26203_s12 + $0xf0] sm:$0xff]  }
0x1444   :  { %v20196_v19 = vld [vmem:[%s26203_s12 + $0x100] sm:$0xff]  }
0x1447   :  { %v18454_v48 = vpop.f32.mrb[32].mxu0  ;;  %v25290_v33 = vpop.f32.mrb[152].mxu1 }
0x1448   :  { %v11614_v28 = vpop.f32.mrb[33].mxu0  ;;  %v25292_v63 = vpop.f32.mrb[153].mxu1 }
0x1449   :  { %v18455_v1 = vpop.f32.mrb[34].mxu0  ;;  %v25294_v40 = vpop.f32.mrb[154].mxu1 }
0x144a   :  { %v11646_v61 = vpack.c.bf16 %v18455_v1, %v18454_v48  ;;  %v11617_v50 = vpop.f32.mrb[35].mxu0  ;;  %v12115_v49 = vpack.c.bf16 %v25294_v40, %v25290_v33  ;;  %v25298_v9 = vpop.f32.mrb[155].mxu1  ;;  %v20199_v1 = vld [vmem:[%s26203_s12 + $0x118] sm:$0xff]   ;;  %v20200_v33 = vld [vmem:[%s26203_s12 + $0x120] sm:$0xff]   ;;  %v20201_v40 = vld [vmem:[%s26203_s12 + $0x128] sm:$0xff]  }
0x144b   :  { %v11645_v10 = vpack.c.bf16 %v11617_v50, %v11614_v28  ;;  %v12114_v26 = vpack.c.bf16 %v25298_v9, %v25292_v63  ;;  %v20197_v28 = vld [vmem:[%s26203_s12 + $0x108] sm:$0xff]   ;;  %v20198_v63 = vld [vmem:[%s26203_s12 + $0x110] sm:$0xff]   ;;  %v20203_v50 = vld [vmem:[%s26203_s12 + $0x138] sm:$0xff]  }
0x144d   :  { %18472 = vmatprep.mubr.bf16.mxu0 %v11645_v10 }
0x144e   :  { %18473 = vmatmul.mubr.bf16.vlgmr.msra.gmra.mrb[36].mxu0 %v11646_v61  ;;  %v20202_v61 = vld [vmem:[%s26203_s12 + $0x130] sm:$0xff]  }
0x144f   :  { %18477 = vmatpush3.bf16.msra.mxu0 %v20170_v41  ;;  %18492 = vmatprep.mubr.bf16.mxu0 %v11558_v58  ;;  %v25305_v7 = vpop.f32.mrb[156].mxu1 }
0x1450   :  { %18478 = vmatprep.subr.bf16.mxu0 %v20171_v43  ;;  %v25310_v46 = vpop.f32.mrb[157].mxu1 }
0x1451   :  { %v25312_v27 = vpop.f32.mrb[158].mxu1 }
0x1452   :  { %v12303_v44 = vpack.c.bf16 %v25312_v27, %v25305_v7  ;;  %v25316_v54 = vpop.f32.mrb[159].mxu1  ;;  %v20208_v7 = vld [vmem:[%s26203_s12 + $0x160] sm:$0xff]   ;;  %v20209_v27 = vld [vmem:[%s26203_s12 + $0x168] sm:$0xff]  }
0x1453   :  { %18479 = vmatpush3.bf16.msra.mxu0 %v20171_v43  ;;  %v12302_v53 = vpack.c.bf16 %v25316_v54, %v25310_v46  ;;  %v20205_v54 = vld [vmem:[%s26203_s12 + $0x148] sm:$0xff]  }
0x1454   :  { %18480 = vmatprep.subr.bf16.mxu0 %v20172_v56 }
0x1457   :  { %18481 = vmatpush3.bf16.msra.mxu0 %v20172_v56  ;;  %v25335_v57 = vpop.f32.mrb[160].mxu1  ;;  %v20204_v56 = vld [vmem:[%s26203_s12 + $0x140] sm:$0xff]  }
0x1458   :  { %18482 = vmatprep.subr.bf16.mxu0 %v20173_v52  ;;  %v25337_v36 = vpop.f32.mrb[161].mxu1 }
0x1459   :  { %v25339_v51 = vpop.f32.mrb[162].mxu1 }
0x145a   :  { %v12491_v11 = vpack.c.bf16 %v25339_v51, %v25335_v57  ;;  %v25346_v0 = vpop.f32.mrb[163].mxu1  ;;  %v20216_v57 = vld [vmem:[%s26203_s12 + $0x1a0] sm:$0xff]   ;;  %v20217_v51 = vld [vmem:[%s26203_s12 + $0x1a8] sm:$0xff]  }
0x145b   :  { %18483 = vmatpush3.bf16.msra.mxu0 %v20173_v52  ;;  %v12490_v24 = vpack.c.bf16 %v25346_v0, %v25337_v36  ;;  %v20207_v52 = vld [vmem:[%s26203_s12 + $0x158] sm:$0xff]   ;;  %v20220_v0 = vld [vmem:[%s26203_s12 + $0x1c0] sm:$0xff]  }
0x145c   :  { %18484 = vmatprep.subr.bf16.mxu0 %v20174_v22  ;;  %v20215_v36 = vld [vmem:[%s26203_s12 + $0x198] sm:$0xff]  }
0x145f   :  { %18485 = vmatpush3.bf16.msra.mxu0 %v20174_v22  ;;  %v25371_v45 = vpop.f32.mrb[164].mxu1  ;;  %v20211_v22 = vld [vmem:[%s26203_s12 + $0x178] sm:$0xff]  }
0x1460   :  { %18486 = vmatprep.subr.bf16.mxu0 %v20175_v14  ;;  %v25373_v5 = vpop.f32.mrb[165].mxu1 }
0x1461   :  { %v25375_v39 = vpop.f32.mrb[166].mxu1 }
0x1462   :  { %v12679_v30 = vpack.c.bf16 %v25375_v39, %v25371_v45  ;;  %v25382_v41 = vpop.f32.mrb[167].mxu1  ;;  %v20229_v45 = vld [vmem:[%s26203_s12 + $0x208] sm:$0xff]   ;;  %v20231_v39 = vld [vmem:[%s26203_s12 + $0x218] sm:$0xff]  }
0x1463   :  { %18487 = vmatpush3.bf16.msra.mxu0 %v20175_v14  ;;  %v12678_v55 = vpack.c.bf16 %v25382_v41, %v25373_v5  ;;  %v20212_v14 = vld [vmem:[%s26203_s12 + $0x180] sm:$0xff]   ;;  %v20230_v5 = vld [vmem:[%s26203_s12 + $0x210] sm:$0xff]  }
0x1464   :  { %18488 = vmatprep.subr.bf16.mxu0 %v20176_v8  ;;  %v20234_v41 = vld [vmem:[%s26203_s12 + $0x230] sm:$0xff]  }
0x1467   :  { %18489 = vmatpush3.bf16.msra.mxu0 %v20176_v8  ;;  %v20213_v8 = vld [vmem:[%s26203_s12 + $0x188] sm:$0xff]  }
0x1468   :  { %18490 = vmatprep.subr.bf16.mxu0 %v20177_v18 }
0x146b   :  { %18491 = vmatpush3.bf16.msra.mxu0 %v20177_v18  ;;  %v20214_v18 = vld [vmem:[%s26203_s12 + $0x190] sm:$0xff]  }
0x146c   :  { %18504 = vmatprep.subr.bf16.mxu0 %v20178_v38 }
0x146e   :  { %18493 = vmatmul.mubr.bf16.vlgmr.msra.gmra.mrb[36].mxu0 %v11559_v59  ;;  %v25413_v59 = vpop.f32.mrb[168].mxu1 }
0x146f   :  { %18505 = vmatpush3.bf16.msra.mxu0 %v20178_v38  ;;  %18520 = vmatprep.mubr.bf16.mxu0 %v11926_v42  ;;  %v25415_v34 = vpop.f32.mrb[169].mxu1  ;;  %v20218_v38 = vld [vmem:[%s26203_s12 + $0x1b0] sm:$0xff]  }
0x1470   :  { %18506 = vmatprep.subr.bf16.mxu0 %v20179_v32 }
0x1473   :  { %18507 = vmatpush3.bf16.msra.mxu0 %v20179_v32  ;;  %v20222_v32 = vld [vmem:[%s26203_s12 + $0x1d0] sm:$0xff]  }
0x1474   :  { %18508 = vmatprep.subr.bf16.mxu0 %v20182_v3 }
0x1477   :  { %18509 = vmatpush3.bf16.msra.mxu0 %v20182_v3  ;;  %v20223_v3 = vld [vmem:[%s26203_s12 + $0x1d8] sm:$0xff]  }
0x1478   :  { %18510 = vmatprep.subr.bf16.mxu0 %v20183_v6 }
0x147b   :  { %18511 = vmatpush3.bf16.msra.mxu0 %v20183_v6  ;;  %v20224_v6 = vld [vmem:[%s26203_s12 + $0x1e0] sm:$0xff]  }
0x147c   :  { %18512 = vmatprep.subr.bf16.mxu0 %v20184_v35 }
0x147f   :  { %18513 = vmatpush3.bf16.msra.mxu0 %v20184_v35  ;;  %v20225_v35 = vld [vmem:[%s26203_s12 + $0x1e8] sm:$0xff]  }
0x1480   :  { %18514 = vmatprep.subr.bf16.mxu0 %v20185_v47 }
0x1483   :  { %18515 = vmatpush3.bf16.msra.mxu0 %v20185_v47  ;;  %v20226_v47 = vld [vmem:[%s26203_s12 + $0x1f0] sm:$0xff]  }
0x1484   :  { %18516 = vmatprep.subr.bf16.mxu0 %v20186_v13 }
0x1487   :  { %18517 = vmatpush3.bf16.msra.mxu0 %v20186_v13  ;;  %v20227_v13 = vld [vmem:[%s26203_s12 + $0x1f8] sm:$0xff]  }
0x1488   :  { %18518 = vmatprep.subr.bf16.mxu0 %v20187_v20 }
0x148b   :  { %18519 = vmatpush3.bf16.msra.mxu0 %v20187_v20  ;;  %v20228_v20 = vld [vmem:[%s26203_s12 + $0x200] sm:$0xff]  }
0x148c   :  { %18532 = vmatprep.subr.bf16.mxu0 %v20188_v60 }
0x148e   :  { %18521 = vmatmul.mubr.bf16.vlgmr.msra.gmra.mrb[36].mxu0 %v11927_v23  ;;  %v25417_v23 = vpop.f32.mrb[170].mxu1 }
0x148f   :  { %18533 = vmatpush3.bf16.msra.mxu0 %v20188_v60  ;;  %18548 = vmatprep.mubr.bf16.mxu0 %v12114_v26  ;;  %v12867_v58 = vpack.c.bf16 %v25417_v23, %v25413_v59  ;;  %v25424_v42 = vpop.f32.mrb[171].mxu1  ;;  %v20232_v60 = vld [vmem:[%s26203_s12 + $0x220] sm:$0xff]  }
0x1490   :  { %18534 = vmatprep.subr.bf16.mxu0 %v20189_v12  ;;  %v12866_v48 = vpack.c.bf16 %v25424_v42, %v25415_v34 }
0x1493   :  { %18535 = vmatpush3.bf16.msra.mxu0 %v20189_v12  ;;  %v20236_v12 = vld [vmem:[%s26206_s15] sm:$0xff]  }
0x1494   :  { %18536 = vmatprep.subr.bf16.mxu0 %v20190_v16  ;;  %18696 = vmatprep.mubr.msk.bf16.mxu1 %vm813_vm3, %v20236_v12 }
0x1497   :  { %18537 = vmatpush3.bf16.msra.mxu0 %v20190_v16 }
0x1498   :  { %18538 = vmatprep.subr.bf16.mxu0 %v20191_v25 }
0x149b   :  { %18539 = vmatpush3.bf16.msra.mxu0 %v20191_v25 }
0x149c   :  { %18540 = vmatprep.subr.bf16.mxu0 %v20192_v31 }
0x149f   :  { %18541 = vmatpush3.bf16.msra.mxu0 %v20192_v31 }
0x14a0   :  { %18542 = vmatprep.subr.bf16.mxu0 %v20193_v2 }
0x14a3   :  { %18543 = vmatpush3.bf16.msra.mxu0 %v20193_v2 }
0x14a4   :  { %18544 = vmatprep.subr.bf16.mxu0 %v20194_v4 }
0x14a7   :  { %18545 = vmatpush3.bf16.msra.mxu0 %v20194_v4 }
0x14a8   :  { %18546 = vmatprep.subr.bf16.mxu0 %v20195_v29 }
0x14ab   :  { %18547 = vmatpush3.bf16.msra.mxu0 %v20195_v29 }
0x14ac   :  { %18560 = vmatprep.subr.bf16.mxu0 %v20196_v19 }
0x14ae   :  { %18549 = vmatmul.mubr.bf16.vlgmr.msra.gmra.mrb[36].mxu0 %v12115_v49  ;;  %v25455_v49 = vpop.f32.mrb[172].mxu1 }
0x14af   :  { %18561 = vmatpush3.bf16.msra.mxu0 %v20196_v19  ;;  %18576 = vmatprep.mubr.bf16.mxu0 %v12302_v53  ;;  %v25457_v9 = vpop.f32.mrb[173].mxu1  ;;  %v20206_v53 = vld [vmem:[%s26203_s12 + $0x150] sm:$0xff]  }
0x14b0   :  { %18562 = vmatprep.subr.bf16.mxu0 %v20197_v28  ;;  %v25459_v10 = vpop.f32.mrb[174].mxu1 }
0x14b1   :  { %v13055_v26 = vpack.c.bf16 %v25459_v10, %v25455_v49  ;;  %v25463_v43 = vpop.f32.mrb[175].mxu1 }
0x14b2   :  { %v13054_v46 = vpack.c.bf16 %v25463_v43, %v25457_v9 }
0x14b3   :  { %18563 = vmatpush3.bf16.msra.mxu0 %v20197_v28 }
0x14b4   :  { %18564 = vmatprep.subr.bf16.mxu0 %v20198_v63 }
0x14b7   :  { %18565 = vmatpush3.bf16.msra.mxu0 %v20198_v63 }
0x14b8   :  { %18566 = vmatprep.subr.bf16.mxu0 %v20199_v1 }
0x14bb   :  { %18567 = vmatpush3.bf16.msra.mxu0 %v20199_v1 }
0x14bc   :  { %18568 = vmatprep.subr.bf16.mxu0 %v20200_v33 }
0x14bf   :  { %18569 = vmatpush3.bf16.msra.mxu0 %v20200_v33 }
0x14c0   :  { %18570 = vmatprep.subr.bf16.mxu0 %v20201_v40 }
0x14c3   :  { %18571 = vmatpush3.bf16.msra.mxu0 %v20201_v40 }
0x14c4   :  { %18572 = vmatprep.subr.bf16.mxu0 %v20202_v61 }
0x14c7   :  { %18573 = vmatpush3.bf16.msra.mxu0 %v20202_v61 }
0x14c8   :  { %18574 = vmatprep.subr.bf16.mxu0 %v20203_v50 }
0x14cb   :  { %18575 = vmatpush3.bf16.msra.mxu0 %v20203_v50 }
0x14cc   :  { %18588 = vmatprep.subr.bf16.mxu0 %v20204_v56 }
0x14ce   :  { %18577 = vmatmul.mubr.bf16.vlgmr.msra.gmra.mrb[36].mxu0 %v12303_v44  ;;  %v20210_v44 = vld [vmem:[%s26203_s12 + $0x170] sm:$0xff]  }
0x14cf   :  { %18589 = vmatpush3.bf16.msra.mxu0 %v20204_v56  ;;  %18604 = vmatprep.mubr.bf16.mxu0 %v12490_v24  ;;  %v20221_v24 = vld [vmem:[%s26203_s12 + $0x1c8] sm:$0xff]  }
0x14d0   :  { %18590 = vmatprep.subr.bf16.mxu0 %v20205_v54 }
0x14d3   :  { %18591 = vmatpush3.bf16.msra.mxu0 %v20205_v54 }
0x14d4   :  { %18592 = vmatprep.subr.bf16.mxu0 %v20206_v53 }
0x14d7   :  { %18593 = vmatpush3.bf16.msra.mxu0 %v20206_v53 }
0x14d8   :  { %18594 = vmatprep.subr.bf16.mxu0 %v20207_v52 }
0x14db   :  { %18595 = vmatpush3.bf16.msra.mxu0 %v20207_v52 }
0x14dc   :  { %18596 = vmatprep.subr.bf16.mxu0 %v20208_v7 }
0x14df   :  { %18597 = vmatpush3.bf16.msra.mxu0 %v20208_v7 }
0x14e0   :  { %18598 = vmatprep.subr.bf16.mxu0 %v20209_v27 }
0x14e3   :  { %18599 = vmatpush3.bf16.msra.mxu0 %v20209_v27 }
0x14e4   :  { %18600 = vmatprep.subr.bf16.mxu0 %v20210_v44 }
0x14e7   :  { %18601 = vmatpush3.bf16.msra.mxu0 %v20210_v44 }
0x14e8   :  { %18602 = vmatprep.subr.bf16.mxu0 %v20211_v22 }
0x14eb   :  { %18603 = vmatpush3.bf16.msra.mxu0 %v20211_v22  ;;  %v13157_v22 = vld [vmem:[%s26205_s14 + $0x2] sm:$0x1] }
0x14ec   :  { %18616 = vmatprep.subr.bf16.mxu0 %v20212_v14 }
0x14ee   :  { %18605 = vmatmul.mubr.bf16.vlgmr.msra.gmra.mrb[36].mxu0 %v12491_v11  ;;  %v20219_v11 = vld [vmem:[%s26203_s12 + $0x1b8] sm:$0xff]  }
0x14ef   :  { %18617 = vmatpush3.bf16.msra.mxu0 %v20212_v14  ;;  %18632 = vmatprep.mubr.bf16.mxu0 %v12678_v55  ;;  %v20235_v55 = vld [vmem:[%s26203_s12 + $0x238] sm:$0xff]  }
0x14f0   :  { %18618 = vmatprep.subr.bf16.mxu0 %v20213_v8 }
0x14f3   :  { %18619 = vmatpush3.bf16.msra.mxu0 %v20213_v8 }
0x14f4   :  { %18620 = vmatprep.subr.bf16.mxu0 %v20214_v18 }
0x14f7   :  { %18621 = vmatpush3.bf16.msra.mxu0 %v20214_v18  ;;  %v15835_v18 = vld [vmem:[%s26205_s14 + $0x4] ss:$0 sm:$0xff] }
0x14f8   :  { %18622 = vmatprep.subr.bf16.mxu0 %v20215_v36 }
0x14fb   :  { %18623 = vmatpush3.bf16.msra.mxu0 %v20215_v36 }
0x14fc   :  { %18624 = vmatprep.subr.bf16.mxu0 %v20216_v57 }
0x14ff   :  { %18625 = vmatpush3.bf16.msra.mxu0 %v20216_v57  ;;  %v15950_v57 = vld [vmem:[%s26205_s14 + $0x3] ss:$0 sm:$0xff] }
0x1500   :  { %18626 = vmatprep.subr.bf16.mxu0 %v20217_v51 }
0x1503   :  { %18627 = vmatpush3.bf16.msra.mxu0 %v20217_v51 }
0x1504   :  { %18628 = vmatprep.subr.bf16.mxu0 %v20218_v38 }
0x1507   :  { %18629 = vmatpush3.bf16.msra.mxu0 %v20218_v38 }
0x1508   :  { %18630 = vmatprep.subr.bf16.mxu0 %v20219_v11 }
0x150b   :  { %18631 = vmatpush3.bf16.msra.mxu0 %v20219_v11 }
0x150c   :  { %18644 = vmatprep.subr.bf16.mxu0 %v20220_v0 }
0x150e   :  { %18633 = vmatmul.mubr.bf16.vlgmr.msra.gmra.mrb[36].mxu0 %v12679_v30  ;;  %v20233_v30 = vld [vmem:[%s26203_s12 + $0x228] sm:$0xff]  }
0x150f   :  { %18645 = vmatpush3.bf16.msra.mxu0 %v20220_v0  ;;  %18660 = vmatprep.mubr.bf16.mxu0 %v12866_v48 }
0x1510   :  { %18646 = vmatprep.subr.bf16.mxu0 %v20221_v24 }
0x1513   :  { %18647 = vmatpush3.bf16.msra.mxu0 %v20221_v24  ;;  %v11465_v24 = vadd.f32 %v25122_v15, %v15835_v18 }
0x1514   :  { %18648 = vmatprep.subr.bf16.mxu0 %v20222_v32 }
0x1517   :  { %18649 = vmatpush3.bf16.msra.mxu0 %v20222_v32  ;;  %v11457_v32 = vadd.f32 %v15835_v18, %v25124_v37  ;;  %v20237_v37 = vld [vmem:[%s26206_s15 + $0x8] sm:$0xff]  }
0x1518   :  { %18650 = vmatprep.subr.bf16.mxu0 %v20223_v3 }
0x151b   :  { %18651 = vmatpush3.bf16.msra.mxu0 %v20223_v3  ;;  %v11468_v3 = vadd.f32 %v25126_v17, %v15835_v18  ;;  %v20238_v17 = vld [vmem:[%s26207_s16] sm:$0xff]  }
0x151c   :  { %18652 = vmatprep.subr.bf16.mxu0 %v20224_v6 }
0x151f   :  { %18653 = vmatpush3.bf16.msra.mxu0 %v20224_v6  ;;  %v11460_v6 = vadd.f32 %v15835_v18, %v25128_v21  ;;  %v20402_v21 = vmov 0.0   ;;  %v20267_v18 = vld [vmem:[%s26207_s16 + $0xe8] sm:$0xff]  }
0x1520   :  { %18654 = vmatprep.subr.bf16.mxu0 %v20225_v35 }
0x1523   :  { %18655 = vmatpush3.bf16.msra.mxu0 %v20225_v35 }
0x1524   :  { %18656 = vmatprep.subr.bf16.mxu0 %v20226_v47 }
0x1527   :  { %18657 = vmatpush3.bf16.msra.mxu0 %v20226_v47 }
0x1528   :  { %18658 = vmatprep.subr.bf16.mxu0 %v20227_v13 }
0x152b   :  { %18659 = vmatpush3.bf16.msra.mxu0 %v20227_v13 }
0x152c   :  { %18672 = vmatprep.subr.bf16.mxu0 %v20228_v20 }
0x152e   :  { %18661 = vmatmul.mubr.bf16.vlgmr.msra.gmra.mrb[36].mxu0 %v12867_v58 }
0x152f   :  { %18673 = vmatpush3.bf16.msra.mxu0 %v20228_v20  ;;  %18688 = vmatprep.mubr.bf16.mxu0 %v13054_v46 }
0x1530   :  { %18674 = vmatprep.subr.bf16.mxu0 %v20229_v45 }
0x1533   :  { %18675 = vmatpush3.bf16.msra.mxu0 %v20229_v45 }
0x1534   :  { %18676 = vmatprep.subr.bf16.mxu0 %v20230_v5 }
0x1537   :  { %18677 = vmatpush3.bf16.msra.mxu0 %v20230_v5 }
0x1538   :  { %18678 = vmatprep.subr.bf16.mxu0 %v20231_v39 }
0x153b   :  { %18679 = vmatpush3.bf16.msra.mxu0 %v20231_v39 }
0x153c   :  { %18680 = vmatprep.subr.bf16.mxu0 %v20232_v60 }
0x153f   :  { %18681 = vmatpush3.bf16.msra.mxu0 %v20232_v60 }
0x1540   :  { %18682 = vmatprep.subr.bf16.mxu0 %v20233_v30 }
0x1543   :  { %18683 = vmatpush3.bf16.msra.mxu0 %v20233_v30 }
0x1544   :  { %18684 = vmatprep.subr.bf16.mxu0 %v20234_v41 }
0x1547   :  { %18685 = vmatpush3.bf16.msra.mxu0 %v20234_v41 }
0x1548   :  { %18686 = vmatprep.subr.bf16.mxu0 %v20235_v55 }
0x154b   :  { %18687 = vmatpush3.bf16.msra.mxu0 %v20235_v55 }
0x154e   :  { %18689 = vmatmul.mubr.bf16.vlgmr.msra.gmra.mrb[36].mxu0 %v13055_v26 }
0x1621   :  { %v18690_v16 = vpop.f32.mrb[36].mxu0 }
0x1622   :  { %v13138_v25 = vpop.f32.mrb[37].mxu0 }
0x1623   :  { %v18691_v31 = vpop.f32.mrb[38].mxu0 }
0x1624   :  { %v13141_v2 = vpop.f32.mrb[39].mxu0 }
0x1625   :  { %v13159_v4 = vadd.f32 %v13141_v2, %v13138_v25 }
0x1627   :  { %v13160_v29 = vadd.f32 %v18690_v16, %v13159_v4  ;;  %v20243_v4 = vld [vmem:[%s26207_s16 + $0x28] sm:$0xff]  }
0x1629   :  { %v13161_v59 = vadd.f32 %v18691_v31, %v13160_v29  ;;  %v20244_v29 = vld [vmem:[%s26207_s16 + $0x30] sm:$0xff]  }
0x162b   :  { %v13162_v34 = vrot.slane %v13161_v59, 4 }
0x162d   :  { %v13163_v23 = vadd.f32 %v13162_v34, %v13161_v59  ;;  %v20245_v59 = vld [vmem:[%s26207_s16 + $0x38] sm:$0xff]  }
0x162f   :  { %v13164_v19 = vrot.slane %v13163_v23, 2 }
0x1631   :  { %v13165_v58 = vadd.f32 %v13164_v19, %v13163_v23 }
0x1633   :  { %v13166_v42 = vrot.slane %v13165_v58, 1 }
0x1635   :  { %v13167_v48 = vadd.f32 %v13166_v42, %v13165_v58 }
0x1637   :  { %v13168_v28 = vmul.f32 0.03125, %v13167_v48  ;;  %v20246_v48 = vld [vmem:[%s26207_s16 + $0x40] sm:$0xff]  }
0x1639   :  { %v13169_v63 = vsub.f32 %v13138_v25, %v13168_v28  ;;  %v13170_v1 = vsub.f32 %v13141_v2, %v13168_v28  ;;  %v13171_v33 = vsub.f32 %v18690_v16, %v13168_v28  ;;  %v13172_v40 = vsub.f32 %v18691_v31, %v13168_v28  ;;  %v20239_v16 = vld [vmem:[%s26207_s16 + $0x8] sm:$0xff]   ;;  %v20240_v25 = vld [vmem:[%s26207_s16 + $0x10] sm:$0xff]   ;;  %v20241_v31 = vld [vmem:[%s26207_s16 + $0x18] sm:$0xff]  }
0x163a   :  { %v20242_v2 = vld [vmem:[%s26207_s16 + $0x20] sm:$0xff]  }
0x163b   :  { %v13173_v61 = vmul.f32 %v13169_v63, %v13169_v63  ;;  %v13174_v50 = vmul.f32 %v13170_v1, %v13170_v1  ;;  %v13175_v49 = vmul.f32 %v13171_v33, %v13171_v33  ;;  %v13176_v10 = vmul.f32 %v13172_v40, %v13172_v40 }
0x163d   :  { %v13177_v9 = vadd.f32 %v13174_v50, %v13173_v61  ;;  %v20251_v61 = vld [vmem:[%s26207_s16 + $0x68] sm:$0xff]   ;;  %v20252_v50 = vld [vmem:[%s26207_s16 + $0x70] sm:$0xff]  }
0x163f   :  { %v13178_v26 = vadd.f32 %v13177_v9, %v13175_v49  ;;  %v20253_v49 = vld [vmem:[%s26207_s16 + $0x78] sm:$0xff]   ;;  %v20254_v9 = vld [vmem:[%s26207_s16 + $0x80] sm:$0xff]  }
0x1641   :  { %v13179_v43 = vadd.f32 %v13178_v26, %v13176_v10  ;;  %v20255_v26 = vld [vmem:[%s26207_s16 + $0x88] sm:$0xff]  }
0x1643   :  { %v13180_v56 = vrot.slane %v13179_v43, 4 }
0x1645   :  { %v13181_v46 = vadd.f32 %v13180_v56, %v13179_v43  ;;  %v20256_v43 = vld [vmem:[%s26207_s16 + $0x90] sm:$0xff]   ;;  %v20257_v56 = vld [vmem:[%s26207_s16 + $0x98] sm:$0xff]  }
0x1647   :  { %v13182_v54 = vrot.slane %v13181_v46, 2 }
0x1649   :  { %v13183_v53 = vadd.f32 %v13182_v54, %v13181_v46  ;;  %v20258_v46 = vld [vmem:[%s26207_s16 + $0xa0] sm:$0xff]   ;;  %v20259_v54 = vld [vmem:[%s26207_s16 + $0xa8] sm:$0xff]  }
0x164b   :  { %v13184_v52 = vrot.slane %v13183_v53, 1 }
0x164d   :  { %v13185_v7 = vadd.f32 %v13184_v52, %v13183_v53  ;;  %v20260_v53 = vld [vmem:[%s26207_s16 + $0xb0] sm:$0xff]   ;;  %v20261_v52 = vld [vmem:[%s26207_s16 + $0xb8] sm:$0xff]  }
0x164f   :  { %v13186_v27 = vmul.f32 0.03125, %v13185_v7  ;;  %v20262_v7 = vld [vmem:[%s26207_s16 + $0xc0] sm:$0xff]  }
0x1651   :  { %v13187_v44 = vadd.f32 1e-05, %v13186_v27 }
0x1653   :  { %20374 = vrsqrt.f32 %v13187_v44  ;;  %v20263_v44 = vld [vmem:[%s26207_s16 + $0xc8] sm:$0xff]  }
0x165d   :  { %v20375_v14 = vpop.eup %20374 }
0x165e   :  { %v13189_v8 = vmul.f32 %v20375_v14, %v13157_v22  ;;  %v20264_v22 = vld [vmem:[%s26207_s16 + $0xd0] sm:$0xff]   ;;  %v20265_v14 = vld [vmem:[%s26207_s16 + $0xd8] sm:$0xff]  }
0x1660   :  { %v13193_v36 = vrot.slane %v13189_v8, %v26610_v62  ;;  %v20266_v8 = vld [vmem:[%s26207_s16 + $0xe0] sm:$0xff]  }
0x1662   :  { %v13195_v51 = vmul.f32 %v13193_v36, %v13170_v1  ;;  %v13194_v38 = vmul.f32 %v13193_v36, %v13169_v63  ;;  %v13196_v11 = vmul.f32 %v13193_v36, %v13171_v33  ;;  %v13197_v0 = vmul.f32 %v13193_v36, %v13172_v40  ;;  %v20247_v63 = vld [vmem:[%s26207_s16 + $0x48] sm:$0xff]   ;;  %v20248_v1 = vld [vmem:[%s26207_s16 + $0x50] sm:$0xff]   ;;  %v20249_v33 = vld [vmem:[%s26207_s16 + $0x58] sm:$0xff]  }
0x1663   :  { %v20250_v40 = vld [vmem:[%s26207_s16 + $0x60] sm:$0xff]   ;;  %v20268_v36 = vld [vmem:[%s26207_s16 + $0xf0] sm:$0xff]  }
0x1664   :  { %v13203_v35 = vadd.f32 %v15950_v57, %v13195_v51  ;;  %v13202_v47 = vadd.f32 %v15950_v57, %v13194_v38  ;;  %v13204_v13 = vadd.f32 %v15950_v57, %v13196_v11  ;;  %v13205_v62 = vadd.f32 %v15950_v57, %v13197_v0  ;;  %v20269_v57 = vld [vmem:[%s26207_s16 + $0xf8] sm:$0xff]   ;;  %v20270_v51 = vld [vmem:[%s26207_s16 + $0x100] sm:$0xff]   ;;  %v20271_v11 = vld [vmem:[%s26207_s16 + $0x108] sm:$0xff]  }
0x1665   :  { %v20272_v0 = vld [vmem:[%s26207_s16 + $0x110] sm:$0xff]  }
0x1666   :  { %v13206_v20 = vadd.f32 %v13202_v47, %v11457_v32  ;;  %v13207_v45 = vadd.f32 %v13203_v35, %v11460_v6  ;;  %v13208_v5 = vadd.f32 %v13204_v13, %v11465_v24  ;;  %v13209_v39 = vadd.f32 %v13205_v62, %v11468_v3  ;;  %v20273_v24 = vld [vmem:[%s26207_s16 + $0x118] sm:$0xff]   ;;  %v20274_v32 = vld [vmem:[%s26207_s16 + $0x120] sm:$0xff]   ;;  %v20275_v3 = vld [vmem:[%s26207_s16 + $0x128] sm:$0xff]  }
0x1667   :  { %v20276_v6 = vld [vmem:[%s26207_s16 + $0x130] sm:$0xff]   ;;  %v20277_v35 = vld [vmem:[%s26207_s16 + $0x138] sm:$0xff]   ;;  %v20278_v47 = vld [vmem:[%s26207_s16 + $0x140] sm:$0xff]  }
0x1668   :  { %v13210_v60 = vmax.f32 %v13206_v20, 0.0  ;;  %v13211_v30 = vmax.f32 %v13207_v45, 0.0  ;;  %v13212_v41 = vmax.f32 %v13208_v5, 0.0  ;;  %v13213_v55 = vmax.f32 %v13209_v39, 0.0  ;;  %v20279_v62 = vld [vmem:[%s26207_s16 + $0x148] sm:$0xff]   ;;  %v20280_v20 = vld [vmem:[%s26207_s16 + $0x150] sm:$0xff]  }
0x1669   :  { %v20281_v45 = vld [vmem:[%s26207_s16 + $0x158] sm:$0xff]   ;;  %v20282_v5 = vld [vmem:[%s26207_s16 + $0x160] sm:$0xff]   ;;  %v20283_v39 = vld [vmem:[%s26207_s16 + $0x168] sm:$0xff]  }
0x166a   :  { %v13218_v12 = vpack.c.bf16 %v13211_v30, %v13210_v60  ;;  %v13219_v15 = vpack.c.bf16 %v13213_v55, %v13212_v41  ;;  %v20284_v60 = vld [vmem:[%s26207_s16 + $0x170] sm:$0xff]   ;;  %v20285_v30 = vld [vmem:[%s26207_s16 + $0x178] sm:$0xff]   ;;  %v20286_v41 = vld [vmem:[%s26207_s16 + $0x180] sm:$0xff]  }
0x166c   :  { %18692 = vmatprep.subr.bf16.mxu1 %v13218_v12 }
0x166d   :  { %18693 = vmatpush3.bf16.msra.mxu1 %v13218_v12  ;;  %v20287_v12 = vld [vmem:[%s26207_s16 + $0x188] sm:$0xff]  }
0x166e   :  { %18694 = vmatprep.subr.bf16.mxu1 %v13219_v15 }
0x1671   :  { %18695 = vmatpush3.bf16.msra.mxu1 %v13219_v15  ;;  %v20288_v15 = vld [vmem:[%s26207_s16 + $0x190] sm:$0xff]  }
0x1672   :  { %18700 = vmatprep.subr.bf16.mxu1 %v20402_v21 }
0x1674   :  { %18697 = vmatmul.mubr.msk.bf16.vlgmr.msra.gmra.mrb[176].mxu1 %vm813_vm3, %v20237_v37  ;;  %v20289_v37 = vld [vmem:[%s26207_s16 + $0x198] sm:$0xff]  }
0x1675   :  { %18701 = vmatpush3.bf16.msra.mxu1 %v20238_v17  ;;  %18716 = vmatprep.mubr.msk.bf16.mxu1 %vm20403_vm7, %v20402_v21  ;;  %v20290_v17 = vld [vmem:[%s26207_s16 + $0x1a0] sm:$0xff]  }
0x1676   :  { %18702 = vmatprep.subr.bf16.mxu1 %v20402_v21 }
0x1679   :  { %18703 = vmatpush3.bf16.msra.mxu1 %v20239_v16  ;;  %v20291_v16 = vld [vmem:[%s26207_s16 + $0x1a8] sm:$0xff]  }
0x167a   :  { %18704 = vmatprep.subr.bf16.mxu1 %v20402_v21 }
0x167d   :  { %18705 = vmatpush3.bf16.msra.mxu1 %v20240_v25  ;;  %v20292_v25 = vld [vmem:[%s26207_s16 + $0x1b0] sm:$0xff]  }
0x167e   :  { %18706 = vmatprep.subr.bf16.mxu1 %v20402_v21 }
0x1681   :  { %18707 = vmatpush3.bf16.msra.mxu1 %v20241_v31  ;;  %v20293_v31 = vld [vmem:[%s26207_s16 + $0x1b8] sm:$0xff]  }
0x1682   :  { %18708 = vmatprep.subr.bf16.mxu1 %v20402_v21 }
0x1685   :  { %18709 = vmatpush3.bf16.msra.mxu1 %v20242_v2  ;;  %v20294_v2 = vld [vmem:[%s26207_s16 + $0x1c0] sm:$0xff]  }
0x1686   :  { %18710 = vmatprep.subr.bf16.mxu1 %v20402_v21 }
0x1689   :  { %18711 = vmatpush3.bf16.msra.mxu1 %v20243_v4 }
0x168a   :  { %18712 = vmatprep.subr.bf16.mxu1 %v20402_v21 }
0x168d   :  { %18713 = vmatpush3.bf16.msra.mxu1 %v20244_v29  ;;  %v20295_v29 = vld [vmem:[%s26207_s16 + $0x1c8] sm:$0xff]  }
0x168e   :  { %18714 = vmatprep.subr.bf16.mxu1 %v20402_v21 }
0x1691   :  { %18715 = vmatpush3.bf16.msra.mxu1 %v20245_v59  ;;  %v20296_v59 = vld [vmem:[%s26207_s16 + $0x1d0] sm:$0xff]  }
0x1692   :  { %18720 = vmatprep.subr.bf16.mxu1 %v20402_v21 }
0x1747   :  { %v18698_v34 = vpop.f32.mrb[176].mxu1 }
0x1748   :  { %v13270_v23 = vpop.f32.mrb[177].mxu1 }
0x1749   :  { %v18699_v19 = vpop.f32.mrb[178].mxu1 }
0x174a   :  { %v25647_v58 = vpack.c.bf16 %v18699_v19, %v18698_v34  ;;  %v13273_v42 = vpop.f32.mrb[179].mxu1  ;;  %v20297_v34 = vld [vmem:[%s26207_s16 + $0x1d8] sm:$0xff]   ;;  %v20299_v19 = vld [vmem:[%s26207_s16 + $0x1e8] sm:$0xff]  }
0x174b   :  { %v25652_v28 = vpack.c.bf16 %v13273_v42, %v13270_v23  ;;  %v20298_v23 = vld [vmem:[%s26207_s16 + $0x1e0] sm:$0xff]   ;;  %v20300_v42 = vld [vmem:[%s26207_s16 + $0x1f0] sm:$0xff]  }
0x174d   :  { %18717 = vmatmul.mubr.bf16.vlgmr.msra.gmra.mrb[180].mxu1 %v25652_v28  ;;  %v13417_v10 = vrot.slane %v25652_v28, 1  ;;  %v13524_v27 = vrot.slane %v25652_v28, 2  ;;  %v13631_v38 = vrot.slane %v25652_v28, 3  ;;  %v13738_v13 = vrot.slane %v25652_v28, 4 }
0x174e   :  { %18721 = vmatpush3.bf16.msra.mxu1 %v20246_v48  ;;  %18736 = vmatprep.mubr.msk.bf16.mxu1 %vm20403_vm7, %v20402_v21  ;;  %v13845_v55 = vrot.slane %v25652_v28, 5  ;;  %v13952_v4 = vrot.slane %v25652_v28, 6  ;;  %v20301_v48 = vld [vmem:[%s26207_s16 + $0x1f8] sm:$0xff]  }
0x174f   :  { %18722 = vmatprep.subr.bf16.mxu1 %v20402_v21 }
0x1752   :  { %18723 = vmatpush3.bf16.msra.mxu1 %v20247_v63  ;;  %v20302_v63 = vld [vmem:[%s26207_s16 + $0x200] sm:$0xff]  }
0x1753   :  { %18724 = vmatprep.subr.bf16.mxu1 %v20402_v21 }
0x1756   :  { %18725 = vmatpush3.bf16.msra.mxu1 %v20248_v1  ;;  %v14059_v1 = vrot.slane %v25652_v28, 7  ;;  %v20305_v28 = vld [vmem:[%s26207_s16 + $0x218] sm:$0xff]  }
0x1757   :  { %18726 = vmatprep.subr.bf16.mxu1 %v20402_v21 }
0x175a   :  { %18727 = vmatpush3.bf16.msra.mxu1 %v20249_v33  ;;  %v20303_v33 = vld [vmem:[%s26207_s16 + $0x208] sm:$0xff]  }
0x175b   :  { %18728 = vmatprep.subr.bf16.mxu1 %v20402_v21 }
0x175e   :  { %18729 = vmatpush3.bf16.msra.mxu1 %v20250_v40  ;;  %v20304_v40 = vld [vmem:[%s26207_s16 + $0x210] sm:$0xff]  }
0x175f   :  { %18730 = vmatprep.subr.bf16.mxu1 %v20402_v21 }
0x1762   :  { %18731 = vmatpush3.bf16.msra.mxu1 %v20251_v61  ;;  %v20306_v61 = vld [vmem:[%s26207_s16 + $0x220] sm:$0xff]  }
0x1763   :  { %18732 = vmatprep.subr.bf16.mxu1 %v20402_v21 }
0x1766   :  { %18733 = vmatpush3.bf16.msra.mxu1 %v20252_v50  ;;  %v20307_v50 = vld [vmem:[%s26207_s16 + $0x228] sm:$0xff]  }
0x1767   :  { %18734 = vmatprep.subr.bf16.mxu1 %v20402_v21 }
0x176a   :  { %18735 = vmatpush3.bf16.msra.mxu1 %v20253_v49  ;;  %v20308_v49 = vld [vmem:[%s26207_s16 + $0x230] sm:$0xff]  }
0x176b   :  { %18740 = vmatprep.subr.bf16.mxu1 %v20402_v21 }
0x176d   :  { %18737 = vmatmul.mubr.bf16.vlgmr.msra.gmra.mrb[180].mxu1 %v13417_v10  ;;  %v20310_v10 = vld [vmem:[%s26207_s16 + $0x240] sm:$0xff]  }
0x176e   :  { %18741 = vmatpush3.bf16.msra.mxu1 %v20254_v9  ;;  %18756 = vmatprep.mubr.msk.bf16.mxu1 %vm20403_vm7, %v20402_v21  ;;  %v20309_v9 = vld [vmem:[%s26207_s16 + $0x238] sm:$0xff]  }
0x176f   :  { %18742 = vmatprep.subr.bf16.mxu1 %v20402_v21 }
0x1772   :  { %18743 = vmatpush3.bf16.msra.mxu1 %v20255_v26  ;;  %v20311_v26 = vld [vmem:[%s26207_s16 + $0x248] sm:$0xff]  }
0x1773   :  { %18744 = vmatprep.subr.bf16.mxu1 %v20402_v21 }
0x1776   :  { %18745 = vmatpush3.bf16.msra.mxu1 %v20256_v43  ;;  %v20312_v43 = vld [vmem:[%s26207_s16 + $0x250] sm:$0xff]  }
0x1777   :  { %18746 = vmatprep.subr.bf16.mxu1 %v20402_v21 }
0x177a   :  { %18747 = vmatpush3.bf16.msra.mxu1 %v20257_v56  ;;  %v20313_v56 = vld [vmem:[%s26207_s16 + $0x258] sm:$0xff]  }
0x177b   :  { %18748 = vmatprep.subr.bf16.mxu1 %v20402_v21 }
0x177e   :  { %18749 = vmatpush3.bf16.msra.mxu1 %v20258_v46  ;;  %v20314_v46 = vld [vmem:[%s26207_s16 + $0x260] sm:$0xff]  }
0x177f   :  { %18750 = vmatprep.subr.bf16.mxu1 %v20402_v21 }
0x1782   :  { %18751 = vmatpush3.bf16.msra.mxu1 %v20259_v54  ;;  %v20315_v54 = vld [vmem:[%s26207_s16 + $0x268] sm:$0xff]  }
0x1783   :  { %18752 = vmatprep.subr.bf16.mxu1 %v20402_v21 }
0x1786   :  { %18753 = vmatpush3.bf16.msra.mxu1 %v20260_v53  ;;  %v20316_v53 = vld [vmem:[%s26207_s16 + $0x270] sm:$0xff]  }
0x1787   :  { %18754 = vmatprep.subr.bf16.mxu1 %v20402_v21 }
0x178a   :  { %18755 = vmatpush3.bf16.msra.mxu1 %v20261_v52  ;;  %v20317_v52 = vld [vmem:[%s26207_s16 + $0x278] sm:$0xff]  }
0x178b   :  { %18760 = vmatprep.subr.bf16.mxu1 %v20402_v21 }
0x178d   :  { %18757 = vmatmul.mubr.bf16.vlgmr.msra.gmra.mrb[180].mxu1 %v13524_v27  ;;  %v14272_v27 = vrot.slane %v25647_v58, 1 }
0x178e   :  { %18761 = vmatpush3.bf16.msra.mxu1 %v20262_v7  ;;  %18776 = vmatprep.mubr.msk.bf16.mxu1 %vm20403_vm7, %v20402_v21  ;;  %v20318_v7 = vld [vmem:[%s26207_s16 + $0x280] sm:$0xff]  }
0x178f   :  { %18762 = vmatprep.subr.bf16.mxu1 %v20402_v21 }
0x1792   :  { %18763 = vmatpush3.bf16.msra.mxu1 %v20263_v44  ;;  %v20319_v44 = vld [vmem:[%s26207_s16 + $0x288] sm:$0xff]  }
0x1793   :  { %18764 = vmatprep.subr.bf16.mxu1 %v20402_v21 }
0x1796   :  { %18765 = vmatpush3.bf16.msra.mxu1 %v20264_v22  ;;  %v20320_v22 = vld [vmem:[%s26207_s16 + $0x290] sm:$0xff]  }
0x1797   :  { %18766 = vmatprep.subr.bf16.mxu1 %v20402_v21 }
0x179a   :  { %18767 = vmatpush3.bf16.msra.mxu1 %v20265_v14  ;;  %v20321_v14 = vld [vmem:[%s26207_s16 + $0x298] sm:$0xff]  }
0x179b   :  { %18768 = vmatprep.subr.bf16.mxu1 %v20402_v21 }
0x179e   :  { %18769 = vmatpush3.bf16.msra.mxu1 %v20266_v8  ;;  %v20322_v8 = vld [vmem:[%s26207_s16 + $0x2a0] sm:$0xff]  }
0x179f   :  { %18770 = vmatprep.subr.bf16.mxu1 %v20402_v21 }
0x17a2   :  { %18771 = vmatpush3.bf16.msra.mxu1 %v20267_v18  ;;  %v20323_v18 = vld [vmem:[%s26207_s16 + $0x2a8] sm:$0xff]  }
0x17a3   :  { %18772 = vmatprep.subr.bf16.mxu1 %v20402_v21 }
0x17a6   :  { %18773 = vmatpush3.bf16.msra.mxu1 %v20268_v36  ;;  %v20324_v36 = vld [vmem:[%s26207_s16 + $0x2b0] sm:$0xff]  }
0x17a7   :  { %18774 = vmatprep.subr.bf16.mxu1 %v20402_v21 }
0x17aa   :  { %18775 = vmatpush3.bf16.msra.mxu1 %v20269_v57  ;;  %v20325_v57 = vld [vmem:[%s26207_s16 + $0x2b8] sm:$0xff]  }
0x17ab   :  { %18780 = vmatprep.subr.bf16.mxu1 %v20402_v21 }
0x17ad   :  { %18777 = vmatmul.mubr.bf16.vlgmr.msra.gmra.mrb[180].mxu1 %v13631_v38  ;;  %v14379_v38 = vrot.slane %v25647_v58, 2 }
0x17ae   :  { %18781 = vmatpush3.bf16.msra.mxu1 %v20270_v51  ;;  %18796 = vmatprep.mubr.msk.bf16.mxu1 %vm20403_vm7, %v20402_v21  ;;  %v20326_v51 = vld [vmem:[%s26207_s16 + $0x2c0] sm:$0xff]  }
0x17af   :  { %18782 = vmatprep.subr.bf16.mxu1 %v20402_v21 }
0x17b2   :  { %18783 = vmatpush3.bf16.msra.mxu1 %v20271_v11  ;;  %v20327_v11 = vld [vmem:[%s26207_s16 + $0x2c8] sm:$0xff]  }
0x17b3   :  { %18784 = vmatprep.subr.bf16.mxu1 %v20402_v21 }
0x17b6   :  { %18785 = vmatpush3.bf16.msra.mxu1 %v20272_v0  ;;  %v20328_v0 = vld [vmem:[%s26207_s16 + $0x2d0] sm:$0xff]  }
0x17b7   :  { %18786 = vmatprep.subr.bf16.mxu1 %v20402_v21 }
0x17ba   :  { %18787 = vmatpush3.bf16.msra.mxu1 %v20273_v24  ;;  %v20329_v24 = vld [vmem:[%s26207_s16 + $0x2d8] sm:$0xff]  }
0x17bb   :  { %18788 = vmatprep.subr.bf16.mxu1 %v20402_v21 }
0x17be   :  { %18789 = vmatpush3.bf16.msra.mxu1 %v20274_v32  ;;  %v20330_v32 = vld [vmem:[%s26207_s16 + $0x2e0] sm:$0xff]  }
0x17bf   :  { %18790 = vmatprep.subr.bf16.mxu1 %v20402_v21 }
0x17c2   :  { %18791 = vmatpush3.bf16.msra.mxu1 %v20275_v3  ;;  %v20331_v3 = vld [vmem:[%s26207_s16 + $0x2e8] sm:$0xff]  }
0x17c3   :  { %18792 = vmatprep.subr.bf16.mxu1 %v20402_v21 }
0x17c6   :  { %18793 = vmatpush3.bf16.msra.mxu1 %v20276_v6  ;;  %v20332_v6 = vld [vmem:[%s26207_s16 + $0x2f0] sm:$0xff]  }
0x17c7   :  { %18794 = vmatprep.subr.bf16.mxu1 %v20402_v21 }
0x17ca   :  { %18795 = vmatpush3.bf16.msra.mxu1 %v20277_v35  ;;  %v20333_v35 = vld [vmem:[%s26207_s16 + $0x2f8] sm:$0xff]  }
0x17cb   :  { %18800 = vmatprep.subr.bf16.mxu1 %v20402_v21 }
0x17cd   :  { %18797 = vmatmul.mubr.bf16.vlgmr.msra.gmra.mrb[180].mxu1 %v13738_v13  ;;  %v14486_v13 = vrot.slane %v25647_v58, 3 }
0x17ce   :  { %18801 = vmatpush3.bf16.msra.mxu1 %v20278_v47  ;;  %18816 = vmatprep.mubr.msk.bf16.mxu1 %vm20403_vm7, %v20402_v21  ;;  %v20334_v47 = vld [vmem:[%s26207_s16 + $0x300] sm:$0xff]  }
0x17cf   :  { %18802 = vmatprep.subr.bf16.mxu1 %v20402_v21 }
0x17d2   :  { %18803 = vmatpush3.bf16.msra.mxu1 %v20279_v62  ;;  %v20335_v62 = vld [vmem:[%s26207_s16 + $0x308] sm:$0xff]  }
0x17d3   :  { %18804 = vmatprep.subr.bf16.mxu1 %v20402_v21 }
0x17d6   :  { %18805 = vmatpush3.bf16.msra.mxu1 %v20280_v20  ;;  %v20336_v20 = vld [vmem:[%s26207_s16 + $0x310] sm:$0xff]  }
0x17d7   :  { %18806 = vmatprep.subr.bf16.mxu1 %v20402_v21 }
0x17da   :  { %18807 = vmatpush3.bf16.msra.mxu1 %v20281_v45  ;;  %v20337_v45 = vld [vmem:[%s26207_s16 + $0x318] sm:$0xff]  }
0x17db   :  { %18808 = vmatprep.subr.bf16.mxu1 %v20402_v21 }
0x17de   :  { %18809 = vmatpush3.bf16.msra.mxu1 %v20282_v5  ;;  %v20338_v5 = vld [vmem:[%s26207_s16 + $0x320] sm:$0xff]  }
0x17df   :  { %18810 = vmatprep.subr.bf16.mxu1 %v20402_v21 }
0x17e2   :  { %18811 = vmatpush3.bf16.msra.mxu1 %v20283_v39  ;;  %v20339_v39 = vld [vmem:[%s26207_s16 + $0x328] sm:$0xff]  }
0x17e3   :  { %18812 = vmatprep.subr.bf16.mxu1 %v20402_v21 }
0x17e6   :  { %18813 = vmatpush3.bf16.msra.mxu1 %v20284_v60  ;;  %v20340_v60 = vld [vmem:[%s26207_s16 + $0x330] sm:$0xff]  }
0x17e7   :  { %18814 = vmatprep.subr.bf16.mxu1 %v20402_v21 }
0x17ea   :  { %18815 = vmatpush3.bf16.msra.mxu1 %v20285_v30  ;;  %v20341_v30 = vld [vmem:[%s26207_s16 + $0x338] sm:$0xff]  }
0x17eb   :  { %18820 = vmatprep.subr.bf16.mxu1 %v20402_v21 }
0x17ed   :  { %18817 = vmatmul.mubr.bf16.vlgmr.msra.gmra.mrb[180].mxu1 %v13845_v55  ;;  %v14593_v55 = vrot.slane %v25647_v58, 4 }
0x17ee   :  { %18821 = vmatpush3.bf16.msra.mxu1 %v20286_v41  ;;  %18836 = vmatprep.mubr.msk.bf16.mxu1 %vm20403_vm7, %v20402_v21  ;;  %v20342_v41 = vld [vmem:[%s26207_s16 + $0x340] sm:$0xff]  }
0x17ef   :  { %18822 = vmatprep.subr.bf16.mxu1 %v20402_v21 }
0x17f2   :  { %18823 = vmatpush3.bf16.msra.mxu1 %v20287_v12  ;;  %v20343_v12 = vld [vmem:[%s26207_s16 + $0x348] sm:$0xff]  }
0x17f3   :  { %18824 = vmatprep.subr.bf16.mxu1 %v20402_v21 }
0x17f6   :  { %18825 = vmatpush3.bf16.msra.mxu1 %v20288_v15  ;;  %v20344_v15 = vld [vmem:[%s26207_s16 + $0x350] sm:$0xff]  }
0x17f7   :  { %18826 = vmatprep.subr.bf16.mxu1 %v20402_v21 }
0x17fa   :  { %18827 = vmatpush3.bf16.msra.mxu1 %v20289_v37  ;;  %v20345_v37 = vld [vmem:[%s26207_s16 + $0x358] sm:$0xff]  }
0x17fb   :  { %18828 = vmatprep.subr.bf16.mxu1 %v20402_v21 }
0x17fe   :  { %18829 = vmatpush3.bf16.msra.mxu1 %v20290_v17  ;;  %v20346_v17 = vld [vmem:[%s26207_s16 + $0x360] sm:$0xff]  }
0x17ff   :  { %18830 = vmatprep.subr.bf16.mxu1 %v20402_v21 }
0x1802   :  { %18831 = vmatpush3.bf16.msra.mxu1 %v20291_v16  ;;  %v20347_v16 = vld [vmem:[%s26207_s16 + $0x368] sm:$0xff]  }
0x1803   :  { %18832 = vmatprep.subr.bf16.mxu1 %v20402_v21 }
0x1806   :  { %18833 = vmatpush3.bf16.msra.mxu1 %v20292_v25  ;;  %v20348_v25 = vld [vmem:[%s26207_s16 + $0x370] sm:$0xff]  }
0x1807   :  { %18834 = vmatprep.subr.bf16.mxu1 %v20402_v21 }
0x180a   :  { %18835 = vmatpush3.bf16.msra.mxu1 %v20293_v31  ;;  %v20349_v31 = vld [vmem:[%s26207_s16 + $0x378] sm:$0xff]  }
0x180b   :  { %18840 = vmatprep.subr.bf16.mxu1 %v20402_v21 }
0x180d   :  { %18837 = vmatmul.mubr.bf16.vlgmr.msra.gmra.mrb[180].mxu1 %v13952_v4  ;;  %v14700_v4 = vrot.slane %v25647_v58, 5 }
0x180e   :  { %18841 = vmatpush3.bf16.msra.mxu1 %v20294_v2  ;;  %18856 = vmatprep.mubr.msk.bf16.mxu1 %vm20403_vm7, %v20402_v21  ;;  %v20350_v2 = vld [vmem:[%s26207_s16 + $0x380] sm:$0xff]  }
0x180f   :  { %18842 = vmatprep.subr.bf16.mxu1 %v20402_v21 }
0x1812   :  { %18843 = vmatpush3.bf16.msra.mxu1 %v20295_v29  ;;  %v20351_v29 = vld [vmem:[%s26207_s16 + $0x388] sm:$0xff]  }
0x1813   :  { %18844 = vmatprep.subr.bf16.mxu1 %v20402_v21 }
0x1816   :  { %18845 = vmatpush3.bf16.msra.mxu1 %v20296_v59  ;;  %v20352_v59 = vld [vmem:[%s26207_s16 + $0x390] sm:$0xff]  }
0x1817   :  { %18846 = vmatprep.subr.bf16.mxu1 %v20402_v21 }
0x181a   :  { %18847 = vmatpush3.bf16.msra.mxu1 %v20297_v34  ;;  %v20353_v34 = vld [vmem:[%s26207_s16 + $0x398] sm:$0xff]  }
0x181b   :  { %18848 = vmatprep.subr.bf16.mxu1 %v20402_v21 }
0x181e   :  { %18849 = vmatpush3.bf16.msra.mxu1 %v20298_v23  ;;  %v20354_v23 = vld [vmem:[%s26207_s16 + $0x3a0] sm:$0xff]  }
0x181f   :  { %18850 = vmatprep.subr.bf16.mxu1 %v20402_v21 }
0x1822   :  { %18851 = vmatpush3.bf16.msra.mxu1 %v20299_v19  ;;  %v20355_v19 = vld [vmem:[%s26207_s16 + $0x3a8] sm:$0xff]  }
0x1823   :  { %18852 = vmatprep.subr.bf16.mxu1 %v20402_v21 }
0x1826   :  { %18853 = vmatpush3.bf16.msra.mxu1 %v20300_v42  ;;  %v20356_v42 = vld [vmem:[%s26207_s16 + $0x3b0] sm:$0xff]  }
0x1827   :  { %18854 = vmatprep.subr.bf16.mxu1 %v20402_v21 }
0x182a   :  { %18855 = vmatpush3.bf16.msra.mxu1 %v20301_v48  ;;  %v20357_v48 = vld [vmem:[%s26207_s16 + $0x3b8] sm:$0xff]  }
0x182b   :  { %18860 = vmatprep.subr.bf16.mxu1 %v20402_v21 }
0x182d   :  { %18857 = vmatmul.mubr.bf16.vlgmr.msra.gmra.mrb[180].mxu1 %v14059_v1  ;;  %v14807_v1 = vrot.slane %v25647_v58, 6 }
0x182e   :  { %18861 = vmatpush3.bf16.msra.mxu1 %v20302_v63  ;;  %18876 = vmatprep.mubr.msk.bf16.mxu1 %vm20403_vm7, %v20402_v21  ;;  %v20358_v63 = vld [vmem:[%s26207_s16 + $0x3c0] sm:$0xff]  }
0x182f   :  { %18862 = vmatprep.subr.bf16.mxu1 %v20402_v21 }
0x1832   :  { %18863 = vmatpush3.bf16.msra.mxu1 %v20303_v33  ;;  %v20359_v33 = vld [vmem:[%s26207_s16 + $0x3c8] sm:$0xff]  }
0x1833   :  { %18864 = vmatprep.subr.bf16.mxu1 %v20402_v21 }
0x1836   :  { %18865 = vmatpush3.bf16.msra.mxu1 %v20304_v40  ;;  %v20360_v40 = vld [vmem:[%s26207_s16 + $0x3d0] sm:$0xff]  }
0x1837   :  { %18866 = vmatprep.subr.bf16.mxu1 %v20402_v21 }
0x183a   :  { %18867 = vmatpush3.bf16.msra.mxu1 %v20305_v28  ;;  %v20361_v28 = vld [vmem:[%s26207_s16 + $0x3d8] sm:$0xff]  }
0x183b   :  { %18868 = vmatprep.subr.bf16.mxu1 %v20402_v21 }
0x183e   :  { %18869 = vmatpush3.bf16.msra.mxu1 %v20306_v61  ;;  %v20362_v61 = vld [vmem:[%s26207_s16 + $0x3e0] sm:$0xff]  }
0x183f   :  { %18870 = vmatprep.subr.bf16.mxu1 %v20402_v21 }
0x1842   :  { %18871 = vmatpush3.bf16.msra.mxu1 %v20307_v50  ;;  %v20363_v50 = vld [vmem:[%s26207_s16 + $0x3e8] sm:$0xff]  }
0x1843   :  { %18872 = vmatprep.subr.bf16.mxu1 %v20402_v21 }
0x1846   :  { %18873 = vmatpush3.bf16.msra.mxu1 %v20308_v49  ;;  %v20364_v49 = vld [vmem:[%s26207_s16 + $0x3f0] sm:$0xff]  }
0x1847   :  { %18874 = vmatprep.subr.bf16.mxu1 %v20402_v21 }
0x184a   :  { %18875 = vmatpush3.bf16.msra.mxu1 %v20309_v9  ;;  %v20365_v9 = vld [vmem:[%s26207_s16 + $0x3f8] sm:$0xff]   ;;  %s20376_s16 = scalar_lea.vmem %s15014_s9, 32 }
0x184b   :  { %18880 = vmatprep.subr.bf16.mxu1 %v20402_v21  ;;  %p20377_p0 = scmp.ne.s32.totalorder %s15014_s9, %s20376_s16  ;;  %p20382_p2 = scmp.lt.s32.totalorder %s20376_s16, %s20376_s16 }
0x184d   :  { %18877 = vmatmul.mubr.bf16.vlgmr.msra.gmra.mrb[180].mxu1 %v25647_v58  ;;  %p20383_p3 = por %p20382_p2, %p20381_p1 }
0x184e   :  { %18881 = vmatpush3.bf16.msra.mxu1 %v20310_v10  ;;  %18896 = vmatprep.mubr.msk.bf16.mxu1 %vm20403_vm7, %v20402_v21  ;;  %v14914_v10 = vrot.slane %v25647_v58, 7 }
0x184f   :  { %18882 = vmatprep.subr.bf16.mxu1 %v20402_v21  ;;  %p20384_p4 = pnand %p20383_p3, %p20377_p0 }
0x1852   :  { %18883 = vmatpush3.bf16.msra.mxu1 %v20311_v26  ;;  %v15955_v26 = vld [vmem:[%s26208_s17] ss:$0 sm:$0xff] }
0x1853   :  { %18884 = vmatprep.subr.bf16.mxu1 %v20402_v21 }
0x1856   :  { %18885 = vmatpush3.bf16.msra.mxu1 %v20312_v43 }
0x1857   :  { %18886 = vmatprep.subr.bf16.mxu1 %v20402_v21 }
0x185a   :  { %18887 = vmatpush3.bf16.msra.mxu1 %v20313_v56 }
0x185b   :  { %18888 = vmatprep.subr.bf16.mxu1 %v20402_v21 }
0x185e   :  { %18889 = vmatpush3.bf16.msra.mxu1 %v20314_v46 }
0x185f   :  { %18890 = vmatprep.subr.bf16.mxu1 %v20402_v21 }
0x1862   :  { %18891 = vmatpush3.bf16.msra.mxu1 %v20315_v54 }
0x1863   :  { %18892 = vmatprep.subr.bf16.mxu1 %v20402_v21 }
0x1866   :  { %18893 = vmatpush3.bf16.msra.mxu1 %v20316_v53 }
0x1867   :  { %18894 = vmatprep.subr.bf16.mxu1 %v20402_v21 }
0x186a   :  { %18895 = vmatpush3.bf16.msra.mxu1 %v20317_v52 }
0x186b   :  { %18900 = vmatprep.subr.bf16.mxu1 %v20402_v21 }
0x186d   :  { %18897 = vmatmul.mubr.bf16.vlgmr.msra.gmra.mrb[180].mxu1 %v14272_v27 }
0x186e   :  { %18901 = vmatpush3.bf16.msra.mxu1 %v20318_v7  ;;  %18916 = vmatprep.mubr.msk.bf16.mxu1 %vm20403_vm7, %v20402_v21 }
0x186f   :  { %18902 = vmatprep.subr.bf16.mxu1 %v20402_v21 }
0x1872   :  { %18903 = vmatpush3.bf16.msra.mxu1 %v20319_v44 }
0x1873   :  { %18904 = vmatprep.subr.bf16.mxu1 %v20402_v21 }
0x1876   :  { %18905 = vmatpush3.bf16.msra.mxu1 %v20320_v22 }
0x1877   :  { %18906 = vmatprep.subr.bf16.mxu1 %v20402_v21 }
0x187a   :  { %18907 = vmatpush3.bf16.msra.mxu1 %v20321_v14 }
0x187b   :  { %18908 = vmatprep.subr.bf16.mxu1 %v20402_v21 }
0x187e   :  { %18909 = vmatpush3.bf16.msra.mxu1 %v20322_v8 }
0x187f   :  { %18910 = vmatprep.subr.bf16.mxu1 %v20402_v21 }
0x1882   :  { %18911 = vmatpush3.bf16.msra.mxu1 %v20323_v18 }
0x1883   :  { %18912 = vmatprep.subr.bf16.mxu1 %v20402_v21 }
0x1886   :  { %18913 = vmatpush3.bf16.msra.mxu1 %v20324_v36 }
0x1887   :  { %18914 = vmatprep.subr.bf16.mxu1 %v20402_v21 }
0x188a   :  { %18915 = vmatpush3.bf16.msra.mxu1 %v20325_v57 }
0x188b   :  { %18920 = vmatprep.subr.bf16.mxu1 %v20402_v21 }
0x188d   :  { %18917 = vmatmul.mubr.bf16.vlgmr.msra.gmra.mrb[180].mxu1 %v14379_v38 }
0x188e   :  { %18921 = vmatpush3.bf16.msra.mxu1 %v20326_v51  ;;  %18936 = vmatprep.mubr.msk.bf16.mxu1 %vm20403_vm7, %v20402_v21 }
0x188f   :  { %18922 = vmatprep.subr.bf16.mxu1 %v20402_v21 }
0x1892   :  { %18923 = vmatpush3.bf16.msra.mxu1 %v20327_v11 }
0x1893   :  { %18924 = vmatprep.subr.bf16.mxu1 %v20402_v21 }
0x1896   :  { %18925 = vmatpush3.bf16.msra.mxu1 %v20328_v0 }
0x1897   :  { %18926 = vmatprep.subr.bf16.mxu1 %v20402_v21 }
0x189a   :  { %18927 = vmatpush3.bf16.msra.mxu1 %v20329_v24 }
0x189b   :  { %18928 = vmatprep.subr.bf16.mxu1 %v20402_v21 }
0x189e   :  { %18929 = vmatpush3.bf16.msra.mxu1 %v20330_v32 }
0x189f   :  { %18930 = vmatprep.subr.bf16.mxu1 %v20402_v21 }
0x18a2   :  { %18931 = vmatpush3.bf16.msra.mxu1 %v20331_v3 }
0x18a3   :  { %18932 = vmatprep.subr.bf16.mxu1 %v20402_v21 }
0x18a6   :  { %18933 = vmatpush3.bf16.msra.mxu1 %v20332_v6 }
0x18a7   :  { %18934 = vmatprep.subr.bf16.mxu1 %v20402_v21 }
0x18aa   :  { %18935 = vmatpush3.bf16.msra.mxu1 %v20333_v35 }
0x18ab   :  { %18940 = vmatprep.subr.bf16.mxu1 %v20402_v21 }
0x18ad   :  { %18937 = vmatmul.mubr.bf16.vlgmr.msra.gmra.mrb[180].mxu1 %v14486_v13 }
0x18ae   :  { %18941 = vmatpush3.bf16.msra.mxu1 %v20334_v47  ;;  %18956 = vmatprep.mubr.msk.bf16.mxu1 %vm20403_vm7, %v20402_v21 }
0x18af   :  { %18942 = vmatprep.subr.bf16.mxu1 %v20402_v21 }
0x18b2   :  { %18943 = vmatpush3.bf16.msra.mxu1 %v20335_v62 }
0x18b3   :  { %18944 = vmatprep.subr.bf16.mxu1 %v20402_v21 }
0x18b6   :  { %18945 = vmatpush3.bf16.msra.mxu1 %v20336_v20 }
0x18b7   :  { %18946 = vmatprep.subr.bf16.mxu1 %v20402_v21 }
0x18ba   :  { %18947 = vmatpush3.bf16.msra.mxu1 %v20337_v45 }
0x18bb   :  { %18948 = vmatprep.subr.bf16.mxu1 %v20402_v21 }
0x18be   :  { %18949 = vmatpush3.bf16.msra.mxu1 %v20338_v5 }
0x18bf   :  { %18950 = vmatprep.subr.bf16.mxu1 %v20402_v21 }
0x18c2   :  { %18951 = vmatpush3.bf16.msra.mxu1 %v20339_v39 }
0x18c3   :  { %18952 = vmatprep.subr.bf16.mxu1 %v20402_v21 }
0x18c6   :  { %18953 = vmatpush3.bf16.msra.mxu1 %v20340_v60 }
0x18c7   :  { %18954 = vmatprep.subr.bf16.mxu1 %v20402_v21 }
0x18ca   :  { %18955 = vmatpush3.bf16.msra.mxu1 %v20341_v30 }
0x18cb   :  { %18960 = vmatprep.subr.bf16.mxu1 %v20402_v21 }
0x18cd   :  { %18957 = vmatmul.mubr.bf16.vlgmr.msra.gmra.mrb[180].mxu1 %v14593_v55 }
0x18ce   :  { %18961 = vmatpush3.bf16.msra.mxu1 %v20342_v41  ;;  %18976 = vmatprep.mubr.msk.bf16.mxu1 %vm20403_vm7, %v20402_v21 }
0x18cf   :  { %18962 = vmatprep.subr.bf16.mxu1 %v20402_v21 }
0x18d2   :  { %18963 = vmatpush3.bf16.msra.mxu1 %v20343_v12 }
0x18d3   :  { %18964 = vmatprep.subr.bf16.mxu1 %v20402_v21 }
0x18d6   :  { %18965 = vmatpush3.bf16.msra.mxu1 %v20344_v15 }
0x18d7   :  { %18966 = vmatprep.subr.bf16.mxu1 %v20402_v21 }
0x18da   :  { %18967 = vmatpush3.bf16.msra.mxu1 %v20345_v37 }
0x18db   :  { %18968 = vmatprep.subr.bf16.mxu1 %v20402_v21 }
0x18de   :  { %18969 = vmatpush3.bf16.msra.mxu1 %v20346_v17 }
0x18df   :  { %18970 = vmatprep.subr.bf16.mxu1 %v20402_v21 }
0x18e2   :  { %18971 = vmatpush3.bf16.msra.mxu1 %v20347_v16 }
0x18e3   :  { %18972 = vmatprep.subr.bf16.mxu1 %v20402_v21 }
0x18e6   :  { %18973 = vmatpush3.bf16.msra.mxu1 %v20348_v25 }
0x18e7   :  { %18974 = vmatprep.subr.bf16.mxu1 %v20402_v21 }
0x18ea   :  { %18975 = vmatpush3.bf16.msra.mxu1 %v20349_v31 }
0x18eb   :  { %18980 = vmatprep.subr.bf16.mxu1 %v20402_v21 }
0x18ed   :  { %18977 = vmatmul.mubr.bf16.vlgmr.msra.gmra.mrb[180].mxu1 %v14700_v4 }
0x18ee   :  { %18981 = vmatpush3.bf16.msra.mxu1 %v20350_v2  ;;  %18996 = vmatprep.mubr.msk.bf16.mxu1 %vm20403_vm7, %v20402_v21 }
0x18ef   :  { %18982 = vmatprep.subr.bf16.mxu1 %v20402_v21 }
0x18f2   :  { %18983 = vmatpush3.bf16.msra.mxu1 %v20351_v29 }
0x18f3   :  { %18984 = vmatprep.subr.bf16.mxu1 %v20402_v21 }
0x18f6   :  { %18985 = vmatpush3.bf16.msra.mxu1 %v20352_v59 }
0x18f7   :  { %18986 = vmatprep.subr.bf16.mxu1 %v20402_v21 }
0x18fa   :  { %18987 = vmatpush3.bf16.msra.mxu1 %v20353_v34 }
0x18fb   :  { %18988 = vmatprep.subr.bf16.mxu1 %v20402_v21 }
0x18fe   :  { %18989 = vmatpush3.bf16.msra.mxu1 %v20354_v23 }
0x18ff   :  { %18990 = vmatprep.subr.bf16.mxu1 %v20402_v21 }
0x1902   :  { %18991 = vmatpush3.bf16.msra.mxu1 %v20355_v19 }
0x1903   :  { %18992 = vmatprep.subr.bf16.mxu1 %v20402_v21 }
0x1906   :  { %18993 = vmatpush3.bf16.msra.mxu1 %v20356_v42 }
0x1907   :  { %18994 = vmatprep.subr.bf16.mxu1 %v20402_v21 }
0x190a   :  { %18995 = vmatpush3.bf16.msra.mxu1 %v20357_v48 }
0x190b   :  { %19000 = vmatprep.subr.bf16.mxu1 %v20402_v21 }
0x190d   :  { %18997 = vmatmul.mubr.bf16.vlgmr.msra.gmra.mrb[180].mxu1 %v14807_v1 }
0x190e   :  { %19001 = vmatpush3.bf16.msra.mxu1 %v20358_v63  ;;  %19016 = vmatprep.mubr.msk.bf16.mxu1 %vm20403_vm7, %v20402_v21 }
0x190f   :  { %19002 = vmatprep.subr.bf16.mxu1 %v20402_v21 }
0x1912   :  { %19003 = vmatpush3.bf16.msra.mxu1 %v20359_v33 }
0x1913   :  { %19004 = vmatprep.subr.bf16.mxu1 %v20402_v21 }
0x1916   :  { %19005 = vmatpush3.bf16.msra.mxu1 %v20360_v40 }
0x1917   :  { %19006 = vmatprep.subr.bf16.mxu1 %v20402_v21 }
0x191a   :  { %19007 = vmatpush3.bf16.msra.mxu1 %v20361_v28 }
0x191b   :  { %19008 = vmatprep.subr.bf16.mxu1 %v20402_v21 }
0x191e   :  { %19009 = vmatpush3.bf16.msra.mxu1 %v20362_v61 }
0x191f   :  { %19010 = vmatprep.subr.bf16.mxu1 %v20402_v21 }
0x1922   :  { %19011 = vmatpush3.bf16.msra.mxu1 %v20363_v50 }
0x1923   :  { %19012 = vmatprep.subr.bf16.mxu1 %v20402_v21 }
0x1926   :  { %19013 = vmatpush3.bf16.msra.mxu1 %v20364_v49 }
0x1927   :  { %19014 = vmatprep.subr.bf16.mxu1 %v20402_v21 }
0x192a   :  { %19015 = vmatpush3.bf16.msra.mxu1 %v20365_v9 }
0x192d   :  { %19017 = vmatmul.mubr.bf16.vlgmr.msra.gmra.mrb[180].mxu1 %v14914_v10 }
0x1a00   :  { %v14998_v43 = vpop.f32.mrb[180].mxu1 }
0x1a01   :  { %v19046_v56 = vadd.f32 %v15955_v26, %v14998_v43  ;;  %v19018_v46 = vpop.f32.mrb[181].mxu1 }
0x1a02   :  { %v15001_v54 = vpop.f32.mrb[182].mxu1 }
0x1a03   :  { %v19019_v53 = vpop.f32.mrb[183].mxu1  ;;  %15006 = vst.msk [vmem:[#allocation2] sm:$0x3] %vm15005_vm8, %v19046_v56 }
0x1a04   :  { %20387 = shalt.err (!%p20384_p4)
}
0x1a05   :  { %s20388_s17 = scalar_lea.hbm %s26209_s18, 32 }
0x1a06   :  { %p20389_p5 = scmp.ne.s32.totalorder %s26209_s18, %s20388_s17  ;;  %p20392_p6 = scmp.lt.u32.totalorder %s20388_s17, %s26209_s18 }
0x1a08   :  { %p20394_p7 = pnand %p20392_p6, %p20389_p5 }
0x1a0a   :  { %20397 = shalt.err (!%p20394_p7)
}
0x1a0b   :  { %15016 = dma.vmem_to_hbm [thread:$0]  %s15014_s9, 32, %s26209_s18, [#allocation3]  }
0x1a0c   :  { %20398 = dma.done.wait [#allocation3], 32  }
0x1a0d   :  { %20399 = vsyncadd [#allocation3], 4294967264 }
0x1a0e   :  { %15020 = vsyncpa [#allocation3], 1 }

</bundles_post_ra>
